<compile_context>
chip_gen: v7x
topology: tpu7x:2x2x1
jax: 0.10.0
libtpu: 0.0.40
codegen_flags: <defaults>
</compile_context>

<pallas_src>
import jax
import jax.numpy as jnp
import numpy as np
from jax import lax
from jax.experimental import pallas as pl
from jax.experimental.pallas import tpu as pltpu

D_EMB = 1536                 # per-embedding feature size (fixed by the module)
D_IN = 3 * D_EMB             # 4608 = cat([pos, neg, anchor], dim=1)
D_HID = 768
N_CLS = 2
N_CLS_PAD = 128              # pad the tiny class dim up to one full lane group
LN_EPS = 1e-5                # torch.nn.LayerNorm default
TRIPLET_MARGIN = 1.0         # torch.nn.TripletMarginLoss defaults
TRIPLET_EPS = 1e-6
NEG_BIG = -1e30              # bias for padded logit columns (exp -> exactly 0)


def _combined_loss_kernel(label_ref,                       # SMEM (B,) int32, scalar-prefetched
                          pos_ref, neg_ref, anc_ref,       # (B, 1536) f32
                          w1_ref,                          # (4608, 768) bf16
                          b1_ref, g_ref, beta_ref,         # (1, 768) f32
                          w2_ref,                          # (768, 128) bf16, padded
                          b2_ref,                          # (1, 128) f32, padded with -1e30
                          loss_ref):                       # (1, 1) f32
    B = pos_ref.shape[0]

    # ---- TripletMarginLoss (p=2, margin=1, eps=1e-6, reduction=mean) ----
    d_ap = jnp.sqrt(jnp.sum((anc_ref[...] - pos_ref[...] + TRIPLET_EPS) ** 2,
                            axis=-1, keepdims=True))
    d_an = jnp.sqrt(jnp.sum((anc_ref[...] - neg_ref[...] + TRIPLET_EPS) ** 2,
                            axis=-1, keepdims=True))
    loss_tri = jnp.mean(jnp.maximum(d_ap - d_an + TRIPLET_MARGIN, 0.0))

    # ---- Linear(4608 -> 768): three static K-slices of W1, one per embedding
    # (cat([pos, neg, anchor], dim=1) is never materialised). bf16 operands on
    # the MXU, f32 accumulation. ----
    acc = jnp.zeros((B, D_HID), jnp.float32)
    for j, emb_ref in enumerate((pos_ref, neg_ref, anc_ref)):
        acc = acc + jnp.dot(emb_ref[...].astype(jnp.bfloat16),
                            w1_ref[pl.ds(j * D_EMB, D_EMB), :],
                            preferred_element_type=jnp.float32)

    # ---- bias + ReLU + LayerNorm(768) ----
    h = jnp.maximum(acc + b1_ref[...], 0.0)
    mu = jnp.mean(h, axis=-1, keepdims=True)
    var = jnp.mean((h - mu) ** 2, axis=-1, keepdims=True)
    hn = (h - mu) * lax.rsqrt(var + LN_EPS)
    hn = hn * g_ref[...] + beta_ref[...]
    # TODO(synk): nn.Dropout(0.2) treated as eval-mode identity (deterministic
    # kernel); training-mode dropout would need pltpu.prng_seed + stateful_bernoulli.

    # ---- Linear(768 -> 2), padded to 128 output lanes. Padded columns carry a
    # finite -1e30 bias; the CE tail stays f32 so exp underflows to exactly 0. ----
    logits = jnp.dot(hn.astype(jnp.bfloat16), w2_ref[...],
                     preferred_element_type=jnp.float32) + b2_ref[...]

    # ---- CrossEntropyLoss (mean). Target gather built in-kernel from the
    # scalar-prefetched labels (no wrapper-side one-hot). ----
    m = jnp.max(logits, axis=-1, keepdims=True)
    lse = m + jnp.log(jnp.sum(jnp.exp(logits - m), axis=-1, keepdims=True))
    col = lax.broadcasted_iota(jnp.int32, (1, N_CLS_PAD), 1)
    ce_sum = jnp.sum(lse)
    for i in range(B):                                   # B is small and static
        tgt_row = jnp.where(col == label_ref[i], logits[i:i + 1, :], 0.0)
        ce_sum = ce_sum - jnp.sum(tgt_row)
    loss_ce = ce_sum / B

    loss_ref[...] = jnp.reshape(loss_ce + loss_tri, (1, 1))


def prepare_params(params):
    """One-time parameter preprocessing, hoisted out of the per-call hot path.

    W1 is stored persistently in bf16 (halves the dominant HBM stream), W2 is
    padded to 128 output lanes once and stored bf16, b2 is padded once with a
    large-negative bias for the fake classes, and 1-D vectors become (1, 768).
    """
    w1, b1, g, beta, w2, b2 = params
    w1_bf = w1.astype(jnp.bfloat16)
    w2p = (jnp.zeros((D_HID, N_CLS_PAD), jnp.bfloat16)
           .at[:, :N_CLS].set(w2.astype(jnp.bfloat16)))
    b2p = jnp.full((1, N_CLS_PAD), NEG_BIG, jnp.float32).at[0, :N_CLS].set(b2)
    return (w1_bf, b1.reshape(1, D_HID), g.reshape(1, D_HID),
            beta.reshape(1, D_HID), w2p, b2p)


def combined_loss(pos, neg, anc, label, prepared):
    """Pallas forward of CombinedLoss. Returns a scalar f32 loss."""
    B = pos.shape[0]
    w1_bf, b1_2d, g_2d, beta_2d, w2p, b2p = prepared
    label_i32 = label.astype(jnp.int32)      # 32 bytes; scalar-prefetched to SMEM

    flops = 2 * B * D_IN * D_HID + 2 * B * D_HID * N_CLS_PAD
    bytes_accessed = (D_IN * D_HID * 2 + D_HID * N_CLS_PAD * 2
                      + 3 * B * D_EMB * 4 + 3 * D_HID * 4
                      + (D_HID + N_CLS_PAD) * 4 + B * 4 + 4)
    transcendentals = B * N_CLS_PAD + 4 * B

    out = pl.pallas_call(
        _combined_loss_kernel,
        out_shape=jax.ShapeDtypeStruct((1, 1), jnp.float32),
        grid_spec=pltpu.PrefetchScalarGridSpec(
            num_scalar_prefetch=1,            # labels -> SMEM
            grid=(1,),                        # single step: no pipeline overhead
            in_specs=[
                pl.BlockSpec((B, D_EMB), lambda i, lbl: (0, 0)),         # positive
                pl.BlockSpec((B, D_EMB), lambda i, lbl: (0, 0)),         # negative
                pl.BlockSpec((B, D_EMB), lambda i, lbl: (0, 0)),         # anchor
                pl.BlockSpec((D_IN, D_HID), lambda i, lbl: (0, 0)),      # W1 (bf16)
                pl.BlockSpec((1, D_HID), lambda i, lbl: (0, 0)),         # b1
                pl.BlockSpec((1, D_HID), lambda i, lbl: (0, 0)),         # LN gamma
                pl.BlockSpec((1, D_HID), lambda i, lbl: (0, 0)),         # LN beta
                pl.BlockSpec((D_HID, N_CLS_PAD), lambda i, lbl: (0, 0)), # W2 (bf16, padded)
                pl.BlockSpec((1, N_CLS_PAD), lambda i, lbl: (0, 0)),     # b2 (padded)
            ],
            out_specs=pl.BlockSpec((1, 1), lambda i, lbl: (0, 0)),
        ),
        compiler_params=pltpu.CompilerParams(
            dimension_semantics=("arbitrary",)),
        cost_estimate=pl.CostEstimate(flops=flops,
                                      transcendentals=transcendentals,
                                      bytes_accessed=bytes_accessed),
    )(label_i32, pos, neg, anc, w1_bf, b1_2d, g_2d, beta_2d, w2p, b2p)
    return out[0, 0]


def reference_loss(pos, neg, anc, label, params):
    """Pure-JAX f32 reference mirroring the PyTorch forward (Dropout in eval)."""
    w1, b1, g, beta, w2, b2 = params
    x = jnp.concatenate([pos, neg, anc], axis=1)
    h = jnp.maximum(x @ w1 + b1, 0.0)
    mu = h.mean(-1, keepdims=True)
    var = ((h - mu) ** 2).mean(-1, keepdims=True)
    hn = (h - mu) / jnp.sqrt(var + LN_EPS) * g + beta
    logits = hn @ w2 + b2
    lse = jax.scipy.special.logsumexp(logits, axis=-1)
    ce = jnp.mean(lse - logits[jnp.arange(label.shape[0]), label])
    d_ap = jnp.sqrt(jnp.sum((anc - pos + TRIPLET_EPS) ** 2, -1))
    d_an = jnp.sqrt(jnp.sum((anc - neg + TRIPLET_EPS) ** 2, -1))
    tri = jnp.mean(jnp.maximum(d_ap - d_an + TRIPLET_MARGIN, 0.0))
    return ce + tri


def init_params(key):
    k1, k2, k3, k4 = jax.random.split(key, 4)
    w1 = 0.02 * jax.random.normal(k1, (D_IN, D_HID), jnp.float32)
    b1 = 0.01 * jax.random.normal(k2, (D_HID,), jnp.float32)
    g = jnp.ones((D_HID,), jnp.float32)
    beta = jnp.zeros((D_HID,), jnp.float32)
    w2 = 0.02 * jax.random.normal(k3, (D_HID, N_CLS), jnp.float32)
    b2 = 0.01 * jax.random.normal(k4, (N_CLS,), jnp.float32)
    return (w1, b1, g, beta, w2, b2)


if __name__ == "__main__":
    B = 8  # small batch; feature dims are fixed at 1536 by the module itself
    key = jax.random.PRNGKey(0)
    kp, kn, ka, kl, kw = jax.random.split(key, 5)
    pos = jax.random.normal(kp, (B, D_EMB), jnp.float32)
    neg = jax.random.normal(kn, (B, D_EMB), jnp.float32)
    anc = jax.random.normal(ka, (B, D_EMB), jnp.float32)
    label = jax.random.randint(kl, (B,), 0, N_CLS, jnp.int32)
    params = init_params(kw)

    # One-time preprocessing (bf16 W1, padded W2/b2) — not in the hot path.
    prepared = prepare_params(params)

    loss = jax.block_until_ready(combined_loss(pos, neg, anc, label, prepared))
    ref = jax.block_until_ready(reference_loss(pos, neg, anc, label, params))

    np.testing.assert_allclose(np.asarray(loss), np.asarray(ref),
                               rtol=1e-2, atol=1e-2)
    assert np.isfinite(np.asarray(loss))
    print("KERNEL_OK")
</pallas_src>

<mosaic_0001>
module attributes {stable_mosaic.version = 11 : i64} {
  func.func @_combined_loss_kernel(%arg0: i32, %arg1: memref<8xi32, #tpu.memory_space<smem>>, %arg2: memref<8x1536xf32, #tpu.memory_space<vmem>>, %arg3: memref<8x1536xf32, #tpu.memory_space<vmem>>, %arg4: memref<8x1536xf32, #tpu.memory_space<vmem>>, %arg5: memref<4608x768xbf16, #tpu.memory_space<vmem>>, %arg6: memref<1x768xf32, #tpu.memory_space<vmem>>, %arg7: memref<1x768xf32, #tpu.memory_space<vmem>>, %arg8: memref<1x768xf32, #tpu.memory_space<vmem>>, %arg9: memref<768x128xbf16, #tpu.memory_space<vmem>>, %arg10: memref<1x128xf32, #tpu.memory_space<vmem>>, %arg11: memref<1x1xf32, #tpu.memory_space<vmem>>) attributes {dimension_semantics = [#tpu.dimension_semantics<arbitrary>], iteration_bounds = array<i64: 1>, scalar_prefetch = 1 : i64, scratch_operands = 0 : i64, tpu.core_type = #tpu.core_type<tc>, window_params = [{pipeline_mode = #tpu.pipeline_mode<synchronous>, transform_indices = @transform_0, window_bounds = array<i64: 8, 1536>}, {pipeline_mode = #tpu.pipeline_mode<synchronous>, transform_indices = @transform_1, window_bounds = array<i64: 8, 1536>}, {pipeline_mode = #tpu.pipeline_mode<synchronous>, transform_indices = @transform_2, window_bounds = array<i64: 8, 1536>}, {pipeline_mode = #tpu.pipeline_mode<synchronous>, transform_indices = @transform_3, window_bounds = array<i64: 4608, 768>}, {pipeline_mode = #tpu.pipeline_mode<synchronous>, transform_indices = @transform_4, window_bounds = array<i64: 1, 768>}, {pipeline_mode = #tpu.pipeline_mode<synchronous>, transform_indices = @transform_5, window_bounds = array<i64: 1, 768>}, {pipeline_mode = #tpu.pipeline_mode<synchronous>, transform_indices = @transform_6, window_bounds = array<i64: 1, 768>}, {pipeline_mode = #tpu.pipeline_mode<synchronous>, transform_indices = @transform_7, window_bounds = array<i64: 768, 128>}, {pipeline_mode = #tpu.pipeline_mode<synchronous>, transform_indices = @transform_8, window_bounds = array<i64: 1, 128>}, {pipeline_mode = #tpu.pipeline_mode<synchronous>, transform_indices = @transform_9, window_bounds = array<i64: 1, 1>}]} {
    %c0 = arith.constant 0 : index
    %c0_0 = arith.constant 0 : index
    %0 = vector.load %arg4[%c0, %c0_0] : memref<8x1536xf32, #tpu.memory_space<vmem>>, vector<8x1536xf32>
    %c0_1 = arith.constant 0 : index
    %c0_2 = arith.constant 0 : index
    %1 = vector.load %arg2[%c0_1, %c0_2] : memref<8x1536xf32, #tpu.memory_space<vmem>>, vector<8x1536xf32>
    %2 = arith.subf %0, %1 : vector<8x1536xf32>
    %cst = arith.constant 9.99999997E-7 : f32
    %3 = vector.broadcast %cst : f32 to vector<8x1536xf32>
    %4 = arith.addf %2, %3 : vector<8x1536xf32>
    %5 = arith.mulf %4, %4 : vector<8x1536xf32>
    %cst_3 = arith.constant dense<0.000000e+00> : vector<8xf32>
    %6 = vector.multi_reduction <add>, %5, %cst_3 [1] : vector<8x1536xf32> to vector<8xf32>
    %7 = vector.shape_cast %6 : vector<8xf32> to vector<8x1xf32>
    %8 = math.sqrt %7 : vector<8x1xf32>
    %c0_4 = arith.constant 0 : index
    %c0_5 = arith.constant 0 : index
    %9 = vector.load %arg4[%c0_4, %c0_5] : memref<8x1536xf32, #tpu.memory_space<vmem>>, vector<8x1536xf32>
    %c0_6 = arith.constant 0 : index
    %c0_7 = arith.constant 0 : index
    %10 = vector.load %arg3[%c0_6, %c0_7] : memref<8x1536xf32, #tpu.memory_space<vmem>>, vector<8x1536xf32>
    %11 = arith.subf %9, %10 : vector<8x1536xf32>
    %cst_8 = arith.constant 9.99999997E-7 : f32
    %12 = vector.broadcast %cst_8 : f32 to vector<8x1536xf32>
    %13 = arith.addf %11, %12 : vector<8x1536xf32>
    %14 = arith.mulf %13, %13 : vector<8x1536xf32>
    %cst_9 = arith.constant dense<0.000000e+00> : vector<8xf32>
    %15 = vector.multi_reduction <add>, %14, %cst_9 [1] : vector<8x1536xf32> to vector<8xf32>
    %16 = vector.shape_cast %15 : vector<8xf32> to vector<8x1xf32>
    %17 = math.sqrt %16 : vector<8x1xf32>
    %18 = arith.subf %8, %17 : vector<8x1xf32>
    %cst_10 = arith.constant 1.000000e+00 : f32
    %19 = vector.broadcast %cst_10 : f32 to vector<8x1xf32>
    %20 = arith.addf %18, %19 : vector<8x1xf32>
    %cst_11 = arith.constant 0.000000e+00 : f32
    %21 = vector.broadcast %cst_11 : f32 to vector<8x1xf32>
    %22 = arith.maximumf %20, %21 : vector<8x1xf32>
    %23 = vector.shape_cast %22 : vector<8x1xf32> to vector<1x8x1xf32>
    %cst_12 = arith.constant dense<0.000000e+00> : vector<1xf32>
    %24 = vector.multi_reduction <add>, %23, %cst_12 [1, 2] : vector<1x8x1xf32> to vector<1xf32>
    %25 = vector.shape_cast %24 : vector<1xf32> to vector<1x1x1xf32>
    %26 = vector.extract %25[0, 0, 0] : f32 from vector<1x1x1xf32>
    %cst_13 = arith.constant 8.000000e+00 : f32
    %27 = arith.divf %26, %cst_13 : f32
    %cst_14 = arith.constant 0.000000e+00 : f32
    %28 = vector.broadcast %cst_14 : f32 to vector<8x768xf32>
    %c0_15 = arith.constant 0 : index
    %c0_16 = arith.constant 0 : index
    %29 = vector.load %arg2[%c0_15, %c0_16] : memref<8x1536xf32, #tpu.memory_space<vmem>>, vector<8x1536xf32>
    %30 = arith.truncf %29 : vector<8x1536xf32> to vector<8x1536xbf16>
    %c0_17 = arith.constant 0 : index
    %c0_18 = arith.constant 0 : index
    %31 = vector.load %arg5[%c0_17, %c0_18] : memref<4608x768xbf16, #tpu.memory_space<vmem>>, vector<1536x768xbf16>
    %cst_19 = arith.constant dense<0.000000e+00> : vector<8x768xf32>
    %32 = tpu.matmul %30, %31, %cst_19 {dimension_numbers = #tpu.dot_dimension_numbers<[1], [0], [0], [1], [0, 0, 1, 1], [], []>} : vector<8x1536xbf16>, vector<1536x768xbf16>, vector<8x768xf32> -> vector<8x768xf32>
    %33 = arith.addf %28, %32 : vector<8x768xf32>
    %c0_20 = arith.constant 0 : index
    %c0_21 = arith.constant 0 : index
    %34 = vector.load %arg3[%c0_20, %c0_21] : memref<8x1536xf32, #tpu.memory_space<vmem>>, vector<8x1536xf32>
    %35 = arith.truncf %34 : vector<8x1536xf32> to vector<8x1536xbf16>
    %c1536 = arith.constant 1536 : index
    %c0_22 = arith.constant 0 : index
    %36 = vector.load %arg5[%c1536, %c0_22] : memref<4608x768xbf16, #tpu.memory_space<vmem>>, vector<1536x768xbf16>
    %cst_23 = arith.constant dense<0.000000e+00> : vector<8x768xf32>
    %37 = tpu.matmul %35, %36, %cst_23 {dimension_numbers = #tpu.dot_dimension_numbers<[1], [0], [0], [1], [0, 0, 1, 1], [], []>} : vector<8x1536xbf16>, vector<1536x768xbf16>, vector<8x768xf32> -> vector<8x768xf32>
    %38 = arith.addf %33, %37 : vector<8x768xf32>
    %c0_24 = arith.constant 0 : index
    %c0_25 = arith.constant 0 : index
    %39 = vector.load %arg4[%c0_24, %c0_25] : memref<8x1536xf32, #tpu.memory_space<vmem>>, vector<8x1536xf32>
    %40 = arith.truncf %39 : vector<8x1536xf32> to vector<8x1536xbf16>
    %c3072 = arith.constant 3072 : index
    %c0_26 = arith.constant 0 : index
    %41 = vector.load %arg5[%c3072, %c0_26] : memref<4608x768xbf16, #tpu.memory_space<vmem>>, vector<1536x768xbf16>
    %cst_27 = arith.constant dense<0.000000e+00> : vector<8x768xf32>
    %42 = tpu.matmul %40, %41, %cst_27 {dimension_numbers = #tpu.dot_dimension_numbers<[1], [0], [0], [1], [0, 0, 1, 1], [], []>} : vector<8x1536xbf16>, vector<1536x768xbf16>, vector<8x768xf32> -> vector<8x768xf32>
    %43 = arith.addf %38, %42 : vector<8x768xf32>
    %c0_28 = arith.constant 0 : index
    %c0_29 = arith.constant 0 : index
    %44 = vector.load %arg6[%c0_28, %c0_29] : memref<1x768xf32, #tpu.memory_space<vmem>>, vector<1x768xf32>
    %45 = vector.broadcast %44 : vector<1x768xf32> to vector<8x768xf32>
    %46 = arith.addf %43, %45 : vector<8x768xf32>
    %cst_30 = arith.constant 0.000000e+00 : f32
    %47 = vector.broadcast %cst_30 : f32 to vector<8x768xf32>
    %48 = arith.maximumf %46, %47 : vector<8x768xf32>
    %cst_31 = arith.constant dense<0.000000e+00> : vector<8xf32>
    %49 = vector.multi_reduction <add>, %48, %cst_31 [1] : vector<8x768xf32> to vector<8xf32>
    %50 = vector.shape_cast %49 : vector<8xf32> to vector<8x1xf32>
    %cst_32 = arith.constant 7.680000e+02 : f32
    %51 = vector.broadcast %cst_32 : f32 to vector<8x1xf32>
    %52 = arith.divf %50, %51 : vector<8x1xf32>
    %53 = vector.broadcast %52 : vector<8x1xf32> to vector<8x768xf32>
    %54 = arith.subf %48, %53 : vector<8x768xf32>
    %55 = arith.mulf %54, %54 : vector<8x768xf32>
    %cst_33 = arith.constant dense<0.000000e+00> : vector<8xf32>
    %56 = vector.multi_reduction <add>, %55, %cst_33 [1] : vector<8x768xf32> to vector<8xf32>
    %57 = vector.shape_cast %56 : vector<8xf32> to vector<8x1xf32>
    %cst_34 = arith.constant 7.680000e+02 : f32
    %58 = vector.broadcast %cst_34 : f32 to vector<8x1xf32>
    %59 = arith.divf %57, %58 : vector<8x1xf32>
    %60 = vector.broadcast %52 : vector<8x1xf32> to vector<8x768xf32>
    %61 = arith.subf %48, %60 : vector<8x768xf32>
    %cst_35 = arith.constant 9.99999974E-6 : f32
    %62 = vector.broadcast %cst_35 : f32 to vector<8x1xf32>
    %63 = arith.addf %59, %62 : vector<8x1xf32>
    %64 = math.rsqrt %63 : vector<8x1xf32>
    %65 = vector.broadcast %64 : vector<8x1xf32> to vector<8x768xf32>
    %66 = arith.mulf %61, %65 : vector<8x768xf32>
    %c0_36 = arith.constant 0 : index
    %c0_37 = arith.constant 0 : index
    %67 = vector.load %arg7[%c0_36, %c0_37] : memref<1x768xf32, #tpu.memory_space<vmem>>, vector<1x768xf32>
    %68 = vector.broadcast %67 : vector<1x768xf32> to vector<8x768xf32>
    %69 = arith.mulf %66, %68 : vector<8x768xf32>
    %c0_38 = arith.constant 0 : index
    %c0_39 = arith.constant 0 : index
    %70 = vector.load %arg8[%c0_38, %c0_39] : memref<1x768xf32, #tpu.memory_space<vmem>>, vector<1x768xf32>
    %71 = vector.broadcast %70 : vector<1x768xf32> to vector<8x768xf32>
    %72 = arith.addf %69, %71 : vector<8x768xf32>
    %73 = arith.truncf %72 : vector<8x768xf32> to vector<8x768xbf16>
    %c0_40 = arith.constant 0 : index
    %c0_41 = arith.constant 0 : index
    %74 = vector.load %arg9[%c0_40, %c0_41] : memref<768x128xbf16, #tpu.memory_space<vmem>>, vector<768x128xbf16>
    %cst_42 = arith.constant dense<0.000000e+00> : vector<8x128xf32>
    %75 = tpu.matmul %73, %74, %cst_42 {dimension_numbers = #tpu.dot_dimension_numbers<[1], [0], [0], [1], [0, 0, 1, 1], [], []>} : vector<8x768xbf16>, vector<768x128xbf16>, vector<8x128xf32> -> vector<8x128xf32>
    %c0_43 = arith.constant 0 : index
    %c0_44 = arith.constant 0 : index
    %76 = vector.load %arg10[%c0_43, %c0_44] : memref<1x128xf32, #tpu.memory_space<vmem>>, vector<1x128xf32>
    %77 = vector.broadcast %76 : vector<1x128xf32> to vector<8x128xf32>
    %78 = arith.addf %75, %77 : vector<8x128xf32>
    %cst_45 = arith.constant dense<0xFF800000> : vector<8xf32>
    %79 = vector.multi_reduction <maximumf>, %78, %cst_45 [1] : vector<8x128xf32> to vector<8xf32>
    %80 = vector.shape_cast %79 : vector<8xf32> to vector<8x1xf32>
    %81 = vector.broadcast %80 : vector<8x1xf32> to vector<8x128xf32>
    %82 = arith.subf %78, %81 : vector<8x128xf32>
    %83 = math.exp %82 : vector<8x128xf32>
    %cst_46 = arith.constant dense<0.000000e+00> : vector<8xf32>
    %84 = vector.multi_reduction <add>, %83, %cst_46 [1] : vector<8x128xf32> to vector<8xf32>
    %85 = vector.shape_cast %84 : vector<8xf32> to vector<8x1xf32>
    %86 = math.log %85 : vector<8x1xf32>
    %87 = arith.addf %80, %86 : vector<8x1xf32>
    %88 = tpu.iota {dimensions = array<i32: 1>} : vector<1x128xi32>
    %89 = vector.shape_cast %87 : vector<8x1xf32> to vector<1x8x1xf32>
    %cst_47 = arith.constant dense<0.000000e+00> : vector<1xf32>
    %90 = vector.multi_reduction <add>, %89, %cst_47 [1, 2] : vector<1x8x1xf32> to vector<1xf32>
    %91 = vector.shape_cast %90 : vector<1xf32> to vector<1x1x1xf32>
    %92 = vector.extract %91[0, 0, 0] : f32 from vector<1x1x1xf32>
    %c0_48 = arith.constant 0 : index
    %93 = memref.load %arg1[%c0_48] : memref<8xi32, #tpu.memory_space<smem>>
    %94 = vector.broadcast %93 : i32 to vector<1x128xi32>
    %95 = arith.cmpi eq, %88, %94 : vector<1x128xi32>
    %96 = vector.extract_strided_slice %78 {offsets = [0, 0], sizes = [1, 128], strides = [1, 1]} : vector<8x128xf32> to vector<1x128xf32>
    %cst_49 = arith.constant 0.000000e+00 : f32
    %97 = vector.broadcast %cst_49 : f32 to vector<1x128xf32>
    %98 = arith.select %95, %96, %97 : vector<1x128xi1>, vector<1x128xf32>
    %99 = vector.shape_cast %98 : vector<1x128xf32> to vector<1x1x128xf32>
    %cst_50 = arith.constant dense<0.000000e+00> : vector<1xf32>
    %100 = vector.multi_reduction <add>, %99, %cst_50 [1, 2] : vector<1x1x128xf32> to vector<1xf32>
    %101 = vector.shape_cast %100 : vector<1xf32> to vector<1x1x1xf32>
    %102 = vector.extract %101[0, 0, 0] : f32 from vector<1x1x1xf32>
    %103 = arith.subf %92, %102 : f32
    %c1 = arith.constant 1 : index
    %104 = memref.load %arg1[%c1] : memref<8xi32, #tpu.memory_space<smem>>
    %105 = vector.broadcast %104 : i32 to vector<1x128xi32>
    %106 = arith.cmpi eq, %88, %105 : vector<1x128xi32>
    %107 = vector.extract_strided_slice %78 {offsets = [1, 0], sizes = [1, 128], strides = [1, 1]} : vector<8x128xf32> to vector<1x128xf32>
    %cst_51 = arith.constant 0.000000e+00 : f32
    %108 = vector.broadcast %cst_51 : f32 to vector<1x128xf32>
    %109 = arith.select %106, %107, %108 : vector<1x128xi1>, vector<1x128xf32>
    %110 = vector.shape_cast %109 : vector<1x128xf32> to vector<1x1x128xf32>
    %cst_52 = arith.constant dense<0.000000e+00> : vector<1xf32>
    %111 = vector.multi_reduction <add>, %110, %cst_52 [1, 2] : vector<1x1x128xf32> to vector<1xf32>
    %112 = vector.shape_cast %111 : vector<1xf32> to vector<1x1x1xf32>
    %113 = vector.extract %112[0, 0, 0] : f32 from vector<1x1x1xf32>
    %114 = arith.subf %103, %113 : f32
    %c2 = arith.constant 2 : index
    %115 = memref.load %arg1[%c2] : memref<8xi32, #tpu.memory_space<smem>>
    %116 = vector.broadcast %115 : i32 to vector<1x128xi32>
    %117 = arith.cmpi eq, %88, %116 : vector<1x128xi32>
    %118 = vector.extract_strided_slice %78 {offsets = [2, 0], sizes = [1, 128], strides = [1, 1]} : vector<8x128xf32> to vector<1x128xf32>
    %cst_53 = arith.constant 0.000000e+00 : f32
    %119 = vector.broadcast %cst_53 : f32 to vector<1x128xf32>
    %120 = arith.select %117, %118, %119 : vector<1x128xi1>, vector<1x128xf32>
    %121 = vector.shape_cast %120 : vector<1x128xf32> to vector<1x1x128xf32>
    %cst_54 = arith.constant dense<0.000000e+00> : vector<1xf32>
    %122 = vector.multi_reduction <add>, %121, %cst_54 [1, 2] : vector<1x1x128xf32> to vector<1xf32>
    %123 = vector.shape_cast %122 : vector<1xf32> to vector<1x1x1xf32>
    %124 = vector.extract %123[0, 0, 0] : f32 from vector<1x1x1xf32>
    %125 = arith.subf %114, %124 : f32
    %c3 = arith.constant 3 : index
    %126 = memref.load %arg1[%c3] : memref<8xi32, #tpu.memory_space<smem>>
    %127 = vector.broadcast %126 : i32 to vector<1x128xi32>
    %128 = arith.cmpi eq, %88, %127 : vector<1x128xi32>
    %129 = vector.extract_strided_slice %78 {offsets = [3, 0], sizes = [1, 128], strides = [1, 1]} : vector<8x128xf32> to vector<1x128xf32>
    %cst_55 = arith.constant 0.000000e+00 : f32
    %130 = vector.broadcast %cst_55 : f32 to vector<1x128xf32>
    %131 = arith.select %128, %129, %130 : vector<1x128xi1>, vector<1x128xf32>
    %132 = vector.shape_cast %131 : vector<1x128xf32> to vector<1x1x128xf32>
    %cst_56 = arith.constant dense<0.000000e+00> : vector<1xf32>
    %133 = vector.multi_reduction <add>, %132, %cst_56 [1, 2] : vector<1x1x128xf32> to vector<1xf32>
    %134 = vector.shape_cast %133 : vector<1xf32> to vector<1x1x1xf32>
    %135 = vector.extract %134[0, 0, 0] : f32 from vector<1x1x1xf32>
    %136 = arith.subf %125, %135 : f32
    %c4 = arith.constant 4 : index
    %137 = memref.load %arg1[%c4] : memref<8xi32, #tpu.memory_space<smem>>
    %138 = vector.broadcast %137 : i32 to vector<1x128xi32>
    %139 = arith.cmpi eq, %88, %138 : vector<1x128xi32>
    %140 = vector.extract_strided_slice %78 {offsets = [4, 0], sizes = [1, 128], strides = [1, 1]} : vector<8x128xf32> to vector<1x128xf32>
    %cst_57 = arith.constant 0.000000e+00 : f32
    %141 = vector.broadcast %cst_57 : f32 to vector<1x128xf32>
    %142 = arith.select %139, %140, %141 : vector<1x128xi1>, vector<1x128xf32>
    %143 = vector.shape_cast %142 : vector<1x128xf32> to vector<1x1x128xf32>
    %cst_58 = arith.constant dense<0.000000e+00> : vector<1xf32>
    %144 = vector.multi_reduction <add>, %143, %cst_58 [1, 2] : vector<1x1x128xf32> to vector<1xf32>
    %145 = vector.shape_cast %144 : vector<1xf32> to vector<1x1x1xf32>
    %146 = vector.extract %145[0, 0, 0] : f32 from vector<1x1x1xf32>
    %147 = arith.subf %136, %146 : f32
    %c5 = arith.constant 5 : index
    %148 = memref.load %arg1[%c5] : memref<8xi32, #tpu.memory_space<smem>>
    %149 = vector.broadcast %148 : i32 to vector<1x128xi32>
    %150 = arith.cmpi eq, %88, %149 : vector<1x128xi32>
    %151 = vector.extract_strided_slice %78 {offsets = [5, 0], sizes = [1, 128], strides = [1, 1]} : vector<8x128xf32> to vector<1x128xf32>
    %cst_59 = arith.constant 0.000000e+00 : f32
    %152 = vector.broadcast %cst_59 : f32 to vector<1x128xf32>
    %153 = arith.select %150, %151, %152 : vector<1x128xi1>, vector<1x128xf32>
    %154 = vector.shape_cast %153 : vector<1x128xf32> to vector<1x1x128xf32>
    %cst_60 = arith.constant dense<0.000000e+00> : vector<1xf32>
    %155 = vector.multi_reduction <add>, %154, %cst_60 [1, 2] : vector<1x1x128xf32> to vector<1xf32>
    %156 = vector.shape_cast %155 : vector<1xf32> to vector<1x1x1xf32>
    %157 = vector.extract %156[0, 0, 0] : f32 from vector<1x1x1xf32>
    %158 = arith.subf %147, %157 : f32
    %c6 = arith.constant 6 : index
    %159 = memref.load %arg1[%c6] : memref<8xi32, #tpu.memory_space<smem>>
    %160 = vector.broadcast %159 : i32 to vector<1x128xi32>
    %161 = arith.cmpi eq, %88, %160 : vector<1x128xi32>
    %162 = vector.extract_strided_slice %78 {offsets = [6, 0], sizes = [1, 128], strides = [1, 1]} : vector<8x128xf32> to vector<1x128xf32>
    %cst_61 = arith.constant 0.000000e+00 : f32
    %163 = vector.broadcast %cst_61 : f32 to vector<1x128xf32>
    %164 = arith.select %161, %162, %163 : vector<1x128xi1>, vector<1x128xf32>
    %165 = vector.shape_cast %164 : vector<1x128xf32> to vector<1x1x128xf32>
    %cst_62 = arith.constant dense<0.000000e+00> : vector<1xf32>
    %166 = vector.multi_reduction <add>, %165, %cst_62 [1, 2] : vector<1x1x128xf32> to vector<1xf32>
    %167 = vector.shape_cast %166 : vector<1xf32> to vector<1x1x1xf32>
    %168 = vector.extract %167[0, 0, 0] : f32 from vector<1x1x1xf32>
    %169 = arith.subf %158, %168 : f32
    %c7 = arith.constant 7 : index
    %170 = memref.load %arg1[%c7] : memref<8xi32, #tpu.memory_space<smem>>
    %171 = vector.broadcast %170 : i32 to vector<1x128xi32>
    %172 = arith.cmpi eq, %88, %171 : vector<1x128xi32>
    %173 = vector.extract_strided_slice %78 {offsets = [7, 0], sizes = [1, 128], strides = [1, 1]} : vector<8x128xf32> to vector<1x128xf32>
    %cst_63 = arith.constant 0.000000e+00 : f32
    %174 = vector.broadcast %cst_63 : f32 to vector<1x128xf32>
    %175 = arith.select %172, %173, %174 : vector<1x128xi1>, vector<1x128xf32>
    %176 = vector.shape_cast %175 : vector<1x128xf32> to vector<1x1x128xf32>
    %cst_64 = arith.constant dense<0.000000e+00> : vector<1xf32>
    %177 = vector.multi_reduction <add>, %176, %cst_64 [1, 2] : vector<1x1x128xf32> to vector<1xf32>
    %178 = vector.shape_cast %177 : vector<1xf32> to vector<1x1x1xf32>
    %179 = vector.extract %178[0, 0, 0] : f32 from vector<1x1x1xf32>
    %180 = arith.subf %169, %179 : f32
    %cst_65 = arith.constant 8.000000e+00 : f32
    %181 = arith.divf %180, %cst_65 : f32
    %182 = arith.addf %181, %27 : f32
    %183 = vector.broadcast %182 : f32 to vector<1x1xf32>
    %c0_66 = arith.constant 0 : index
    %c0_67 = arith.constant 0 : index
    %184 = vector.load %arg11[%c0_66, %c0_67] : memref<1x1xf32, #tpu.memory_space<vmem>>, vector<1x1xf32>
    tpu.vector_store %arg11[%c0_66, %c0_67], %183 {strides = array<i32>} : memref<1x1xf32, #tpu.memory_space<vmem>>, vector<1x1xf32>,
    return
  }
  func.func @transform_0(%arg0: i32, %arg1: memref<8xi32, #tpu.memory_space<smem>>) -> (i32, i32) {
    %c0_i32 = arith.constant 0 : i32
    %c0_i32_0 = arith.constant 0 : i32
    %c0_i32_1 = arith.constant 0 : i32
    return %c0_i32, %c0_i32_0 : i32, i32
  }
  func.func @transform_1(%arg0: i32, %arg1: memref<8xi32, #tpu.memory_space<smem>>) -> (i32, i32) {
    %c0_i32 = arith.constant 0 : i32
    %c0_i32_0 = arith.constant 0 : i32
    %c0_i32_1 = arith.constant 0 : i32
    return %c0_i32, %c0_i32_0 : i32, i32
  }
  func.func @transform_2(%arg0: i32, %arg1: memref<8xi32, #tpu.memory_space<smem>>) -> (i32, i32) {
    %c0_i32 = arith.constant 0 : i32
    %c0_i32_0 = arith.constant 0 : i32
    %c0_i32_1 = arith.constant 0 : i32
    return %c0_i32, %c0_i32_0 : i32, i32
  }
  func.func @transform_3(%arg0: i32, %arg1: memref<8xi32, #tpu.memory_space<smem>>) -> (i32, i32) {
    %c0_i32 = arith.constant 0 : i32
    %c0_i32_0 = arith.constant 0 : i32
    %c0_i32_1 = arith.constant 0 : i32
    return %c0_i32, %c0_i32_0 : i32, i32
  }
  func.func @transform_4(%arg0: i32, %arg1: memref<8xi32, #tpu.memory_space<smem>>) -> (i32, i32) {
    %c0_i32 = arith.constant 0 : i32
    %c0_i32_0 = arith.constant 0 : i32
    %c0_i32_1 = arith.constant 0 : i32
    return %c0_i32, %c0_i32_0 : i32, i32
  }
  func.func @transform_5(%arg0: i32, %arg1: memref<8xi32, #tpu.memory_space<smem>>) -> (i32, i32) {
    %c0_i32 = arith.constant 0 : i32
    %c0_i32_0 = arith.constant 0 : i32
    %c0_i32_1 = arith.constant 0 : i32
    return %c0_i32, %c0_i32_0 : i32, i32
  }
  func.func @transform_6(%arg0: i32, %arg1: memref<8xi32, #tpu.memory_space<smem>>) -> (i32, i32) {
    %c0_i32 = arith.constant 0 : i32
    %c0_i32_0 = arith.constant 0 : i32
    %c0_i32_1 = arith.constant 0 : i32
    return %c0_i32, %c0_i32_0 : i32, i32
  }
  func.func @transform_7(%arg0: i32, %arg1: memref<8xi32, #tpu.memory_space<smem>>) -> (i32, i32) {
    %c0_i32 = arith.constant 0 : i32
    %c0_i32_0 = arith.constant 0 : i32
    %c0_i32_1 = arith.constant 0 : i32
    return %c0_i32, %c0_i32_0 : i32, i32
  }
  func.func @transform_8(%arg0: i32, %arg1: memref<8xi32, #tpu.memory_space<smem>>) -> (i32, i32) {
    %c0_i32 = arith.constant 0 : i32
    %c0_i32_0 = arith.constant 0 : i32
    %c0_i32_1 = arith.constant 0 : i32
    return %c0_i32, %c0_i32_0 : i32, i32
  }
  func.func @transform_9(%arg0: i32, %arg1: memref<8xi32, #tpu.memory_space<smem>>) -> (i32, i32) {
    %c0_i32 = arith.constant 0 : i32
    %c0_i32_0 = arith.constant 0 : i32
    %c0_i32_1 = arith.constant 0 : i32
    return %c0_i32, %c0_i32_0 : i32, i32
  }
}

</mosaic_0001>

<bundles_post_ra>
// kernel: tpu_custom_call.1
= control target key start
LH: loop header
LB: loop body
LE: loop exit
PB: predicated region body
PF: predicated region fallthrough
CT: control target
= control target key end

     0   :  { %s19296_s0 = inlined_call_operand.hbm [shape: s32[8], index: 0, kind: input, shape index: {}]   ;;  %s19297_s1 = inlined_call_operand.hbm [shape: f32[8,1536], index: 1, kind: input, shape index: {}]   ;;  %s19298_s2 = inlined_call_operand.hbm [shape: f32[8,1536], index: 2, kind: input, shape index: {}]   ;;  %s19299_s3 = inlined_call_operand.hbm [shape: f32[8,1536], index: 3, kind: input, shape index: {}]   ;;  %s19300_s4 = inlined_call_operand.hbm [shape: bf16[4608,768], index: 4, kind: input, shape index: {}]   ;;  %s19301_s5 = inlined_call_operand.hbm [shape: f32[1,768], index: 5, kind: input, shape index: {}]   ;;  %s19302_s6 = inlined_call_operand.hbm [shape: f32[1,768], index: 6, kind: input, shape index: {}]   ;;  %s19303_s7 = inlined_call_operand.hbm [shape: f32[1,768], index: 7, kind: input, shape index: {}]   ;;  %s19304_s8 = inlined_call_operand.hbm [shape: bf16[768,128], index: 8, kind: input, shape index: {}]   ;;  %s19305_s9 = inlined_call_operand.hbm [shape: f32[1,128], index: 9, kind: input, shape index: {}]   ;;  %s19306_s10 = inlined_call_operand.hbm [shape: f32[1,1], index: 10, kind: output, shape index: {}]  }
   0x1   :  { %s18369_s15 = scalar_lea.hbm %s19296_s0, 16 }
   0x2   :  { %p18370_p0 = scmp.ne.s32.totalorder %s19296_s0, %s18369_s15  ;;  %p18373_p1 = scmp.lt.u32.totalorder %s18369_s15, %s19296_s0 }
   0x4   :  { %p18375_p2 = pnand %p18373_p1, %p18370_p0 }
   0x6   :  { %18378 = shalt.err (!%p18375_p2)  }
   0x7   :  { %s18613_s20 = smov [#allocation3]  }
   0x8   :  { %16 = dma.hbm_to_smem %s19296_s0, 16, %s18613_s20, [#allocation2] }
   0x9   :  { %18599 = dma.done.wait [#allocation2], 16 }
   0xa   :  { %18600 = vsyncadd [#allocation2], 4294967280 }
   0xb   :  { %18 = sfence }
   0xc   :  { %19 = vsyncpa [#allocation5], 0 }
   0xd   :  { %20 = vsyncpa [#allocation8], 0 }
   0xe   :  { %21 = vsyncpa [#allocation11], 0 }
   0xf   :  { %22 = vsyncpa [#allocation14], 0 }
  0x10   :  { %23 = vsyncpa [#allocation17], 0 }
  0x11   :  { %24 = vsyncpa [#allocation6], 0  ;;  %s18614_s23 = smov [#allocation7]   ;;  %s18615_s25 = smov [#allocation10]  }
  0x12   :  { %s41_s24 = sshll.u32 %s18614_s23, 4  ;;  %s60_s26 = sshll.u32 %s18615_s25, 4  ;;  %s42_s24 = int_to_ptr.vmem [resolvable:$true] %s41_s24  ;;  %s18695_s26 = int_to_ptr.vmem [resolvable:$true] %s60_s26 }
  0x13   :  { %s18379_s0 = scalar_lea.hbm %s19298_s2, 1536 }
  0x14   :  { %p18380_p3 = scmp.ne.s32.totalorder %s19298_s2, %s18379_s0  ;;  %p18383_p4 = scmp.lt.u32.totalorder %s18379_s0, %s19298_s2 }
  0x16   :  { %p18385_p5 = pnand %p18383_p4, %p18380_p3 }
  0x18   :  { %18388 = shalt.err (!%p18385_p5)
}
  0x19   :  { %s18389_s13 = scalar_lea.vmem %s42_s24, 1536  ;;  %p18394_p7 = scmp.lt.s32.totalorder %s42_s24, %s42_s24 }
  0x1a   :  { %p18390_p6 = scmp.ne.s32.totalorder %s42_s24, %s18389_s13  ;;  %p18395_p8 = scmp.lt.s32.totalorder %s18389_s13, %s18389_s13 }
  0x1c   :  { %p18396_p9 = por %p18395_p8, %p18394_p7 }
  0x1e   :  { %p18397_p10 = pnand %p18396_p9, %p18390_p6 }
  0x20   :  { %18400 = shalt.err (!%p18397_p10)
}
  0x21   :  { %44 = dma.hbm_to_vmem [thread:$0]  %s19298_s2, 1536, %s42_s24, [#allocation8]  }
  0x22   :  { %s18401_s18 = scalar_lea.hbm %s19300_s4, 221184 }
  0x23   :  { %p18402_p11 = scmp.ne.s32.totalorder %s19300_s4, %s18401_s18  ;;  %p18405_p12 = scmp.lt.u32.totalorder %s18401_s18, %s19300_s4 }
  0x25   :  { %p18407_p13 = pnand %p18405_p12, %p18402_p11 }
  0x27   :  { %18410 = shalt.err (!%p18407_p13)
}
  0x28   :  { %s18411_s23 = scalar_lea.vmem %s18695_s26, 221184  ;;  %p18416_p1 = scmp.lt.s32.totalorder %s18695_s26, %s18695_s26 }
  0x29   :  { %p18412_p0 = scmp.ne.s32.totalorder %s18695_s26, %s18411_s23  ;;  %p18417_p2 = scmp.lt.s32.totalorder %s18411_s23, %s18411_s23 }
  0x2b   :  { %p18418_p3 = por %p18417_p2, %p18416_p1 }
  0x2d   :  { %p18419_p4 = pnand %p18418_p3, %p18412_p0 }
  0x2f   :  { %18422 = shalt.err (!%p18419_p4)
}
  0x30   :  { %s18616_s2 = smov 384   ;;  %s18617_s24 = smov 24  }
  0x31   :  { %66 = dma.hbm_to_vmem [thread:$0]  %s19300_s4, 221184, %s18695_s26, [#allocation11], %s18616_s2, %s18616_s2, %s18617_s24  }
  0x32   :  { %s18618_s28 = smov [#allocation13]   ;;  %s18619_s29 = smov [#allocation16]  }
  0x33   :  { %s83_s0 = sshll.u32 %s18618_s28, 4  ;;  %s102_s30 = sshll.u32 %s18619_s29, 4  ;;  %s84_s0 = int_to_ptr.vmem [resolvable:$true] %s83_s0  ;;  %s18726_s30 = int_to_ptr.vmem [resolvable:$true] %s102_s30 }
  0x34   :  { %s18423_s13 = scalar_lea.hbm %s19302_s6, 96 }
  0x35   :  { %p18424_p5 = scmp.ne.s32.totalorder %s19302_s6, %s18423_s13  ;;  %p18427_p6 = scmp.lt.u32.totalorder %s18423_s13, %s19302_s6 }
  0x37   :  { %p18429_p7 = pnand %p18427_p6, %p18424_p5 }
  0x39   :  { %18432 = shalt.err (!%p18429_p7)
}
  0x3a   :  { %s18433_s4 = scalar_lea.vmem %s84_s0, 96  ;;  %p18438_p9 = scmp.lt.s32.totalorder %s84_s0, %s84_s0 }
  0x3b   :  { %p18434_p8 = scmp.ne.s32.totalorder %s84_s0, %s18433_s4  ;;  %p18439_p10 = scmp.lt.s32.totalorder %s18433_s4, %s18433_s4 }
  0x3d   :  { %p18440_p11 = por %p18439_p10, %p18438_p9 }
  0x3f   :  { %p18441_p12 = pnand %p18440_p11, %p18434_p8 }
  0x41   :  { %18444 = shalt.err (!%p18441_p12)
}
  0x42   :  { %86 = dma.hbm_to_vmem [thread:$0]  %s19302_s6, 96, %s84_s0, [#allocation14]  }
  0x43   :  { %s18445_s21 = scalar_lea.hbm %s19304_s8, 6144 }
  0x44   :  { %p18446_p13 = scmp.ne.s32.totalorder %s19304_s8, %s18445_s21  ;;  %p18449_p0 = scmp.lt.u32.totalorder %s18445_s21, %s19304_s8 }
  0x46   :  { %p18451_p1 = pnand %p18449_p0, %p18446_p13 }
  0x48   :  { %18454 = shalt.err (!%p18451_p1)
}
  0x49   :  { %s18455_s25 = scalar_lea.vmem %s18726_s30, 6144  ;;  %p18460_p3 = scmp.lt.s32.totalorder %s18726_s30, %s18726_s30 }
  0x4a   :  { %p18456_p2 = scmp.ne.s32.totalorder %s18726_s30, %s18455_s25  ;;  %p18461_p4 = scmp.lt.s32.totalorder %s18455_s25, %s18455_s25 }
  0x4c   :  { %p18462_p5 = por %p18461_p4, %p18460_p3 }
  0x4e   :  { %p18463_p6 = pnand %p18462_p5, %p18456_p2 }
  0x50   :  { %18466 = shalt.err (!%p18463_p6)
}
  0x51   :  { %s18620_s6 = smov 64   ;;  %s18621_s27 = smov 4  }
  0x52   :  { %108 = dma.hbm_to_vmem [thread:$0]  %s19304_s8, 6144, %s18726_s30, [#allocation17], %s18620_s6, %s18620_s6, %s18621_s27  }
  0x53   :  { %s18622_s29 = smov [#allocation4]   ;;  %s18623_s12 = smov [#allocation9]  }
  0x54   :  { %s31_s11 = sshll.u32 %s18622_s29, 4  ;;  %s51_s13 = sshll.u32 %s18623_s12, 4  ;;  %s32_s11 = int_to_ptr.vmem [resolvable:$true] %s31_s11  ;;  %s52_s13 = int_to_ptr.vmem [resolvable:$true] %s51_s13 }
  0x55   :  { %s18467_s16 = scalar_lea.hbm %s19297_s1, 1536 }
  0x56   :  { %p18468_p7 = scmp.ne.s32.totalorder %s19297_s1, %s18467_s16  ;;  %p18471_p8 = scmp.lt.u32.totalorder %s18467_s16, %s19297_s1 }
  0x58   :  { %p18473_p9 = pnand %p18471_p8, %p18468_p7 }
  0x5a   :  { %18476 = shalt.err (!%p18473_p9)
}
  0x5b   :  { %s18477_s8 = scalar_lea.vmem %s32_s11, 1536  ;;  %p18482_p11 = scmp.lt.s32.totalorder %s32_s11, %s32_s11 }
  0x5c   :  { %p18478_p10 = scmp.ne.s32.totalorder %s32_s11, %s18477_s8  ;;  %p18483_p12 = scmp.lt.s32.totalorder %s18477_s8, %s18477_s8 }
  0x5e   :  { %p18484_p13 = por %p18483_p12, %p18482_p11 }
  0x60   :  { %p18485_p0 = pnand %p18484_p13, %p18478_p10 }
  0x62   :  { %18488 = shalt.err (!%p18485_p0)
}
  0x63   :  { %34 = dma.hbm_to_vmem [thread:$0]  %s19297_s1, 1536, %s32_s11, [#allocation5]  }
  0x64   :  { %s18489_s22 = scalar_lea.hbm %s19299_s3, 1536 }
  0x65   :  { %p18490_p1 = scmp.ne.s32.totalorder %s19299_s3, %s18489_s22  ;;  %p18493_p2 = scmp.lt.u32.totalorder %s18489_s22, %s19299_s3 }
  0x67   :  { %p18495_p3 = pnand %p18493_p2, %p18490_p1 }
  0x69   :  { %18498 = shalt.err (!%p18495_p3)
}
  0x6a   :  { %s18499_s6 = scalar_lea.vmem %s52_s13, 1536  ;;  %p18504_p5 = scmp.lt.s32.totalorder %s52_s13, %s52_s13 }
  0x6b   :  { %p18500_p4 = scmp.ne.s32.totalorder %s52_s13, %s18499_s6  ;;  %p18505_p6 = scmp.lt.s32.totalorder %s18499_s6, %s18499_s6 }
  0x6d   :  { %p18506_p7 = por %p18505_p6, %p18504_p5 }
  0x6f   :  { %p18507_p8 = pnand %p18506_p7, %p18500_p4 }
  0x71   :  { %18510 = shalt.err (!%p18507_p8)
}
  0x72   :  { %54 = dma.hbm_to_vmem [thread:$0]  %s19299_s3, 1536, %s52_s13, [#allocation8]  }
  0x73   :  { %s18624_s28 = smov [#allocation12]   ;;  %s18625_s29 = smov [#allocation15]  }
  0x74   :  { %s73_s0 = sshll.u32 %s18624_s28, 4  ;;  %s93_s11 = sshll.u32 %s18625_s29, 4  ;;  %s74_s0 = int_to_ptr.vmem [resolvable:$true] %s73_s0  ;;  %s94_s11 = int_to_ptr.vmem [resolvable:$true] %s93_s11 }
  0x75   :  { %s18511_s15 = scalar_lea.hbm %s19301_s5, 96 }
  0x76   :  { %p18512_p9 = scmp.ne.s32.totalorder %s19301_s5, %s18511_s15  ;;  %p18515_p10 = scmp.lt.u32.totalorder %s18511_s15, %s19301_s5 }
  0x78   :  { %p18517_p11 = pnand %p18515_p10, %p18512_p9 }
  0x7a   :  { %18520 = shalt.err (!%p18517_p11)
}
  0x7b   :  { %s18521_s3 = scalar_lea.vmem %s74_s0, 96  ;;  %p18526_p13 = scmp.lt.s32.totalorder %s74_s0, %s74_s0 }
  0x7c   :  { %p18522_p12 = scmp.ne.s32.totalorder %s74_s0, %s18521_s3  ;;  %p18527_p0 = scmp.lt.s32.totalorder %s18521_s3, %s18521_s3 }
  0x7e   :  { %p18528_p1 = por %p18527_p0, %p18526_p13 }
  0x80   :  { %p18529_p2 = pnand %p18528_p1, %p18522_p12 }
  0x82   :  { %18532 = shalt.err (!%p18529_p2)
}
  0x83   :  { %76 = dma.hbm_to_vmem [thread:$0]  %s19301_s5, 96, %s74_s0, [#allocation11]  }
  0x84   :  { %s18533_s19 = scalar_lea.hbm %s19303_s7, 96 }
  0x85   :  { %p18534_p3 = scmp.ne.s32.totalorder %s19303_s7, %s18533_s19  ;;  %p18537_p4 = scmp.lt.u32.totalorder %s18533_s19, %s19303_s7 }
  0x87   :  { %p18539_p5 = pnand %p18537_p4, %p18534_p3 }
  0x89   :  { %18542 = shalt.err (!%p18539_p5)
}
  0x8a   :  { %s18543_s2 = scalar_lea.vmem %s94_s11, 96  ;;  %p18548_p7 = scmp.lt.s32.totalorder %s94_s11, %s94_s11 }
  0x8b   :  { %p18544_p6 = scmp.ne.s32.totalorder %s94_s11, %s18543_s2  ;;  %p18549_p8 = scmp.lt.s32.totalorder %s18543_s2, %s18543_s2 }
  0x8d   :  { %p18550_p9 = por %p18549_p8, %p18548_p7 }
  0x8f   :  { %p18551_p10 = pnand %p18550_p9, %p18544_p6 }
  0x91   :  { %18554 = shalt.err (!%p18551_p10)
}
  0x92   :  { %96 = dma.hbm_to_vmem [thread:$0]  %s19303_s7, 96, %s94_s11, [#allocation14]  }
  0x93   :  { %s18626_s25 = smov [#allocation18]   ;;  %s18555_s28 = scalar_lea.hbm %s19305_s9, 16 }
  0x94   :  { %s115_s6 = sshll.u32 %s18626_s25, 4  ;;  %p18556_p11 = scmp.ne.s32.totalorder %s19305_s9, %s18555_s28  ;;  %s116_s6 = int_to_ptr.vmem [resolvable:$true] %s115_s6 }
  0x95   :  { %p18559_p12 = scmp.lt.u32.totalorder %s18555_s28, %s19305_s9 }
  0x97   :  { %p18561_p13 = pnand %p18559_p12, %p18556_p11 }
  0x99   :  { %18564 = shalt.err (!%p18561_p13)
}
  0x9a   :  { %s18565_s15 = scalar_lea.vmem %s116_s6, 16  ;;  %s18569_s7 = scalar_lea.vmem %s116_s6, 32 }
  0x9b   :  { %p18566_p0 = scmp.ne.s32.totalorder %s116_s6, %s18565_s15  ;;  %p18570_p1 = scmp.lt.s32.totalorder %s116_s6, %s116_s6 }
  0x9c   :  { %p18571_p2 = scmp.lt.s32.totalorder %s18569_s7, %s18565_s15 }
  0x9e   :  { %p18572_p3 = por %p18571_p2, %p18570_p1 }
  0xa0   :  { %p18573_p4 = pnand %p18572_p3, %p18566_p0 }
  0xa2   :  { %18576 = shalt.err (!%p18573_p4)
}
  0xa3   :  { %118 = dma.hbm_to_vmem [thread:$0]  %s19305_s9, 16, %s116_s6, [#allocation17]  }
  0xa4   :  { %18601 = dma.done.wait [#allocation5], 1536  }
  0xa5   :  { %18602 = vsyncadd [#allocation5], 4294965760 }
  0xa6   :  { %18603 = dma.done.wait [#allocation8], 3072  }
  0xa7   :  { %18604 = vsyncadd [#allocation8], 4294964224 }
  0xa8   :  { %18605 = dma.done.wait [#allocation11], 221280  }
  0xa9   :  { %18606 = vsyncadd [#allocation11], 4294746016 }
  0xaa   :  { %18607 = dma.done.wait [#allocation14], 192  }
  0xab   :  { %18608 = vsyncadd [#allocation14], 4294967104 }
  0xac   :  { %18609 = dma.done.wait [#allocation17], 6160  }
  0xad   :  { %18610 = vsyncadd [#allocation17], 4294961136  ;;  %v15685_v0 = vld [vmem:[#allocation10 + $0x1204] ss:$24 sps:$4 sm:$0xff]   ;;  %v15689_v2 = vld [vmem:[#allocation10 + $0x1200] ss:$24 sps:$4 sm:$0xff]  }
  0xae   :  { %v15687_v1 = vld [vmem:[#allocation10 + $0x1504] ss:$24 sps:$4 sm:$0xff]   ;;  %4368 = vmatprep.subr.bf16.mxu0 %v15685_v0  ;;  %v15690_v3 = vld [vmem:[#allocation10 + $0x1500] ss:$24 sps:$4 sm:$0xff]   ;;  %v15691_v4 = vld [vmem:[#allocation10 + $0x1234] ss:$24 sps:$4 sm:$0xff]  }
  0xaf   :  { %4409 = vmatprep.subr.bf16.mxu1 %v15687_v1  ;;  %4369 = vmatpush1.bf16.msra.mxu0 %v15689_v2  ;;  %v15693_v5 = vld [vmem:[#allocation10 + $0x1534] ss:$24 sps:$4 sm:$0xff]   ;;  %v15695_v6 = vld [vmem:[#allocation10 + $0x1230] ss:$24 sps:$4 sm:$0xff]   ;;  %v15697_v8 = vld [vmem:[#allocation10 + $0x1264] ss:$24 sps:$4 sm:$0xff]  }
  0xb0   :  { %4410 = vmatpush1.bf16.msra.mxu1 %v15690_v3  ;;  %4370 = vmatprep.subr.bf16.mxu0 %v15691_v4  ;;  %v15696_v7 = vld [vmem:[#allocation10 + $0x1530] ss:$24 sps:$4 sm:$0xff]   ;;  %v15699_v9 = vld [vmem:[#allocation10 + $0x1564] ss:$24 sps:$4 sm:$0xff]   ;;  %v15701_v10 = vld [vmem:[#allocation10 + $0x1260] ss:$24 sps:$4 sm:$0xff]  }
  0xb1   :  { %4411 = vmatprep.subr.bf16.mxu1 %v15693_v5  ;;  %v15702_v11 = vld [vmem:[#allocation10 + $0x1560] ss:$24 sps:$4 sm:$0xff]   ;;  %v15703_v12 = vld [vmem:[#allocation10 + $0x1294] ss:$24 sps:$4 sm:$0xff]   ;;  %v15707_v14 = vld [vmem:[#allocation10 + $0x1290] ss:$24 sps:$4 sm:$0xff]  }
  0xb2   :  { %v15705_v13 = vld [vmem:[#allocation10 + $0x1594] ss:$24 sps:$4 sm:$0xff]   ;;  %v15708_v15 = vld [vmem:[#allocation10 + $0x1590] ss:$24 sps:$4 sm:$0xff]   ;;  %v15709_v16 = vld [vmem:[#allocation10 + $0x12c4] ss:$24 sps:$4 sm:$0xff]  }
  0xb3   :  { %4371 = vmatpush1.bf16.msra.mxu0 %v15695_v6  ;;  %v15711_v17 = vld [vmem:[#allocation10 + $0x15c4] ss:$24 sps:$4 sm:$0xff]   ;;  %v15713_v18 = vld [vmem:[#allocation10 + $0x12c0] ss:$24 sps:$4 sm:$0xff]   ;;  %v15715_v20 = vld [vmem:[#allocation10 + $0x12f4] ss:$24 sps:$4 sm:$0xff]  }
  0xb4   :  { %4412 = vmatpush1.bf16.msra.mxu1 %v15696_v7  ;;  %4372 = vmatprep.subr.bf16.mxu0 %v15697_v8  ;;  %v15714_v19 = vld [vmem:[#allocation10 + $0x15c0] ss:$24 sps:$4 sm:$0xff]   ;;  %v15717_v21 = vld [vmem:[#allocation10 + $0x15f4] ss:$24 sps:$4 sm:$0xff]   ;;  %v15719_v22 = vld [vmem:[#allocation10 + $0x12f0] ss:$24 sps:$4 sm:$0xff]  }
  0xb5   :  { %4413 = vmatprep.subr.bf16.mxu1 %v15699_v9  ;;  %v15720_v23 = vld [vmem:[#allocation10 + $0x15f0] ss:$24 sps:$4 sm:$0xff]   ;;  %v15721_v24 = vld [vmem:[#allocation10 + $0x1324] ss:$24 sps:$4 sm:$0xff]   ;;  %v15725_v26 = vld [vmem:[#allocation10 + $0x1320] ss:$24 sps:$4 sm:$0xff]  }
  0xb6   :  { %v15723_v25 = vld [vmem:[#allocation10 + $0x1624] ss:$24 sps:$4 sm:$0xff]   ;;  %v15726_v27 = vld [vmem:[#allocation10 + $0x1620] ss:$24 sps:$4 sm:$0xff]   ;;  %v15727_v28 = vld [vmem:[#allocation10 + $0x1354] ss:$24 sps:$4 sm:$0xff]  }
  0xb7   :  { %4373 = vmatpush1.bf16.msra.mxu0 %v15701_v10  ;;  %v15729_v29 = vld [vmem:[#allocation10 + $0x1654] ss:$24 sps:$4 sm:$0xff]   ;;  %v15731_v30 = vld [vmem:[#allocation10 + $0x1350] ss:$24 sps:$4 sm:$0xff]   ;;  %v15733_v32 = vld [vmem:[#allocation10 + $0x1384] ss:$24 sps:$4 sm:$0xff]  }
  0xb8   :  { %4414 = vmatpush1.bf16.msra.mxu1 %v15702_v11  ;;  %4374 = vmatprep.subr.bf16.mxu0 %v15703_v12  ;;  %v15732_v31 = vld [vmem:[#allocation10 + $0x1650] ss:$24 sps:$4 sm:$0xff]   ;;  %v15735_v33 = vld [vmem:[#allocation10 + $0x1684] ss:$24 sps:$4 sm:$0xff]   ;;  %v15737_v34 = vld [vmem:[#allocation10 + $0x1380] ss:$24 sps:$4 sm:$0xff]  }
  0xb9   :  { %4415 = vmatprep.subr.bf16.mxu1 %v15705_v13  ;;  %v15738_v35 = vld [vmem:[#allocation10 + $0x1680] ss:$24 sps:$4 sm:$0xff]   ;;  %v15739_v36 = vld [vmem:[#allocation10 + $0x13b4] ss:$24 sps:$4 sm:$0xff]   ;;  %v15743_v38 = vld [vmem:[#allocation10 + $0x13b0] ss:$24 sps:$4 sm:$0xff]  }
  0xba   :  { %v15741_v37 = vld [vmem:[#allocation10 + $0x16b4] ss:$24 sps:$4 sm:$0xff]   ;;  %v15744_v39 = vld [vmem:[#allocation10 + $0x16b0] ss:$24 sps:$4 sm:$0xff]   ;;  %v15745_v40 = vld [vmem:[#allocation10 + $0x13e4] ss:$24 sps:$4 sm:$0xff]  }
  0xbb   :  { %4375 = vmatpush1.bf16.msra.mxu0 %v15707_v14  ;;  %v15747_v41 = vld [vmem:[#allocation10 + $0x16e4] ss:$24 sps:$4 sm:$0xff]   ;;  %v15749_v42 = vld [vmem:[#allocation10 + $0x13e0] ss:$24 sps:$4 sm:$0xff]   ;;  %v15751_v44 = vld [vmem:[#allocation10 + $0x1414] ss:$24 sps:$4 sm:$0xff]  }
  0xbc   :  { %4416 = vmatpush1.bf16.msra.mxu1 %v15708_v15  ;;  %4376 = vmatprep.subr.bf16.mxu0 %v15709_v16  ;;  %v15750_v43 = vld [vmem:[#allocation10 + $0x16e0] ss:$24 sps:$4 sm:$0xff]   ;;  %v15753_v45 = vld [vmem:[#allocation10 + $0x1714] ss:$24 sps:$4 sm:$0xff]   ;;  %v15755_v46 = vld [vmem:[#allocation10 + $0x1410] ss:$24 sps:$4 sm:$0xff]  }
  0xbd   :  { %4417 = vmatprep.subr.bf16.mxu1 %v15711_v17  ;;  %v15756_v47 = vld [vmem:[#allocation10 + $0x1710] ss:$24 sps:$4 sm:$0xff]   ;;  %v15757_v49 = vld [vmem:[#allocation10 + $0x1444] ss:$24 sps:$4 sm:$0xff]   ;;  %v15761_v63 = vld [vmem:[#allocation10 + $0x1440] ss:$24 sps:$4 sm:$0xff]  }
  0xbe   :  { %v148_v48 = vld [vmem:[#allocation9 + $0x8] sm:$0xff]  ;;  %v15759_v50 = vld [vmem:[#allocation10 + $0x1744] ss:$24 sps:$4 sm:$0xff]   ;;  %v149_v59 = vld [vmem:[#allocation9 + $0x10] sm:$0xff]  ;;  %s15577_s9 = sld [smem:[#allocation3 + $0x1]]  ;;  %s15579_s17 = sld [smem:[#allocation3 + $0x3]] }
  0xbf   :  { %4377 = vmatpush1.bf16.msra.mxu0 %v15713_v18  ;;  %v228_v51 = vld [vmem:[#allocation7 + $0x8] sm:$0xff]  ;;  %v150_v52 = vld [vmem:[#allocation9 + $0x18] sm:$0xff]  ;;  %v147_v57 = vld [vmem:[#allocation9] sm:$0xff]  ;;  %s15581_s4 = sld [smem:[#allocation3 + $0x5]]  ;;  %s15583_s26 = sld [smem:[#allocation3 + $0x7]]  ;;  %vm13636_vm4 = vcmask 1040384  }
  0xc0   :  { %4418 = vmatpush1.bf16.msra.mxu1 %v15714_v19  ;;  %4378 = vmatprep.subr.bf16.mxu0 %v15715_v20  ;;  %v230_v53 = vld [vmem:[#allocation7 + $0x18] sm:$0xff]  ;;  %v240_v54 = vsub.f32 %v148_v48, %v228_v51  ;;  %v18817_v55 = vpack.c.bf16 %v228_v51, %v228_v51  ;;  %v227_v58 = vld [vmem:[#allocation7] sm:$0xff]  ;;  %v229_v62 = vld [vmem:[#allocation7 + $0x10] sm:$0xff]  ;;  %s13632_s3 = sld [smem:[#allocation3]]  ;;  %s15578_s13 = sld [smem:[#allocation3 + $0x2]]  ;;  %vm298_vm9 = vcmask 7168  }
  0xc1   :  { %4419 = vmatprep.subr.bf16.mxu1 %v15717_v21  ;;  %v242_v56 = vsub.f32 %v150_v52, %v230_v53  ;;  %v18819_v60 = vpack.c.bf16 %v230_v53, %v230_v53  ;;  %v239_v61 = vsub.f32 %v147_v57, %v227_v58  ;;  %v241_v1 = vsub.f32 %v149_v59, %v229_v62  ;;  %v15762_v4 = vld [vmem:[#allocation10 + $0x1740] ss:$24 sps:$4 sm:$0xff]   ;;  %v15763_v5 = vld [vmem:[#allocation10 + $0x1474] ss:$24 sps:$4 sm:$0xff]   ;;  %v15767_v11 = vld [vmem:[#allocation10 + $0x1470] ss:$24 sps:$4 sm:$0xff]  }
  0xc2   :  { %v252_v0 = vadd.f32 1e-06, %v240_v54  ;;  %4400 = vmatprep.mubr.bf16.mxu0 %v18817_v55  ;;  %v15765_v8 = vld [vmem:[#allocation10 + $0x1774] ss:$24 sps:$4 sm:$0xff]   ;;  %v15768_v14 = vld [vmem:[#allocation10 + $0x1770] ss:$24 sps:$4 sm:$0xff]  }
  0xc3   :  { %4379 = vmatpush1.bf16.msra.mxu0 %v15719_v22  ;;  %v254_v2 = vadd.f32 1e-06, %v242_v56  ;;  %4441 = vmatprep.mubr.bf16.mxu1 %v18819_v60  ;;  %v251_v3 = vadd.f32 1e-06, %v239_v61  ;;  %v253_v7 = vadd.f32 1e-06, %v241_v1 }
  0xc4   :  { %4420 = vmatpush1.bf16.msra.mxu1 %v15720_v23  ;;  %4380 = vmatprep.subr.bf16.mxu0 %v15721_v24  ;;  %v264_v6 = vmul.f32 %v252_v0, %v252_v0  ;;  %v15769_v15 = vld [vmem:[#allocation10 + $0x14a4] ss:$24 sps:$4 sm:$0xff]   ;;  %v15773_v18 = vld [vmem:[#allocation10 + $0x14a0] ss:$24 sps:$4 sm:$0xff]   ;;  %v15775_v21 = vld [vmem:[#allocation10 + $0x14d4] ss:$24 sps:$4 sm:$0xff]  }
  0xc5   :  { %4421 = vmatprep.subr.bf16.mxu1 %v15723_v25  ;;  %v263_v9 = vmul.f32 %v251_v3, %v251_v3  ;;  %v265_v10 = vmul.f32 %v253_v7, %v253_v7  ;;  %v266_v12 = vmul.f32 %v254_v2, %v254_v2  ;;  %v15771_v16 = vld [vmem:[#allocation10 + $0x17a4] ss:$24 sps:$4 sm:$0xff]   ;;  %v15774_v20 = vld [vmem:[#allocation10 + $0x17a0] ss:$24 sps:$4 sm:$0xff]   ;;  %v15777_v22 = vld [vmem:[#allocation10 + $0x17d4] ss:$24 sps:$4 sm:$0xff]  }
  0xc6   :  { %v15779_v23 = vld [vmem:[#allocation10 + $0x14d0] ss:$24 sps:$4 sm:$0xff]   ;;  %v15783_v25 = vld [vmem:[#allocation10 + $0x1804] ss:$24 sps:$4 sm:$0xff]   ;;  %v15816_v48 = vld [vmem:[#allocation10 + $0x1bf4] ss:$24 sps:$4 sm:$0xff]  }
  0xc7   :  { %4381 = vmatpush1.bf16.msra.mxu0 %v15725_v26  ;;  %v275_v13 = vadd.f32 %v264_v6, %v263_v9  ;;  %v15780_v24 = vld [vmem:[#allocation10 + $0x17d0] ss:$24 sps:$4 sm:$0xff]   ;;  %v15786_v26 = vld [vmem:[#allocation10 + $0x1b04] ss:$24 sps:$4 sm:$0xff]   ;;  %v15817_v53 = vld [vmem:[#allocation10 + $0x1920] ss:$24 sps:$4 sm:$0xff]  }
  0xc8   :  { %4422 = vmatpush1.bf16.msra.mxu1 %v15726_v27  ;;  %4382 = vmatprep.subr.bf16.mxu0 %v15727_v28  ;;  %v18825_v27 = vpack.c.bf16 %v227_v58, %v227_v58  ;;  %v18827_v28 = vpack.c.bf16 %v229_v62, %v229_v62  ;;  %v15819_v51 = vld [vmem:[#allocation10 + $0x1924] ss:$24 sps:$4 sm:$0xff]   ;;  %v15820_v54 = vld [vmem:[#allocation10 + $0x1c20] ss:$24 sps:$4 sm:$0xff]   ;;  %v15825_v56 = vld [vmem:[#allocation10 + $0x1954] ss:$24 sps:$4 sm:$0xff]  }
  0xc9   :  { %4423 = vmatprep.subr.bf16.mxu1 %v15729_v29  ;;  %v276_v17 = vadd.f32 %v275_v13, %v265_v10  ;;  %v15781_v29 = vld [vmem:[#allocation10 + $0x1800] ss:$24 sps:$4 sm:$0xff]   ;;  %v15822_v52 = vld [vmem:[#allocation10 + $0x1c24] ss:$24 sps:$4 sm:$0xff]   ;;  %v15828_v57 = vld [vmem:[#allocation10 + $0x1c54] ss:$24 sps:$4 sm:$0xff]  }
  0xca   :  { %v232_v58 = vld [vmem:[#allocation7 + $0x28] sm:$0xff]  ;;  %v234_v61 = vld [vmem:[#allocation7 + $0x38] sm:$0xff]  ;;  %v151_v62 = vld [vmem:[#allocation9 + $0x20] sm:$0xff]  ;;  %s15580_s18 = sld [smem:[#allocation3 + $0x4]]  ;;  %s15582_s8 = sld [smem:[#allocation3 + $0x6]]  ;;  %vm13779_vm14 = vcmask 0  }
  0xcb   :  { %4383 = vmatpush1.bf16.msra.mxu0 %v15731_v30  ;;  %v18823_v19 = vadd.f32 %v276_v17, %v266_v12  ;;  %v15784_v30 = vld [vmem:[#allocation10 + $0x1b00] ss:$24 sps:$4 sm:$0xff]   ;;  %v18831_v59 = vpack.c.bf16 %v232_v58, %v232_v58  ;;  %v15823_v0 = vld [vmem:[#allocation10 + $0x1950] ss:$24 sps:$4 sm:$0xff]   ;;  %v18835_v1 = vpack.c.bf16 %v234_v61, %v234_v61  ;;  %v15837_v10 = vld [vmem:[#allocation10 + $0x19b4] ss:$24 sps:$4 sm:$0xff]  }
  0xcc   :  { %4424 = vmatpush1.bf16.msra.mxu1 %v15732_v31  ;;  %4384 = vmatprep.subr.bf16.mxu0 %v15733_v32  ;;  %v15789_v31 = vld [vmem:[#allocation10 + $0x1834] ss:$24 sps:$4 sm:$0xff]   ;;  %v15826_v3 = vld [vmem:[#allocation10 + $0x1c50] ss:$24 sps:$4 sm:$0xff]   ;;  %v15829_v7 = vld [vmem:[#allocation10 + $0x1980] ss:$24 sps:$4 sm:$0xff]  }
  0xcd   :  { %4425 = vmatprep.subr.bf16.mxu1 %v15735_v33  ;;  %v15792_v32 = vld [vmem:[#allocation10 + $0x1b34] ss:$24 sps:$4 sm:$0xff]   ;;  %v15787_v33 = vld [vmem:[#allocation10 + $0x1830] ss:$24 sps:$4 sm:$0xff]   ;;  %v15832_v9 = vld [vmem:[#allocation10 + $0x1c80] ss:$24 sps:$4 sm:$0xff]  }
  0xce   :  { %v15835_v13 = vld [vmem:[#allocation10 + $0x19b0] ss:$24 sps:$4 sm:$0xff]   ;;  %v15841_v17 = vld [vmem:[#allocation10 + $0x19e0] ss:$24 sps:$4 sm:$0xff]   ;;  %v15897_v61 = vld [vmem:[#allocation10 + $0x1e94] ss:$24 sps:$4 sm:$0xff]  }
  0xcf   :  { %4385 = vmatpush1.bf16.msra.mxu0 %v15737_v34  ;;  %v15790_v34 = vld [vmem:[#allocation10 + $0x1b30] ss:$24 sps:$4 sm:$0xff]   ;;  %v15892_v58 = vld [vmem:[#allocation10 + $0x2160] ss:$24 sps:$4 sm:$0xff]   ;;  %s18627_s11 = smov [#allocation19]  }
  0xd0   :  { %4426 = vmatpush1.bf16.msra.mxu1 %v15738_v35  ;;  %4386 = vmatprep.subr.bf16.mxu0 %v15739_v36  ;;  %v15795_v35 = vld [vmem:[#allocation10 + $0x1864] ss:$24 sps:$4 sm:$0xff]   ;;  %s13787_s16 = sshll.u32 %s18627_s11, 4  ;;  %s13788_s16 = int_to_ptr.vmem [resolvable:$true] %s13787_s16 }
  0xd1   :  { %4427 = vmatprep.subr.bf16.mxu1 %v15741_v37  ;;  %v15798_v36 = vld [vmem:[#allocation10 + $0x1b64] ss:$24 sps:$4 sm:$0xff]   ;;  %v15793_v37 = vld [vmem:[#allocation10 + $0x1860] ss:$24 sps:$4 sm:$0xff]   ;;  %p18582_p6 = scmp.lt.s32.totalorder %s13788_s16, %s13788_s16 }
  0xd3   :  { %4387 = vmatpush1.bf16.msra.mxu0 %v15743_v38  ;;  %v15796_v38 = vld [vmem:[#allocation10 + $0x1b60] ss:$24 sps:$4 sm:$0xff]  }
  0xd4   :  { %4428 = vmatpush1.bf16.msra.mxu1 %v15744_v39  ;;  %4388 = vmatprep.subr.bf16.mxu0 %v15745_v40  ;;  %v15801_v39 = vld [vmem:[#allocation10 + $0x1894] ss:$24 sps:$4 sm:$0xff]  }
  0xd5   :  { %4429 = vmatprep.subr.bf16.mxu1 %v15747_v41  ;;  %v15804_v40 = vld [vmem:[#allocation10 + $0x1b94] ss:$24 sps:$4 sm:$0xff]   ;;  %v15799_v41 = vld [vmem:[#allocation10 + $0x1890] ss:$24 sps:$4 sm:$0xff]  }
  0xd7   :  { %4389 = vmatpush1.bf16.msra.mxu0 %v15749_v42  ;;  %v15802_v42 = vld [vmem:[#allocation10 + $0x1b90] ss:$24 sps:$4 sm:$0xff]  }
  0xd8   :  { %4430 = vmatpush1.bf16.msra.mxu1 %v15750_v43  ;;  %4390 = vmatprep.subr.bf16.mxu0 %v15751_v44  ;;  %v15807_v43 = vld [vmem:[#allocation10 + $0x18c4] ss:$24 sps:$4 sm:$0xff]  }
  0xd9   :  { %4431 = vmatprep.subr.bf16.mxu1 %v15753_v45  ;;  %v15810_v44 = vld [vmem:[#allocation10 + $0x1bc4] ss:$24 sps:$4 sm:$0xff]   ;;  %v15805_v45 = vld [vmem:[#allocation10 + $0x18c0] ss:$24 sps:$4 sm:$0xff]  }
  0xdb   :  { %4391 = vmatpush1.bf16.msra.mxu0 %v15755_v46  ;;  %v15808_v46 = vld [vmem:[#allocation10 + $0x1bc0] ss:$24 sps:$4 sm:$0xff]  }
  0xdc   :  { %4432 = vmatpush1.bf16.msra.mxu1 %v15756_v47  ;;  %4392 = vmatprep.subr.bf16.mxu0 %v15757_v49  ;;  %v15813_v47 = vld [vmem:[#allocation10 + $0x18f4] ss:$24 sps:$4 sm:$0xff]   ;;  %v15811_v49 = vld [vmem:[#allocation10 + $0x18f0] ss:$24 sps:$4 sm:$0xff]  }
  0xdd   :  { %4433 = vmatprep.subr.bf16.mxu1 %v15759_v50  ;;  %v15814_v50 = vld [vmem:[#allocation10 + $0x1bf0] ss:$24 sps:$4 sm:$0xff]  }
  0xdf   :  { %4393 = vmatpush1.bf16.msra.mxu0 %v15761_v63  ;;  %v18833_v63 = vld [vmem:[#allocation7 + $0x20] sm:$0xff] }
  0xe0   :  { %4434 = vmatpush1.bf16.msra.mxu1 %v15762_v4  ;;  %4394 = vmatprep.subr.bf16.mxu0 %v15763_v5  ;;  %v243_v2 = vsub.f32 %v151_v62, %v18833_v63  ;;  %v15831_v4 = vld [vmem:[#allocation10 + $0x1984] ss:$24 sps:$4 sm:$0xff]  }
  0xe1   :  { %4435 = vmatprep.subr.bf16.mxu1 %v15765_v8  ;;  %v15834_v5 = vld [vmem:[#allocation10 + $0x1c84] ss:$24 sps:$4 sm:$0xff]  }
  0xe2   :  { %v255_v6 = vadd.f32 1e-06, %v243_v2  ;;  %v15895_v2 = vld [vmem:[#allocation10 + $0x1e90] ss:$24 sps:$4 sm:$0xff]  }
  0xe3   :  { %4395 = vmatpush1.bf16.msra.mxu0 %v15767_v11  ;;  %v15840_v11 = vld [vmem:[#allocation10 + $0x1cb4] ss:$24 sps:$4 sm:$0xff]  }
  0xe4   :  { %4436 = vmatpush1.bf16.msra.mxu1 %v15768_v14  ;;  %4396 = vmatprep.subr.bf16.mxu0 %v15769_v15  ;;  %v267_v8 = vmul.f32 %v255_v6, %v255_v6  ;;  %v15838_v14 = vld [vmem:[#allocation10 + $0x1cb0] ss:$24 sps:$4 sm:$0xff]   ;;  %v15843_v15 = vld [vmem:[#allocation10 + $0x19e4] ss:$24 sps:$4 sm:$0xff]   ;;  %v15901_v6 = vld [vmem:[#allocation10 + $0x1ec0] ss:$24 sps:$4 sm:$0xff]  }
  0xe5   :  { %4437 = vmatprep.subr.bf16.mxu1 %v15771_v16  ;;  %v15846_v16 = vld [vmem:[#allocation10 + $0x1ce4] ss:$24 sps:$4 sm:$0xff]  }
  0xe6   :  { %v18841_v12 = vadd.f32 %v18823_v19, %v267_v8  ;;  %v15850_v19 = vld [vmem:[#allocation10 + $0x1d10] ss:$24 sps:$4 sm:$0xff]   ;;  %v15909_v8 = vld [vmem:[#allocation10 + $0x1ef4] ss:$24 sps:$4 sm:$0xff]  }
  0xe7   :  { %4397 = vmatpush1.bf16.msra.mxu0 %v15773_v18  ;;  %v15844_v18 = vld [vmem:[#allocation10 + $0x1ce0] ss:$24 sps:$4 sm:$0xff]  }
  0xe8   :  { %4438 = vmatpush1.bf16.msra.mxu1 %v15774_v20  ;;  %4398 = vmatprep.subr.bf16.mxu0 %v15775_v21  ;;  %v15849_v20 = vld [vmem:[#allocation10 + $0x1a14] ss:$24 sps:$4 sm:$0xff]  }
  0xe9   :  { %4439 = vmatprep.subr.bf16.mxu1 %v15777_v22  ;;  %v15852_v21 = vld [vmem:[#allocation10 + $0x1d14] ss:$24 sps:$4 sm:$0xff]   ;;  %v15847_v22 = vld [vmem:[#allocation10 + $0x1a10] ss:$24 sps:$4 sm:$0xff]  }
  0xeb   :  { %4399 = vmatpush1.bf16.msra.mxu0 %v15779_v23  ;;  %v15855_v23 = vld [vmem:[#allocation10 + $0x1a44] ss:$24 sps:$4 sm:$0xff]  }
  0xec   :  { %4440 = vmatpush1.bf16.msra.mxu1 %v15780_v24  ;;  %4450 = vmatprep.subr.bf16.mxu0 %v15783_v25  ;;  %v15858_v24 = vld [vmem:[#allocation10 + $0x1d44] ss:$24 sps:$4 sm:$0xff]   ;;  %v15853_v25 = vld [vmem:[#allocation10 + $0x1a40] ss:$24 sps:$4 sm:$0xff]  }
  0xed   :  { %4491 = vmatprep.subr.bf16.mxu1 %v15786_v26  ;;  %v15856_v26 = vld [vmem:[#allocation10 + $0x1d40] ss:$24 sps:$4 sm:$0xff]  }
  0xee   :  { %4401 = vmatmul.mubr.bf16.vlgmr.msra.gmra.mrb[0].mxu0 %v18825_v27 }
  0xef   :  { %4442 = vmatmul.mubr.bf16.vlgmr.msra.gmra.mrb[0].mxu1 %v18827_v28  ;;  %4451 = vmatpush1.bf16.msra.mxu0 %v15781_v29  ;;  %v15861_v29 = vld [vmem:[#allocation10 + $0x1a74] ss:$24 sps:$4 sm:$0xff]  }
  0xf0   :  { %4492 = vmatpush1.bf16.msra.mxu1 %v15784_v30  ;;  %4452 = vmatprep.subr.bf16.mxu0 %v15789_v31  ;;  %v15864_v30 = vld [vmem:[#allocation10 + $0x1d74] ss:$24 sps:$4 sm:$0xff]   ;;  %v15859_v31 = vld [vmem:[#allocation10 + $0x1a70] ss:$24 sps:$4 sm:$0xff]  }
  0xf1   :  { %4493 = vmatprep.subr.bf16.mxu1 %v15792_v32  ;;  %4482 = vmatprep.mubr.bf16.mxu0 %v18831_v59  ;;  %v15862_v32 = vld [vmem:[#allocation10 + $0x1d70] ss:$24 sps:$4 sm:$0xff]  }
  0xf2   :  { %4523 = vmatprep.mubr.bf16.mxu1 %v18835_v1 }
  0xf3   :  { %4453 = vmatpush1.bf16.msra.mxu0 %v15787_v33  ;;  %v15867_v33 = vld [vmem:[#allocation10 + $0x1aa4] ss:$24 sps:$4 sm:$0xff]  }
  0xf4   :  { %4494 = vmatpush1.bf16.msra.mxu1 %v15790_v34  ;;  %4454 = vmatprep.subr.bf16.mxu0 %v15795_v35  ;;  %v15870_v34 = vld [vmem:[#allocation10 + $0x1da4] ss:$24 sps:$4 sm:$0xff]   ;;  %v15865_v35 = vld [vmem:[#allocation10 + $0x1aa0] ss:$24 sps:$4 sm:$0xff]  }
  0xf5   :  { %4495 = vmatprep.subr.bf16.mxu1 %v15798_v36  ;;  %v15868_v36 = vld [vmem:[#allocation10 + $0x1da0] ss:$24 sps:$4 sm:$0xff]  }
  0xf7   :  { %4455 = vmatpush1.bf16.msra.mxu0 %v15793_v37  ;;  %v15873_v37 = vld [vmem:[#allocation10 + $0x1ad4] ss:$24 sps:$4 sm:$0xff]  }
  0xf8   :  { %4496 = vmatpush1.bf16.msra.mxu1 %v15796_v38  ;;  %4456 = vmatprep.subr.bf16.mxu0 %v15801_v39  ;;  %v15876_v38 = vld [vmem:[#allocation10 + $0x1dd4] ss:$24 sps:$4 sm:$0xff]   ;;  %v15871_v39 = vld [vmem:[#allocation10 + $0x1ad0] ss:$24 sps:$4 sm:$0xff]  }
  0xf9   :  { %4497 = vmatprep.subr.bf16.mxu1 %v15804_v40  ;;  %v15874_v40 = vld [vmem:[#allocation10 + $0x1dd0] ss:$24 sps:$4 sm:$0xff]  }
  0xfb   :  { %4457 = vmatpush1.bf16.msra.mxu0 %v15799_v41  ;;  %v233_v41 = vld [vmem:[#allocation7 + $0x30] sm:$0xff] }
  0xfc   :  { %4498 = vmatpush1.bf16.msra.mxu1 %v15802_v42  ;;  %4458 = vmatprep.subr.bf16.mxu0 %v15807_v43  ;;  %v15879_v42 = vld [vmem:[#allocation10 + $0x1e04] ss:$24 sps:$4 sm:$0xff]  }
  0xfd   :  { %4499 = vmatprep.subr.bf16.mxu1 %v15810_v44  ;;  %v15882_v43 = vld [vmem:[#allocation10 + $0x2104] ss:$24 sps:$4 sm:$0xff]   ;;  %v18845_v44 = vpack.c.bf16 %v18833_v63, %v18833_v63 }
  0xff   :  { %4459 = vmatpush1.bf16.msra.mxu0 %v15805_v45  ;;  %v18847_v45 = vpack.c.bf16 %v233_v41, %v233_v41  ;;  %v15949_v41 = vld [vmem:[#allocation10 + $0x2040] ss:$24 sps:$4 sm:$0xff]  }
 0x100   :  { %4500 = vmatpush1.bf16.msra.mxu1 %v15808_v46  ;;  %4460 = vmatprep.subr.bf16.mxu0 %v15813_v47  ;;  %v15877_v46 = vld [vmem:[#allocation10 + $0x1e00] ss:$24 sps:$4 sm:$0xff]  }
 0x101   :  { %4501 = vmatprep.subr.bf16.mxu1 %v15816_v48  ;;  %v15880_v47 = vld [vmem:[#allocation10 + $0x2100] ss:$24 sps:$4 sm:$0xff]   ;;  %v15885_v48 = vld [vmem:[#allocation10 + $0x1e34] ss:$24 sps:$4 sm:$0xff]  }
 0x103   :  { %4461 = vmatpush1.bf16.msra.mxu0 %v15811_v49  ;;  %v15888_v49 = vld [vmem:[#allocation10 + $0x2134] ss:$24 sps:$4 sm:$0xff]  }
 0x104   :  { %4502 = vmatpush1.bf16.msra.mxu1 %v15814_v50  ;;  %4462 = vmatprep.subr.bf16.mxu0 %v15819_v51  ;;  %v15883_v50 = vld [vmem:[#allocation10 + $0x1e30] ss:$24 sps:$4 sm:$0xff]  }
 0x105   :  { %4503 = vmatprep.subr.bf16.mxu1 %v15822_v52  ;;  %v15886_v51 = vld [vmem:[#allocation10 + $0x2130] ss:$24 sps:$4 sm:$0xff]   ;;  %v15891_v52 = vld [vmem:[#allocation10 + $0x1e64] ss:$24 sps:$4 sm:$0xff]  }
 0x107   :  { %4463 = vmatpush1.bf16.msra.mxu0 %v15817_v53  ;;  %v15894_v53 = vld [vmem:[#allocation10 + $0x2164] ss:$24 sps:$4 sm:$0xff]  }
 0x108   :  { %4504 = vmatpush1.bf16.msra.mxu1 %v15820_v54  ;;  %4464 = vmatprep.subr.bf16.mxu0 %v15825_v56  ;;  %v236_v54 = vld [vmem:[#allocation7 + $0x48] sm:$0xff]  ;;  %v238_v56 = vld [vmem:[#allocation7 + $0x58] sm:$0xff] }
 0x109   :  { %4505 = vmatprep.subr.bf16.mxu1 %v15828_v57  ;;  %v15889_v57 = vld [vmem:[#allocation10 + $0x1e60] ss:$24 sps:$4 sm:$0xff]   ;;  %v18851_v62 = vpack.c.bf16 %v236_v54, %v236_v54  ;;  %v18853_v63 = vpack.c.bf16 %v238_v56, %v238_v56  ;;  %v15972_v54 = vld [vmem:[#allocation10 + $0x23d4] ss:$24 sps:$4 sm:$0xff]   ;;  %v15967_v56 = vld [vmem:[#allocation10 + $0x20d0] ss:$24 sps:$4 sm:$0xff]  }
 0x10b   :  { %4465 = vmatpush1.bf16.msra.mxu0 %v15823_v0  ;;  %v15900_v0 = vld [vmem:[#allocation10 + $0x2194] ss:$24 sps:$4 sm:$0xff]  }
 0x10c   :  { %4506 = vmatpush1.bf16.msra.mxu1 %v15826_v3  ;;  %4466 = vmatprep.subr.bf16.mxu0 %v15831_v4  ;;  %v15898_v3 = vld [vmem:[#allocation10 + $0x2190] ss:$24 sps:$4 sm:$0xff]   ;;  %v15903_v4 = vld [vmem:[#allocation10 + $0x1ec4] ss:$24 sps:$4 sm:$0xff]  }
 0x10d   :  { %4507 = vmatprep.subr.bf16.mxu1 %v15834_v5  ;;  %v15906_v5 = vld [vmem:[#allocation10 + $0x21c4] ss:$24 sps:$4 sm:$0xff]  }
 0x10f   :  { %4467 = vmatpush1.bf16.msra.mxu0 %v15829_v7  ;;  %v15904_v7 = vld [vmem:[#allocation10 + $0x21c0] ss:$24 sps:$4 sm:$0xff]  }
 0x110   :  { %4508 = vmatpush1.bf16.msra.mxu1 %v15832_v9  ;;  %4468 = vmatprep.subr.bf16.mxu0 %v15837_v10  ;;  %v15912_v9 = vld [vmem:[#allocation10 + $0x21f4] ss:$24 sps:$4 sm:$0xff]   ;;  %v15907_v10 = vld [vmem:[#allocation10 + $0x1ef0] ss:$24 sps:$4 sm:$0xff]  }
 0x111   :  { %4509 = vmatprep.subr.bf16.mxu1 %v15840_v11  ;;  %v15910_v11 = vld [vmem:[#allocation10 + $0x21f0] ss:$24 sps:$4 sm:$0xff]  }
 0x113   :  { %4469 = vmatpush1.bf16.msra.mxu0 %v15835_v13  ;;  %v15915_v13 = vld [vmem:[#allocation10 + $0x1f24] ss:$24 sps:$4 sm:$0xff]  }
 0x114   :  { %4510 = vmatpush1.bf16.msra.mxu1 %v15838_v14  ;;  %4470 = vmatprep.subr.bf16.mxu0 %v15843_v15  ;;  %v15918_v14 = vld [vmem:[#allocation10 + $0x2224] ss:$24 sps:$4 sm:$0xff]   ;;  %v15913_v15 = vld [vmem:[#allocation10 + $0x1f20] ss:$24 sps:$4 sm:$0xff]  }
 0x115   :  { %4511 = vmatprep.subr.bf16.mxu1 %v15846_v16  ;;  %v15916_v16 = vld [vmem:[#allocation10 + $0x2220] ss:$24 sps:$4 sm:$0xff]  }
 0x117   :  { %4471 = vmatpush1.bf16.msra.mxu0 %v15841_v17  ;;  %v15921_v17 = vld [vmem:[#allocation10 + $0x1f54] ss:$24 sps:$4 sm:$0xff]  }
 0x118   :  { %4512 = vmatpush1.bf16.msra.mxu1 %v15844_v18  ;;  %4472 = vmatprep.subr.bf16.mxu0 %v15849_v20  ;;  %v15924_v18 = vld [vmem:[#allocation10 + $0x2254] ss:$24 sps:$4 sm:$0xff]   ;;  %v15919_v20 = vld [vmem:[#allocation10 + $0x1f50] ss:$24 sps:$4 sm:$0xff]  }
 0x119   :  { %4513 = vmatprep.subr.bf16.mxu1 %v15852_v21  ;;  %v15922_v21 = vld [vmem:[#allocation10 + $0x2250] ss:$24 sps:$4 sm:$0xff]  }
 0x11b   :  { %4473 = vmatpush1.bf16.msra.mxu0 %v15847_v22  ;;  %v15927_v22 = vld [vmem:[#allocation10 + $0x1f84] ss:$24 sps:$4 sm:$0xff]  }
 0x11c   :  { %4514 = vmatpush1.bf16.msra.mxu1 %v15850_v19  ;;  %4474 = vmatprep.subr.bf16.mxu0 %v15855_v23  ;;  %v15930_v19 = vld [vmem:[#allocation10 + $0x2284] ss:$24 sps:$4 sm:$0xff]   ;;  %v15925_v23 = vld [vmem:[#allocation10 + $0x1f80] ss:$24 sps:$4 sm:$0xff]  }
 0x11d   :  { %4515 = vmatprep.subr.bf16.mxu1 %v15858_v24  ;;  %v15928_v24 = vld [vmem:[#allocation10 + $0x2280] ss:$24 sps:$4 sm:$0xff]  }
 0x11f   :  { %4475 = vmatpush1.bf16.msra.mxu0 %v15853_v25  ;;  %v15933_v25 = vld [vmem:[#allocation10 + $0x1fb4] ss:$24 sps:$4 sm:$0xff]  }
 0x120   :  { %4516 = vmatpush1.bf16.msra.mxu1 %v15856_v26  ;;  %4476 = vmatprep.subr.bf16.mxu0 %v15861_v29  ;;  %v15936_v26 = vld [vmem:[#allocation10 + $0x22b4] ss:$24 sps:$4 sm:$0xff]   ;;  %v15931_v29 = vld [vmem:[#allocation10 + $0x1fb0] ss:$24 sps:$4 sm:$0xff]  }
 0x121   :  { %4517 = vmatprep.subr.bf16.mxu1 %v15864_v30  ;;  %v15934_v30 = vld [vmem:[#allocation10 + $0x22b0] ss:$24 sps:$4 sm:$0xff]  }
 0x123   :  { %4477 = vmatpush1.bf16.msra.mxu0 %v15859_v31  ;;  %v15939_v31 = vld [vmem:[#allocation10 + $0x1fe4] ss:$24 sps:$4 sm:$0xff]  }
 0x124   :  { %4518 = vmatpush1.bf16.msra.mxu1 %v15862_v32  ;;  %4478 = vmatprep.subr.bf16.mxu0 %v15867_v33  ;;  %v15942_v32 = vld [vmem:[#allocation10 + $0x22e4] ss:$24 sps:$4 sm:$0xff]   ;;  %v15937_v33 = vld [vmem:[#allocation10 + $0x1fe0] ss:$24 sps:$4 sm:$0xff]  }
 0x125   :  { %4519 = vmatprep.subr.bf16.mxu1 %v15870_v34  ;;  %v15940_v34 = vld [vmem:[#allocation10 + $0x22e0] ss:$24 sps:$4 sm:$0xff]  }
 0x127   :  { %4479 = vmatpush1.bf16.msra.mxu0 %v15865_v35  ;;  %v15945_v35 = vld [vmem:[#allocation10 + $0x2014] ss:$24 sps:$4 sm:$0xff]  }
 0x128   :  { %4520 = vmatpush1.bf16.msra.mxu1 %v15868_v36  ;;  %4480 = vmatprep.subr.bf16.mxu0 %v15873_v37  ;;  %v15948_v36 = vld [vmem:[#allocation10 + $0x2314] ss:$24 sps:$4 sm:$0xff]   ;;  %v15943_v37 = vld [vmem:[#allocation10 + $0x2010] ss:$24 sps:$4 sm:$0xff]  }
 0x129   :  { %4521 = vmatprep.subr.bf16.mxu1 %v15876_v38  ;;  %v15946_v38 = vld [vmem:[#allocation10 + $0x2310] ss:$24 sps:$4 sm:$0xff]  }
 0x12b   :  { %4481 = vmatpush1.bf16.msra.mxu0 %v15871_v39  ;;  %v15951_v39 = vld [vmem:[#allocation10 + $0x2044] ss:$24 sps:$4 sm:$0xff]  }
 0x12c   :  { %4522 = vmatpush1.bf16.msra.mxu1 %v15874_v40  ;;  %4532 = vmatprep.subr.bf16.mxu0 %v15879_v42  ;;  %v15954_v40 = vld [vmem:[#allocation10 + $0x2344] ss:$24 sps:$4 sm:$0xff]   ;;  %v15952_v42 = vld [vmem:[#allocation10 + $0x2340] ss:$24 sps:$4 sm:$0xff]  }
 0x12d   :  { %4573 = vmatprep.subr.bf16.mxu1 %v15882_v43  ;;  %v15957_v43 = vld [vmem:[#allocation10 + $0x2074] ss:$24 sps:$4 sm:$0xff]  }
 0x12e   :  { %4483 = vmatmul.mubr.bf16.vlgmr.msra.gmra.mrb[4].mxu0 %v18845_v44 }
 0x12f   :  { %4524 = vmatmul.mubr.bf16.vlgmr.msra.gmra.mrb[4].mxu1 %v18847_v45  ;;  %4533 = vmatpush1.bf16.msra.mxu0 %v15877_v46  ;;  %v15960_v46 = vld [vmem:[#allocation10 + $0x2374] ss:$24 sps:$4 sm:$0xff]  }
 0x130   :  { %4574 = vmatpush1.bf16.msra.mxu1 %v15880_v47  ;;  %4534 = vmatprep.subr.bf16.mxu0 %v15885_v48  ;;  %v15955_v47 = vld [vmem:[#allocation10 + $0x2070] ss:$24 sps:$4 sm:$0xff]  }
 0x131   :  { %4575 = vmatprep.subr.bf16.mxu1 %v15888_v49  ;;  %4564 = vmatprep.mubr.bf16.mxu0 %v18851_v62  ;;  %v15958_v48 = vld [vmem:[#allocation10 + $0x2370] ss:$24 sps:$4 sm:$0xff]   ;;  %v15963_v49 = vld [vmem:[#allocation10 + $0x20a4] ss:$24 sps:$4 sm:$0xff]  }
 0x132   :  { %4605 = vmatprep.mubr.bf16.mxu1 %v18853_v63 }
 0x133   :  { %4535 = vmatpush1.bf16.msra.mxu0 %v15883_v50  ;;  %v15966_v50 = vld [vmem:[#allocation10 + $0x23a4] ss:$24 sps:$4 sm:$0xff]  }
 0x134   :  { %4576 = vmatpush1.bf16.msra.mxu1 %v15886_v51  ;;  %4536 = vmatprep.subr.bf16.mxu0 %v15891_v52  ;;  %v15961_v51 = vld [vmem:[#allocation10 + $0x20a0] ss:$24 sps:$4 sm:$0xff]  }
 0x135   :  { %4577 = vmatprep.subr.bf16.mxu1 %v15894_v53  ;;  %v15964_v52 = vld [vmem:[#allocation10 + $0x23a0] ss:$24 sps:$4 sm:$0xff]   ;;  %v15969_v53 = vld [vmem:[#allocation10 + $0x20d4] ss:$24 sps:$4 sm:$0xff]  }
 0x137   :  { %4537 = vmatpush1.bf16.msra.mxu0 %v15889_v57  ;;  %v15970_v57 = vld [vmem:[#allocation10 + $0x23d0] ss:$24 sps:$4 sm:$0xff]  }
 0x138   :  { %4578 = vmatpush1.bf16.msra.mxu1 %v15892_v58  ;;  %4538 = vmatprep.subr.bf16.mxu0 %v15897_v61  ;;  %v235_v58 = vld [vmem:[#allocation7 + $0x40] sm:$0xff]  ;;  %v237_v61 = vld [vmem:[#allocation7 + $0x50] sm:$0xff] }
 0x139   :  { %4579 = vmatprep.subr.bf16.mxu1 %v15900_v0  ;;  %v15975_v0 = vld [vmem:[#allocation10 + $0x120c] ss:$24 sps:$4 sm:$0xff]  }
 0x13b   :  { %4539 = vmatpush1.bf16.msra.mxu0 %v15895_v2  ;;  %v15978_v2 = vld [vmem:[#allocation10 + $0x150c] ss:$24 sps:$4 sm:$0xff]  }
 0x13c   :  { %4580 = vmatpush1.bf16.msra.mxu1 %v15898_v3  ;;  %4540 = vmatprep.subr.bf16.mxu0 %v15903_v4  ;;  %v18857_v3 = vpack.c.bf16 %v235_v58, %v235_v58  ;;  %v18859_v4 = vpack.c.bf16 %v237_v61, %v237_v61  ;;  %v16050_v58 = vld [vmem:[#allocation10 + $0x174c] ss:$24 sps:$4 sm:$0xff]   ;;  %v16045_v61 = vld [vmem:[#allocation10 + $0x1448] ss:$24 sps:$4 sm:$0xff]  }
 0x13d   :  { %4581 = vmatprep.subr.bf16.mxu1 %v15906_v5  ;;  %v15973_v5 = vld [vmem:[#allocation10 + $0x1208] ss:$24 sps:$4 sm:$0xff]  }
 0x13f   :  { %4541 = vmatpush1.bf16.msra.mxu0 %v15901_v6  ;;  %v15976_v6 = vld [vmem:[#allocation10 + $0x1508] ss:$24 sps:$4 sm:$0xff]  }
 0x140   :  { %4582 = vmatpush1.bf16.msra.mxu1 %v15904_v7  ;;  %4542 = vmatprep.subr.bf16.mxu0 %v15909_v8  ;;  %v15981_v7 = vld [vmem:[#allocation10 + $0x123c] ss:$24 sps:$4 sm:$0xff]  }
 0x141   :  { %4583 = vmatprep.subr.bf16.mxu1 %v15912_v9  ;;  %v15984_v8 = vld [vmem:[#allocation10 + $0x153c] ss:$24 sps:$4 sm:$0xff]   ;;  %v15979_v9 = vld [vmem:[#allocation10 + $0x1238] ss:$24 sps:$4 sm:$0xff]  }
 0x143   :  { %4543 = vmatpush1.bf16.msra.mxu0 %v15907_v10  ;;  %v15982_v10 = vld [vmem:[#allocation10 + $0x1538] ss:$24 sps:$4 sm:$0xff]  }
 0x144   :  { %4584 = vmatpush1.bf16.msra.mxu1 %v15910_v11  ;;  %4544 = vmatprep.subr.bf16.mxu0 %v15915_v13  ;;  %v15987_v11 = vld [vmem:[#allocation10 + $0x126c] ss:$24 sps:$4 sm:$0xff]  }
 0x145   :  { %4585 = vmatprep.subr.bf16.mxu1 %v15918_v14  ;;  %v15990_v13 = vld [vmem:[#allocation10 + $0x156c] ss:$24 sps:$4 sm:$0xff]   ;;  %v15985_v14 = vld [vmem:[#allocation10 + $0x1268] ss:$24 sps:$4 sm:$0xff]  }
 0x147   :  { %4545 = vmatpush1.bf16.msra.mxu0 %v15913_v15  ;;  %v15988_v15 = vld [vmem:[#allocation10 + $0x1568] ss:$24 sps:$4 sm:$0xff]  }
 0x148   :  { %4586 = vmatpush1.bf16.msra.mxu1 %v15916_v16  ;;  %4546 = vmatprep.subr.bf16.mxu0 %v15921_v17  ;;  %v15993_v16 = vld [vmem:[#allocation10 + $0x129c] ss:$24 sps:$4 sm:$0xff]  }
 0x149   :  { %4587 = vmatprep.subr.bf16.mxu1 %v15924_v18  ;;  %v15996_v17 = vld [vmem:[#allocation10 + $0x159c] ss:$24 sps:$4 sm:$0xff]   ;;  %v15991_v18 = vld [vmem:[#allocation10 + $0x1298] ss:$24 sps:$4 sm:$0xff]  }
 0x14b   :  { %4547 = vmatpush1.bf16.msra.mxu0 %v15919_v20  ;;  %v15994_v20 = vld [vmem:[#allocation10 + $0x1598] ss:$24 sps:$4 sm:$0xff]  }
 0x14c   :  { %4588 = vmatpush1.bf16.msra.mxu1 %v15922_v21  ;;  %4548 = vmatprep.subr.bf16.mxu0 %v15927_v22  ;;  %v15999_v21 = vld [vmem:[#allocation10 + $0x12cc] ss:$24 sps:$4 sm:$0xff]  }
 0x14d   :  { %4589 = vmatprep.subr.bf16.mxu1 %v15930_v19  ;;  %v16002_v22 = vld [vmem:[#allocation10 + $0x15cc] ss:$24 sps:$4 sm:$0xff]   ;;  %v15997_v19 = vld [vmem:[#allocation10 + $0x12c8] ss:$24 sps:$4 sm:$0xff]  }
 0x14f   :  { %4549 = vmatpush1.bf16.msra.mxu0 %v15925_v23  ;;  %v16000_v23 = vld [vmem:[#allocation10 + $0x15c8] ss:$24 sps:$4 sm:$0xff]  }
 0x150   :  { %4590 = vmatpush1.bf16.msra.mxu1 %v15928_v24  ;;  %4550 = vmatprep.subr.bf16.mxu0 %v15933_v25  ;;  %v16005_v24 = vld [vmem:[#allocation10 + $0x12fc] ss:$24 sps:$4 sm:$0xff]  }
 0x151   :  { %4591 = vmatprep.subr.bf16.mxu1 %v15936_v26  ;;  %v16008_v25 = vld [vmem:[#allocation10 + $0x15fc] ss:$24 sps:$4 sm:$0xff]   ;;  %v16003_v26 = vld [vmem:[#allocation10 + $0x12f8] ss:$24 sps:$4 sm:$0xff]  }
 0x153   :  { %4551 = vmatpush1.bf16.msra.mxu0 %v15931_v29  ;;  %v16006_v29 = vld [vmem:[#allocation10 + $0x15f8] ss:$24 sps:$4 sm:$0xff]  }
 0x154   :  { %4592 = vmatpush1.bf16.msra.mxu1 %v15934_v30  ;;  %4552 = vmatprep.subr.bf16.mxu0 %v15939_v31  ;;  %v16011_v30 = vld [vmem:[#allocation10 + $0x132c] ss:$24 sps:$4 sm:$0xff]  }
 0x155   :  { %4593 = vmatprep.subr.bf16.mxu1 %v15942_v32  ;;  %v16014_v31 = vld [vmem:[#allocation10 + $0x162c] ss:$24 sps:$4 sm:$0xff]   ;;  %v16009_v32 = vld [vmem:[#allocation10 + $0x1328] ss:$24 sps:$4 sm:$0xff]  }
 0x157   :  { %4553 = vmatpush1.bf16.msra.mxu0 %v15937_v33  ;;  %v16012_v33 = vld [vmem:[#allocation10 + $0x1628] ss:$24 sps:$4 sm:$0xff]  }
 0x158   :  { %4594 = vmatpush1.bf16.msra.mxu1 %v15940_v34  ;;  %4554 = vmatprep.subr.bf16.mxu0 %v15945_v35  ;;  %v16017_v34 = vld [vmem:[#allocation10 + $0x135c] ss:$24 sps:$4 sm:$0xff]  }
 0x159   :  { %4595 = vmatprep.subr.bf16.mxu1 %v15948_v36  ;;  %v16020_v35 = vld [vmem:[#allocation10 + $0x165c] ss:$24 sps:$4 sm:$0xff]   ;;  %v16015_v36 = vld [vmem:[#allocation10 + $0x1358] ss:$24 sps:$4 sm:$0xff]  }
 0x15b   :  { %4555 = vmatpush1.bf16.msra.mxu0 %v15943_v37  ;;  %v16018_v37 = vld [vmem:[#allocation10 + $0x1658] ss:$24 sps:$4 sm:$0xff]  }
 0x15c   :  { %4596 = vmatpush1.bf16.msra.mxu1 %v15946_v38  ;;  %4556 = vmatprep.subr.bf16.mxu0 %v15951_v39  ;;  %v16023_v38 = vld [vmem:[#allocation10 + $0x138c] ss:$24 sps:$4 sm:$0xff]  }
 0x15d   :  { %4597 = vmatprep.subr.bf16.mxu1 %v15954_v40  ;;  %v16026_v39 = vld [vmem:[#allocation10 + $0x168c] ss:$24 sps:$4 sm:$0xff]   ;;  %v16021_v40 = vld [vmem:[#allocation10 + $0x1388] ss:$24 sps:$4 sm:$0xff]  }
 0x15f   :  { %4557 = vmatpush1.bf16.msra.mxu0 %v15949_v41  ;;  %v16024_v41 = vld [vmem:[#allocation10 + $0x1688] ss:$24 sps:$4 sm:$0xff]  }
 0x160   :  { %4598 = vmatpush1.bf16.msra.mxu1 %v15952_v42  ;;  %4558 = vmatprep.subr.bf16.mxu0 %v15957_v43  ;;  %v16029_v42 = vld [vmem:[#allocation10 + $0x13bc] ss:$24 sps:$4 sm:$0xff]  }
 0x161   :  { %4599 = vmatprep.subr.bf16.mxu1 %v15960_v46  ;;  %v16032_v43 = vld [vmem:[#allocation10 + $0x16bc] ss:$24 sps:$4 sm:$0xff]   ;;  %v16027_v46 = vld [vmem:[#allocation10 + $0x13b8] ss:$24 sps:$4 sm:$0xff]  }
 0x163   :  { %4559 = vmatpush1.bf16.msra.mxu0 %v15955_v47  ;;  %v16030_v47 = vld [vmem:[#allocation10 + $0x16b8] ss:$24 sps:$4 sm:$0xff]  }
 0x164   :  { %4600 = vmatpush1.bf16.msra.mxu1 %v15958_v48  ;;  %4560 = vmatprep.subr.bf16.mxu0 %v15963_v49  ;;  %v16035_v48 = vld [vmem:[#allocation10 + $0x13ec] ss:$24 sps:$4 sm:$0xff]  }
 0x165   :  { %4601 = vmatprep.subr.bf16.mxu1 %v15966_v50  ;;  %v16038_v49 = vld [vmem:[#allocation10 + $0x16ec] ss:$24 sps:$4 sm:$0xff]   ;;  %v16033_v50 = vld [vmem:[#allocation10 + $0x13e8] ss:$24 sps:$4 sm:$0xff]  }
 0x167   :  { %4561 = vmatpush1.bf16.msra.mxu0 %v15961_v51  ;;  %v16036_v51 = vld [vmem:[#allocation10 + $0x16e8] ss:$24 sps:$4 sm:$0xff]  }
 0x168   :  { %4602 = vmatpush1.bf16.msra.mxu1 %v15964_v52  ;;  %4562 = vmatprep.subr.bf16.mxu0 %v15969_v53  ;;  %v16041_v52 = vld [vmem:[#allocation10 + $0x141c] ss:$24 sps:$4 sm:$0xff]  }
 0x169   :  { %4603 = vmatprep.subr.bf16.mxu1 %v15972_v54  ;;  %v16044_v53 = vld [vmem:[#allocation10 + $0x171c] ss:$24 sps:$4 sm:$0xff]   ;;  %v16039_v54 = vld [vmem:[#allocation10 + $0x1418] ss:$24 sps:$4 sm:$0xff]  }
 0x16b   :  { %4563 = vmatpush1.bf16.msra.mxu0 %v15967_v56  ;;  %v16042_v56 = vld [vmem:[#allocation10 + $0x1718] ss:$24 sps:$4 sm:$0xff]  }
 0x16c   :  { %4604 = vmatpush1.bf16.msra.mxu1 %v15970_v57  ;;  %4614 = vmatprep.subr.bf16.mxu0 %v15975_v0  ;;  %v16047_v57 = vld [vmem:[#allocation10 + $0x144c] ss:$24 sps:$4 sm:$0xff]   ;;  %v16048_v0 = vld [vmem:[#allocation10 + $0x1748] ss:$24 sps:$4 sm:$0xff]  }
 0x16d   :  { %4655 = vmatprep.subr.bf16.mxu1 %v15978_v2  ;;  %v16053_v2 = vld [vmem:[#allocation10 + $0x147c] ss:$24 sps:$4 sm:$0xff]  }
 0x16e   :  { %4565 = vmatmul.mubr.bf16.vlgmr.msra.gmra.mrb[8].mxu0 %v18857_v3 }
 0x16f   :  { %4606 = vmatmul.mubr.bf16.vlgmr.msra.gmra.mrb[8].mxu1 %v18859_v4  ;;  %4615 = vmatpush1.bf16.msra.mxu0 %v15973_v5  ;;  %v16056_v5 = vld [vmem:[#allocation10 + $0x177c] ss:$24 sps:$4 sm:$0xff]  }
 0x170   :  { %4656 = vmatpush1.bf16.msra.mxu1 %v15976_v6  ;;  %4616 = vmatprep.subr.bf16.mxu0 %v15981_v7  ;;  %v16051_v6 = vld [vmem:[#allocation10 + $0x1478] ss:$24 sps:$4 sm:$0xff]  }
 0x171   :  { %4657 = vmatprep.subr.bf16.mxu1 %v15984_v8  ;;  %4646 = vmatprep.mubr.bf16.mxu0 %v18817_v55  ;;  %v16054_v7 = vld [vmem:[#allocation10 + $0x1778] ss:$24 sps:$4 sm:$0xff]   ;;  %v16059_v8 = vld [vmem:[#allocation10 + $0x14ac] ss:$24 sps:$4 sm:$0xff]  }
 0x172   :  { %4687 = vmatprep.mubr.bf16.mxu1 %v18819_v60 }
 0x173   :  { %4617 = vmatpush1.bf16.msra.mxu0 %v15979_v9  ;;  %v16062_v9 = vld [vmem:[#allocation10 + $0x17ac] ss:$24 sps:$4 sm:$0xff]  }
 0x174   :  { %4658 = vmatpush1.bf16.msra.mxu1 %v15982_v10  ;;  %4618 = vmatprep.subr.bf16.mxu0 %v15987_v11  ;;  %v16057_v10 = vld [vmem:[#allocation10 + $0x14a8] ss:$24 sps:$4 sm:$0xff]  }
 0x175   :  { %4659 = vmatprep.subr.bf16.mxu1 %v15990_v13  ;;  %v16060_v11 = vld [vmem:[#allocation10 + $0x17a8] ss:$24 sps:$4 sm:$0xff]   ;;  %v16065_v13 = vld [vmem:[#allocation10 + $0x14dc] ss:$24 sps:$4 sm:$0xff]  }
 0x177   :  { %4619 = vmatpush1.bf16.msra.mxu0 %v15985_v14  ;;  %v16068_v14 = vld [vmem:[#allocation10 + $0x17dc] ss:$24 sps:$4 sm:$0xff]  }
 0x178   :  { %4660 = vmatpush1.bf16.msra.mxu1 %v15988_v15  ;;  %4620 = vmatprep.subr.bf16.mxu0 %v15993_v16  ;;  %v16063_v15 = vld [vmem:[#allocation10 + $0x14d8] ss:$24 sps:$4 sm:$0xff]  }
 0x179   :  { %4661 = vmatprep.subr.bf16.mxu1 %v15996_v17  ;;  %v16066_v16 = vld [vmem:[#allocation10 + $0x17d8] ss:$24 sps:$4 sm:$0xff]   ;;  %v16071_v17 = vld [vmem:[#allocation10 + $0x180c] ss:$24 sps:$4 sm:$0xff]  }
 0x17b   :  { %4621 = vmatpush1.bf16.msra.mxu0 %v15991_v18  ;;  %v16074_v18 = vld [vmem:[#allocation10 + $0x1b0c] ss:$24 sps:$4 sm:$0xff]  }
 0x17c   :  { %4662 = vmatpush1.bf16.msra.mxu1 %v15994_v20  ;;  %4622 = vmatprep.subr.bf16.mxu0 %v15999_v21  ;;  %v16069_v20 = vld [vmem:[#allocation10 + $0x1808] ss:$24 sps:$4 sm:$0xff]  }
 0x17d   :  { %4663 = vmatprep.subr.bf16.mxu1 %v16002_v22  ;;  %v16072_v21 = vld [vmem:[#allocation10 + $0x1b08] ss:$24 sps:$4 sm:$0xff]   ;;  %v16077_v22 = vld [vmem:[#allocation10 + $0x183c] ss:$24 sps:$4 sm:$0xff]  }
 0x17f   :  { %4623 = vmatpush1.bf16.msra.mxu0 %v15997_v19  ;;  %v16080_v19 = vld [vmem:[#allocation10 + $0x1b3c] ss:$24 sps:$4 sm:$0xff]  }
 0x180   :  { %4664 = vmatpush1.bf16.msra.mxu1 %v16000_v23  ;;  %4624 = vmatprep.subr.bf16.mxu0 %v16005_v24  ;;  %v16075_v23 = vld [vmem:[#allocation10 + $0x1838] ss:$24 sps:$4 sm:$0xff]  }
 0x181   :  { %4665 = vmatprep.subr.bf16.mxu1 %v16008_v25  ;;  %v16078_v24 = vld [vmem:[#allocation10 + $0x1b38] ss:$24 sps:$4 sm:$0xff]   ;;  %v16083_v25 = vld [vmem:[#allocation10 + $0x186c] ss:$24 sps:$4 sm:$0xff]  }
 0x183   :  { %4625 = vmatpush1.bf16.msra.mxu0 %v16003_v26  ;;  %v16086_v26 = vld [vmem:[#allocation10 + $0x1b6c] ss:$24 sps:$4 sm:$0xff]  }
 0x184   :  { %4666 = vmatpush1.bf16.msra.mxu1 %v16006_v29  ;;  %4626 = vmatprep.subr.bf16.mxu0 %v16011_v30  ;;  %v16081_v29 = vld [vmem:[#allocation10 + $0x1868] ss:$24 sps:$4 sm:$0xff]  }
 0x185   :  { %4667 = vmatprep.subr.bf16.mxu1 %v16014_v31  ;;  %v16084_v30 = vld [vmem:[#allocation10 + $0x1b68] ss:$24 sps:$4 sm:$0xff]   ;;  %v16089_v31 = vld [vmem:[#allocation10 + $0x189c] ss:$24 sps:$4 sm:$0xff]  }
 0x187   :  { %4627 = vmatpush1.bf16.msra.mxu0 %v16009_v32  ;;  %v16092_v32 = vld [vmem:[#allocation10 + $0x1b9c] ss:$24 sps:$4 sm:$0xff]  }
 0x188   :  { %4668 = vmatpush1.bf16.msra.mxu1 %v16012_v33  ;;  %4628 = vmatprep.subr.bf16.mxu0 %v16017_v34  ;;  %v16087_v33 = vld [vmem:[#allocation10 + $0x1898] ss:$24 sps:$4 sm:$0xff]  }
 0x189   :  { %4669 = vmatprep.subr.bf16.mxu1 %v16020_v35  ;;  %v16090_v34 = vld [vmem:[#allocation10 + $0x1b98] ss:$24 sps:$4 sm:$0xff]   ;;  %v16095_v35 = vld [vmem:[#allocation10 + $0x18cc] ss:$24 sps:$4 sm:$0xff]  }
 0x18b   :  { %4629 = vmatpush1.bf16.msra.mxu0 %v16015_v36  ;;  %v16098_v36 = vld [vmem:[#allocation10 + $0x1bcc] ss:$24 sps:$4 sm:$0xff]  }
 0x18c   :  { %4670 = vmatpush1.bf16.msra.mxu1 %v16018_v37  ;;  %4630 = vmatprep.subr.bf16.mxu0 %v16023_v38  ;;  %v16093_v37 = vld [vmem:[#allocation10 + $0x18c8] ss:$24 sps:$4 sm:$0xff]  }
 0x18d   :  { %4671 = vmatprep.subr.bf16.mxu1 %v16026_v39  ;;  %v16096_v38 = vld [vmem:[#allocation10 + $0x1bc8] ss:$24 sps:$4 sm:$0xff]   ;;  %v16101_v39 = vld [vmem:[#allocation10 + $0x18fc] ss:$24 sps:$4 sm:$0xff]  }
 0x18f   :  { %4631 = vmatpush1.bf16.msra.mxu0 %v16021_v40  ;;  %v16104_v40 = vld [vmem:[#allocation10 + $0x1bfc] ss:$24 sps:$4 sm:$0xff]  }
 0x190   :  { %4672 = vmatpush1.bf16.msra.mxu1 %v16024_v41  ;;  %4632 = vmatprep.subr.bf16.mxu0 %v16029_v42  ;;  %v16099_v41 = vld [vmem:[#allocation10 + $0x18f8] ss:$24 sps:$4 sm:$0xff]  }
 0x191   :  { %4673 = vmatprep.subr.bf16.mxu1 %v16032_v43  ;;  %v16102_v42 = vld [vmem:[#allocation10 + $0x1bf8] ss:$24 sps:$4 sm:$0xff]   ;;  %v16107_v43 = vld [vmem:[#allocation10 + $0x192c] ss:$24 sps:$4 sm:$0xff]  }
 0x193   :  { %4633 = vmatpush1.bf16.msra.mxu0 %v16027_v46  ;;  %v16110_v46 = vld [vmem:[#allocation10 + $0x1c2c] ss:$24 sps:$4 sm:$0xff]  }
 0x194   :  { %4674 = vmatpush1.bf16.msra.mxu1 %v16030_v47  ;;  %4634 = vmatprep.subr.bf16.mxu0 %v16035_v48 }
 0x195   :  { %4675 = vmatprep.subr.bf16.mxu1 %v16038_v49 }
 0x197   :  { %4635 = vmatpush1.bf16.msra.mxu0 %v16033_v50 }
 0x198   :  { %4676 = vmatpush1.bf16.msra.mxu1 %v16036_v51  ;;  %4636 = vmatprep.subr.bf16.mxu0 %v16041_v52  ;;  %v16105_v52 = vld [vmem:[#allocation10 + $0x1928] ss:$24 sps:$4 sm:$0xff]  }
 0x199   :  { %4677 = vmatprep.subr.bf16.mxu1 %v16044_v53  ;;  %v16108_v53 = vld [vmem:[#allocation10 + $0x1c28] ss:$24 sps:$4 sm:$0xff]  }
 0x19b   :  { %4637 = vmatpush1.bf16.msra.mxu0 %v16039_v54 }
 0x19c   :  { %4678 = vmatpush1.bf16.msra.mxu1 %v16042_v56  ;;  %4638 = vmatprep.subr.bf16.mxu0 %v16047_v57 }
 0x19d   :  { %4679 = vmatprep.subr.bf16.mxu1 %v16050_v58  ;;  %v16113_v58 = vld [vmem:[#allocation10 + $0x195c] ss:$24 sps:$4 sm:$0xff]  }
 0x19f   :  { %4639 = vmatpush1.bf16.msra.mxu0 %v16045_v61 }
 0x1a0   :  { %4680 = vmatpush1.bf16.msra.mxu1 %v16048_v0  ;;  %4640 = vmatprep.subr.bf16.mxu0 %v16053_v2  ;;  %v16116_v2 = vld [vmem:[#allocation10 + $0x1c5c] ss:$24 sps:$4 sm:$0xff]  }
 0x1a1   :  { %4681 = vmatprep.subr.bf16.mxu1 %v16056_v5  ;;  %v16111_v5 = vld [vmem:[#allocation10 + $0x1958] ss:$24 sps:$4 sm:$0xff]  }
 0x1a3   :  { %4641 = vmatpush1.bf16.msra.mxu0 %v16051_v6  ;;  %v16114_v6 = vld [vmem:[#allocation10 + $0x1c58] ss:$24 sps:$4 sm:$0xff]  }
 0x1a4   :  { %4682 = vmatpush1.bf16.msra.mxu1 %v16054_v7  ;;  %4642 = vmatprep.subr.bf16.mxu0 %v16059_v8  ;;  %v16119_v7 = vld [vmem:[#allocation10 + $0x198c] ss:$24 sps:$4 sm:$0xff]  }
 0x1a5   :  { %4683 = vmatprep.subr.bf16.mxu1 %v16062_v9  ;;  %v16122_v8 = vld [vmem:[#allocation10 + $0x1c8c] ss:$24 sps:$4 sm:$0xff]   ;;  %v16117_v9 = vld [vmem:[#allocation10 + $0x1988] ss:$24 sps:$4 sm:$0xff]  }
 0x1a7   :  { %4643 = vmatpush1.bf16.msra.mxu0 %v16057_v10  ;;  %v16120_v10 = vld [vmem:[#allocation10 + $0x1c88] ss:$24 sps:$4 sm:$0xff]  }
 0x1a8   :  { %4684 = vmatpush1.bf16.msra.mxu1 %v16060_v11  ;;  %4644 = vmatprep.subr.bf16.mxu0 %v16065_v13  ;;  %v16125_v11 = vld [vmem:[#allocation10 + $0x19bc] ss:$24 sps:$4 sm:$0xff]  }
 0x1a9   :  { %4685 = vmatprep.subr.bf16.mxu1 %v16068_v14  ;;  %v16128_v13 = vld [vmem:[#allocation10 + $0x1cbc] ss:$24 sps:$4 sm:$0xff]   ;;  %v16123_v14 = vld [vmem:[#allocation10 + $0x19b8] ss:$24 sps:$4 sm:$0xff]  }
 0x1ab   :  { %4645 = vmatpush1.bf16.msra.mxu0 %v16063_v15  ;;  %v16126_v15 = vld [vmem:[#allocation10 + $0x1cb8] ss:$24 sps:$4 sm:$0xff]  }
 0x1ac   :  { %4686 = vmatpush1.bf16.msra.mxu1 %v16066_v16  ;;  %4696 = vmatprep.subr.bf16.mxu0 %v16071_v17  ;;  %v16131_v16 = vld [vmem:[#allocation10 + $0x19ec] ss:$24 sps:$4 sm:$0xff]  }
 0x1ad   :  { %4737 = vmatprep.subr.bf16.mxu1 %v16074_v18  ;;  %v16134_v17 = vld [vmem:[#allocation10 + $0x1cec] ss:$24 sps:$4 sm:$0xff]   ;;  %v16129_v18 = vld [vmem:[#allocation10 + $0x19e8] ss:$24 sps:$4 sm:$0xff]  }
 0x1ae   :  { %4647 = vmatmul.mubr.bf16.vlgmr.msra.gmra.mrb[12].mxu0 %v18825_v27 }
 0x1af   :  { %4688 = vmatmul.mubr.bf16.vlgmr.msra.gmra.mrb[12].mxu1 %v18827_v28  ;;  %4697 = vmatpush1.bf16.msra.mxu0 %v16069_v20  ;;  %v16132_v20 = vld [vmem:[#allocation10 + $0x1ce8] ss:$24 sps:$4 sm:$0xff]  }
 0x1b0   :  { %4738 = vmatpush1.bf16.msra.mxu1 %v16072_v21  ;;  %4698 = vmatprep.subr.bf16.mxu0 %v16077_v22  ;;  %v16137_v21 = vld [vmem:[#allocation10 + $0x1a1c] ss:$24 sps:$4 sm:$0xff]  }
 0x1b1   :  { %4739 = vmatprep.subr.bf16.mxu1 %v16080_v19  ;;  %4728 = vmatprep.mubr.bf16.mxu0 %v18831_v59  ;;  %v16140_v22 = vld [vmem:[#allocation10 + $0x1d1c] ss:$24 sps:$4 sm:$0xff]   ;;  %v16135_v19 = vld [vmem:[#allocation10 + $0x1a18] ss:$24 sps:$4 sm:$0xff]  }
 0x1b2   :  { %4769 = vmatprep.mubr.bf16.mxu1 %v18835_v1 }
 0x1b3   :  { %4699 = vmatpush1.bf16.msra.mxu0 %v16075_v23  ;;  %v16138_v23 = vld [vmem:[#allocation10 + $0x1d18] ss:$24 sps:$4 sm:$0xff]  }
 0x1b4   :  { %4740 = vmatpush1.bf16.msra.mxu1 %v16078_v24  ;;  %4700 = vmatprep.subr.bf16.mxu0 %v16083_v25  ;;  %v16143_v24 = vld [vmem:[#allocation10 + $0x1a4c] ss:$24 sps:$4 sm:$0xff]  }
 0x1b5   :  { %4741 = vmatprep.subr.bf16.mxu1 %v16086_v26  ;;  %v16146_v25 = vld [vmem:[#allocation10 + $0x1d4c] ss:$24 sps:$4 sm:$0xff]   ;;  %v16141_v26 = vld [vmem:[#allocation10 + $0x1a48] ss:$24 sps:$4 sm:$0xff]  }
 0x1b7   :  { %4701 = vmatpush1.bf16.msra.mxu0 %v16081_v29  ;;  %v16144_v29 = vld [vmem:[#allocation10 + $0x1d48] ss:$24 sps:$4 sm:$0xff]  }
 0x1b8   :  { %4742 = vmatpush1.bf16.msra.mxu1 %v16084_v30  ;;  %4702 = vmatprep.subr.bf16.mxu0 %v16089_v31  ;;  %v16149_v30 = vld [vmem:[#allocation10 + $0x1a7c] ss:$24 sps:$4 sm:$0xff]  }
 0x1b9   :  { %4743 = vmatprep.subr.bf16.mxu1 %v16092_v32  ;;  %v16152_v31 = vld [vmem:[#allocation10 + $0x1d7c] ss:$24 sps:$4 sm:$0xff]   ;;  %v16147_v32 = vld [vmem:[#allocation10 + $0x1a78] ss:$24 sps:$4 sm:$0xff]  }
 0x1bb   :  { %4703 = vmatpush1.bf16.msra.mxu0 %v16087_v33  ;;  %v16150_v33 = vld [vmem:[#allocation10 + $0x1d78] ss:$24 sps:$4 sm:$0xff]  }
 0x1bc   :  { %4744 = vmatpush1.bf16.msra.mxu1 %v16090_v34  ;;  %4704 = vmatprep.subr.bf16.mxu0 %v16095_v35  ;;  %v16155_v34 = vld [vmem:[#allocation10 + $0x1aac] ss:$24 sps:$4 sm:$0xff]  }
 0x1bd   :  { %4745 = vmatprep.subr.bf16.mxu1 %v16098_v36  ;;  %v16158_v35 = vld [vmem:[#allocation10 + $0x1dac] ss:$24 sps:$4 sm:$0xff]   ;;  %v16153_v36 = vld [vmem:[#allocation10 + $0x1aa8] ss:$24 sps:$4 sm:$0xff]  }
 0x1bf   :  { %4705 = vmatpush1.bf16.msra.mxu0 %v16093_v37  ;;  %v16156_v37 = vld [vmem:[#allocation10 + $0x1da8] ss:$24 sps:$4 sm:$0xff]  }
 0x1c0   :  { %4746 = vmatpush1.bf16.msra.mxu1 %v16096_v38  ;;  %4706 = vmatprep.subr.bf16.mxu0 %v16101_v39  ;;  %v16161_v38 = vld [vmem:[#allocation10 + $0x1adc] ss:$24 sps:$4 sm:$0xff]  }
 0x1c1   :  { %4747 = vmatprep.subr.bf16.mxu1 %v16104_v40  ;;  %v4402_v47 = vpop.f32.mrb[0].mxu0  ;;  %v16164_v39 = vld [vmem:[#allocation10 + $0x1ddc] ss:$24 sps:$4 sm:$0xff]   ;;  %v16159_v40 = vld [vmem:[#allocation10 + $0x1ad8] ss:$24 sps:$4 sm:$0xff]  }
 0x1c2   :  { %v4443_v48 = vpop.f32.mrb[0].mxu1  ;;  %v4404_v50 = vpop.f32.mrb[1].mxu0 }
 0x1c3   :  { %v18869_v49 = vadd.f32 %v4443_v48, %v4402_v47  ;;  %v4445_v51 = vpop.f32.mrb[1].mxu1  ;;  %v4406_v56 = vpop.f32.mrb[2].mxu0  ;;  %4707 = vmatpush1.bf16.msra.mxu0 %v16099_v41  ;;  %v16162_v41 = vld [vmem:[#allocation10 + $0x1dd8] ss:$24 sps:$4 sm:$0xff]   ;;  %v16168_v47 = vld [vmem:[#allocation10 + $0x2108] ss:$24 sps:$4 sm:$0xff]  }
 0x1c4   :  { %v18871_v54 = vadd.f32 %v4445_v51, %v4404_v50  ;;  %v4447_v57 = vpop.f32.mrb[2].mxu1  ;;  %4748 = vmatpush1.bf16.msra.mxu1 %v16102_v42  ;;  %v4407_v61 = vpop.f32.mrb[3].mxu0  ;;  %4708 = vmatprep.subr.bf16.mxu0 %v16107_v43  ;;  %v16167_v42 = vld [vmem:[#allocation10 + $0x1e0c] ss:$24 sps:$4 sm:$0xff]   ;;  %v16173_v48 = vld [vmem:[#allocation10 + $0x1e3c] ss:$24 sps:$4 sm:$0xff]  }
 0x1c5   :  { %v4448_v0 = vpop.f32.mrb[3].mxu1  ;;  %4749 = vmatprep.subr.bf16.mxu1 %v16110_v46  ;;  %v16170_v43 = vld [vmem:[#allocation10 + $0x210c] ss:$24 sps:$4 sm:$0xff]   ;;  %v16165_v46 = vld [vmem:[#allocation10 + $0x1e08] ss:$24 sps:$4 sm:$0xff]  }
 0x1c6   :  { %v16176_v50 = vld [vmem:[#allocation10 + $0x213c] ss:$24 sps:$4 sm:$0xff]   ;;  %v16171_v51 = vld [vmem:[#allocation10 + $0x1e38] ss:$24 sps:$4 sm:$0xff]   ;;  %v16182_v56 = vld [vmem:[#allocation10 + $0x216c] ss:$24 sps:$4 sm:$0xff]  }
 0x1c7   :  { %4709 = vmatpush1.bf16.msra.mxu0 %v16105_v52  ;;  %v16174_v52 = vld [vmem:[#allocation10 + $0x2138] ss:$24 sps:$4 sm:$0xff]   ;;  %v16177_v57 = vld [vmem:[#allocation10 + $0x1e68] ss:$24 sps:$4 sm:$0xff]   ;;  %v16185_v61 = vld [vmem:[#allocation10 + $0x1e9c] ss:$24 sps:$4 sm:$0xff]  }
 0x1c8   :  { %4750 = vmatpush1.bf16.msra.mxu1 %v16108_v53  ;;  %4710 = vmatprep.subr.bf16.mxu0 %v16113_v58  ;;  %v16179_v53 = vld [vmem:[#allocation10 + $0x1e6c] ss:$24 sps:$4 sm:$0xff]   ;;  %v16180_v58 = vld [vmem:[#allocation10 + $0x2168] ss:$24 sps:$4 sm:$0xff]   ;;  %v16188_v0 = vld [vmem:[#allocation10 + $0x219c] ss:$24 sps:$4 sm:$0xff]  }
 0x1c9   :  { %4751 = vmatprep.subr.bf16.mxu1 %v16116_v2  ;;  %v16183_v2 = vld [vmem:[#allocation10 + $0x1e98] ss:$24 sps:$4 sm:$0xff]  }
 0x1cb   :  { %4711 = vmatpush1.bf16.msra.mxu0 %v16111_v5  ;;  %v16186_v5 = vld [vmem:[#allocation10 + $0x2198] ss:$24 sps:$4 sm:$0xff]  }
 0x1cc   :  { %4752 = vmatpush1.bf16.msra.mxu1 %v16114_v6  ;;  %4712 = vmatprep.subr.bf16.mxu0 %v16119_v7  ;;  %v16191_v6 = vld [vmem:[#allocation10 + $0x1ecc] ss:$24 sps:$4 sm:$0xff]  }
 0x1cd   :  { %4753 = vmatprep.subr.bf16.mxu1 %v16122_v8  ;;  %v16194_v7 = vld [vmem:[#allocation10 + $0x21cc] ss:$24 sps:$4 sm:$0xff]   ;;  %v16189_v8 = vld [vmem:[#allocation10 + $0x1ec8] ss:$24 sps:$4 sm:$0xff]  }
 0x1cf   :  { %4713 = vmatpush1.bf16.msra.mxu0 %v16117_v9  ;;  %v16192_v9 = vld [vmem:[#allocation10 + $0x21c8] ss:$24 sps:$4 sm:$0xff]  }
 0x1d0   :  { %4754 = vmatpush1.bf16.msra.mxu1 %v16120_v10  ;;  %4714 = vmatprep.subr.bf16.mxu0 %v16125_v11  ;;  %v16197_v10 = vld [vmem:[#allocation10 + $0x1efc] ss:$24 sps:$4 sm:$0xff]  }
 0x1d1   :  { %4755 = vmatprep.subr.bf16.mxu1 %v16128_v13  ;;  %v16200_v11 = vld [vmem:[#allocation10 + $0x21fc] ss:$24 sps:$4 sm:$0xff]   ;;  %v16195_v13 = vld [vmem:[#allocation10 + $0x1ef8] ss:$24 sps:$4 sm:$0xff]  }
 0x1d3   :  { %4715 = vmatpush1.bf16.msra.mxu0 %v16123_v14  ;;  %v16198_v14 = vld [vmem:[#allocation10 + $0x21f8] ss:$24 sps:$4 sm:$0xff]  }
 0x1d4   :  { %4756 = vmatpush1.bf16.msra.mxu1 %v16126_v15  ;;  %4716 = vmatprep.subr.bf16.mxu0 %v16131_v16  ;;  %v16203_v15 = vld [vmem:[#allocation10 + $0x1f2c] ss:$24 sps:$4 sm:$0xff]  }
 0x1d5   :  { %4757 = vmatprep.subr.bf16.mxu1 %v16134_v17  ;;  %v16206_v16 = vld [vmem:[#allocation10 + $0x222c] ss:$24 sps:$4 sm:$0xff]  }
 0x1d7   :  { %4717 = vmatpush1.bf16.msra.mxu0 %v16129_v18 }
 0x1d8   :  { %4758 = vmatpush1.bf16.msra.mxu1 %v16132_v20  ;;  %4718 = vmatprep.subr.bf16.mxu0 %v16137_v21  ;;  %v16201_v20 = vld [vmem:[#allocation10 + $0x1f28] ss:$24 sps:$4 sm:$0xff]  }
 0x1d9   :  { %4759 = vmatprep.subr.bf16.mxu1 %v16140_v22  ;;  %v16204_v21 = vld [vmem:[#allocation10 + $0x2228] ss:$24 sps:$4 sm:$0xff]  }
 0x1db   :  { %4719 = vmatpush1.bf16.msra.mxu0 %v16135_v19 }
 0x1dc   :  { %4760 = vmatpush1.bf16.msra.mxu1 %v16138_v23  ;;  %4720 = vmatprep.subr.bf16.mxu0 %v16143_v24 }
 0x1dd   :  { %4761 = vmatprep.subr.bf16.mxu1 %v16146_v25 }
 0x1df   :  { %4721 = vmatpush1.bf16.msra.mxu0 %v16141_v26 }
 0x1e0   :  { %4762 = vmatpush1.bf16.msra.mxu1 %v16144_v29  ;;  %4722 = vmatprep.subr.bf16.mxu0 %v16149_v30 }
 0x1e1   :  { %4763 = vmatprep.subr.bf16.mxu1 %v16152_v31 }
 0x1e3   :  { %4723 = vmatpush1.bf16.msra.mxu0 %v16147_v32  ;;  %v16209_v32 = vld [vmem:[#allocation10 + $0x1f5c] ss:$24 sps:$4 sm:$0xff]  }
 0x1e4   :  { %4764 = vmatpush1.bf16.msra.mxu1 %v16150_v33  ;;  %4724 = vmatprep.subr.bf16.mxu0 %v16155_v34  ;;  %v16212_v33 = vld [vmem:[#allocation10 + $0x225c] ss:$24 sps:$4 sm:$0xff]  }
 0x1e5   :  { %4765 = vmatprep.subr.bf16.mxu1 %v16158_v35  ;;  %v16210_v35 = vld [vmem:[#allocation10 + $0x2258] ss:$24 sps:$4 sm:$0xff]  }
 0x1e7   :  { %4725 = vmatpush1.bf16.msra.mxu0 %v16153_v36  ;;  %v16218_v36 = vld [vmem:[#allocation10 + $0x228c] ss:$24 sps:$4 sm:$0xff]  }
 0x1e8   :  { %4766 = vmatpush1.bf16.msra.mxu1 %v16156_v37  ;;  %4726 = vmatprep.subr.bf16.mxu0 %v16161_v38  ;;  %v16213_v37 = vld [vmem:[#allocation10 + $0x1f88] ss:$24 sps:$4 sm:$0xff]  }
 0x1e9   :  { %4767 = vmatprep.subr.bf16.mxu1 %v16164_v39  ;;  %v16216_v38 = vld [vmem:[#allocation10 + $0x2288] ss:$24 sps:$4 sm:$0xff]   ;;  %v16221_v39 = vld [vmem:[#allocation10 + $0x1fbc] ss:$24 sps:$4 sm:$0xff]  }
 0x1eb   :  { %4727 = vmatpush1.bf16.msra.mxu0 %v16159_v40  ;;  %v16224_v40 = vld [vmem:[#allocation10 + $0x22bc] ss:$24 sps:$4 sm:$0xff]  }
 0x1ec   :  { %4768 = vmatpush1.bf16.msra.mxu1 %v16162_v41  ;;  %4778 = vmatprep.subr.bf16.mxu0 %v16167_v42  ;;  %v16219_v41 = vld [vmem:[#allocation10 + $0x1fb8] ss:$24 sps:$4 sm:$0xff]  }
 0x1ed   :  { %4819 = vmatprep.subr.bf16.mxu1 %v16170_v43  ;;  %v16222_v42 = vld [vmem:[#allocation10 + $0x22b8] ss:$24 sps:$4 sm:$0xff]   ;;  %v16227_v43 = vld [vmem:[#allocation10 + $0x1fec] ss:$24 sps:$4 sm:$0xff]  }
 0x1ee   :  { %4729 = vmatmul.mubr.bf16.vlgmr.msra.gmra.mrb[16].mxu0 %v18845_v44 }
 0x1ef   :  { %4770 = vmatmul.mubr.bf16.vlgmr.msra.gmra.mrb[16].mxu1 %v18847_v45  ;;  %4779 = vmatpush1.bf16.msra.mxu0 %v16165_v46  ;;  %v16230_v46 = vld [vmem:[#allocation10 + $0x22ec] ss:$24 sps:$4 sm:$0xff]  }
 0x1f0   :  { %4820 = vmatpush1.bf16.msra.mxu1 %v16168_v47  ;;  %4780 = vmatprep.subr.bf16.mxu0 %v16173_v48  ;;  %v16225_v47 = vld [vmem:[#allocation10 + $0x1fe8] ss:$24 sps:$4 sm:$0xff]  }
 0x1f1   :  { %4821 = vmatprep.subr.bf16.mxu1 %v16176_v50  ;;  %4810 = vmatprep.mubr.bf16.mxu0 %v18851_v62  ;;  %v16228_v48 = vld [vmem:[#allocation10 + $0x22e8] ss:$24 sps:$4 sm:$0xff]   ;;  %v16233_v50 = vld [vmem:[#allocation10 + $0x201c] ss:$24 sps:$4 sm:$0xff]  }
 0x1f2   :  { %4851 = vmatprep.mubr.bf16.mxu1 %v18853_v63 }
 0x1f3   :  { %4781 = vmatpush1.bf16.msra.mxu0 %v16171_v51  ;;  %v16236_v51 = vld [vmem:[#allocation10 + $0x231c] ss:$24 sps:$4 sm:$0xff]  }
 0x1f4   :  { %4822 = vmatpush1.bf16.msra.mxu1 %v16174_v52  ;;  %4782 = vmatprep.subr.bf16.mxu0 %v16179_v53  ;;  %v16231_v52 = vld [vmem:[#allocation10 + $0x2018] ss:$24 sps:$4 sm:$0xff]  }
 0x1f5   :  { %4823 = vmatprep.subr.bf16.mxu1 %v16182_v56  ;;  %v16234_v53 = vld [vmem:[#allocation10 + $0x2318] ss:$24 sps:$4 sm:$0xff]   ;;  %v16239_v56 = vld [vmem:[#allocation10 + $0x204c] ss:$24 sps:$4 sm:$0xff]  }
 0x1f7   :  { %4783 = vmatpush1.bf16.msra.mxu0 %v16177_v57  ;;  %v16242_v57 = vld [vmem:[#allocation10 + $0x234c] ss:$24 sps:$4 sm:$0xff]  }
 0x1f8   :  { %4824 = vmatpush1.bf16.msra.mxu1 %v16180_v58  ;;  %4784 = vmatprep.subr.bf16.mxu0 %v16185_v61  ;;  %v16237_v58 = vld [vmem:[#allocation10 + $0x2048] ss:$24 sps:$4 sm:$0xff]  }
 0x1f9   :  { %4825 = vmatprep.subr.bf16.mxu1 %v16188_v0  ;;  %v16240_v61 = vld [vmem:[#allocation10 + $0x2348] ss:$24 sps:$4 sm:$0xff]   ;;  %v16245_v0 = vld [vmem:[#allocation10 + $0x207c] ss:$24 sps:$4 sm:$0xff]  }
 0x1fb   :  { %4785 = vmatpush1.bf16.msra.mxu0 %v16183_v2  ;;  %v16248_v2 = vld [vmem:[#allocation10 + $0x237c] ss:$24 sps:$4 sm:$0xff]  }
 0x1fc   :  { %4826 = vmatpush1.bf16.msra.mxu1 %v16186_v5  ;;  %4786 = vmatprep.subr.bf16.mxu0 %v16191_v6  ;;  %v16243_v5 = vld [vmem:[#allocation10 + $0x2078] ss:$24 sps:$4 sm:$0xff]  }
 0x1fd   :  { %4827 = vmatprep.subr.bf16.mxu1 %v16194_v7  ;;  %v16246_v6 = vld [vmem:[#allocation10 + $0x2378] ss:$24 sps:$4 sm:$0xff]   ;;  %v16251_v7 = vld [vmem:[#allocation10 + $0x20ac] ss:$24 sps:$4 sm:$0xff]  }
 0x1ff   :  { %4787 = vmatpush1.bf16.msra.mxu0 %v16189_v8  ;;  %v16254_v8 = vld [vmem:[#allocation10 + $0x23ac] ss:$24 sps:$4 sm:$0xff]  }
 0x200   :  { %4828 = vmatpush1.bf16.msra.mxu1 %v16192_v9  ;;  %4788 = vmatprep.subr.bf16.mxu0 %v16197_v10  ;;  %v16249_v9 = vld [vmem:[#allocation10 + $0x20a8] ss:$24 sps:$4 sm:$0xff]  }
 0x201   :  { %4829 = vmatprep.subr.bf16.mxu1 %v16200_v11  ;;  %v4484_v17 = vpop.f32.mrb[4].mxu0  ;;  %v16252_v10 = vld [vmem:[#allocation10 + $0x23a8] ss:$24 sps:$4 sm:$0xff]   ;;  %v16257_v11 = vld [vmem:[#allocation10 + $0x20dc] ss:$24 sps:$4 sm:$0xff]  }
 0x202   :  { %v4525_v18 = vpop.f32.mrb[4].mxu1  ;;  %v4485_v22 = vadd.f32 %v4484_v17, %v18869_v49  ;;  %v4486_v19 = vpop.f32.mrb[5].mxu0  ;;  %v16207_v49 = vld [vmem:[#allocation10 + $0x1f58] ss:$24 sps:$4 sm:$0xff]   ;;  %v16266_v17 = vld [vmem:[#allocation10 + $0x1514] ss:$24 sps:$4 sm:$0xff]  }
 0x203   :  { %v4527_v23 = vpop.f32.mrb[5].mxu1  ;;  %v4487_v24 = vadd.f32 %v4486_v19, %v18871_v54  ;;  %v4488_v25 = vpop.f32.mrb[6].mxu0  ;;  %4789 = vmatpush1.bf16.msra.mxu0 %v16195_v13  ;;  %v16215_v54 = vld [vmem:[#allocation10 + $0x1f8c] ss:$24 sps:$4 sm:$0xff]   ;;  %v16260_v13 = vld [vmem:[#allocation10 + $0x23dc] ss:$24 sps:$4 sm:$0xff]  }
 0x204   :  { %v4529_v26 = vpop.f32.mrb[6].mxu1  ;;  %4830 = vmatpush1.bf16.msra.mxu1 %v16198_v14  ;;  %v18879_v29 = vadd.f32 %v4525_v18, %v4485_v22  ;;  %v4489_v30 = vpop.f32.mrb[7].mxu0  ;;  %4790 = vmatprep.subr.bf16.mxu0 %v16203_v15  ;;  %v16255_v14 = vld [vmem:[#allocation10 + $0x20d8] ss:$24 sps:$4 sm:$0xff]   ;;  %v16272_v22 = vld [vmem:[#allocation10 + $0x1544] ss:$24 sps:$4 sm:$0xff]  }
 0x205   :  { %v4530_v31 = vpop.f32.mrb[7].mxu1  ;;  %4831 = vmatprep.subr.bf16.mxu1 %v16206_v16  ;;  %v18881_v34 = vadd.f32 %v4527_v23, %v4487_v24  ;;  %v16258_v15 = vld [vmem:[#allocation10 + $0x23d8] ss:$24 sps:$4 sm:$0xff]   ;;  %v16263_v16 = vld [vmem:[#allocation10 + $0x1214] ss:$24 sps:$4 sm:$0xff]  }
 0x206   :  { %v16261_v18 = vld [vmem:[#allocation10 + $0x1210] ss:$24 sps:$4 sm:$0xff]   ;;  %v16267_v19 = vld [vmem:[#allocation10 + $0x1240] ss:$24 sps:$4 sm:$0xff]   ;;  %v16275_v24 = vld [vmem:[#allocation10 + $0x1274] ss:$24 sps:$4 sm:$0xff]  }
 0x207   :  { %4791 = vmatpush1.bf16.msra.mxu0 %v16201_v20  ;;  %v16264_v20 = vld [vmem:[#allocation10 + $0x1510] ss:$24 sps:$4 sm:$0xff]   ;;  %v16270_v23 = vld [vmem:[#allocation10 + $0x1540] ss:$24 sps:$4 sm:$0xff]   ;;  %v16278_v25 = vld [vmem:[#allocation10 + $0x1574] ss:$24 sps:$4 sm:$0xff]  }
 0x208   :  { %4832 = vmatpush1.bf16.msra.mxu1 %v16204_v21  ;;  %4792 = vmatprep.subr.bf16.mxu0 %v16209_v32  ;;  %v16269_v21 = vld [vmem:[#allocation10 + $0x1244] ss:$24 sps:$4 sm:$0xff]   ;;  %v16273_v26 = vld [vmem:[#allocation10 + $0x1270] ss:$24 sps:$4 sm:$0xff]  }
 0x209   :  { %4833 = vmatprep.subr.bf16.mxu1 %v16212_v33  ;;  %v16276_v30 = vld [vmem:[#allocation10 + $0x1570] ss:$24 sps:$4 sm:$0xff]   ;;  %v16281_v31 = vld [vmem:[#allocation10 + $0x12a4] ss:$24 sps:$4 sm:$0xff]   ;;  %v16279_v33 = vld [vmem:[#allocation10 + $0x12a0] ss:$24 sps:$4 sm:$0xff]  }
 0x20a   :  { %v16284_v32 = vld [vmem:[#allocation10 + $0x15a4] ss:$24 sps:$4 sm:$0xff]  }
 0x20b   :  { %4793 = vmatpush1.bf16.msra.mxu0 %v16207_v49  ;;  %v16282_v49 = vld [vmem:[#allocation10 + $0x15a0] ss:$24 sps:$4 sm:$0xff]  }
 0x20c   :  { %4834 = vmatpush1.bf16.msra.mxu1 %v16210_v35  ;;  %4794 = vmatprep.subr.bf16.mxu0 %v16215_v54  ;;  %v16287_v35 = vld [vmem:[#allocation10 + $0x12d4] ss:$24 sps:$4 sm:$0xff]  }
 0x20d   :  { %4835 = vmatprep.subr.bf16.mxu1 %v16218_v36  ;;  %v16290_v54 = vld [vmem:[#allocation10 + $0x15d4] ss:$24 sps:$4 sm:$0xff]   ;;  %v16293_v36 = vld [vmem:[#allocation10 + $0x1304] ss:$24 sps:$4 sm:$0xff]  }
 0x20f   :  { %4795 = vmatpush1.bf16.msra.mxu0 %v16213_v37  ;;  %v16296_v37 = vld [vmem:[#allocation10 + $0x1604] ss:$24 sps:$4 sm:$0xff]  }
 0x210   :  { %4836 = vmatpush1.bf16.msra.mxu1 %v16216_v38  ;;  %4796 = vmatprep.subr.bf16.mxu0 %v16221_v39  ;;  %v16291_v38 = vld [vmem:[#allocation10 + $0x1300] ss:$24 sps:$4 sm:$0xff]  }
 0x211   :  { %4837 = vmatprep.subr.bf16.mxu1 %v16224_v40  ;;  %v16294_v39 = vld [vmem:[#allocation10 + $0x1600] ss:$24 sps:$4 sm:$0xff]   ;;  %v16299_v40 = vld [vmem:[#allocation10 + $0x1334] ss:$24 sps:$4 sm:$0xff]  }
 0x213   :  { %4797 = vmatpush1.bf16.msra.mxu0 %v16219_v41  ;;  %v16302_v41 = vld [vmem:[#allocation10 + $0x1634] ss:$24 sps:$4 sm:$0xff]  }
 0x214   :  { %4838 = vmatpush1.bf16.msra.mxu1 %v16222_v42  ;;  %4798 = vmatprep.subr.bf16.mxu0 %v16227_v43 }
 0x215   :  { %4839 = vmatprep.subr.bf16.mxu1 %v16230_v46  ;;  %v16297_v46 = vld [vmem:[#allocation10 + $0x1330] ss:$24 sps:$4 sm:$0xff]  }
 0x217   :  { %4799 = vmatpush1.bf16.msra.mxu0 %v16225_v47  ;;  %v16300_v47 = vld [vmem:[#allocation10 + $0x1630] ss:$24 sps:$4 sm:$0xff]  }
 0x218   :  { %4840 = vmatpush1.bf16.msra.mxu1 %v16228_v48  ;;  %4800 = vmatprep.subr.bf16.mxu0 %v16233_v50 }
 0x219   :  { %4841 = vmatprep.subr.bf16.mxu1 %v16236_v51 }
 0x21b   :  { %4801 = vmatpush1.bf16.msra.mxu0 %v16231_v52 }
 0x21c   :  { %4842 = vmatpush1.bf16.msra.mxu1 %v16234_v53  ;;  %4802 = vmatprep.subr.bf16.mxu0 %v16239_v56 }
 0x21d   :  { %4843 = vmatprep.subr.bf16.mxu1 %v16242_v57 }
 0x21f   :  { %4803 = vmatpush1.bf16.msra.mxu0 %v16237_v58 }
 0x220   :  { %4844 = vmatpush1.bf16.msra.mxu1 %v16240_v61  ;;  %4804 = vmatprep.subr.bf16.mxu0 %v16245_v0  ;;  %v16305_v0 = vld [vmem:[#allocation10 + $0x1364] ss:$24 sps:$4 sm:$0xff]  }
 0x221   :  { %4845 = vmatprep.subr.bf16.mxu1 %v16248_v2  ;;  %v16308_v2 = vld [vmem:[#allocation10 + $0x1664] ss:$24 sps:$4 sm:$0xff]  }
 0x223   :  { %4805 = vmatpush1.bf16.msra.mxu0 %v16243_v5 }
 0x224   :  { %4846 = vmatpush1.bf16.msra.mxu1 %v16246_v6  ;;  %4806 = vmatprep.subr.bf16.mxu0 %v16251_v7  ;;  %v16306_v6 = vld [vmem:[#allocation10 + $0x1660] ss:$24 sps:$4 sm:$0xff]   ;;  %v16314_v7 = vld [vmem:[#allocation10 + $0x1694] ss:$24 sps:$4 sm:$0xff]  }
 0x225   :  { %4847 = vmatprep.subr.bf16.mxu1 %v16254_v8  ;;  %v16309_v8 = vld [vmem:[#allocation10 + $0x1390] ss:$24 sps:$4 sm:$0xff]  }
 0x227   :  { %4807 = vmatpush1.bf16.msra.mxu0 %v16249_v9  ;;  %v16312_v9 = vld [vmem:[#allocation10 + $0x1690] ss:$24 sps:$4 sm:$0xff]  }
 0x228   :  { %4848 = vmatpush1.bf16.msra.mxu1 %v16252_v10  ;;  %4808 = vmatprep.subr.bf16.mxu0 %v16257_v11  ;;  %v16317_v10 = vld [vmem:[#allocation10 + $0x13c4] ss:$24 sps:$4 sm:$0xff]  }
 0x229   :  { %4849 = vmatprep.subr.bf16.mxu1 %v16260_v13  ;;  %v16320_v11 = vld [vmem:[#allocation10 + $0x16c4] ss:$24 sps:$4 sm:$0xff]   ;;  %v16315_v13 = vld [vmem:[#allocation10 + $0x13c0] ss:$24 sps:$4 sm:$0xff]  }
 0x22b   :  { %4809 = vmatpush1.bf16.msra.mxu0 %v16255_v14  ;;  %v16318_v14 = vld [vmem:[#allocation10 + $0x16c0] ss:$24 sps:$4 sm:$0xff]  }
 0x22c   :  { %4850 = vmatpush1.bf16.msra.mxu1 %v16258_v15  ;;  %4860 = vmatprep.subr.bf16.mxu0 %v16263_v16  ;;  %v16323_v15 = vld [vmem:[#allocation10 + $0x13f4] ss:$24 sps:$4 sm:$0xff]  }
 0x22d   :  { %4901 = vmatprep.subr.bf16.mxu1 %v16266_v17  ;;  %v16326_v16 = vld [vmem:[#allocation10 + $0x16f4] ss:$24 sps:$4 sm:$0xff]   ;;  %v16321_v17 = vld [vmem:[#allocation10 + $0x13f0] ss:$24 sps:$4 sm:$0xff]  }
 0x22e   :  { %4811 = vmatmul.mubr.bf16.vlgmr.msra.gmra.mrb[20].mxu0 %v18857_v3 }
 0x22f   :  { %4852 = vmatmul.mubr.bf16.vlgmr.msra.gmra.mrb[20].mxu1 %v18859_v4  ;;  %4861 = vmatpush1.bf16.msra.mxu0 %v16261_v18  ;;  %v16324_v18 = vld [vmem:[#allocation10 + $0x16f0] ss:$24 sps:$4 sm:$0xff]  }
 0x230   :  { %4902 = vmatpush1.bf16.msra.mxu1 %v16264_v20  ;;  %4862 = vmatprep.subr.bf16.mxu0 %v16269_v21  ;;  %v16329_v20 = vld [vmem:[#allocation10 + $0x1424] ss:$24 sps:$4 sm:$0xff]  }
 0x231   :  { %4903 = vmatprep.subr.bf16.mxu1 %v16272_v22  ;;  %4892 = vmatprep.mubr.bf16.mxu0 %v18817_v55  ;;  %v16285_v55 = vld [vmem:[#allocation10 + $0x12d0] ss:$24 sps:$4 sm:$0xff]   ;;  %v16332_v21 = vld [vmem:[#allocation10 + $0x1724] ss:$24 sps:$4 sm:$0xff]   ;;  %v16327_v22 = vld [vmem:[#allocation10 + $0x1420] ss:$24 sps:$4 sm:$0xff]  }
 0x232   :  { %4933 = vmatprep.mubr.bf16.mxu1 %v18819_v60  ;;  %v16288_v60 = vld [vmem:[#allocation10 + $0x15d0] ss:$24 sps:$4 sm:$0xff]  }
 0x233   :  { %4863 = vmatpush1.bf16.msra.mxu0 %v16267_v19  ;;  %v16330_v19 = vld [vmem:[#allocation10 + $0x1720] ss:$24 sps:$4 sm:$0xff]  }
 0x234   :  { %4904 = vmatpush1.bf16.msra.mxu1 %v16270_v23  ;;  %4864 = vmatprep.subr.bf16.mxu0 %v16275_v24  ;;  %v16335_v23 = vld [vmem:[#allocation10 + $0x1454] ss:$24 sps:$4 sm:$0xff]  }
 0x235   :  { %4905 = vmatprep.subr.bf16.mxu1 %v16278_v25  ;;  %v16338_v24 = vld [vmem:[#allocation10 + $0x1754] ss:$24 sps:$4 sm:$0xff]   ;;  %v16333_v25 = vld [vmem:[#allocation10 + $0x1450] ss:$24 sps:$4 sm:$0xff]  }
 0x237   :  { %4865 = vmatpush1.bf16.msra.mxu0 %v16273_v26  ;;  %v16336_v26 = vld [vmem:[#allocation10 + $0x1750] ss:$24 sps:$4 sm:$0xff]  }
 0x238   :  { %4906 = vmatpush1.bf16.msra.mxu1 %v16276_v30  ;;  %4866 = vmatprep.subr.bf16.mxu0 %v16281_v31  ;;  %v16341_v30 = vld [vmem:[#allocation10 + $0x1484] ss:$24 sps:$4 sm:$0xff]  }
 0x239   :  { %4907 = vmatprep.subr.bf16.mxu1 %v16284_v32  ;;  %v16344_v31 = vld [vmem:[#allocation10 + $0x1784] ss:$24 sps:$4 sm:$0xff]   ;;  %v16339_v32 = vld [vmem:[#allocation10 + $0x1480] ss:$24 sps:$4 sm:$0xff]  }
 0x23b   :  { %4867 = vmatpush1.bf16.msra.mxu0 %v16279_v33  ;;  %v16342_v33 = vld [vmem:[#allocation10 + $0x1780] ss:$24 sps:$4 sm:$0xff]  }
 0x23c   :  { %4908 = vmatpush1.bf16.msra.mxu1 %v16282_v49  ;;  %4868 = vmatprep.subr.bf16.mxu0 %v16287_v35  ;;  %v16347_v49 = vld [vmem:[#allocation10 + $0x14b4] ss:$24 sps:$4 sm:$0xff]  }
 0x23d   :  { %4909 = vmatprep.subr.bf16.mxu1 %v16290_v54  ;;  %v16350_v35 = vld [vmem:[#allocation10 + $0x17b4] ss:$24 sps:$4 sm:$0xff]   ;;  %v16345_v54 = vld [vmem:[#allocation10 + $0x14b0] ss:$24 sps:$4 sm:$0xff]  }
 0x23f   :  { %4869 = vmatpush1.bf16.msra.mxu0 %v16285_v55  ;;  %v16348_v55 = vld [vmem:[#allocation10 + $0x17b0] ss:$24 sps:$4 sm:$0xff]  }
 0x240   :  { %4910 = vmatpush1.bf16.msra.mxu1 %v16288_v60  ;;  %4870 = vmatprep.subr.bf16.mxu0 %v16293_v36  ;;  %v16353_v60 = vld [vmem:[#allocation10 + $0x14e4] ss:$24 sps:$4 sm:$0xff]  }
 0x241   :  { %4911 = vmatprep.subr.bf16.mxu1 %v16296_v37  ;;  %v4566_v42 = vpop.f32.mrb[8].mxu0  ;;  %v16356_v36 = vld [vmem:[#allocation10 + $0x17e4] ss:$24 sps:$4 sm:$0xff]   ;;  %v16351_v37 = vld [vmem:[#allocation10 + $0x14e0] ss:$24 sps:$4 sm:$0xff]  }
 0x242   :  { %v4607_v43 = vpop.f32.mrb[8].mxu1  ;;  %v4567_v48 = vadd.f32 %v4566_v42, %v18879_v29  ;;  %v4568_v50 = vpop.f32.mrb[9].mxu0  ;;  %v16303_v29 = vld [vmem:[#allocation10 + $0x1360] ss:$24 sps:$4 sm:$0xff]   ;;  %v16360_v42 = vld [vmem:[#allocation10 + $0x1b10] ss:$24 sps:$4 sm:$0xff]  }
 0x243   :  { %v4609_v51 = vpop.f32.mrb[9].mxu1  ;;  %v4569_v52 = vadd.f32 %v4568_v50, %v18881_v34  ;;  %v4570_v53 = vpop.f32.mrb[10].mxu0  ;;  %4871 = vmatpush1.bf16.msra.mxu0 %v16291_v38  ;;  %v16311_v34 = vld [vmem:[#allocation10 + $0x1394] ss:$24 sps:$4 sm:$0xff]   ;;  %v16354_v38 = vld [vmem:[#allocation10 + $0x17e0] ss:$24 sps:$4 sm:$0xff]  }
 0x244   :  { %v4611_v56 = vpop.f32.mrb[10].mxu1  ;;  %4912 = vmatpush1.bf16.msra.mxu1 %v16294_v39  ;;  %v18889_v57 = vadd.f32 %v4607_v43, %v4567_v48  ;;  %v4571_v58 = vpop.f32.mrb[11].mxu0  ;;  %4872 = vmatprep.subr.bf16.mxu0 %v16299_v40  ;;  %v16359_v39 = vld [vmem:[#allocation10 + $0x1814] ss:$24 sps:$4 sm:$0xff]   ;;  %v16365_v43 = vld [vmem:[#allocation10 + $0x1844] ss:$24 sps:$4 sm:$0xff]  }
 0x245   :  { %v4612_v61 = vpop.f32.mrb[11].mxu1  ;;  %4913 = vmatprep.subr.bf16.mxu1 %v16302_v41  ;;  %v18891_v5 = vadd.f32 %v4609_v51, %v4569_v52  ;;  %v16362_v40 = vld [vmem:[#allocation10 + $0x1b14] ss:$24 sps:$4 sm:$0xff]   ;;  %v16357_v41 = vld [vmem:[#allocation10 + $0x1810] ss:$24 sps:$4 sm:$0xff]  }
 0x246   :  { %v16366_v48 = vld [vmem:[#allocation10 + $0x1b40] ss:$24 sps:$4 sm:$0xff]   ;;  %v16371_v50 = vld [vmem:[#allocation10 + $0x1874] ss:$24 sps:$4 sm:$0xff]   ;;  %v16369_v52 = vld [vmem:[#allocation10 + $0x1870] ss:$24 sps:$4 sm:$0xff]  }
 0x247   :  { %4873 = vmatpush1.bf16.msra.mxu0 %v16297_v46  ;;  %v16368_v46 = vld [vmem:[#allocation10 + $0x1b44] ss:$24 sps:$4 sm:$0xff]   ;;  %v16374_v51 = vld [vmem:[#allocation10 + $0x1b74] ss:$24 sps:$4 sm:$0xff]   ;;  %v16372_v53 = vld [vmem:[#allocation10 + $0x1b70] ss:$24 sps:$4 sm:$0xff]  }
 0x248   :  { %4914 = vmatpush1.bf16.msra.mxu1 %v16300_v47  ;;  %4874 = vmatprep.subr.bf16.mxu0 %v16305_v0  ;;  %v16363_v47 = vld [vmem:[#allocation10 + $0x1840] ss:$24 sps:$4 sm:$0xff]   ;;  %v16383_v61 = vld [vmem:[#allocation10 + $0x18d4] ss:$24 sps:$4 sm:$0xff]  }
 0x249   :  { %4915 = vmatprep.subr.bf16.mxu1 %v16308_v2  ;;  %v16375_v56 = vld [vmem:[#allocation10 + $0x18a0] ss:$24 sps:$4 sm:$0xff]   ;;  %v16386_v0 = vld [vmem:[#allocation10 + $0x1bd4] ss:$24 sps:$4 sm:$0xff]   ;;  %v16389_v2 = vld [vmem:[#allocation10 + $0x1904] ss:$24 sps:$4 sm:$0xff]  }
 0x24a   :  { %v16378_v58 = vld [vmem:[#allocation10 + $0x1ba0] ss:$24 sps:$4 sm:$0xff]  }
 0x24b   :  { %4875 = vmatpush1.bf16.msra.mxu0 %v16303_v29  ;;  %v16392_v29 = vld [vmem:[#allocation10 + $0x1c04] ss:$24 sps:$4 sm:$0xff]  }
 0x24c   :  { %4916 = vmatpush1.bf16.msra.mxu1 %v16306_v6  ;;  %4876 = vmatprep.subr.bf16.mxu0 %v16311_v34  ;;  %v16387_v6 = vld [vmem:[#allocation10 + $0x1900] ss:$24 sps:$4 sm:$0xff]  }
 0x24d   :  { %4917 = vmatprep.subr.bf16.mxu1 %v16314_v7  ;;  %v16390_v34 = vld [vmem:[#allocation10 + $0x1c00] ss:$24 sps:$4 sm:$0xff]   ;;  %v16395_v7 = vld [vmem:[#allocation10 + $0x1934] ss:$24 sps:$4 sm:$0xff]  }
 0x24f   :  { %4877 = vmatpush1.bf16.msra.mxu0 %v16309_v8  ;;  %v16398_v8 = vld [vmem:[#allocation10 + $0x1c34] ss:$24 sps:$4 sm:$0xff]  }
 0x250   :  { %4918 = vmatpush1.bf16.msra.mxu1 %v16312_v9  ;;  %4878 = vmatprep.subr.bf16.mxu0 %v16317_v10 }
 0x251   :  { %4919 = vmatprep.subr.bf16.mxu1 %v16320_v11  ;;  %v16393_v11 = vld [vmem:[#allocation10 + $0x1930] ss:$24 sps:$4 sm:$0xff]  }
 0x253   :  { %4879 = vmatpush1.bf16.msra.mxu0 %v16315_v13  ;;  %v16396_v13 = vld [vmem:[#allocation10 + $0x1c30] ss:$24 sps:$4 sm:$0xff]  }
 0x254   :  { %4920 = vmatpush1.bf16.msra.mxu1 %v16318_v14  ;;  %4880 = vmatprep.subr.bf16.mxu0 %v16323_v15 }
 0x255   :  { %4921 = vmatprep.subr.bf16.mxu1 %v16326_v16 }
 0x257   :  { %4881 = vmatpush1.bf16.msra.mxu0 %v16321_v17 }
 0x258   :  { %4922 = vmatpush1.bf16.msra.mxu1 %v16324_v18  ;;  %4882 = vmatprep.subr.bf16.mxu0 %v16329_v20 }
 0x259   :  { %4923 = vmatprep.subr.bf16.mxu1 %v16332_v21 }
 0x25b   :  { %4883 = vmatpush1.bf16.msra.mxu0 %v16327_v22 }
 0x25c   :  { %4924 = vmatpush1.bf16.msra.mxu1 %v16330_v19  ;;  %4884 = vmatprep.subr.bf16.mxu0 %v16335_v23  ;;  %v16401_v19 = vld [vmem:[#allocation10 + $0x1964] ss:$24 sps:$4 sm:$0xff]  }
 0x25d   :  { %4925 = vmatprep.subr.bf16.mxu1 %v16338_v24  ;;  %v16404_v23 = vld [vmem:[#allocation10 + $0x1c64] ss:$24 sps:$4 sm:$0xff]   ;;  %v16399_v24 = vld [vmem:[#allocation10 + $0x1960] ss:$24 sps:$4 sm:$0xff]  }
 0x25f   :  { %4885 = vmatpush1.bf16.msra.mxu0 %v16333_v25  ;;  %v16402_v25 = vld [vmem:[#allocation10 + $0x1c60] ss:$24 sps:$4 sm:$0xff]  }
 0x260   :  { %4926 = vmatpush1.bf16.msra.mxu1 %v16336_v26  ;;  %4886 = vmatprep.subr.bf16.mxu0 %v16341_v30  ;;  %v16407_v26 = vld [vmem:[#allocation10 + $0x1994] ss:$24 sps:$4 sm:$0xff]  }
 0x261   :  { %4927 = vmatprep.subr.bf16.mxu1 %v16344_v31  ;;  %v16410_v30 = vld [vmem:[#allocation10 + $0x1c94] ss:$24 sps:$4 sm:$0xff]   ;;  %v16405_v31 = vld [vmem:[#allocation10 + $0x1990] ss:$24 sps:$4 sm:$0xff]  }
 0x263   :  { %4887 = vmatpush1.bf16.msra.mxu0 %v16339_v32  ;;  %v16408_v32 = vld [vmem:[#allocation10 + $0x1c90] ss:$24 sps:$4 sm:$0xff]  }
 0x264   :  { %4928 = vmatpush1.bf16.msra.mxu1 %v16342_v33  ;;  %4888 = vmatprep.subr.bf16.mxu0 %v16347_v49  ;;  %v16413_v33 = vld [vmem:[#allocation10 + $0x19c4] ss:$24 sps:$4 sm:$0xff]  }
 0x265   :  { %4929 = vmatprep.subr.bf16.mxu1 %v16350_v35  ;;  %v16416_v49 = vld [vmem:[#allocation10 + $0x1cc4] ss:$24 sps:$4 sm:$0xff]   ;;  %v16411_v35 = vld [vmem:[#allocation10 + $0x19c0] ss:$24 sps:$4 sm:$0xff]  }
 0x267   :  { %4889 = vmatpush1.bf16.msra.mxu0 %v16345_v54  ;;  %v16414_v54 = vld [vmem:[#allocation10 + $0x1cc0] ss:$24 sps:$4 sm:$0xff]  }
 0x268   :  { %4930 = vmatpush1.bf16.msra.mxu1 %v16348_v55  ;;  %4890 = vmatprep.subr.bf16.mxu0 %v16353_v60  ;;  %v16419_v55 = vld [vmem:[#allocation10 + $0x19f4] ss:$24 sps:$4 sm:$0xff]  }
 0x269   :  { %4931 = vmatprep.subr.bf16.mxu1 %v16356_v36  ;;  %v16422_v60 = vld [vmem:[#allocation10 + $0x1cf4] ss:$24 sps:$4 sm:$0xff]   ;;  %v16417_v36 = vld [vmem:[#allocation10 + $0x19f0] ss:$24 sps:$4 sm:$0xff]  }
 0x26b   :  { %4891 = vmatpush1.bf16.msra.mxu0 %v16351_v37  ;;  %v16420_v37 = vld [vmem:[#allocation10 + $0x1cf0] ss:$24 sps:$4 sm:$0xff]  }
 0x26c   :  { %4932 = vmatpush1.bf16.msra.mxu1 %v16354_v38  ;;  %4942 = vmatprep.subr.bf16.mxu0 %v16359_v39  ;;  %v16425_v38 = vld [vmem:[#allocation10 + $0x1a24] ss:$24 sps:$4 sm:$0xff]  }
 0x26d   :  { %4983 = vmatprep.subr.bf16.mxu1 %v16362_v40  ;;  %v16428_v39 = vld [vmem:[#allocation10 + $0x1d24] ss:$24 sps:$4 sm:$0xff]   ;;  %v16423_v40 = vld [vmem:[#allocation10 + $0x1a20] ss:$24 sps:$4 sm:$0xff]  }
 0x26e   :  { %4893 = vmatmul.mubr.bf16.vlgmr.msra.gmra.mrb[24].mxu0 %v18825_v27  ;;  %v16377_v27 = vld [vmem:[#allocation10 + $0x18a4] ss:$24 sps:$4 sm:$0xff]  }
 0x26f   :  { %4934 = vmatmul.mubr.bf16.vlgmr.msra.gmra.mrb[24].mxu1 %v18827_v28  ;;  %4943 = vmatpush1.bf16.msra.mxu0 %v16357_v41  ;;  %v16380_v28 = vld [vmem:[#allocation10 + $0x1ba4] ss:$24 sps:$4 sm:$0xff]   ;;  %v16426_v41 = vld [vmem:[#allocation10 + $0x1d20] ss:$24 sps:$4 sm:$0xff]  }
 0x270   :  { %4984 = vmatpush1.bf16.msra.mxu1 %v16360_v42  ;;  %4944 = vmatprep.subr.bf16.mxu0 %v16365_v43  ;;  %v16431_v42 = vld [vmem:[#allocation10 + $0x1a54] ss:$24 sps:$4 sm:$0xff]  }
 0x271   :  { %4985 = vmatprep.subr.bf16.mxu1 %v16368_v46  ;;  %4974 = vmatprep.mubr.bf16.mxu0 %v18831_v59  ;;  %v16381_v59 = vld [vmem:[#allocation10 + $0x18d0] ss:$24 sps:$4 sm:$0xff]   ;;  %v16434_v43 = vld [vmem:[#allocation10 + $0x1d54] ss:$24 sps:$4 sm:$0xff]  }
 0x272   :  { %5015 = vmatprep.mubr.bf16.mxu1 %v18835_v1  ;;  %v16384_v1 = vld [vmem:[#allocation10 + $0x1bd0] ss:$24 sps:$4 sm:$0xff]  }
 0x273   :  { %4945 = vmatpush1.bf16.msra.mxu0 %v16363_v47  ;;  %v16429_v46 = vld [vmem:[#allocation10 + $0x1a50] ss:$24 sps:$4 sm:$0xff]  }
 0x274   :  { %4986 = vmatpush1.bf16.msra.mxu1 %v16366_v48  ;;  %4946 = vmatprep.subr.bf16.mxu0 %v16371_v50  ;;  %v16432_v47 = vld [vmem:[#allocation10 + $0x1d50] ss:$24 sps:$4 sm:$0xff]   ;;  %v16437_v48 = vld [vmem:[#allocation10 + $0x1a84] ss:$24 sps:$4 sm:$0xff]  }
 0x275   :  { %4987 = vmatprep.subr.bf16.mxu1 %v16374_v51  ;;  %v16440_v50 = vld [vmem:[#allocation10 + $0x1d84] ss:$24 sps:$4 sm:$0xff]   ;;  %v16435_v51 = vld [vmem:[#allocation10 + $0x1a80] ss:$24 sps:$4 sm:$0xff]  }
 0x277   :  { %4947 = vmatpush1.bf16.msra.mxu0 %v16369_v52  ;;  %v16438_v52 = vld [vmem:[#allocation10 + $0x1d80] ss:$24 sps:$4 sm:$0xff]  }
 0x278   :  { %4988 = vmatpush1.bf16.msra.mxu1 %v16372_v53  ;;  %4948 = vmatprep.subr.bf16.mxu0 %v16377_v27  ;;  %v16443_v53 = vld [vmem:[#allocation10 + $0x1ab4] ss:$24 sps:$4 sm:$0xff]  }
 0x279   :  { %4989 = vmatprep.subr.bf16.mxu1 %v16380_v28  ;;  %v16446_v27 = vld [vmem:[#allocation10 + $0x1db4] ss:$24 sps:$4 sm:$0xff]   ;;  %v16441_v28 = vld [vmem:[#allocation10 + $0x1ab0] ss:$24 sps:$4 sm:$0xff]  }
 0x27b   :  { %4949 = vmatpush1.bf16.msra.mxu0 %v16375_v56  ;;  %v16444_v56 = vld [vmem:[#allocation10 + $0x1db0] ss:$24 sps:$4 sm:$0xff]  }
 0x27c   :  { %4990 = vmatpush1.bf16.msra.mxu1 %v16378_v58  ;;  %4950 = vmatprep.subr.bf16.mxu0 %v16383_v61  ;;  %v16449_v58 = vld [vmem:[#allocation10 + $0x1ae4] ss:$24 sps:$4 sm:$0xff]  }
 0x27d   :  { %4991 = vmatprep.subr.bf16.mxu1 %v16386_v0  ;;  %v16452_v61 = vld [vmem:[#allocation10 + $0x1de4] ss:$24 sps:$4 sm:$0xff]   ;;  %v16447_v0 = vld [vmem:[#allocation10 + $0x1ae0] ss:$24 sps:$4 sm:$0xff]  }
 0x27f   :  { %4951 = vmatpush1.bf16.msra.mxu0 %v16381_v59  ;;  %v16450_v59 = vld [vmem:[#allocation10 + $0x1de0] ss:$24 sps:$4 sm:$0xff]  }
 0x280   :  { %4992 = vmatpush1.bf16.msra.mxu1 %v16384_v1  ;;  %4952 = vmatprep.subr.bf16.mxu0 %v16389_v2  ;;  %v16455_v1 = vld [vmem:[#allocation10 + $0x1e14] ss:$24 sps:$4 sm:$0xff]  }
 0x281   :  { %4993 = vmatprep.subr.bf16.mxu1 %v16392_v29  ;;  %v4648_v9 = vpop.f32.mrb[12].mxu0  ;;  %v16458_v2 = vld [vmem:[#allocation10 + $0x2114] ss:$24 sps:$4 sm:$0xff]   ;;  %v16453_v29 = vld [vmem:[#allocation10 + $0x1e10] ss:$24 sps:$4 sm:$0xff]  }
 0x282   :  { %v4689_v10 = vpop.f32.mrb[12].mxu1  ;;  %v4650_v15 = vpop.f32.mrb[13].mxu0 }
 0x283   :  { %v18897_v14 = vadd.f32 %v4689_v10, %v4648_v9  ;;  %v4691_v16 = vpop.f32.mrb[13].mxu1  ;;  %v4652_v18 = vpop.f32.mrb[14].mxu0  ;;  %4953 = vmatpush1.bf16.msra.mxu0 %v16387_v6  ;;  %v18901_v6 = vld [vmem:[#allocation4 + $0x8] sm:$0xff]  ;;  %v18336_v10 = vld [vmem:[#allocation9 + $0x18] sm:$0xff] }
 0x284   :  { %v18899_v17 = vadd.f32 %v4691_v16, %v4650_v15  ;;  %v4693_v20 = vpop.f32.mrb[14].mxu1  ;;  %4994 = vmatpush1.bf16.msra.mxu1 %v16390_v34  ;;  %v4653_v21 = vpop.f32.mrb[15].mxu0  ;;  %4954 = vmatprep.subr.bf16.mxu0 %v16395_v7  ;;  %v18903_v34 = vld [vmem:[#allocation4 + $0x18] sm:$0xff]  ;;  %v16456_v7 = vld [vmem:[#allocation10 + $0x2110] ss:$24 sps:$4 sm:$0xff]   ;;  %v18337_v18 = vld [vmem:[#allocation9] sm:$0xff] }
 0x285   :  { %v4694_v22 = vpop.f32.mrb[15].mxu1  ;;  %4995 = vmatprep.subr.bf16.mxu1 %v16398_v8  ;;  %v18335_v8 = vld [vmem:[#allocation9 + $0x8] sm:$0xff]  ;;  %v16461_v15 = vld [vmem:[#allocation10 + $0x1e44] ss:$24 sps:$4 sm:$0xff]  }
 0x286   :  { %v172_v9 = vsub.f32 %v18335_v8, %v18901_v6  ;;  %v16464_v16 = vld [vmem:[#allocation10 + $0x2144] ss:$24 sps:$4 sm:$0xff]   ;;  %v161_v22 = vld [vmem:[#allocation4 + $0x10] sm:$0xff] }
 0x287   :  { %4955 = vmatpush1.bf16.msra.mxu0 %v16393_v11  ;;  %v174_v11 = vsub.f32 %v18336_v10, %v18903_v34  ;;  %v16500_v10 = vld [vmem:[#allocation10 + $0x2264] ss:$24 sps:$4 sm:$0xff]  }
 0x288   :  { %4996 = vmatpush1.bf16.msra.mxu1 %v16396_v13  ;;  %4956 = vmatprep.subr.bf16.mxu0 %v16401_v19  ;;  %v159_v13 = vld [vmem:[#allocation4] sm:$0xff]  ;;  %v184_v21 = vadd.f32 1e-06, %v172_v9 }
 0x289   :  { %4997 = vmatprep.subr.bf16.mxu1 %v16404_v23  ;;  %v171_v20 = vsub.f32 %v18337_v18, %v159_v13  ;;  %v186_v19 = vadd.f32 1e-06, %v174_v11  ;;  %v16497_v9 = vld [vmem:[#allocation10 + $0x1f64] ss:$24 sps:$4 sm:$0xff]   ;;  %v16498_v13 = vld [vmem:[#allocation10 + $0x2260] ss:$24 sps:$4 sm:$0xff]  }
 0x28a   :  { %v16504_v18 = vld [vmem:[#allocation10 + $0x2290] ss:$24 sps:$4 sm:$0xff]  }
 0x28b   :  { %4957 = vmatpush1.bf16.msra.mxu0 %v16399_v24  ;;  %v183_v23 = vadd.f32 1e-06, %v171_v20  ;;  %v18338_v24 = vld [vmem:[#allocation9 + $0x10] sm:$0xff]  ;;  %v16509_v20 = vld [vmem:[#allocation10 + $0x1fc4] ss:$24 sps:$4 sm:$0xff]  }
 0x28c   :  { %4998 = vmatpush1.bf16.msra.mxu1 %v16402_v25  ;;  %4958 = vmatprep.subr.bf16.mxu0 %v16407_v26  ;;  %v173_v25 = vsub.f32 %v18338_v24, %v161_v22  ;;  %v16459_v26 = vld [vmem:[#allocation10 + $0x1e40] ss:$24 sps:$4 sm:$0xff]   ;;  %v16518_v24 = vld [vmem:[#allocation10 + $0x22f4] ss:$24 sps:$4 sm:$0xff]  }
 0x28d   :  { %4999 = vmatprep.subr.bf16.mxu1 %v16410_v30  ;;  %v16462_v30 = vld [vmem:[#allocation10 + $0x2140] ss:$24 sps:$4 sm:$0xff]  }
 0x28e   :  { %v16507_v22 = vld [vmem:[#allocation10 + $0x1fc0] ss:$24 sps:$4 sm:$0xff]  }
 0x28f   :  { %4959 = vmatpush1.bf16.msra.mxu0 %v16405_v31  ;;  %v196_v31 = vmul.f32 %v184_v21, %v184_v21  ;;  %v16512_v21 = vld [vmem:[#allocation10 + $0x22c4] ss:$24 sps:$4 sm:$0xff]  }
 0x290   :  { %5000 = vmatpush1.bf16.msra.mxu1 %v16408_v32  ;;  %4960 = vmatprep.subr.bf16.mxu0 %v16413_v33  ;;  %v16467_v32 = vld [vmem:[#allocation10 + $0x1e74] ss:$24 sps:$4 sm:$0xff]  }
 0x291   :  { %5001 = vmatprep.subr.bf16.mxu1 %v16416_v49  ;;  %v16470_v33 = vld [vmem:[#allocation10 + $0x2174] ss:$24 sps:$4 sm:$0xff]   ;;  %v195_v49 = vmul.f32 %v183_v23, %v183_v23 }
 0x292   :  { %v16515_v23 = vld [vmem:[#allocation10 + $0x1ff4] ss:$24 sps:$4 sm:$0xff]  }
 0x293   :  { %4961 = vmatpush1.bf16.msra.mxu0 %v16411_v35  ;;  %v185_v35 = vadd.f32 1e-06, %v173_v25  ;;  %v16513_v25 = vld [vmem:[#allocation10 + $0x1ff0] ss:$24 sps:$4 sm:$0xff]  }
 0x294   :  { %5002 = vmatpush1.bf16.msra.mxu1 %v16414_v54  ;;  %4962 = vmatprep.subr.bf16.mxu0 %v16419_v55  ;;  %v16465_v55 = vld [vmem:[#allocation10 + $0x1e70] ss:$24 sps:$4 sm:$0xff]  }
 0x295   :  { %5003 = vmatprep.subr.bf16.mxu1 %v16422_v60  ;;  %v197_v54 = vmul.f32 %v185_v35, %v185_v35  ;;  %v16468_v60 = vld [vmem:[#allocation10 + $0x2170] ss:$24 sps:$4 sm:$0xff]   ;;  %v16530_v35 = vld [vmem:[#allocation10 + $0x2354] ss:$24 sps:$4 sm:$0xff]  }
 0x297   :  { %4963 = vmatpush1.bf16.msra.mxu0 %v16417_v36  ;;  %v16473_v36 = vld [vmem:[#allocation10 + $0x1ea4] ss:$24 sps:$4 sm:$0xff]  }
 0x298   :  { %5004 = vmatpush1.bf16.msra.mxu1 %v16420_v37  ;;  %4964 = vmatprep.subr.bf16.mxu0 %v16425_v38  ;;  %v16476_v37 = vld [vmem:[#allocation10 + $0x21a4] ss:$24 sps:$4 sm:$0xff]  }
 0x299   :  { %5005 = vmatprep.subr.bf16.mxu1 %v16428_v39 }
 0x29b   :  { %4965 = vmatpush1.bf16.msra.mxu0 %v16423_v40  ;;  %v16471_v40 = vld [vmem:[#allocation10 + $0x1ea0] ss:$24 sps:$4 sm:$0xff]  }
 0x29c   :  { %5006 = vmatpush1.bf16.msra.mxu1 %v16426_v41  ;;  %4966 = vmatprep.subr.bf16.mxu0 %v16431_v42  ;;  %v16482_v41 = vld [vmem:[#allocation10 + $0x21d4] ss:$24 sps:$4 sm:$0xff]   ;;  %v16477_v42 = vld [vmem:[#allocation10 + $0x1ed0] ss:$24 sps:$4 sm:$0xff]  }
 0x29d   :  { %5007 = vmatprep.subr.bf16.mxu1 %v16434_v43  ;;  %v16480_v43 = vld [vmem:[#allocation10 + $0x21d0] ss:$24 sps:$4 sm:$0xff]  }
 0x29f   :  { %4967 = vmatpush1.bf16.msra.mxu0 %v16429_v46  ;;  %v16485_v46 = vld [vmem:[#allocation10 + $0x1f04] ss:$24 sps:$4 sm:$0xff]  }
 0x2a0   :  { %5008 = vmatpush1.bf16.msra.mxu1 %v16432_v47  ;;  %4968 = vmatprep.subr.bf16.mxu0 %v16437_v48  ;;  %v16488_v47 = vld [vmem:[#allocation10 + $0x2204] ss:$24 sps:$4 sm:$0xff]   ;;  %v16483_v48 = vld [vmem:[#allocation10 + $0x1f00] ss:$24 sps:$4 sm:$0xff]  }
 0x2a1   :  { %5009 = vmatprep.subr.bf16.mxu1 %v16440_v50  ;;  %v16486_v50 = vld [vmem:[#allocation10 + $0x2200] ss:$24 sps:$4 sm:$0xff]  }
 0x2a3   :  { %4969 = vmatpush1.bf16.msra.mxu0 %v16435_v51  ;;  %v16491_v51 = vld [vmem:[#allocation10 + $0x1f34] ss:$24 sps:$4 sm:$0xff]  }
 0x2a4   :  { %5010 = vmatpush1.bf16.msra.mxu1 %v16438_v52  ;;  %4970 = vmatprep.subr.bf16.mxu0 %v16443_v53  ;;  %v16494_v52 = vld [vmem:[#allocation10 + $0x2234] ss:$24 sps:$4 sm:$0xff]  }
 0x2a5   :  { %5011 = vmatprep.subr.bf16.mxu1 %v16446_v27 }
 0x2a7   :  { %4971 = vmatpush1.bf16.msra.mxu0 %v16441_v28  ;;  %v16489_v28 = vld [vmem:[#allocation10 + $0x1f30] ss:$24 sps:$4 sm:$0xff]  }
 0x2a8   :  { %5012 = vmatpush1.bf16.msra.mxu1 %v16444_v56  ;;  %4972 = vmatprep.subr.bf16.mxu0 %v16449_v58  ;;  %v16492_v56 = vld [vmem:[#allocation10 + $0x2230] ss:$24 sps:$4 sm:$0xff]  }
 0x2a9   :  { %5013 = vmatprep.subr.bf16.mxu1 %v16452_v61 }
 0x2ab   :  { %4973 = vmatpush1.bf16.msra.mxu0 %v16447_v0 }
 0x2ac   :  { %5014 = vmatpush1.bf16.msra.mxu1 %v16450_v59  ;;  %5024 = vmatprep.subr.bf16.mxu0 %v16455_v1 }
 0x2ad   :  { %5065 = vmatprep.subr.bf16.mxu1 %v16458_v2 }
 0x2ae   :  { %4975 = vmatmul.mubr.bf16.vlgmr.msra.gmra.mrb[28].mxu0 %v18845_v44  ;;  %v198_v44 = vmul.f32 %v186_v19, %v186_v19  ;;  %v16510_v19 = vld [vmem:[#allocation10 + $0x22c0] ss:$24 sps:$4 sm:$0xff]  }
 0x2af   :  { %5016 = vmatmul.mubr.bf16.vlgmr.msra.gmra.mrb[28].mxu1 %v18847_v45  ;;  %5025 = vmatpush1.bf16.msra.mxu0 %v16453_v29  ;;  %v207_v45 = vadd.f32 %v196_v31, %v195_v49  ;;  %v16524_v31 = vld [vmem:[#allocation10 + $0x2324] ss:$24 sps:$4 sm:$0xff]   ;;  %v16527_v49 = vld [vmem:[#allocation10 + $0x2054] ss:$24 sps:$4 sm:$0xff]  }
 0x2b0   :  { %5066 = vmatpush1.bf16.msra.mxu1 %v16456_v7  ;;  %5026 = vmatprep.subr.bf16.mxu0 %v16461_v15  ;;  %v16506_v15 = vld [vmem:[#allocation10 + $0x2294] ss:$24 sps:$4 sm:$0xff]  }
 0x2b1   :  { %5067 = vmatprep.subr.bf16.mxu1 %v16464_v16  ;;  %5056 = vmatprep.mubr.bf16.mxu0 %v18851_v62  ;;  %v208_v38 = vadd.f32 %v207_v45, %v197_v54  ;;  %v16474_v62 = vld [vmem:[#allocation10 + $0x21a0] ss:$24 sps:$4 sm:$0xff]   ;;  %v16501_v16 = vld [vmem:[#allocation10 + $0x1f90] ss:$24 sps:$4 sm:$0xff]   ;;  %v16533_v54 = vld [vmem:[#allocation10 + $0x2084] ss:$24 sps:$4 sm:$0xff]  }
 0x2b2   :  { %5097 = vmatprep.mubr.bf16.mxu1 %v18853_v63  ;;  %v16479_v63 = vld [vmem:[#allocation10 + $0x1ed4] ss:$24 sps:$4 sm:$0xff]   ;;  %v16528_v45 = vld [vmem:[#allocation10 + $0x2350] ss:$24 sps:$4 sm:$0xff]  }
 0x2b3   :  { %5027 = vmatpush1.bf16.msra.mxu0 %v16459_v26  ;;  %v18911_v39 = vadd.f32 %v208_v38, %v198_v44  ;;  %v16516_v26 = vld [vmem:[#allocation10 + $0x22f0] ss:$24 sps:$4 sm:$0xff]   ;;  %v16542_v38 = vld [vmem:[#allocation10 + $0x23b4] ss:$24 sps:$4 sm:$0xff]  }
 0x2b4   :  { %5068 = vmatpush1.bf16.msra.mxu1 %v16462_v30  ;;  %5028 = vmatprep.subr.bf16.mxu0 %v16467_v32  ;;  %v16521_v30 = vld [vmem:[#allocation10 + $0x2024] ss:$24 sps:$4 sm:$0xff]   ;;  %v16519_v32 = vld [vmem:[#allocation10 + $0x2020] ss:$24 sps:$4 sm:$0xff]   ;;  %v16525_v44 = vld [vmem:[#allocation10 + $0x2050] ss:$24 sps:$4 sm:$0xff]  }
 0x2b5   :  { %5069 = vmatprep.subr.bf16.mxu1 %v16470_v33  ;;  %v16522_v33 = vld [vmem:[#allocation10 + $0x2320] ss:$24 sps:$4 sm:$0xff]  }
 0x2b7   :  { %5029 = vmatpush1.bf16.msra.mxu0 %v16465_v55  ;;  %v16536_v55 = vld [vmem:[#allocation10 + $0x2384] ss:$24 sps:$4 sm:$0xff]  }
 0x2b8   :  { %5070 = vmatpush1.bf16.msra.mxu1 %v16468_v60  ;;  %5030 = vmatprep.subr.bf16.mxu0 %v16473_v36  ;;  %v16531_v60 = vld [vmem:[#allocation10 + $0x2080] ss:$24 sps:$4 sm:$0xff]  }
 0x2b9   :  { %5071 = vmatprep.subr.bf16.mxu1 %v16476_v37  ;;  %v16534_v36 = vld [vmem:[#allocation10 + $0x2380] ss:$24 sps:$4 sm:$0xff]   ;;  %v16539_v37 = vld [vmem:[#allocation10 + $0x20b4] ss:$24 sps:$4 sm:$0xff]  }
 0x2bb   :  { %5031 = vmatpush1.bf16.msra.mxu0 %v16471_v40  ;;  %v16537_v40 = vld [vmem:[#allocation10 + $0x20b0] ss:$24 sps:$4 sm:$0xff]  }
 0x2bc   :  { %5072 = vmatpush1.bf16.msra.mxu1 %v16474_v62  ;;  %5032 = vmatprep.subr.bf16.mxu0 %v16479_v63  ;;  %v16540_v62 = vld [vmem:[#allocation10 + $0x23b0] ss:$24 sps:$4 sm:$0xff]   ;;  %v16545_v63 = vld [vmem:[#allocation10 + $0x20e4] ss:$24 sps:$4 sm:$0xff]  }
 0x2bd   :  { %5073 = vmatprep.subr.bf16.mxu1 %v16482_v41  ;;  %v16548_v41 = vld [vmem:[#allocation10 + $0x23e4] ss:$24 sps:$4 sm:$0xff]  }
 0x2bf   :  { %5033 = vmatpush1.bf16.msra.mxu0 %v16477_v42  ;;  %v16543_v42 = vld [vmem:[#allocation10 + $0x20e0] ss:$24 sps:$4 sm:$0xff]  }
 0x2c0   :  { %5074 = vmatpush1.bf16.msra.mxu1 %v16480_v43  ;;  %5034 = vmatprep.subr.bf16.mxu0 %v16485_v46  ;;  %v16546_v43 = vld [vmem:[#allocation10 + $0x23e0] ss:$24 sps:$4 sm:$0xff]   ;;  %v16551_v46 = vld [vmem:[#allocation10 + $0x4] ss:$24 sps:$4 sm:$0xff]  }
 0x2c1   :  { %5075 = vmatprep.subr.bf16.mxu1 %v16488_v47  ;;  %v4730_v53 = vpop.f32.mrb[16].mxu0  ;;  %v16554_v47 = vld [vmem:[#allocation10 + $0x304] ss:$24 sps:$4 sm:$0xff]  }
 0x2c2   :  { %v4771_v27 = vpop.f32.mrb[16].mxu1  ;;  %v4731_v58 = vadd.f32 %v4730_v53, %v18897_v14  ;;  %v4732_v61 = vpop.f32.mrb[17].mxu0  ;;  %v16495_v14 = vld [vmem:[#allocation10 + $0x1f60] ss:$24 sps:$4 sm:$0xff]   ;;  %v16560_v53 = vld [vmem:[#allocation10 + $0x334] ss:$24 sps:$4 sm:$0xff]  }
 0x2c3   :  { %v4773_v0 = vpop.f32.mrb[17].mxu1  ;;  %v4733_v59 = vadd.f32 %v4732_v61, %v18899_v17  ;;  %v4734_v1 = vpop.f32.mrb[18].mxu0  ;;  %5035 = vmatpush1.bf16.msra.mxu0 %v16483_v48  ;;  %v16503_v17 = vld [vmem:[#allocation10 + $0x1f94] ss:$24 sps:$4 sm:$0xff]   ;;  %v16549_v48 = vld [vmem:[#allocation10] ss:$24 sps:$4 sm:$0xff]  }
 0x2c4   :  { %v4775_v2 = vpop.f32.mrb[18].mxu1  ;;  %5076 = vmatpush1.bf16.msra.mxu1 %v16486_v50  ;;  %v18915_v29 = vadd.f32 %v4771_v27, %v4731_v58  ;;  %v4735_v7 = vpop.f32.mrb[19].mxu0  ;;  %5036 = vmatprep.subr.bf16.mxu0 %v16491_v51  ;;  %v16552_v50 = vld [vmem:[#allocation10 + $0x300] ss:$24 sps:$4 sm:$0xff]   ;;  %v18925_v58 = vpack.c.bf16 %v18903_v34, %v18903_v34  ;;  %v16563_v1 = vld [vmem:[#allocation10 + $0x64] ss:$24 sps:$4 sm:$0xff]  }
 0x2c5   :  { %v4776_v8 = vpop.f32.mrb[19].mxu1  ;;  %5077 = vmatprep.subr.bf16.mxu1 %v16494_v52  ;;  %v18917_v11 = vadd.f32 %v4773_v0, %v4733_v59  ;;  %v163_v51 = vld [vmem:[#allocation4 + $0x20] sm:$0xff]  ;;  %v16557_v52 = vld [vmem:[#allocation10 + $0x34] ss:$24 sps:$4 sm:$0xff]   ;;  %v16555_v0 = vld [vmem:[#allocation10 + $0x30] ss:$24 sps:$4 sm:$0xff]  }
 0x2c6   :  { %v18339_v27 = vld [vmem:[#allocation9 + $0x20] sm:$0xff]  ;;  %v16558_v59 = vld [vmem:[#allocation10 + $0x330] ss:$24 sps:$4 sm:$0xff]   ;;  %v16569_v34 = vld [vmem:[#allocation10 + $0x94] ss:$24 sps:$4 sm:$0xff]  }
 0x2c7   :  { %5037 = vmatpush1.bf16.msra.mxu0 %v16489_v28  ;;  %v175_v28 = vsub.f32 %v18339_v27, %v163_v51  ;;  %v16566_v2 = vld [vmem:[#allocation10 + $0x364] ss:$24 sps:$4 sm:$0xff]   ;;  %v16572_v8 = vld [vmem:[#allocation10 + $0x394] ss:$24 sps:$4 sm:$0xff]  }
 0x2c8   :  { %5078 = vmatpush1.bf16.msra.mxu1 %v16492_v56  ;;  %5038 = vmatprep.subr.bf16.mxu0 %v16497_v9  ;;  %v18921_v56 = vpack.c.bf16 %v18901_v6, %v18901_v6  ;;  %v16567_v9 = vld [vmem:[#allocation10 + $0x90] ss:$24 sps:$4 sm:$0xff]   ;;  %v16620_v51 = vld [vmem:[#allocation10 + $0x514] ss:$24 sps:$4 sm:$0xff]   ;;  %v16623_v27 = vld [vmem:[#allocation10 + $0x244] ss:$24 sps:$4 sm:$0xff]  }
 0x2c9   :  { %5079 = vmatprep.subr.bf16.mxu1 %v16500_v10  ;;  %v187_v61 = vadd.f32 1e-06, %v175_v28  ;;  %v16570_v10 = vld [vmem:[#allocation10 + $0x390] ss:$24 sps:$4 sm:$0xff]   ;;  %v16626_v28 = vld [vmem:[#allocation10 + $0x544] ss:$24 sps:$4 sm:$0xff]  }
 0x2cb   :  { %5039 = vmatpush1.bf16.msra.mxu0 %v16495_v14  ;;  %v199_v7 = vmul.f32 %v187_v61, %v187_v61  ;;  %v16575_v14 = vld [vmem:[#allocation10 + $0xc4] ss:$24 sps:$4 sm:$0xff]   ;;  %v16621_v61 = vld [vmem:[#allocation10 + $0x240] ss:$24 sps:$4 sm:$0xff]  }
 0x2cc   :  { %5080 = vmatpush1.bf16.msra.mxu1 %v16498_v13  ;;  %5040 = vmatprep.subr.bf16.mxu0 %v16503_v17  ;;  %v16578_v13 = vld [vmem:[#allocation10 + $0x3c4] ss:$24 sps:$4 sm:$0xff]   ;;  %v16576_v17 = vld [vmem:[#allocation10 + $0x3c0] ss:$24 sps:$4 sm:$0xff]  }
 0x2cd   :  { %5081 = vmatprep.subr.bf16.mxu1 %v16506_v15  ;;  %v18932_v6 = vadd.f32 %v18911_v39, %v199_v7  ;;  %v16573_v39 = vld [vmem:[#allocation10 + $0xc0] ss:$24 sps:$4 sm:$0xff]   ;;  %v16581_v15 = vld [vmem:[#allocation10 + $0xf4] ss:$24 sps:$4 sm:$0xff]   ;;  %v16630_v7 = vld [vmem:[#allocation10 + $0x570] ss:$24 sps:$4 sm:$0xff]  }
 0x2cf   :  { %5041 = vmatpush1.bf16.msra.mxu0 %v16501_v16  ;;  %v16584_v16 = vld [vmem:[#allocation10 + $0x3f4] ss:$24 sps:$4 sm:$0xff]  }
 0x2d0   :  { %5082 = vmatpush1.bf16.msra.mxu1 %v16504_v18  ;;  %5042 = vmatprep.subr.bf16.mxu0 %v16509_v20  ;;  %v16579_v18 = vld [vmem:[#allocation10 + $0xf0] ss:$24 sps:$4 sm:$0xff]  }
 0x2d1   :  { %5083 = vmatprep.subr.bf16.mxu1 %v16512_v21  ;;  %v16582_v20 = vld [vmem:[#allocation10 + $0x3f0] ss:$24 sps:$4 sm:$0xff]   ;;  %v16587_v21 = vld [vmem:[#allocation10 + $0x124] ss:$24 sps:$4 sm:$0xff]  }
 0x2d3   :  { %5043 = vmatpush1.bf16.msra.mxu0 %v16507_v22  ;;  %v16590_v22 = vld [vmem:[#allocation10 + $0x424] ss:$24 sps:$4 sm:$0xff]  }
 0x2d4   :  { %5084 = vmatpush1.bf16.msra.mxu1 %v16510_v19  ;;  %5044 = vmatprep.subr.bf16.mxu0 %v16515_v23 }
 0x2d5   :  { %5085 = vmatprep.subr.bf16.mxu1 %v16518_v24  ;;  %v16585_v24 = vld [vmem:[#allocation10 + $0x120] ss:$24 sps:$4 sm:$0xff]  }
 0x2d7   :  { %5045 = vmatpush1.bf16.msra.mxu0 %v16513_v25  ;;  %v16588_v25 = vld [vmem:[#allocation10 + $0x420] ss:$24 sps:$4 sm:$0xff]  }
 0x2d8   :  { %5086 = vmatpush1.bf16.msra.mxu1 %v16516_v26  ;;  %5046 = vmatprep.subr.bf16.mxu0 %v16521_v30 }
 0x2d9   :  { %5087 = vmatprep.subr.bf16.mxu1 %v16524_v31 }
 0x2db   :  { %5047 = vmatpush1.bf16.msra.mxu0 %v16519_v32 }
 0x2dc   :  { %5088 = vmatpush1.bf16.msra.mxu1 %v16522_v33  ;;  %5048 = vmatprep.subr.bf16.mxu0 %v16527_v49 }
 0x2dd   :  { %5089 = vmatprep.subr.bf16.mxu1 %v16530_v35 }
 0x2df   :  { %5049 = vmatpush1.bf16.msra.mxu0 %v16525_v44 }
 0x2e0   :  { %5090 = vmatpush1.bf16.msra.mxu1 %v16528_v45  ;;  %5050 = vmatprep.subr.bf16.mxu0 %v16533_v54  ;;  %v16593_v54 = vld [vmem:[#allocation10 + $0x154] ss:$24 sps:$4 sm:$0xff]  }
 0x2e1   :  { %5091 = vmatprep.subr.bf16.mxu1 %v16536_v55  ;;  %v16596_v55 = vld [vmem:[#allocation10 + $0x454] ss:$24 sps:$4 sm:$0xff]  }
 0x2e3   :  { %5051 = vmatpush1.bf16.msra.mxu0 %v16531_v60 }
 0x2e4   :  { %5092 = vmatpush1.bf16.msra.mxu1 %v16534_v36  ;;  %5052 = vmatprep.subr.bf16.mxu0 %v16539_v37  ;;  %v16594_v36 = vld [vmem:[#allocation10 + $0x450] ss:$24 sps:$4 sm:$0xff]   ;;  %v16602_v37 = vld [vmem:[#allocation10 + $0x484] ss:$24 sps:$4 sm:$0xff]  }
 0x2e5   :  { %5093 = vmatprep.subr.bf16.mxu1 %v16542_v38  ;;  %v16597_v38 = vld [vmem:[#allocation10 + $0x180] ss:$24 sps:$4 sm:$0xff]  }
 0x2e7   :  { %5053 = vmatpush1.bf16.msra.mxu0 %v16537_v40  ;;  %v16600_v40 = vld [vmem:[#allocation10 + $0x480] ss:$24 sps:$4 sm:$0xff]  }
 0x2e8   :  { %5094 = vmatpush1.bf16.msra.mxu1 %v16540_v62  ;;  %5054 = vmatprep.subr.bf16.mxu0 %v16545_v63  ;;  %v16605_v62 = vld [vmem:[#allocation10 + $0x1b4] ss:$24 sps:$4 sm:$0xff]  }
 0x2e9   :  { %5095 = vmatprep.subr.bf16.mxu1 %v16548_v41  ;;  %v16608_v63 = vld [vmem:[#allocation10 + $0x4b4] ss:$24 sps:$4 sm:$0xff]   ;;  %v16603_v41 = vld [vmem:[#allocation10 + $0x1b0] ss:$24 sps:$4 sm:$0xff]  }
 0x2eb   :  { %5055 = vmatpush1.bf16.msra.mxu0 %v16543_v42  ;;  %v16606_v42 = vld [vmem:[#allocation10 + $0x4b0] ss:$24 sps:$4 sm:$0xff]  }
 0x2ec   :  { %5096 = vmatpush1.bf16.msra.mxu1 %v16546_v43  ;;  %7986 = vmatprep.subr.bf16.mxu0 %v16551_v46  ;;  %v16611_v43 = vld [vmem:[#allocation10 + $0x1e4] ss:$24 sps:$4 sm:$0xff]  }
 0x2ed   :  { %8027 = vmatprep.subr.bf16.mxu1 %v16554_v47  ;;  %v16614_v46 = vld [vmem:[#allocation10 + $0x4e4] ss:$24 sps:$4 sm:$0xff]   ;;  %v16609_v47 = vld [vmem:[#allocation10 + $0x1e0] ss:$24 sps:$4 sm:$0xff]  }
 0x2ee   :  { %5057 = vmatmul.mubr.bf16.vlgmr.msra.gmra.mrb[32].mxu0 %v18857_v3  ;;  %v16561_v3 = vld [vmem:[#allocation10 + $0x60] ss:$24 sps:$4 sm:$0xff]  }
 0x2ef   :  { %5098 = vmatmul.mubr.bf16.vlgmr.msra.gmra.mrb[32].mxu1 %v18859_v4  ;;  %7987 = vmatpush1.bf16.msra.mxu0 %v16549_v48  ;;  %v16564_v4 = vld [vmem:[#allocation10 + $0x360] ss:$24 sps:$4 sm:$0xff]  }
 0x2f0   :  { %8028 = vmatpush1.bf16.msra.mxu1 %v16552_v50  ;;  %7988 = vmatprep.subr.bf16.mxu0 %v16557_v52  ;;  %v16612_v48 = vld [vmem:[#allocation10 + $0x4e0] ss:$24 sps:$4 sm:$0xff]   ;;  %v16617_v50 = vld [vmem:[#allocation10 + $0x214] ss:$24 sps:$4 sm:$0xff]   ;;  %v16615_v52 = vld [vmem:[#allocation10 + $0x210] ss:$24 sps:$4 sm:$0xff]  }
 0x2f1   :  { %8029 = vmatprep.subr.bf16.mxu1 %v16560_v53  ;;  %8018 = vmatprep.mubr.bf16.mxu0 %v18921_v56  ;;  %v16618_v53 = vld [vmem:[#allocation10 + $0x510] ss:$24 sps:$4 sm:$0xff]  }
 0x2f2   :  { %8059 = vmatprep.mubr.bf16.mxu1 %v18925_v58 }
 0x2f3   :  { %7989 = vmatpush1.bf16.msra.mxu0 %v16555_v0  ;;  %v16624_v0 = vld [vmem:[#allocation10 + $0x540] ss:$24 sps:$4 sm:$0xff]  }
 0x2f4   :  { %8030 = vmatpush1.bf16.msra.mxu1 %v16558_v59  ;;  %7990 = vmatprep.subr.bf16.mxu0 %v16563_v1  ;;  %v16629_v59 = vld [vmem:[#allocation10 + $0x274] ss:$24 sps:$4 sm:$0xff]  }
 0x2f5   :  { %8031 = vmatprep.subr.bf16.mxu1 %v16566_v2  ;;  %v16632_v1 = vld [vmem:[#allocation10 + $0x574] ss:$24 sps:$4 sm:$0xff]   ;;  %v16627_v2 = vld [vmem:[#allocation10 + $0x270] ss:$24 sps:$4 sm:$0xff]  }
 0x2f7   :  { %7991 = vmatpush1.bf16.msra.mxu0 %v16561_v3  ;;  %v16635_v3 = vld [vmem:[#allocation10 + $0x2a4] ss:$24 sps:$4 sm:$0xff]  }
 0x2f8   :  { %8032 = vmatpush1.bf16.msra.mxu1 %v16564_v4  ;;  %7992 = vmatprep.subr.bf16.mxu0 %v16569_v34  ;;  %v16638_v4 = vld [vmem:[#allocation10 + $0x5a4] ss:$24 sps:$4 sm:$0xff]   ;;  %v16633_v34 = vld [vmem:[#allocation10 + $0x2a0] ss:$24 sps:$4 sm:$0xff]  }
 0x2f9   :  { %8033 = vmatprep.subr.bf16.mxu1 %v16572_v8  ;;  %v16636_v8 = vld [vmem:[#allocation10 + $0x5a0] ss:$24 sps:$4 sm:$0xff]  }
 0x2fb   :  { %7993 = vmatpush1.bf16.msra.mxu0 %v16567_v9  ;;  %v16641_v9 = vld [vmem:[#allocation10 + $0x2d4] ss:$24 sps:$4 sm:$0xff]  }
 0x2fc   :  { %8034 = vmatpush1.bf16.msra.mxu1 %v16570_v10  ;;  %7994 = vmatprep.subr.bf16.mxu0 %v16575_v14  ;;  %v16644_v10 = vld [vmem:[#allocation10 + $0x5d4] ss:$24 sps:$4 sm:$0xff]   ;;  %v16639_v14 = vld [vmem:[#allocation10 + $0x2d0] ss:$24 sps:$4 sm:$0xff]  }
 0x2fd   :  { %8035 = vmatprep.subr.bf16.mxu1 %v16578_v13  ;;  %v16642_v13 = vld [vmem:[#allocation10 + $0x5d0] ss:$24 sps:$4 sm:$0xff]  }
 0x2ff   :  { %7995 = vmatpush1.bf16.msra.mxu0 %v16573_v39  ;;  %v16647_v39 = vld [vmem:[#allocation10 + $0x604] ss:$24 sps:$4 sm:$0xff]  }
 0x300   :  { %8036 = vmatpush1.bf16.msra.mxu1 %v16576_v17  ;;  %7996 = vmatprep.subr.bf16.mxu0 %v16581_v15  ;;  %v16650_v17 = vld [vmem:[#allocation10 + $0x904] ss:$24 sps:$4 sm:$0xff]  }
 0x301   :  { %8037 = vmatprep.subr.bf16.mxu1 %v16584_v16  ;;  %v4812_v19 = vpop.f32.mrb[20].mxu0  ;;  %v18340_v15 = vld [vmem:[#allocation4] sm:$0xff] }
 0x302   :  { %v4853_v23 = vpop.f32.mrb[20].mxu1  ;;  %v4813_v26 = vadd.f32 %v4812_v19, %v18915_v29  ;;  %v4814_v30 = vpop.f32.mrb[21].mxu0  ;;  %v16591_v29 = vld [vmem:[#allocation10 + $0x150] ss:$24 sps:$4 sm:$0xff]   ;;  %v18940_v16 = vpack.c.bf16 %v18340_v15, %v18340_v15  ;;  %v16645_v19 = vld [vmem:[#allocation10 + $0x600] ss:$24 sps:$4 sm:$0xff]  }
 0x303   :  { %v4855_v31 = vpop.f32.mrb[21].mxu1  ;;  %v4815_v32 = vadd.f32 %v4814_v30, %v18917_v11  ;;  %v4816_v33 = vpop.f32.mrb[22].mxu0  ;;  %7997 = vmatpush1.bf16.msra.mxu0 %v16579_v18  ;;  %v16599_v11 = vld [vmem:[#allocation10 + $0x184] ss:$24 sps:$4 sm:$0xff]   ;;  %v18341_v18 = vld [vmem:[#allocation4 + $0x10] sm:$0xff] }
 0x304   :  { %v4857_v49 = vpop.f32.mrb[22].mxu1  ;;  %8038 = vmatpush1.bf16.msra.mxu1 %v16582_v20  ;;  %v18936_v35 = vadd.f32 %v4853_v23, %v4813_v26  ;;  %v4817_v44 = vpop.f32.mrb[23].mxu0  ;;  %7998 = vmatprep.subr.bf16.mxu0 %v16587_v21  ;;  %v18942_v20 = vpack.c.bf16 %v18341_v18, %v18341_v18  ;;  %v164_v21 = vld [vmem:[#allocation4 + $0x28] sm:$0xff]  ;;  %v16648_v23 = vld [vmem:[#allocation10 + $0x900] ss:$24 sps:$4 sm:$0xff]  }
 0x305   :  { %v4858_v45 = vpop.f32.mrb[23].mxu1  ;;  %8039 = vmatprep.subr.bf16.mxu1 %v16590_v22  ;;  %v18938_v60 = vadd.f32 %v4855_v31, %v4815_v32  ;;  %v166_v22 = vld [vmem:[#allocation4 + $0x38] sm:$0xff]  ;;  %v18944_v26 = vpack.c.bf16 %v164_v21, %v164_v21  ;;  %v16651_v31 = vld [vmem:[#allocation10 + $0x630] ss:$24 sps:$4 sm:$0xff]  }
 0x306   :  { %v18946_v30 = vpack.c.bf16 %v166_v22, %v166_v22  ;;  %v16654_v32 = vld [vmem:[#allocation10 + $0x930] ss:$24 sps:$4 sm:$0xff]   ;;  %v16659_v33 = vld [vmem:[#allocation10 + $0x664] ss:$24 sps:$4 sm:$0xff]   ;;  %v16657_v44 = vld [vmem:[#allocation10 + $0x660] ss:$24 sps:$4 sm:$0xff]  }
 0x307   :  { %7999 = vmatpush1.bf16.msra.mxu0 %v16585_v24  ;;  %v16653_v24 = vld [vmem:[#allocation10 + $0x634] ss:$24 sps:$4 sm:$0xff]   ;;  %v16662_v49 = vld [vmem:[#allocation10 + $0x964] ss:$24 sps:$4 sm:$0xff]   ;;  %v16660_v45 = vld [vmem:[#allocation10 + $0x960] ss:$24 sps:$4 sm:$0xff]  }
 0x308   :  { %8040 = vmatpush1.bf16.msra.mxu1 %v16588_v25  ;;  %8000 = vmatprep.subr.bf16.mxu0 %v16593_v54  ;;  %v16656_v25 = vld [vmem:[#allocation10 + $0x934] ss:$24 sps:$4 sm:$0xff]   ;;  %v16707_v15 = vld [vmem:[#allocation10 + $0x7e4] ss:$24 sps:$4 sm:$0xff]   ;;  %v16705_v21 = vld [vmem:[#allocation10 + $0x7e0] ss:$24 sps:$4 sm:$0xff]  }
 0x309   :  { %8041 = vmatprep.subr.bf16.mxu1 %v16596_v55  ;;  %v16665_v54 = vld [vmem:[#allocation10 + $0x694] ss:$24 sps:$4 sm:$0xff]   ;;  %v16710_v18 = vld [vmem:[#allocation10 + $0xae4] ss:$24 sps:$4 sm:$0xff]   ;;  %v16708_v22 = vld [vmem:[#allocation10 + $0xae0] ss:$24 sps:$4 sm:$0xff]  }
 0x30a   :  { %v16668_v55 = vld [vmem:[#allocation10 + $0x994] ss:$24 sps:$4 sm:$0xff]  }
 0x30b   :  { %8001 = vmatpush1.bf16.msra.mxu0 %v16591_v29  ;;  %v16663_v29 = vld [vmem:[#allocation10 + $0x690] ss:$24 sps:$4 sm:$0xff]  }
 0x30c   :  { %8042 = vmatpush1.bf16.msra.mxu1 %v16594_v36  ;;  %8002 = vmatprep.subr.bf16.mxu0 %v16599_v11  ;;  %v16666_v36 = vld [vmem:[#allocation10 + $0x990] ss:$24 sps:$4 sm:$0xff]   ;;  %v16671_v11 = vld [vmem:[#allocation10 + $0x6c4] ss:$24 sps:$4 sm:$0xff]  }
 0x30d   :  { %8043 = vmatprep.subr.bf16.mxu1 %v16602_v37  ;;  %v16674_v37 = vld [vmem:[#allocation10 + $0x9c4] ss:$24 sps:$4 sm:$0xff]  }
 0x30f   :  { %8003 = vmatpush1.bf16.msra.mxu0 %v16597_v38  ;;  %v16669_v38 = vld [vmem:[#allocation10 + $0x6c0] ss:$24 sps:$4 sm:$0xff]  }
 0x310   :  { %8044 = vmatpush1.bf16.msra.mxu1 %v16600_v40  ;;  %8004 = vmatprep.subr.bf16.mxu0 %v16605_v62  ;;  %v16672_v40 = vld [vmem:[#allocation10 + $0x9c0] ss:$24 sps:$4 sm:$0xff]   ;;  %v16677_v62 = vld [vmem:[#allocation10 + $0x6f4] ss:$24 sps:$4 sm:$0xff]  }
 0x311   :  { %8045 = vmatprep.subr.bf16.mxu1 %v16608_v63  ;;  %v16680_v63 = vld [vmem:[#allocation10 + $0x9f4] ss:$24 sps:$4 sm:$0xff]  }
 0x313   :  { %8005 = vmatpush1.bf16.msra.mxu0 %v16603_v41  ;;  %v16675_v41 = vld [vmem:[#allocation10 + $0x6f0] ss:$24 sps:$4 sm:$0xff]  }
 0x314   :  { %8046 = vmatpush1.bf16.msra.mxu1 %v16606_v42  ;;  %8006 = vmatprep.subr.bf16.mxu0 %v16611_v43  ;;  %v16678_v42 = vld [vmem:[#allocation10 + $0x9f0] ss:$24 sps:$4 sm:$0xff]   ;;  %v16683_v43 = vld [vmem:[#allocation10 + $0x724] ss:$24 sps:$4 sm:$0xff]  }
 0x315   :  { %8047 = vmatprep.subr.bf16.mxu1 %v16614_v46  ;;  %v16686_v46 = vld [vmem:[#allocation10 + $0xa24] ss:$24 sps:$4 sm:$0xff]  }
 0x317   :  { %8007 = vmatpush1.bf16.msra.mxu0 %v16609_v47 }
 0x318   :  { %8048 = vmatpush1.bf16.msra.mxu1 %v16612_v48  ;;  %8008 = vmatprep.subr.bf16.mxu0 %v16617_v50  ;;  %v16681_v50 = vld [vmem:[#allocation10 + $0x720] ss:$24 sps:$4 sm:$0xff]  }
 0x319   :  { %8049 = vmatprep.subr.bf16.mxu1 %v16620_v51  ;;  %v16684_v51 = vld [vmem:[#allocation10 + $0xa20] ss:$24 sps:$4 sm:$0xff]  }
 0x31b   :  { %8009 = vmatpush1.bf16.msra.mxu0 %v16615_v52 }
 0x31c   :  { %8050 = vmatpush1.bf16.msra.mxu1 %v16618_v53  ;;  %8010 = vmatprep.subr.bf16.mxu0 %v16623_v27 }
 0x31d   :  { %8051 = vmatprep.subr.bf16.mxu1 %v16626_v28 }
 0x31f   :  { %8011 = vmatpush1.bf16.msra.mxu0 %v16621_v61 }
 0x320   :  { %8052 = vmatpush1.bf16.msra.mxu1 %v16624_v0  ;;  %8012 = vmatprep.subr.bf16.mxu0 %v16629_v59 }
 0x321   :  { %8053 = vmatprep.subr.bf16.mxu1 %v16632_v1 }
 0x323   :  { %8013 = vmatpush1.bf16.msra.mxu0 %v16627_v2  ;;  %v16689_v2 = vld [vmem:[#allocation10 + $0x754] ss:$24 sps:$4 sm:$0xff]  }
 0x324   :  { %8054 = vmatpush1.bf16.msra.mxu1 %v16630_v7  ;;  %8014 = vmatprep.subr.bf16.mxu0 %v16635_v3  ;;  %v16692_v7 = vld [vmem:[#allocation10 + $0xa54] ss:$24 sps:$4 sm:$0xff]   ;;  %v16687_v3 = vld [vmem:[#allocation10 + $0x750] ss:$24 sps:$4 sm:$0xff]  }
 0x325   :  { %8055 = vmatprep.subr.bf16.mxu1 %v16638_v4  ;;  %v16690_v4 = vld [vmem:[#allocation10 + $0xa50] ss:$24 sps:$4 sm:$0xff]  }
 0x327   :  { %8015 = vmatpush1.bf16.msra.mxu0 %v16633_v34  ;;  %v16695_v34 = vld [vmem:[#allocation10 + $0x784] ss:$24 sps:$4 sm:$0xff]  }
 0x328   :  { %8056 = vmatpush1.bf16.msra.mxu1 %v16636_v8  ;;  %8016 = vmatprep.subr.bf16.mxu0 %v16641_v9  ;;  %v16698_v8 = vld [vmem:[#allocation10 + $0xa84] ss:$24 sps:$4 sm:$0xff]   ;;  %v16693_v9 = vld [vmem:[#allocation10 + $0x780] ss:$24 sps:$4 sm:$0xff]  }
 0x329   :  { %8057 = vmatprep.subr.bf16.mxu1 %v16644_v10  ;;  %v16696_v10 = vld [vmem:[#allocation10 + $0xa80] ss:$24 sps:$4 sm:$0xff]  }
 0x32b   :  { %8017 = vmatpush1.bf16.msra.mxu0 %v16639_v14  ;;  %v16701_v14 = vld [vmem:[#allocation10 + $0x7b4] ss:$24 sps:$4 sm:$0xff]  }
 0x32c   :  { %8058 = vmatpush1.bf16.msra.mxu1 %v16642_v13  ;;  %8068 = vmatprep.subr.bf16.mxu0 %v16647_v39  ;;  %v16704_v13 = vld [vmem:[#allocation10 + $0xab4] ss:$24 sps:$4 sm:$0xff]   ;;  %v16699_v39 = vld [vmem:[#allocation10 + $0x7b0] ss:$24 sps:$4 sm:$0xff]  }
 0x32d   :  { %8109 = vmatprep.subr.bf16.mxu1 %v16650_v17  ;;  %v16702_v17 = vld [vmem:[#allocation10 + $0xab0] ss:$24 sps:$4 sm:$0xff]  }
 0x32e   :  { %8019 = vmatmul.mubr.bf16.vlgmr.msra.gmra.mrb[36].mxu0 %v18940_v16 }
 0x32f   :  { %8060 = vmatmul.mubr.bf16.vlgmr.msra.gmra.mrb[36].mxu1 %v18942_v20  ;;  %8069 = vmatpush1.bf16.msra.mxu0 %v16645_v19  ;;  %v16713_v19 = vld [vmem:[#allocation10 + $0x814] ss:$24 sps:$4 sm:$0xff]  }
 0x330   :  { %8110 = vmatpush1.bf16.msra.mxu1 %v16648_v23  ;;  %8070 = vmatprep.subr.bf16.mxu0 %v16653_v24  ;;  %v16716_v23 = vld [vmem:[#allocation10 + $0xb14] ss:$24 sps:$4 sm:$0xff]   ;;  %v16711_v24 = vld [vmem:[#allocation10 + $0x810] ss:$24 sps:$4 sm:$0xff]  }
 0x331   :  { %8111 = vmatprep.subr.bf16.mxu1 %v16656_v25  ;;  %8100 = vmatprep.mubr.bf16.mxu0 %v18944_v26  ;;  %v16714_v25 = vld [vmem:[#allocation10 + $0xb10] ss:$24 sps:$4 sm:$0xff]  }
 0x332   :  { %8141 = vmatprep.mubr.bf16.mxu1 %v18946_v30 }
 0x333   :  { %8071 = vmatpush1.bf16.msra.mxu0 %v16651_v31  ;;  %v16719_v31 = vld [vmem:[#allocation10 + $0x844] ss:$24 sps:$4 sm:$0xff]  }
 0x334   :  { %8112 = vmatpush1.bf16.msra.mxu1 %v16654_v32  ;;  %8072 = vmatprep.subr.bf16.mxu0 %v16659_v33  ;;  %v16722_v32 = vld [vmem:[#allocation10 + $0xb44] ss:$24 sps:$4 sm:$0xff]   ;;  %v16717_v33 = vld [vmem:[#allocation10 + $0x840] ss:$24 sps:$4 sm:$0xff]  }
 0x335   :  { %8113 = vmatprep.subr.bf16.mxu1 %v16662_v49  ;;  %v16720_v49 = vld [vmem:[#allocation10 + $0xb40] ss:$24 sps:$4 sm:$0xff]  }
 0x337   :  { %8073 = vmatpush1.bf16.msra.mxu0 %v16657_v44  ;;  %v16725_v44 = vld [vmem:[#allocation10 + $0x874] ss:$24 sps:$4 sm:$0xff]  }
 0x338   :  { %8114 = vmatpush1.bf16.msra.mxu1 %v16660_v45  ;;  %8074 = vmatprep.subr.bf16.mxu0 %v16665_v54  ;;  %v16728_v45 = vld [vmem:[#allocation10 + $0xb74] ss:$24 sps:$4 sm:$0xff]   ;;  %v16723_v54 = vld [vmem:[#allocation10 + $0x870] ss:$24 sps:$4 sm:$0xff]  }
 0x339   :  { %8115 = vmatprep.subr.bf16.mxu1 %v16668_v55  ;;  %v16726_v55 = vld [vmem:[#allocation10 + $0xb70] ss:$24 sps:$4 sm:$0xff]  }
 0x33b   :  { %8075 = vmatpush1.bf16.msra.mxu0 %v16663_v29  ;;  %v16731_v29 = vld [vmem:[#allocation10 + $0x8a4] ss:$24 sps:$4 sm:$0xff]  }
 0x33c   :  { %8116 = vmatpush1.bf16.msra.mxu1 %v16666_v36  ;;  %8076 = vmatprep.subr.bf16.mxu0 %v16671_v11  ;;  %v16734_v36 = vld [vmem:[#allocation10 + $0xba4] ss:$24 sps:$4 sm:$0xff]   ;;  %v16729_v11 = vld [vmem:[#allocation10 + $0x8a0] ss:$24 sps:$4 sm:$0xff]  }
 0x33d   :  { %8117 = vmatprep.subr.bf16.mxu1 %v16674_v37  ;;  %v16732_v37 = vld [vmem:[#allocation10 + $0xba0] ss:$24 sps:$4 sm:$0xff]  }
 0x33f   :  { %8077 = vmatpush1.bf16.msra.mxu0 %v16669_v38  ;;  %v16737_v38 = vld [vmem:[#allocation10 + $0x8d4] ss:$24 sps:$4 sm:$0xff]  }
 0x340   :  { %8118 = vmatpush1.bf16.msra.mxu1 %v16672_v40  ;;  %8078 = vmatprep.subr.bf16.mxu0 %v16677_v62  ;;  %v16740_v40 = vld [vmem:[#allocation10 + $0xbd4] ss:$24 sps:$4 sm:$0xff]   ;;  %v16735_v62 = vld [vmem:[#allocation10 + $0x8d0] ss:$24 sps:$4 sm:$0xff]  }
 0x341   :  { %8119 = vmatprep.subr.bf16.mxu1 %v16680_v63  ;;  %v4894_v47 = vpop.f32.mrb[24].mxu0  ;;  %v16738_v63 = vld [vmem:[#allocation10 + $0xbd0] ss:$24 sps:$4 sm:$0xff]  }
 0x342   :  { %v4935_v48 = vpop.f32.mrb[24].mxu1  ;;  %v4896_v53 = vpop.f32.mrb[25].mxu0 }
 0x343   :  { %v18952_v52 = vadd.f32 %v4935_v48, %v4894_v47  ;;  %v4937_v27 = vpop.f32.mrb[25].mxu1  ;;  %v4898_v61 = vpop.f32.mrb[26].mxu0  ;;  %8079 = vmatpush1.bf16.msra.mxu0 %v16675_v41  ;;  %v165_v41 = vld [vmem:[#allocation4 + $0x30] sm:$0xff]  ;;  %v170_v47 = vld [vmem:[#allocation4 + $0x58] sm:$0xff] }
 0x344   :  { %v18954_v28 = vadd.f32 %v4937_v27, %v4896_v53  ;;  %v4939_v0 = vpop.f32.mrb[26].mxu1  ;;  %8120 = vmatpush1.bf16.msra.mxu1 %v16678_v42  ;;  %v4899_v59 = vpop.f32.mrb[27].mxu0  ;;  %8080 = vmatprep.subr.bf16.mxu0 %v16683_v43  ;;  %v16743_v42 = vld [vmem:[#allocation10 + $0xc04] ss:$24 sps:$4 sm:$0xff]   ;;  %v16741_v48 = vld [vmem:[#allocation10 + $0xc00] ss:$24 sps:$4 sm:$0xff]   ;;  %v18958_v27 = vpack.c.bf16 %v165_v41, %v165_v41 }
 0x345   :  { %v4940_v1 = vpop.f32.mrb[27].mxu1  ;;  %8121 = vmatprep.subr.bf16.mxu1 %v16686_v46  ;;  %v16746_v43 = vld [vmem:[#allocation10 + $0xf04] ss:$24 sps:$4 sm:$0xff]   ;;  %v168_v46 = vld [vmem:[#allocation4 + $0x48] sm:$0xff] }
 0x346   :  { %v16749_v61 = vld [vmem:[#allocation10 + $0xc34] ss:$24 sps:$4 sm:$0xff]   ;;  %v18960_v59 = vpack.c.bf16 %v168_v46, %v168_v46  ;;  %v18962_v1 = vpack.c.bf16 %v170_v47, %v170_v47  ;;  %v16786_v41 = vld [vmem:[#allocation10 + $0x1050] ss:$24 sps:$4 sm:$0xff]   ;;  %v16792_v46 = vld [vmem:[#allocation10 + $0x1080] ss:$24 sps:$4 sm:$0xff]  }
 0x347   :  { %8081 = vmatpush1.bf16.msra.mxu0 %v16681_v50  ;;  %v16744_v50 = vld [vmem:[#allocation10 + $0xf00] ss:$24 sps:$4 sm:$0xff]   ;;  %v16752_v0 = vld [vmem:[#allocation10 + $0xf34] ss:$24 sps:$4 sm:$0xff]  }
 0x348   :  { %8122 = vmatpush1.bf16.msra.mxu1 %v16684_v51  ;;  %8082 = vmatprep.subr.bf16.mxu0 %v16689_v2  ;;  %v18342_v51 = vld [vmem:[#allocation4 + $0x20] sm:$0xff]  ;;  %v16747_v2 = vld [vmem:[#allocation10 + $0xc30] ss:$24 sps:$4 sm:$0xff]   ;;  %v16797_v47 = vld [vmem:[#allocation10 + $0xdb4] ss:$24 sps:$4 sm:$0xff]  }
 0x349   :  { %8123 = vmatprep.subr.bf16.mxu1 %v16692_v7  ;;  %v18956_v53 = vpack.c.bf16 %v18342_v51, %v18342_v51  ;;  %v16750_v7 = vld [vmem:[#allocation10 + $0xf30] ss:$24 sps:$4 sm:$0xff]  }
 0x34a   :  { %v16798_v51 = vld [vmem:[#allocation10 + $0x10b0] ss:$24 sps:$4 sm:$0xff]  }
 0x34b   :  { %8083 = vmatpush1.bf16.msra.mxu0 %v16687_v3  ;;  %v16755_v3 = vld [vmem:[#allocation10 + $0xc64] ss:$24 sps:$4 sm:$0xff]  }
 0x34c   :  { %8124 = vmatpush1.bf16.msra.mxu1 %v16690_v4  ;;  %8084 = vmatprep.subr.bf16.mxu0 %v16695_v34  ;;  %v16758_v4 = vld [vmem:[#allocation10 + $0xf64] ss:$24 sps:$4 sm:$0xff]   ;;  %v16753_v34 = vld [vmem:[#allocation10 + $0xc60] ss:$24 sps:$4 sm:$0xff]  }
 0x34d   :  { %8125 = vmatprep.subr.bf16.mxu1 %v16698_v8  ;;  %v16756_v8 = vld [vmem:[#allocation10 + $0xf60] ss:$24 sps:$4 sm:$0xff]  }
 0x34f   :  { %8085 = vmatpush1.bf16.msra.mxu0 %v16693_v9  ;;  %v16761_v9 = vld [vmem:[#allocation10 + $0xc94] ss:$24 sps:$4 sm:$0xff]  }
 0x350   :  { %8126 = vmatpush1.bf16.msra.mxu1 %v16696_v10  ;;  %8086 = vmatprep.subr.bf16.mxu0 %v16701_v14  ;;  %v16764_v10 = vld [vmem:[#allocation10 + $0xf94] ss:$24 sps:$4 sm:$0xff]   ;;  %v16759_v14 = vld [vmem:[#allocation10 + $0xc90] ss:$24 sps:$4 sm:$0xff]  }
 0x351   :  { %8127 = vmatprep.subr.bf16.mxu1 %v16704_v13  ;;  %v16762_v13 = vld [vmem:[#allocation10 + $0xf90] ss:$24 sps:$4 sm:$0xff]  }
 0x353   :  { %8087 = vmatpush1.bf16.msra.mxu0 %v16699_v39  ;;  %v16767_v39 = vld [vmem:[#allocation10 + $0xcc4] ss:$24 sps:$4 sm:$0xff]  }
 0x354   :  { %8128 = vmatpush1.bf16.msra.mxu1 %v16702_v17  ;;  %8088 = vmatprep.subr.bf16.mxu0 %v16707_v15  ;;  %v16770_v17 = vld [vmem:[#allocation10 + $0xfc4] ss:$24 sps:$4 sm:$0xff]   ;;  %v16765_v15 = vld [vmem:[#allocation10 + $0xcc0] ss:$24 sps:$4 sm:$0xff]  }
 0x355   :  { %8129 = vmatprep.subr.bf16.mxu1 %v16710_v18  ;;  %v16768_v18 = vld [vmem:[#allocation10 + $0xfc0] ss:$24 sps:$4 sm:$0xff]  }
 0x357   :  { %8089 = vmatpush1.bf16.msra.mxu0 %v16705_v21  ;;  %v16773_v21 = vld [vmem:[#allocation10 + $0xcf4] ss:$24 sps:$4 sm:$0xff]  }
 0x358   :  { %8130 = vmatpush1.bf16.msra.mxu1 %v16708_v22  ;;  %8090 = vmatprep.subr.bf16.mxu0 %v16713_v19  ;;  %v16776_v22 = vld [vmem:[#allocation10 + $0xff4] ss:$24 sps:$4 sm:$0xff]   ;;  %v16771_v19 = vld [vmem:[#allocation10 + $0xcf0] ss:$24 sps:$4 sm:$0xff]  }
 0x359   :  { %8131 = vmatprep.subr.bf16.mxu1 %v16716_v23  ;;  %v16774_v23 = vld [vmem:[#allocation10 + $0xff0] ss:$24 sps:$4 sm:$0xff]  }
 0x35b   :  { %8091 = vmatpush1.bf16.msra.mxu0 %v16711_v24  ;;  %v16779_v24 = vld [vmem:[#allocation10 + $0xd24] ss:$24 sps:$4 sm:$0xff]  }
 0x35c   :  { %8132 = vmatpush1.bf16.msra.mxu1 %v16714_v25  ;;  %8092 = vmatprep.subr.bf16.mxu0 %v16719_v31  ;;  %v16782_v25 = vld [vmem:[#allocation10 + $0x1024] ss:$24 sps:$4 sm:$0xff]  }
 0x35d   :  { %8133 = vmatprep.subr.bf16.mxu1 %v16722_v32 }
 0x35f   :  { %8093 = vmatpush1.bf16.msra.mxu0 %v16717_v33  ;;  %v16777_v33 = vld [vmem:[#allocation10 + $0xd20] ss:$24 sps:$4 sm:$0xff]  }
 0x360   :  { %8134 = vmatpush1.bf16.msra.mxu1 %v16720_v49  ;;  %8094 = vmatprep.subr.bf16.mxu0 %v16725_v44  ;;  %v16780_v49 = vld [vmem:[#allocation10 + $0x1020] ss:$24 sps:$4 sm:$0xff]  }
 0x361   :  { %8135 = vmatprep.subr.bf16.mxu1 %v16728_v45 }
 0x363   :  { %8095 = vmatpush1.bf16.msra.mxu0 %v16723_v54 }
 0x364   :  { %8136 = vmatpush1.bf16.msra.mxu1 %v16726_v55  ;;  %8096 = vmatprep.subr.bf16.mxu0 %v16731_v29 }
 0x365   :  { %8137 = vmatprep.subr.bf16.mxu1 %v16734_v36 }
 0x367   :  { %8097 = vmatpush1.bf16.msra.mxu0 %v16729_v11 }
 0x368   :  { %8138 = vmatpush1.bf16.msra.mxu1 %v16732_v37  ;;  %8098 = vmatprep.subr.bf16.mxu0 %v16737_v38 }
 0x369   :  { %8139 = vmatprep.subr.bf16.mxu1 %v16740_v40  ;;  %v16785_v40 = vld [vmem:[#allocation10 + $0xd54] ss:$24 sps:$4 sm:$0xff]  }
 0x36b   :  { %8099 = vmatpush1.bf16.msra.mxu0 %v16735_v62  ;;  %v16788_v62 = vld [vmem:[#allocation10 + $0x1054] ss:$24 sps:$4 sm:$0xff]  }
 0x36c   :  { %8140 = vmatpush1.bf16.msra.mxu1 %v16738_v63  ;;  %8150 = vmatprep.subr.bf16.mxu0 %v16743_v42  ;;  %v16794_v42 = vld [vmem:[#allocation10 + $0x1084] ss:$24 sps:$4 sm:$0xff]  }
 0x36d   :  { %8191 = vmatprep.subr.bf16.mxu1 %v16746_v43  ;;  %v16789_v43 = vld [vmem:[#allocation10 + $0xd80] ss:$24 sps:$4 sm:$0xff]  }
 0x36e   :  { %8101 = vmatmul.mubr.bf16.vlgmr.msra.gmra.mrb[40].mxu0 %v18956_v53 }
 0x36f   :  { %8142 = vmatmul.mubr.bf16.vlgmr.msra.gmra.mrb[40].mxu1 %v18958_v27  ;;  %8151 = vmatpush1.bf16.msra.mxu0 %v16741_v48  ;;  %v16800_v48 = vld [vmem:[#allocation10 + $0x10b4] ss:$24 sps:$4 sm:$0xff]  }
 0x370   :  { %8192 = vmatpush1.bf16.msra.mxu1 %v16744_v50  ;;  %8152 = vmatprep.subr.bf16.mxu0 %v16749_v61  ;;  %v16795_v50 = vld [vmem:[#allocation10 + $0xdb0] ss:$24 sps:$4 sm:$0xff]   ;;  %v16803_v61 = vld [vmem:[#allocation10 + $0xde4] ss:$24 sps:$4 sm:$0xff]  }
 0x371   :  { %8193 = vmatprep.subr.bf16.mxu1 %v16752_v0  ;;  %8182 = vmatprep.mubr.bf16.mxu0 %v18960_v59  ;;  %v16806_v0 = vld [vmem:[#allocation10 + $0x10e4] ss:$24 sps:$4 sm:$0xff]  }
 0x372   :  { %8223 = vmatprep.mubr.bf16.mxu1 %v18962_v1 }
 0x373   :  { %8153 = vmatpush1.bf16.msra.mxu0 %v16747_v2  ;;  %v16801_v2 = vld [vmem:[#allocation10 + $0xde0] ss:$24 sps:$4 sm:$0xff]  }
 0x374   :  { %8194 = vmatpush1.bf16.msra.mxu1 %v16750_v7  ;;  %8154 = vmatprep.subr.bf16.mxu0 %v16755_v3  ;;  %v16804_v7 = vld [vmem:[#allocation10 + $0x10e0] ss:$24 sps:$4 sm:$0xff]   ;;  %v16809_v3 = vld [vmem:[#allocation10 + $0xe14] ss:$24 sps:$4 sm:$0xff]  }
 0x375   :  { %8195 = vmatprep.subr.bf16.mxu1 %v16758_v4  ;;  %v16812_v4 = vld [vmem:[#allocation10 + $0x1114] ss:$24 sps:$4 sm:$0xff]  }
 0x377   :  { %8155 = vmatpush1.bf16.msra.mxu0 %v16753_v34  ;;  %v16807_v34 = vld [vmem:[#allocation10 + $0xe10] ss:$24 sps:$4 sm:$0xff]  }
 0x378   :  { %8196 = vmatpush1.bf16.msra.mxu1 %v16756_v8  ;;  %8156 = vmatprep.subr.bf16.mxu0 %v16761_v9  ;;  %v16810_v8 = vld [vmem:[#allocation10 + $0x1110] ss:$24 sps:$4 sm:$0xff]   ;;  %v16815_v9 = vld [vmem:[#allocation10 + $0xe44] ss:$24 sps:$4 sm:$0xff]  }
 0x379   :  { %8197 = vmatprep.subr.bf16.mxu1 %v16764_v10  ;;  %v16818_v10 = vld [vmem:[#allocation10 + $0x1144] ss:$24 sps:$4 sm:$0xff]  }
 0x37b   :  { %8157 = vmatpush1.bf16.msra.mxu0 %v16759_v14  ;;  %v16813_v14 = vld [vmem:[#allocation10 + $0xe40] ss:$24 sps:$4 sm:$0xff]  }
 0x37c   :  { %8198 = vmatpush1.bf16.msra.mxu1 %v16762_v13  ;;  %8158 = vmatprep.subr.bf16.mxu0 %v16767_v39  ;;  %v16816_v13 = vld [vmem:[#allocation10 + $0x1140] ss:$24 sps:$4 sm:$0xff]   ;;  %v16821_v39 = vld [vmem:[#allocation10 + $0xe74] ss:$24 sps:$4 sm:$0xff]  }
 0x37d   :  { %8199 = vmatprep.subr.bf16.mxu1 %v16770_v17  ;;  %v16824_v17 = vld [vmem:[#allocation10 + $0x1174] ss:$24 sps:$4 sm:$0xff]  }
 0x37f   :  { %8159 = vmatpush1.bf16.msra.mxu0 %v16765_v15  ;;  %v16819_v15 = vld [vmem:[#allocation10 + $0xe70] ss:$24 sps:$4 sm:$0xff]  }
 0x380   :  { %8200 = vmatpush1.bf16.msra.mxu1 %v16768_v18  ;;  %8160 = vmatprep.subr.bf16.mxu0 %v16773_v21  ;;  %v16822_v18 = vld [vmem:[#allocation10 + $0x1170] ss:$24 sps:$4 sm:$0xff]   ;;  %v16827_v21 = vld [vmem:[#allocation10 + $0xea4] ss:$24 sps:$4 sm:$0xff]  }
 0x381   :  { %8201 = vmatprep.subr.bf16.mxu1 %v16776_v22  ;;  %v4976_v31 = vpop.f32.mrb[28].mxu0  ;;  %v16830_v22 = vld [vmem:[#allocation10 + $0x11a4] ss:$24 sps:$4 sm:$0xff]  }
 0x382   :  { %v5017_v32 = vpop.f32.mrb[28].mxu1  ;;  %v4977_v44 = vadd.f32 %v4976_v31, %v18952_v52  ;;  %v4978_v45 = vpop.f32.mrb[29].mxu0  ;;  %v16783_v52 = vld [vmem:[#allocation10 + $0xd50] ss:$24 sps:$4 sm:$0xff]  }
 0x383   :  { %v5019_v54 = vpop.f32.mrb[29].mxu1  ;;  %v4979_v55 = vadd.f32 %v4978_v45, %v18954_v28  ;;  %v4980_v29 = vpop.f32.mrb[30].mxu0  ;;  %8161 = vmatpush1.bf16.msra.mxu0 %v16771_v19  ;;  %v16791_v28 = vld [vmem:[#allocation10 + $0xd84] ss:$24 sps:$4 sm:$0xff]   ;;  %v16825_v19 = vld [vmem:[#allocation10 + $0xea0] ss:$24 sps:$4 sm:$0xff]  }
 0x384   :  { %v5021_v36 = vpop.f32.mrb[30].mxu1  ;;  %8202 = vmatpush1.bf16.msra.mxu1 %v16774_v23  ;;  %v18970_v11 = vadd.f32 %v5017_v32, %v4977_v44  ;;  %v4981_v37 = vpop.f32.mrb[31].mxu0  ;;  %8162 = vmatprep.subr.bf16.mxu0 %v16779_v24  ;;  %v16828_v23 = vld [vmem:[#allocation10 + $0x11a0] ss:$24 sps:$4 sm:$0xff]   ;;  %v16833_v24 = vld [vmem:[#allocation10 + $0xed4] ss:$24 sps:$4 sm:$0xff]  }
 0x385   :  { %v5022_v38 = vpop.f32.mrb[31].mxu1  ;;  %8203 = vmatprep.subr.bf16.mxu1 %v16782_v25  ;;  %v18972_v63 = vadd.f32 %v5019_v54, %v4979_v55  ;;  %v16836_v25 = vld [vmem:[#allocation10 + $0x11d4] ss:$24 sps:$4 sm:$0xff]   ;;  %v16831_v31 = vld [vmem:[#allocation10 + $0xed0] ss:$24 sps:$4 sm:$0xff]  }
 0x386   :  { %v16834_v32 = vld [vmem:[#allocation10 + $0x11d0] ss:$24 sps:$4 sm:$0xff]   ;;  %v16839_v44 = vld [vmem:[#allocation10 + $0xc] ss:$24 sps:$4 sm:$0xff]   ;;  %v16845_v37 = vld [vmem:[#allocation10 + $0x3c] ss:$24 sps:$4 sm:$0xff]  }
 0x387   :  { %8163 = vmatpush1.bf16.msra.mxu0 %v16777_v33  ;;  %v167_v33 = vld [vmem:[#allocation4 + $0x40] sm:$0xff]  ;;  %v16848_v38 = vld [vmem:[#allocation10 + $0x33c] ss:$24 sps:$4 sm:$0xff]  }
 0x388   :  { %8204 = vmatpush1.bf16.msra.mxu1 %v16780_v49  ;;  %8164 = vmatprep.subr.bf16.mxu0 %v16785_v40  ;;  %v169_v49 = vld [vmem:[#allocation4 + $0x50] sm:$0xff]  ;;  %v16842_v45 = vld [vmem:[#allocation10 + $0x30c] ss:$24 sps:$4 sm:$0xff]   ;;  %v16837_v54 = vld [vmem:[#allocation10 + $0x8] ss:$24 sps:$4 sm:$0xff]   ;;  %v18974_v29 = vpack.c.bf16 %v167_v33, %v167_v33 }
 0x389   :  { %8205 = vmatprep.subr.bf16.mxu1 %v16788_v62  ;;  %v16840_v55 = vld [vmem:[#allocation10 + $0x308] ss:$24 sps:$4 sm:$0xff]   ;;  %v18976_v36 = vpack.c.bf16 %v169_v49, %v169_v49  ;;  %v16843_v40 = vld [vmem:[#allocation10 + $0x38] ss:$24 sps:$4 sm:$0xff]   ;;  %v16890_v49 = vld [vmem:[#allocation10 + $0x48c] ss:$24 sps:$4 sm:$0xff]  }
 0x38a   :  { %v16846_v62 = vld [vmem:[#allocation10 + $0x338] ss:$24 sps:$4 sm:$0xff]  }
 0x38b   :  { %8165 = vmatpush1.bf16.msra.mxu0 %v16783_v52  ;;  %v16851_v52 = vld [vmem:[#allocation10 + $0x6c] ss:$24 sps:$4 sm:$0xff]   ;;  %v16882_v33 = vld [vmem:[#allocation10 + $0x458] ss:$24 sps:$4 sm:$0xff]  }
 0x38c   :  { %8206 = vmatpush1.bf16.msra.mxu1 %v16786_v41  ;;  %8166 = vmatprep.subr.bf16.mxu0 %v16791_v28  ;;  %v16854_v41 = vld [vmem:[#allocation10 + $0x36c] ss:$24 sps:$4 sm:$0xff]   ;;  %v16849_v28 = vld [vmem:[#allocation10 + $0x68] ss:$24 sps:$4 sm:$0xff]  }
 0x38d   :  { %8207 = vmatprep.subr.bf16.mxu1 %v16794_v42  ;;  %v16852_v42 = vld [vmem:[#allocation10 + $0x368] ss:$24 sps:$4 sm:$0xff]  }
 0x38f   :  { %8167 = vmatpush1.bf16.msra.mxu0 %v16789_v43  ;;  %v16857_v43 = vld [vmem:[#allocation10 + $0x9c] ss:$24 sps:$4 sm:$0xff]  }
 0x390   :  { %8208 = vmatpush1.bf16.msra.mxu1 %v16792_v46  ;;  %8168 = vmatprep.subr.bf16.mxu0 %v16797_v47  ;;  %v16860_v46 = vld [vmem:[#allocation10 + $0x39c] ss:$24 sps:$4 sm:$0xff]   ;;  %v16855_v47 = vld [vmem:[#allocation10 + $0x98] ss:$24 sps:$4 sm:$0xff]  }
 0x391   :  { %8209 = vmatprep.subr.bf16.mxu1 %v16800_v48  ;;  %v16858_v48 = vld [vmem:[#allocation10 + $0x398] ss:$24 sps:$4 sm:$0xff]  }
 0x393   :  { %8169 = vmatpush1.bf16.msra.mxu0 %v16795_v50  ;;  %v16863_v50 = vld [vmem:[#allocation10 + $0xcc] ss:$24 sps:$4 sm:$0xff]  }
 0x394   :  { %8210 = vmatpush1.bf16.msra.mxu1 %v16798_v51  ;;  %8170 = vmatprep.subr.bf16.mxu0 %v16803_v61  ;;  %v16866_v51 = vld [vmem:[#allocation10 + $0x3cc] ss:$24 sps:$4 sm:$0xff]   ;;  %v16861_v61 = vld [vmem:[#allocation10 + $0xc8] ss:$24 sps:$4 sm:$0xff]  }
 0x395   :  { %8211 = vmatprep.subr.bf16.mxu1 %v16806_v0  ;;  %v16864_v0 = vld [vmem:[#allocation10 + $0x3c8] ss:$24 sps:$4 sm:$0xff]  }
 0x397   :  { %8171 = vmatpush1.bf16.msra.mxu0 %v16801_v2  ;;  %v16869_v2 = vld [vmem:[#allocation10 + $0xfc] ss:$24 sps:$4 sm:$0xff]  }
 0x398   :  { %8212 = vmatpush1.bf16.msra.mxu1 %v16804_v7  ;;  %8172 = vmatprep.subr.bf16.mxu0 %v16809_v3  ;;  %v16872_v7 = vld [vmem:[#allocation10 + $0x3fc] ss:$24 sps:$4 sm:$0xff]   ;;  %v16867_v3 = vld [vmem:[#allocation10 + $0xf8] ss:$24 sps:$4 sm:$0xff]  }
 0x399   :  { %8213 = vmatprep.subr.bf16.mxu1 %v16812_v4  ;;  %v16870_v4 = vld [vmem:[#allocation10 + $0x3f8] ss:$24 sps:$4 sm:$0xff]  }
 0x39b   :  { %8173 = vmatpush1.bf16.msra.mxu0 %v16807_v34  ;;  %v16875_v34 = vld [vmem:[#allocation10 + $0x12c] ss:$24 sps:$4 sm:$0xff]  }
 0x39c   :  { %8214 = vmatpush1.bf16.msra.mxu1 %v16810_v8  ;;  %8174 = vmatprep.subr.bf16.mxu0 %v16815_v9  ;;  %v16878_v8 = vld [vmem:[#allocation10 + $0x42c] ss:$24 sps:$4 sm:$0xff]  }
 0x39d   :  { %8215 = vmatprep.subr.bf16.mxu1 %v16818_v10 }
 0x39f   :  { %8175 = vmatpush1.bf16.msra.mxu0 %v16813_v14  ;;  %v16873_v14 = vld [vmem:[#allocation10 + $0x128] ss:$24 sps:$4 sm:$0xff]  }
 0x3a0   :  { %8216 = vmatpush1.bf16.msra.mxu1 %v16816_v13  ;;  %8176 = vmatprep.subr.bf16.mxu0 %v16821_v39  ;;  %v16876_v13 = vld [vmem:[#allocation10 + $0x428] ss:$24 sps:$4 sm:$0xff]  }
 0x3a1   :  { %8217 = vmatprep.subr.bf16.mxu1 %v16824_v17 }
 0x3a3   :  { %8177 = vmatpush1.bf16.msra.mxu0 %v16819_v15 }
 0x3a4   :  { %8218 = vmatpush1.bf16.msra.mxu1 %v16822_v18  ;;  %8178 = vmatprep.subr.bf16.mxu0 %v16827_v21 }
 0x3a5   :  { %8219 = vmatprep.subr.bf16.mxu1 %v16830_v22 }
 0x3a7   :  { %8179 = vmatpush1.bf16.msra.mxu0 %v16825_v19 }
 0x3a8   :  { %8220 = vmatpush1.bf16.msra.mxu1 %v16828_v23  ;;  %8180 = vmatprep.subr.bf16.mxu0 %v16833_v24 }
 0x3a9   :  { %8221 = vmatprep.subr.bf16.mxu1 %v16836_v25  ;;  %v16881_v25 = vld [vmem:[#allocation10 + $0x15c] ss:$24 sps:$4 sm:$0xff]  }
 0x3ab   :  { %8181 = vmatpush1.bf16.msra.mxu0 %v16831_v31  ;;  %v16884_v31 = vld [vmem:[#allocation10 + $0x45c] ss:$24 sps:$4 sm:$0xff]  }
 0x3ac   :  { %8222 = vmatpush1.bf16.msra.mxu1 %v16834_v32  ;;  %8232 = vmatprep.subr.bf16.mxu0 %v16839_v44  ;;  %v16885_v44 = vld [vmem:[#allocation10 + $0x188] ss:$24 sps:$4 sm:$0xff]  }
 0x3ad   :  { %8273 = vmatprep.subr.bf16.mxu1 %v16842_v45  ;;  %v16888_v45 = vld [vmem:[#allocation10 + $0x488] ss:$24 sps:$4 sm:$0xff]  }
 0x3ae   :  { %8183 = vmatmul.mubr.bf16.vlgmr.msra.gmra.mrb[44].mxu0 %v18974_v29 }
 0x3af   :  { %8224 = vmatmul.mubr.bf16.vlgmr.msra.gmra.mrb[44].mxu1 %v18976_v36  ;;  %8233 = vmatpush1.bf16.msra.mxu0 %v16837_v54  ;;  %v16893_v54 = vld [vmem:[#allocation10 + $0x1bc] ss:$24 sps:$4 sm:$0xff]  }
 0x3b0   :  { %8274 = vmatpush1.bf16.msra.mxu1 %v16840_v55  ;;  %8234 = vmatprep.subr.bf16.mxu0 %v16845_v37  ;;  %v16896_v55 = vld [vmem:[#allocation10 + $0x4bc] ss:$24 sps:$4 sm:$0xff]   ;;  %v16891_v37 = vld [vmem:[#allocation10 + $0x1b8] ss:$24 sps:$4 sm:$0xff]  }
 0x3b1   :  { %8275 = vmatprep.subr.bf16.mxu1 %v16848_v38  ;;  %8264 = vmatprep.mubr.bf16.mxu0 %v18921_v56  ;;  %v16894_v38 = vld [vmem:[#allocation10 + $0x4b8] ss:$24 sps:$4 sm:$0xff]  }
 0x3b2   :  { %8305 = vmatprep.mubr.bf16.mxu1 %v18925_v58 }
 0x3b3   :  { %8235 = vmatpush1.bf16.msra.mxu0 %v16843_v40  ;;  %v16899_v40 = vld [vmem:[#allocation10 + $0x1ec] ss:$24 sps:$4 sm:$0xff]  }
 0x3b4   :  { %8276 = vmatpush1.bf16.msra.mxu1 %v16846_v62  ;;  %8236 = vmatprep.subr.bf16.mxu0 %v16851_v52  ;;  %v16902_v62 = vld [vmem:[#allocation10 + $0x4ec] ss:$24 sps:$4 sm:$0xff]   ;;  %v16897_v52 = vld [vmem:[#allocation10 + $0x1e8] ss:$24 sps:$4 sm:$0xff]  }
 0x3b5   :  { %8277 = vmatprep.subr.bf16.mxu1 %v16854_v41  ;;  %v16900_v41 = vld [vmem:[#allocation10 + $0x4e8] ss:$24 sps:$4 sm:$0xff]  }
 0x3b7   :  { %8237 = vmatpush1.bf16.msra.mxu0 %v16849_v28  ;;  %v16905_v28 = vld [vmem:[#allocation10 + $0x21c] ss:$24 sps:$4 sm:$0xff]  }
 0x3b8   :  { %8278 = vmatpush1.bf16.msra.mxu1 %v16852_v42  ;;  %8238 = vmatprep.subr.bf16.mxu0 %v16857_v43  ;;  %v16908_v42 = vld [vmem:[#allocation10 + $0x51c] ss:$24 sps:$4 sm:$0xff]   ;;  %v16903_v43 = vld [vmem:[#allocation10 + $0x218] ss:$24 sps:$4 sm:$0xff]  }
 0x3b9   :  { %8279 = vmatprep.subr.bf16.mxu1 %v16860_v46  ;;  %v16906_v46 = vld [vmem:[#allocation10 + $0x518] ss:$24 sps:$4 sm:$0xff]  }
 0x3bb   :  { %8239 = vmatpush1.bf16.msra.mxu0 %v16855_v47  ;;  %v16911_v47 = vld [vmem:[#allocation10 + $0x24c] ss:$24 sps:$4 sm:$0xff]  }
 0x3bc   :  { %8280 = vmatpush1.bf16.msra.mxu1 %v16858_v48  ;;  %8240 = vmatprep.subr.bf16.mxu0 %v16863_v50  ;;  %v16914_v48 = vld [vmem:[#allocation10 + $0x54c] ss:$24 sps:$4 sm:$0xff]   ;;  %v16909_v50 = vld [vmem:[#allocation10 + $0x248] ss:$24 sps:$4 sm:$0xff]  }
 0x3bd   :  { %8281 = vmatprep.subr.bf16.mxu1 %v16866_v51  ;;  %v16912_v51 = vld [vmem:[#allocation10 + $0x548] ss:$24 sps:$4 sm:$0xff]  }
 0x3bf   :  { %8241 = vmatpush1.bf16.msra.mxu0 %v16861_v61  ;;  %v16917_v61 = vld [vmem:[#allocation10 + $0x27c] ss:$24 sps:$4 sm:$0xff]  }
 0x3c0   :  { %8282 = vmatpush1.bf16.msra.mxu1 %v16864_v0  ;;  %8242 = vmatprep.subr.bf16.mxu0 %v16869_v2  ;;  %v16920_v0 = vld [vmem:[#allocation10 + $0x57c] ss:$24 sps:$4 sm:$0xff]   ;;  %v16915_v2 = vld [vmem:[#allocation10 + $0x278] ss:$24 sps:$4 sm:$0xff]  }
 0x3c1   :  { %8283 = vmatprep.subr.bf16.mxu1 %v16872_v7  ;;  %v5058_v9 = vpop.f32.mrb[32].mxu0  ;;  %v16918_v7 = vld [vmem:[#allocation10 + $0x578] ss:$24 sps:$4 sm:$0xff]  }
 0x3c2   :  { %v5099_v10 = vpop.f32.mrb[32].mxu1  ;;  %v5059_v39 = vadd.f32 %v5058_v9, %v18970_v11  ;;  %v5060_v17 = vpop.f32.mrb[33].mxu0  ;;  %v16879_v11 = vld [vmem:[#allocation10 + $0x158] ss:$24 sps:$4 sm:$0xff]   ;;  %v16929_v9 = vld [vmem:[#allocation10 + $0x2dc] ss:$24 sps:$4 sm:$0xff]  }
 0x3c3   :  { %v5101_v15 = vpop.f32.mrb[33].mxu1  ;;  %v5061_v18 = vadd.f32 %v5060_v17, %v18972_v63  ;;  %v5062_v21 = vpop.f32.mrb[34].mxu0  ;;  %8243 = vmatpush1.bf16.msra.mxu0 %v16867_v3  ;;  %v16887_v63 = vld [vmem:[#allocation10 + $0x18c] ss:$24 sps:$4 sm:$0xff]  }
 0x3c4   :  { %v5103_v22 = vpop.f32.mrb[34].mxu1  ;;  %8284 = vmatpush1.bf16.msra.mxu1 %v16870_v4  ;;  %v18984_v19 = vadd.f32 %v5099_v10, %v5059_v39  ;;  %v5063_v23 = vpop.f32.mrb[35].mxu0  ;;  %8244 = vmatprep.subr.bf16.mxu0 %v16875_v34  ;;  %v16923_v3 = vld [vmem:[#allocation10 + $0x2ac] ss:$24 sps:$4 sm:$0xff]   ;;  %v16921_v34 = vld [vmem:[#allocation10 + $0x2a8] ss:$24 sps:$4 sm:$0xff]  }
 0x3c5   :  { %v5104_v24 = vpop.f32.mrb[35].mxu1  ;;  %8285 = vmatprep.subr.bf16.mxu1 %v16878_v8  ;;  %v18986_v32 = vadd.f32 %v5101_v15, %v5061_v18  ;;  %v16926_v4 = vld [vmem:[#allocation10 + $0x5ac] ss:$24 sps:$4 sm:$0xff]   ;;  %v16924_v8 = vld [vmem:[#allocation10 + $0x5a8] ss:$24 sps:$4 sm:$0xff]  }
 0x3c6   :  { %v16932_v10 = vld [vmem:[#allocation10 + $0x5dc] ss:$24 sps:$4 sm:$0xff]   ;;  %v16935_v39 = vld [vmem:[#allocation10 + $0x60c] ss:$24 sps:$4 sm:$0xff]   ;;  %v16933_v15 = vld [vmem:[#allocation10 + $0x608] ss:$24 sps:$4 sm:$0xff]  }
 0x3c7   :  { %8245 = vmatpush1.bf16.msra.mxu0 %v16873_v14  ;;  %v16927_v14 = vld [vmem:[#allocation10 + $0x2d8] ss:$24 sps:$4 sm:$0xff]   ;;  %v16938_v17 = vld [vmem:[#allocation10 + $0x90c] ss:$24 sps:$4 sm:$0xff]   ;;  %v16936_v18 = vld [vmem:[#allocation10 + $0x908] ss:$24 sps:$4 sm:$0xff]  }
 0x3c8   :  { %8286 = vmatpush1.bf16.msra.mxu1 %v16876_v13  ;;  %8246 = vmatprep.subr.bf16.mxu0 %v16881_v25  ;;  %v16930_v13 = vld [vmem:[#allocation10 + $0x5d8] ss:$24 sps:$4 sm:$0xff]   ;;  %v16941_v21 = vld [vmem:[#allocation10 + $0x63c] ss:$24 sps:$4 sm:$0xff]   ;;  %v16947_v25 = vld [vmem:[#allocation10 + $0x66c] ss:$24 sps:$4 sm:$0xff]  }
 0x3c9   :  { %8287 = vmatprep.subr.bf16.mxu1 %v16884_v31  ;;  %v16944_v22 = vld [vmem:[#allocation10 + $0x93c] ss:$24 sps:$4 sm:$0xff]   ;;  %v16939_v23 = vld [vmem:[#allocation10 + $0x638] ss:$24 sps:$4 sm:$0xff]   ;;  %v16950_v31 = vld [vmem:[#allocation10 + $0x96c] ss:$24 sps:$4 sm:$0xff]  }
 0x3ca   :  { %v16942_v24 = vld [vmem:[#allocation10 + $0x938] ss:$24 sps:$4 sm:$0xff]  }
 0x3cb   :  { %8247 = vmatpush1.bf16.msra.mxu0 %v16879_v11  ;;  %v16945_v11 = vld [vmem:[#allocation10 + $0x668] ss:$24 sps:$4 sm:$0xff]  }
 0x3cc   :  { %8288 = vmatpush1.bf16.msra.mxu1 %v16882_v33  ;;  %8248 = vmatprep.subr.bf16.mxu0 %v16887_v63  ;;  %v16948_v33 = vld [vmem:[#allocation10 + $0x968] ss:$24 sps:$4 sm:$0xff]   ;;  %v16953_v63 = vld [vmem:[#allocation10 + $0x69c] ss:$24 sps:$4 sm:$0xff]  }
 0x3cd   :  { %8289 = vmatprep.subr.bf16.mxu1 %v16890_v49  ;;  %v16956_v49 = vld [vmem:[#allocation10 + $0x99c] ss:$24 sps:$4 sm:$0xff]  }
 0x3cf   :  { %8249 = vmatpush1.bf16.msra.mxu0 %v16885_v44  ;;  %v16951_v44 = vld [vmem:[#allocation10 + $0x698] ss:$24 sps:$4 sm:$0xff]  }
 0x3d0   :  { %8290 = vmatpush1.bf16.msra.mxu1 %v16888_v45  ;;  %8250 = vmatprep.subr.bf16.mxu0 %v16893_v54  ;;  %v16954_v45 = vld [vmem:[#allocation10 + $0x998] ss:$24 sps:$4 sm:$0xff]   ;;  %v16959_v54 = vld [vmem:[#allocation10 + $0x6cc] ss:$24 sps:$4 sm:$0xff]  }
 0x3d1   :  { %8291 = vmatprep.subr.bf16.mxu1 %v16896_v55  ;;  %v16962_v55 = vld [vmem:[#allocation10 + $0x9cc] ss:$24 sps:$4 sm:$0xff]  }
 0x3d3   :  { %8251 = vmatpush1.bf16.msra.mxu0 %v16891_v37  ;;  %v16957_v37 = vld [vmem:[#allocation10 + $0x6c8] ss:$24 sps:$4 sm:$0xff]  }
 0x3d4   :  { %8292 = vmatpush1.bf16.msra.mxu1 %v16894_v38  ;;  %8252 = vmatprep.subr.bf16.mxu0 %v16899_v40  ;;  %v16960_v38 = vld [vmem:[#allocation10 + $0x9c8] ss:$24 sps:$4 sm:$0xff]   ;;  %v16965_v40 = vld [vmem:[#allocation10 + $0x6fc] ss:$24 sps:$4 sm:$0xff]  }
 0x3d5   :  { %8293 = vmatprep.subr.bf16.mxu1 %v16902_v62  ;;  %v16968_v62 = vld [vmem:[#allocation10 + $0x9fc] ss:$24 sps:$4 sm:$0xff]  }
 0x3d7   :  { %8253 = vmatpush1.bf16.msra.mxu0 %v16897_v52  ;;  %v16963_v52 = vld [vmem:[#allocation10 + $0x6f8] ss:$24 sps:$4 sm:$0xff]  }
 0x3d8   :  { %8294 = vmatpush1.bf16.msra.mxu1 %v16900_v41  ;;  %8254 = vmatprep.subr.bf16.mxu0 %v16905_v28  ;;  %v16966_v41 = vld [vmem:[#allocation10 + $0x9f8] ss:$24 sps:$4 sm:$0xff]   ;;  %v16971_v28 = vld [vmem:[#allocation10 + $0x72c] ss:$24 sps:$4 sm:$0xff]  }
 0x3d9   :  { %8295 = vmatprep.subr.bf16.mxu1 %v16908_v42  ;;  %v16974_v42 = vld [vmem:[#allocation10 + $0xa2c] ss:$24 sps:$4 sm:$0xff]  }
 0x3db   :  { %8255 = vmatpush1.bf16.msra.mxu0 %v16903_v43 }
 0x3dc   :  { %8296 = vmatpush1.bf16.msra.mxu1 %v16906_v46  ;;  %8256 = vmatprep.subr.bf16.mxu0 %v16911_v47  ;;  %v16969_v47 = vld [vmem:[#allocation10 + $0x728] ss:$24 sps:$4 sm:$0xff]  }
 0x3dd   :  { %8297 = vmatprep.subr.bf16.mxu1 %v16914_v48  ;;  %v16972_v48 = vld [vmem:[#allocation10 + $0xa28] ss:$24 sps:$4 sm:$0xff]  }
 0x3df   :  { %8257 = vmatpush1.bf16.msra.mxu0 %v16909_v50 }
 0x3e0   :  { %8298 = vmatpush1.bf16.msra.mxu1 %v16912_v51  ;;  %8258 = vmatprep.subr.bf16.mxu0 %v16917_v61 }
 0x3e1   :  { %8299 = vmatprep.subr.bf16.mxu1 %v16920_v0 }
 0x3e3   :  { %8259 = vmatpush1.bf16.msra.mxu0 %v16915_v2 }
 0x3e4   :  { %8300 = vmatpush1.bf16.msra.mxu1 %v16918_v7  ;;  %8260 = vmatprep.subr.bf16.mxu0 %v16923_v3 }
 0x3e5   :  { %8301 = vmatprep.subr.bf16.mxu1 %v16926_v4 }
 0x3e7   :  { %8261 = vmatpush1.bf16.msra.mxu0 %v16921_v34 }
 0x3e8   :  { %8302 = vmatpush1.bf16.msra.mxu1 %v16924_v8  ;;  %8262 = vmatprep.subr.bf16.mxu0 %v16929_v9  ;;  %v16977_v8 = vld [vmem:[#allocation10 + $0x75c] ss:$24 sps:$4 sm:$0xff]  }
 0x3e9   :  { %8303 = vmatprep.subr.bf16.mxu1 %v16932_v10  ;;  %v16980_v9 = vld [vmem:[#allocation10 + $0xa5c] ss:$24 sps:$4 sm:$0xff]  }
 0x3eb   :  { %8263 = vmatpush1.bf16.msra.mxu0 %v16927_v14  ;;  %v16978_v14 = vld [vmem:[#allocation10 + $0xa58] ss:$24 sps:$4 sm:$0xff]  }
 0x3ec   :  { %8304 = vmatpush1.bf16.msra.mxu1 %v16930_v13  ;;  %8314 = vmatprep.subr.bf16.mxu0 %v16935_v39  ;;  %v16986_v13 = vld [vmem:[#allocation10 + $0xa8c] ss:$24 sps:$4 sm:$0xff]   ;;  %v16981_v39 = vld [vmem:[#allocation10 + $0x788] ss:$24 sps:$4 sm:$0xff]  }
 0x3ed   :  { %8355 = vmatprep.subr.bf16.mxu1 %v16938_v17  ;;  %v16984_v17 = vld [vmem:[#allocation10 + $0xa88] ss:$24 sps:$4 sm:$0xff]  }
 0x3ee   :  { %8265 = vmatmul.mubr.bf16.vlgmr.msra.gmra.mrb[48].mxu0 %v18940_v16 }
 0x3ef   :  { %8306 = vmatmul.mubr.bf16.vlgmr.msra.gmra.mrb[48].mxu1 %v18942_v20  ;;  %8315 = vmatpush1.bf16.msra.mxu0 %v16933_v15  ;;  %v16989_v15 = vld [vmem:[#allocation10 + $0x7bc] ss:$24 sps:$4 sm:$0xff]  }
 0x3f0   :  { %8356 = vmatpush1.bf16.msra.mxu1 %v16936_v18  ;;  %8316 = vmatprep.subr.bf16.mxu0 %v16941_v21  ;;  %v16992_v18 = vld [vmem:[#allocation10 + $0xabc] ss:$24 sps:$4 sm:$0xff]   ;;  %v16987_v21 = vld [vmem:[#allocation10 + $0x7b8] ss:$24 sps:$4 sm:$0xff]  }
 0x3f1   :  { %8357 = vmatprep.subr.bf16.mxu1 %v16944_v22  ;;  %8346 = vmatprep.mubr.bf16.mxu0 %v18944_v26  ;;  %v16990_v22 = vld [vmem:[#allocation10 + $0xab8] ss:$24 sps:$4 sm:$0xff]  }
 0x3f2   :  { %8387 = vmatprep.mubr.bf16.mxu1 %v18946_v30 }
 0x3f3   :  { %8317 = vmatpush1.bf16.msra.mxu0 %v16939_v23  ;;  %v16995_v23 = vld [vmem:[#allocation10 + $0x7ec] ss:$24 sps:$4 sm:$0xff]  }
 0x3f4   :  { %8358 = vmatpush1.bf16.msra.mxu1 %v16942_v24  ;;  %8318 = vmatprep.subr.bf16.mxu0 %v16947_v25  ;;  %v16998_v24 = vld [vmem:[#allocation10 + $0xaec] ss:$24 sps:$4 sm:$0xff]   ;;  %v16993_v25 = vld [vmem:[#allocation10 + $0x7e8] ss:$24 sps:$4 sm:$0xff]  }
 0x3f5   :  { %8359 = vmatprep.subr.bf16.mxu1 %v16950_v31  ;;  %v16996_v31 = vld [vmem:[#allocation10 + $0xae8] ss:$24 sps:$4 sm:$0xff]  }
 0x3f7   :  { %8319 = vmatpush1.bf16.msra.mxu0 %v16945_v11  ;;  %v17001_v11 = vld [vmem:[#allocation10 + $0x81c] ss:$24 sps:$4 sm:$0xff]  }
 0x3f8   :  { %8360 = vmatpush1.bf16.msra.mxu1 %v16948_v33  ;;  %8320 = vmatprep.subr.bf16.mxu0 %v16953_v63  ;;  %v17004_v33 = vld [vmem:[#allocation10 + $0xb1c] ss:$24 sps:$4 sm:$0xff]   ;;  %v16999_v63 = vld [vmem:[#allocation10 + $0x818] ss:$24 sps:$4 sm:$0xff]  }
 0x3f9   :  { %8361 = vmatprep.subr.bf16.mxu1 %v16956_v49  ;;  %v17002_v49 = vld [vmem:[#allocation10 + $0xb18] ss:$24 sps:$4 sm:$0xff]  }
 0x3fb   :  { %8321 = vmatpush1.bf16.msra.mxu0 %v16951_v44  ;;  %v17007_v44 = vld [vmem:[#allocation10 + $0x84c] ss:$24 sps:$4 sm:$0xff]  }
 0x3fc   :  { %8362 = vmatpush1.bf16.msra.mxu1 %v16954_v45  ;;  %8322 = vmatprep.subr.bf16.mxu0 %v16959_v54  ;;  %v17010_v45 = vld [vmem:[#allocation10 + $0xb4c] ss:$24 sps:$4 sm:$0xff]   ;;  %v17005_v54 = vld [vmem:[#allocation10 + $0x848] ss:$24 sps:$4 sm:$0xff]  }
 0x3fd   :  { %8363 = vmatprep.subr.bf16.mxu1 %v16962_v55  ;;  %v17008_v55 = vld [vmem:[#allocation10 + $0xb48] ss:$24 sps:$4 sm:$0xff]  }
 0x3ff   :  { %8323 = vmatpush1.bf16.msra.mxu0 %v16957_v37  ;;  %v17013_v37 = vld [vmem:[#allocation10 + $0x87c] ss:$24 sps:$4 sm:$0xff]  }
 0x400   :  { %8364 = vmatpush1.bf16.msra.mxu1 %v16960_v38  ;;  %8324 = vmatprep.subr.bf16.mxu0 %v16965_v40  ;;  %v17016_v38 = vld [vmem:[#allocation10 + $0xb7c] ss:$24 sps:$4 sm:$0xff]   ;;  %v17011_v40 = vld [vmem:[#allocation10 + $0x878] ss:$24 sps:$4 sm:$0xff]  }
 0x401   :  { %8365 = vmatprep.subr.bf16.mxu1 %v16968_v62  ;;  %v8020_v43 = vpop.f32.mrb[36].mxu0  ;;  %v17014_v62 = vld [vmem:[#allocation10 + $0xb78] ss:$24 sps:$4 sm:$0xff]  }
 0x402   :  { %v8061_v46 = vpop.f32.mrb[36].mxu1  ;;  %v8021_v50 = vadd.f32 %v8020_v43, %v18889_v57  ;;  %v8022_v51 = vpop.f32.mrb[37].mxu0  ;;  %v16975_v57 = vld [vmem:[#allocation10 + $0x758] ss:$24 sps:$4 sm:$0xff]   ;;  %v17025_v43 = vld [vmem:[#allocation10 + $0x8dc] ss:$24 sps:$4 sm:$0xff]  }
 0x403   :  { %v8063_v61 = vpop.f32.mrb[37].mxu1  ;;  %v8023_v0 = vadd.f32 %v8022_v51, %v18891_v5  ;;  %v8024_v2 = vpop.f32.mrb[38].mxu0  ;;  %8325 = vmatpush1.bf16.msra.mxu0 %v16963_v52  ;;  %v16983_v5 = vld [vmem:[#allocation10 + $0x78c] ss:$24 sps:$4 sm:$0xff]  }
 0x404   :  { %v8065_v7 = vpop.f32.mrb[38].mxu1  ;;  %8366 = vmatpush1.bf16.msra.mxu1 %v16966_v41  ;;  %v18994_v3 = vadd.f32 %v8061_v46, %v8021_v50  ;;  %v8025_v4 = vpop.f32.mrb[39].mxu0  ;;  %8326 = vmatprep.subr.bf16.mxu0 %v16971_v28  ;;  %v17019_v52 = vld [vmem:[#allocation10 + $0x8ac] ss:$24 sps:$4 sm:$0xff]   ;;  %v17017_v28 = vld [vmem:[#allocation10 + $0x8a8] ss:$24 sps:$4 sm:$0xff]  }
 0x405   :  { %v8066_v34 = vpop.f32.mrb[39].mxu1  ;;  %8367 = vmatprep.subr.bf16.mxu1 %v16974_v42  ;;  %v18996_v10 = vadd.f32 %v8063_v61, %v8023_v0  ;;  %v17022_v41 = vld [vmem:[#allocation10 + $0xbac] ss:$24 sps:$4 sm:$0xff]   ;;  %v17020_v42 = vld [vmem:[#allocation10 + $0xba8] ss:$24 sps:$4 sm:$0xff]  }
 0x406   :  { %v17028_v46 = vld [vmem:[#allocation10 + $0xbdc] ss:$24 sps:$4 sm:$0xff]   ;;  %v17031_v50 = vld [vmem:[#allocation10 + $0xc0c] ss:$24 sps:$4 sm:$0xff]   ;;  %v17029_v61 = vld [vmem:[#allocation10 + $0xc08] ss:$24 sps:$4 sm:$0xff]  }
 0x407   :  { %8327 = vmatpush1.bf16.msra.mxu0 %v16969_v47  ;;  %v17023_v47 = vld [vmem:[#allocation10 + $0x8d8] ss:$24 sps:$4 sm:$0xff]   ;;  %v17034_v51 = vld [vmem:[#allocation10 + $0xf0c] ss:$24 sps:$4 sm:$0xff]   ;;  %v17032_v0 = vld [vmem:[#allocation10 + $0xf08] ss:$24 sps:$4 sm:$0xff]  }
 0x408   :  { %8368 = vmatpush1.bf16.msra.mxu1 %v16972_v48  ;;  %8328 = vmatprep.subr.bf16.mxu0 %v16977_v8  ;;  %v17026_v48 = vld [vmem:[#allocation10 + $0xbd8] ss:$24 sps:$4 sm:$0xff]   ;;  %v17037_v2 = vld [vmem:[#allocation10 + $0xc3c] ss:$24 sps:$4 sm:$0xff]   ;;  %v17043_v8 = vld [vmem:[#allocation10 + $0xc6c] ss:$24 sps:$4 sm:$0xff]  }
 0x409   :  { %8369 = vmatprep.subr.bf16.mxu1 %v16980_v9  ;;  %v17040_v7 = vld [vmem:[#allocation10 + $0xf3c] ss:$24 sps:$4 sm:$0xff]   ;;  %v17035_v4 = vld [vmem:[#allocation10 + $0xc38] ss:$24 sps:$4 sm:$0xff]   ;;  %v17046_v9 = vld [vmem:[#allocation10 + $0xf6c] ss:$24 sps:$4 sm:$0xff]  }
 0x40a   :  { %v17038_v34 = vld [vmem:[#allocation10 + $0xf38] ss:$24 sps:$4 sm:$0xff]  }
 0x40b   :  { %8329 = vmatpush1.bf16.msra.mxu0 %v16975_v57  ;;  %v17041_v57 = vld [vmem:[#allocation10 + $0xc68] ss:$24 sps:$4 sm:$0xff]  }
 0x40c   :  { %8370 = vmatpush1.bf16.msra.mxu1 %v16978_v14  ;;  %8330 = vmatprep.subr.bf16.mxu0 %v16983_v5  ;;  %v17044_v14 = vld [vmem:[#allocation10 + $0xf68] ss:$24 sps:$4 sm:$0xff]   ;;  %v17049_v5 = vld [vmem:[#allocation10 + $0xc9c] ss:$24 sps:$4 sm:$0xff]  }
 0x40d   :  { %8371 = vmatprep.subr.bf16.mxu1 %v16986_v13  ;;  %v17052_v13 = vld [vmem:[#allocation10 + $0xf9c] ss:$24 sps:$4 sm:$0xff]  }
 0x40f   :  { %8331 = vmatpush1.bf16.msra.mxu0 %v16981_v39  ;;  %v17047_v39 = vld [vmem:[#allocation10 + $0xc98] ss:$24 sps:$4 sm:$0xff]  }
 0x410   :  { %8372 = vmatpush1.bf16.msra.mxu1 %v16984_v17  ;;  %8332 = vmatprep.subr.bf16.mxu0 %v16989_v15  ;;  %v17050_v17 = vld [vmem:[#allocation10 + $0xf98] ss:$24 sps:$4 sm:$0xff]   ;;  %v17055_v15 = vld [vmem:[#allocation10 + $0xccc] ss:$24 sps:$4 sm:$0xff]  }
 0x411   :  { %8373 = vmatprep.subr.bf16.mxu1 %v16992_v18  ;;  %v17058_v18 = vld [vmem:[#allocation10 + $0xfcc] ss:$24 sps:$4 sm:$0xff]  }
 0x413   :  { %8333 = vmatpush1.bf16.msra.mxu0 %v16987_v21  ;;  %v17053_v21 = vld [vmem:[#allocation10 + $0xcc8] ss:$24 sps:$4 sm:$0xff]  }
 0x414   :  { %8374 = vmatpush1.bf16.msra.mxu1 %v16990_v22  ;;  %8334 = vmatprep.subr.bf16.mxu0 %v16995_v23  ;;  %v17056_v22 = vld [vmem:[#allocation10 + $0xfc8] ss:$24 sps:$4 sm:$0xff]   ;;  %v17061_v23 = vld [vmem:[#allocation10 + $0xcfc] ss:$24 sps:$4 sm:$0xff]  }
 0x415   :  { %8375 = vmatprep.subr.bf16.mxu1 %v16998_v24  ;;  %v17064_v24 = vld [vmem:[#allocation10 + $0xffc] ss:$24 sps:$4 sm:$0xff]  }
 0x417   :  { %8335 = vmatpush1.bf16.msra.mxu0 %v16993_v25  ;;  %v17059_v25 = vld [vmem:[#allocation10 + $0xcf8] ss:$24 sps:$4 sm:$0xff]  }
 0x418   :  { %8376 = vmatpush1.bf16.msra.mxu1 %v16996_v31  ;;  %8336 = vmatprep.subr.bf16.mxu0 %v17001_v11  ;;  %v17062_v31 = vld [vmem:[#allocation10 + $0xff8] ss:$24 sps:$4 sm:$0xff]   ;;  %v17067_v11 = vld [vmem:[#allocation10 + $0xd2c] ss:$24 sps:$4 sm:$0xff]  }
 0x419   :  { %8377 = vmatprep.subr.bf16.mxu1 %v17004_v33  ;;  %v17070_v33 = vld [vmem:[#allocation10 + $0x102c] ss:$24 sps:$4 sm:$0xff]  }
 0x41b   :  { %8337 = vmatpush1.bf16.msra.mxu0 %v16999_v63 }
 0x41c   :  { %8378 = vmatpush1.bf16.msra.mxu1 %v17002_v49  ;;  %8338 = vmatprep.subr.bf16.mxu0 %v17007_v44  ;;  %v17065_v44 = vld [vmem:[#allocation10 + $0xd28] ss:$24 sps:$4 sm:$0xff]  }
 0x41d   :  { %8379 = vmatprep.subr.bf16.mxu1 %v17010_v45  ;;  %v17068_v45 = vld [vmem:[#allocation10 + $0x1028] ss:$24 sps:$4 sm:$0xff]  }
 0x41f   :  { %8339 = vmatpush1.bf16.msra.mxu0 %v17005_v54 }
 0x420   :  { %8380 = vmatpush1.bf16.msra.mxu1 %v17008_v55  ;;  %8340 = vmatprep.subr.bf16.mxu0 %v17013_v37 }
 0x421   :  { %8381 = vmatprep.subr.bf16.mxu1 %v17016_v38 }
 0x423   :  { %8341 = vmatpush1.bf16.msra.mxu0 %v17011_v40 }
 0x424   :  { %8382 = vmatpush1.bf16.msra.mxu1 %v17014_v62  ;;  %8342 = vmatprep.subr.bf16.mxu0 %v17019_v52 }
 0x425   :  { %8383 = vmatprep.subr.bf16.mxu1 %v17022_v41 }
 0x427   :  { %8343 = vmatpush1.bf16.msra.mxu0 %v17017_v28 }
 0x428   :  { %8384 = vmatpush1.bf16.msra.mxu1 %v17020_v42  ;;  %8344 = vmatprep.subr.bf16.mxu0 %v17025_v43  ;;  %v17073_v42 = vld [vmem:[#allocation10 + $0xd5c] ss:$24 sps:$4 sm:$0xff]  }
 0x429   :  { %8385 = vmatprep.subr.bf16.mxu1 %v17028_v46  ;;  %v17076_v43 = vld [vmem:[#allocation10 + $0x105c] ss:$24 sps:$4 sm:$0xff]  }
 0x42b   :  { %8345 = vmatpush1.bf16.msra.mxu0 %v17023_v47  ;;  %v17074_v47 = vld [vmem:[#allocation10 + $0x1058] ss:$24 sps:$4 sm:$0xff]  }
 0x42c   :  { %8386 = vmatpush1.bf16.msra.mxu1 %v17026_v48  ;;  %8396 = vmatprep.subr.bf16.mxu0 %v17031_v50  ;;  %v17082_v48 = vld [vmem:[#allocation10 + $0x108c] ss:$24 sps:$4 sm:$0xff]   ;;  %v17077_v50 = vld [vmem:[#allocation10 + $0xd88] ss:$24 sps:$4 sm:$0xff]  }
 0x42d   :  { %8437 = vmatprep.subr.bf16.mxu1 %v17034_v51  ;;  %v17080_v51 = vld [vmem:[#allocation10 + $0x1088] ss:$24 sps:$4 sm:$0xff]  }
 0x42e   :  { %8347 = vmatmul.mubr.bf16.vlgmr.msra.gmra.mrb[52].mxu0 %v18956_v53 }
 0x42f   :  { %8388 = vmatmul.mubr.bf16.vlgmr.msra.gmra.mrb[52].mxu1 %v18958_v27  ;;  %8397 = vmatpush1.bf16.msra.mxu0 %v17029_v61  ;;  %v17085_v61 = vld [vmem:[#allocation10 + $0xdbc] ss:$24 sps:$4 sm:$0xff]  }
 0x430   :  { %8438 = vmatpush1.bf16.msra.mxu1 %v17032_v0  ;;  %8398 = vmatprep.subr.bf16.mxu0 %v17037_v2  ;;  %v17088_v0 = vld [vmem:[#allocation10 + $0x10bc] ss:$24 sps:$4 sm:$0xff]   ;;  %v17083_v2 = vld [vmem:[#allocation10 + $0xdb8] ss:$24 sps:$4 sm:$0xff]  }
 0x431   :  { %8439 = vmatprep.subr.bf16.mxu1 %v17040_v7  ;;  %8428 = vmatprep.mubr.bf16.mxu0 %v18960_v59  ;;  %v17086_v7 = vld [vmem:[#allocation10 + $0x10b8] ss:$24 sps:$4 sm:$0xff]  }
 0x432   :  { %8469 = vmatprep.mubr.bf16.mxu1 %v18962_v1 }
 0x433   :  { %8399 = vmatpush1.bf16.msra.mxu0 %v17035_v4  ;;  %v17091_v4 = vld [vmem:[#allocation10 + $0xdec] ss:$24 sps:$4 sm:$0xff]  }
 0x434   :  { %8440 = vmatpush1.bf16.msra.mxu1 %v17038_v34  ;;  %8400 = vmatprep.subr.bf16.mxu0 %v17043_v8  ;;  %v17094_v34 = vld [vmem:[#allocation10 + $0x10ec] ss:$24 sps:$4 sm:$0xff]   ;;  %v17089_v8 = vld [vmem:[#allocation10 + $0xde8] ss:$24 sps:$4 sm:$0xff]  }
 0x435   :  { %8441 = vmatprep.subr.bf16.mxu1 %v17046_v9  ;;  %v17092_v9 = vld [vmem:[#allocation10 + $0x10e8] ss:$24 sps:$4 sm:$0xff]  }
 0x437   :  { %8401 = vmatpush1.bf16.msra.mxu0 %v17041_v57  ;;  %v17097_v57 = vld [vmem:[#allocation10 + $0xe1c] ss:$24 sps:$4 sm:$0xff]  }
 0x438   :  { %8442 = vmatpush1.bf16.msra.mxu1 %v17044_v14  ;;  %8402 = vmatprep.subr.bf16.mxu0 %v17049_v5  ;;  %v17100_v14 = vld [vmem:[#allocation10 + $0x111c] ss:$24 sps:$4 sm:$0xff]   ;;  %v17095_v5 = vld [vmem:[#allocation10 + $0xe18] ss:$24 sps:$4 sm:$0xff]  }
 0x439   :  { %8443 = vmatprep.subr.bf16.mxu1 %v17052_v13  ;;  %v17098_v13 = vld [vmem:[#allocation10 + $0x1118] ss:$24 sps:$4 sm:$0xff]  }
 0x43b   :  { %8403 = vmatpush1.bf16.msra.mxu0 %v17047_v39  ;;  %v17103_v39 = vld [vmem:[#allocation10 + $0xe4c] ss:$24 sps:$4 sm:$0xff]  }
 0x43c   :  { %8444 = vmatpush1.bf16.msra.mxu1 %v17050_v17  ;;  %8404 = vmatprep.subr.bf16.mxu0 %v17055_v15  ;;  %v17106_v17 = vld [vmem:[#allocation10 + $0x114c] ss:$24 sps:$4 sm:$0xff]   ;;  %v17101_v15 = vld [vmem:[#allocation10 + $0xe48] ss:$24 sps:$4 sm:$0xff]  }
 0x43d   :  { %8445 = vmatprep.subr.bf16.mxu1 %v17058_v18  ;;  %v17104_v18 = vld [vmem:[#allocation10 + $0x1148] ss:$24 sps:$4 sm:$0xff]  }
 0x43f   :  { %8405 = vmatpush1.bf16.msra.mxu0 %v17053_v21  ;;  %v17109_v21 = vld [vmem:[#allocation10 + $0xe7c] ss:$24 sps:$4 sm:$0xff]  }
 0x440   :  { %8446 = vmatpush1.bf16.msra.mxu1 %v17056_v22  ;;  %8406 = vmatprep.subr.bf16.mxu0 %v17061_v23  ;;  %v17112_v22 = vld [vmem:[#allocation10 + $0x117c] ss:$24 sps:$4 sm:$0xff]   ;;  %v17107_v23 = vld [vmem:[#allocation10 + $0xe78] ss:$24 sps:$4 sm:$0xff]  }
 0x441   :  { %8447 = vmatprep.subr.bf16.mxu1 %v17064_v24  ;;  %v8102_v63 = vpop.f32.mrb[40].mxu0  ;;  %v17110_v24 = vld [vmem:[#allocation10 + $0x1178] ss:$24 sps:$4 sm:$0xff]  }
 0x442   :  { %v8143_v49 = vpop.f32.mrb[40].mxu1  ;;  %v8103_v54 = vadd.f32 %v8102_v63, %v18994_v3  ;;  %v8104_v55 = vpop.f32.mrb[41].mxu0  ;;  %v17071_v3 = vld [vmem:[#allocation10 + $0xd58] ss:$24 sps:$4 sm:$0xff]   ;;  %v17121_v63 = vld [vmem:[#allocation10 + $0xedc] ss:$24 sps:$4 sm:$0xff]  }
 0x443   :  { %v8145_v37 = vpop.f32.mrb[41].mxu1  ;;  %v8105_v38 = vadd.f32 %v8104_v55, %v18996_v10  ;;  %v8106_v40 = vpop.f32.mrb[42].mxu0  ;;  %8407 = vmatpush1.bf16.msra.mxu0 %v17059_v25  ;;  %v17079_v10 = vld [vmem:[#allocation10 + $0xd8c] ss:$24 sps:$4 sm:$0xff]  }
 0x444   :  { %v8147_v62 = vpop.f32.mrb[42].mxu1  ;;  %8448 = vmatpush1.bf16.msra.mxu1 %v17062_v31  ;;  %v19004_v52 = vadd.f32 %v8143_v49, %v8103_v54  ;;  %v8107_v41 = vpop.f32.mrb[43].mxu0  ;;  %8408 = vmatprep.subr.bf16.mxu0 %v17067_v11  ;;  %v17115_v25 = vld [vmem:[#allocation10 + $0xeac] ss:$24 sps:$4 sm:$0xff]   ;;  %v17113_v11 = vld [vmem:[#allocation10 + $0xea8] ss:$24 sps:$4 sm:$0xff]  }
 0x445   :  { %v8148_v28 = vpop.f32.mrb[43].mxu1  ;;  %8449 = vmatprep.subr.bf16.mxu1 %v17070_v33  ;;  %v19006_v46 = vadd.f32 %v8145_v37, %v8105_v38  ;;  %v17118_v31 = vld [vmem:[#allocation10 + $0x11ac] ss:$24 sps:$4 sm:$0xff]   ;;  %v17116_v33 = vld [vmem:[#allocation10 + $0x11a8] ss:$24 sps:$4 sm:$0xff]  }
 0x446   :  { %v17124_v49 = vld [vmem:[#allocation10 + $0x11dc] ss:$24 sps:$4 sm:$0xff]   ;;  %v17125_v37 = vld [vmem:[#allocation10 + $0x10] ss:$24 sps:$4 sm:$0xff]   ;;  %v17131_v41 = vld [vmem:[#allocation10 + $0x40] ss:$24 sps:$4 sm:$0xff]  }
 0x447   :  { %8409 = vmatpush1.bf16.msra.mxu0 %v17065_v44  ;;  %v17119_v44 = vld [vmem:[#allocation10 + $0xed8] ss:$24 sps:$4 sm:$0xff]   ;;  %v17127_v54 = vld [vmem:[#allocation10 + $0x14] ss:$24 sps:$4 sm:$0xff]   ;;  %v17133_v40 = vld [vmem:[#allocation10 + $0x44] ss:$24 sps:$4 sm:$0xff]  }
 0x448   :  { %8450 = vmatpush1.bf16.msra.mxu1 %v17068_v45  ;;  %8410 = vmatprep.subr.bf16.mxu0 %v17073_v42  ;;  %v17122_v45 = vld [vmem:[#allocation10 + $0x11d8] ss:$24 sps:$4 sm:$0xff]   ;;  %v17130_v55 = vld [vmem:[#allocation10 + $0x314] ss:$24 sps:$4 sm:$0xff]   ;;  %v17136_v62 = vld [vmem:[#allocation10 + $0x344] ss:$24 sps:$4 sm:$0xff]  }
 0x449   :  { %8451 = vmatprep.subr.bf16.mxu1 %v17076_v43  ;;  %v17128_v38 = vld [vmem:[#allocation10 + $0x310] ss:$24 sps:$4 sm:$0xff]   ;;  %v17134_v28 = vld [vmem:[#allocation10 + $0x340] ss:$24 sps:$4 sm:$0xff]   ;;  %v17139_v42 = vld [vmem:[#allocation10 + $0x74] ss:$24 sps:$4 sm:$0xff]  }
 0x44a   :  { %v17142_v43 = vld [vmem:[#allocation10 + $0x374] ss:$24 sps:$4 sm:$0xff]  }
 0x44b   :  { %8411 = vmatpush1.bf16.msra.mxu0 %v17071_v3  ;;  %v17137_v3 = vld [vmem:[#allocation10 + $0x70] ss:$24 sps:$4 sm:$0xff]  }
 0x44c   :  { %8452 = vmatpush1.bf16.msra.mxu1 %v17074_v47  ;;  %8412 = vmatprep.subr.bf16.mxu0 %v17079_v10  ;;  %v17140_v47 = vld [vmem:[#allocation10 + $0x370] ss:$24 sps:$4 sm:$0xff]   ;;  %v17145_v10 = vld [vmem:[#allocation10 + $0xa4] ss:$24 sps:$4 sm:$0xff]  }
 0x44d   :  { %8453 = vmatprep.subr.bf16.mxu1 %v17082_v48  ;;  %v17148_v48 = vld [vmem:[#allocation10 + $0x3a4] ss:$24 sps:$4 sm:$0xff]  }
 0x44f   :  { %8413 = vmatpush1.bf16.msra.mxu0 %v17077_v50  ;;  %v17143_v50 = vld [vmem:[#allocation10 + $0xa0] ss:$24 sps:$4 sm:$0xff]  }
 0x450   :  { %8454 = vmatpush1.bf16.msra.mxu1 %v17080_v51  ;;  %8414 = vmatprep.subr.bf16.mxu0 %v17085_v61  ;;  %v17146_v51 = vld [vmem:[#allocation10 + $0x3a0] ss:$24 sps:$4 sm:$0xff]   ;;  %v17151_v61 = vld [vmem:[#allocation10 + $0xd4] ss:$24 sps:$4 sm:$0xff]  }
 0x451   :  { %8455 = vmatprep.subr.bf16.mxu1 %v17088_v0  ;;  %v17154_v0 = vld [vmem:[#allocation10 + $0x3d4] ss:$24 sps:$4 sm:$0xff]  }
 0x453   :  { %8415 = vmatpush1.bf16.msra.mxu0 %v17083_v2  ;;  %v17157_v2 = vld [vmem:[#allocation10 + $0x104] ss:$24 sps:$4 sm:$0xff]  }
 0x454   :  { %8456 = vmatpush1.bf16.msra.mxu1 %v17086_v7  ;;  %8416 = vmatprep.subr.bf16.mxu0 %v17091_v4  ;;  %v17160_v7 = vld [vmem:[#allocation10 + $0x404] ss:$24 sps:$4 sm:$0xff]   ;;  %v17155_v4 = vld [vmem:[#allocation10 + $0x100] ss:$24 sps:$4 sm:$0xff]  }
 0x455   :  { %8457 = vmatprep.subr.bf16.mxu1 %v17094_v34  ;;  %v17158_v34 = vld [vmem:[#allocation10 + $0x400] ss:$24 sps:$4 sm:$0xff]  }
 0x457   :  { %8417 = vmatpush1.bf16.msra.mxu0 %v17089_v8  ;;  %v17163_v8 = vld [vmem:[#allocation10 + $0x134] ss:$24 sps:$4 sm:$0xff]  }
 0x458   :  { %8458 = vmatpush1.bf16.msra.mxu1 %v17092_v9  ;;  %8418 = vmatprep.subr.bf16.mxu0 %v17097_v57  ;;  %v17166_v9 = vld [vmem:[#allocation10 + $0x434] ss:$24 sps:$4 sm:$0xff]  }
 0x459   :  { %8459 = vmatprep.subr.bf16.mxu1 %v17100_v14 }
 0x45b   :  { %8419 = vmatpush1.bf16.msra.mxu0 %v17095_v5  ;;  %v17161_v5 = vld [vmem:[#allocation10 + $0x130] ss:$24 sps:$4 sm:$0xff]  }
 0x45c   :  { %8460 = vmatpush1.bf16.msra.mxu1 %v17098_v13  ;;  %8420 = vmatprep.subr.bf16.mxu0 %v17103_v39  ;;  %v17164_v13 = vld [vmem:[#allocation10 + $0x430] ss:$24 sps:$4 sm:$0xff]  }
 0x45d   :  { %8461 = vmatprep.subr.bf16.mxu1 %v17106_v17 }
 0x45f   :  { %8421 = vmatpush1.bf16.msra.mxu0 %v17101_v15 }
 0x460   :  { %8462 = vmatpush1.bf16.msra.mxu1 %v17104_v18  ;;  %8422 = vmatprep.subr.bf16.mxu0 %v17109_v21 }
 0x461   :  { %8463 = vmatprep.subr.bf16.mxu1 %v17112_v22 }
 0x463   :  { %8423 = vmatpush1.bf16.msra.mxu0 %v17107_v23 }
 0x464   :  { %8464 = vmatpush1.bf16.msra.mxu1 %v17110_v24  ;;  %8424 = vmatprep.subr.bf16.mxu0 %v17115_v25 }
 0x465   :  { %8465 = vmatprep.subr.bf16.mxu1 %v17118_v31  ;;  %v17169_v31 = vld [vmem:[#allocation10 + $0x164] ss:$24 sps:$4 sm:$0xff]  }
 0x467   :  { %8425 = vmatpush1.bf16.msra.mxu0 %v17113_v11  ;;  %v17172_v11 = vld [vmem:[#allocation10 + $0x464] ss:$24 sps:$4 sm:$0xff]  }
 0x468   :  { %8466 = vmatpush1.bf16.msra.mxu1 %v17116_v33  ;;  %8426 = vmatprep.subr.bf16.mxu0 %v17121_v63  ;;  %v17170_v63 = vld [vmem:[#allocation10 + $0x460] ss:$24 sps:$4 sm:$0xff]  }
 0x469   :  { %8467 = vmatprep.subr.bf16.mxu1 %v17124_v49  ;;  %v17178_v49 = vld [vmem:[#allocation10 + $0x494] ss:$24 sps:$4 sm:$0xff]  }
 0x46b   :  { %8427 = vmatpush1.bf16.msra.mxu0 %v17119_v44  ;;  %v17173_v44 = vld [vmem:[#allocation10 + $0x190] ss:$24 sps:$4 sm:$0xff]  }
 0x46c   :  { %8468 = vmatpush1.bf16.msra.mxu1 %v17122_v45  ;;  %8478 = vmatprep.subr.bf16.mxu0 %v17127_v54  ;;  %v17176_v45 = vld [vmem:[#allocation10 + $0x490] ss:$24 sps:$4 sm:$0xff]   ;;  %v17181_v54 = vld [vmem:[#allocation10 + $0x1c4] ss:$24 sps:$4 sm:$0xff]  }
 0x46d   :  { %8519 = vmatprep.subr.bf16.mxu1 %v17130_v55  ;;  %v17184_v55 = vld [vmem:[#allocation10 + $0x4c4] ss:$24 sps:$4 sm:$0xff]  }
 0x46e   :  { %8429 = vmatmul.mubr.bf16.vlgmr.msra.gmra.mrb[56].mxu0 %v18974_v29 }
 0x46f   :  { %8470 = vmatmul.mubr.bf16.vlgmr.msra.gmra.mrb[56].mxu1 %v18976_v36  ;;  %8479 = vmatpush1.bf16.msra.mxu0 %v17125_v37  ;;  %v17179_v37 = vld [vmem:[#allocation10 + $0x1c0] ss:$24 sps:$4 sm:$0xff]  }
 0x470   :  { %8520 = vmatpush1.bf16.msra.mxu1 %v17128_v38  ;;  %8480 = vmatprep.subr.bf16.mxu0 %v17133_v40  ;;  %v17182_v38 = vld [vmem:[#allocation10 + $0x4c0] ss:$24 sps:$4 sm:$0xff]   ;;  %v17187_v40 = vld [vmem:[#allocation10 + $0x1f4] ss:$24 sps:$4 sm:$0xff]  }
 0x471   :  { %8521 = vmatprep.subr.bf16.mxu1 %v17136_v62  ;;  %8510 = vmatprep.mubr.bf16.mxu0 %v18921_v56  ;;  %v17149_v56 = vld [vmem:[#allocation10 + $0xd0] ss:$24 sps:$4 sm:$0xff]   ;;  %v17190_v62 = vld [vmem:[#allocation10 + $0x4f4] ss:$24 sps:$4 sm:$0xff]  }
 0x472   :  { %8551 = vmatprep.mubr.bf16.mxu1 %v18925_v58  ;;  %v17152_v58 = vld [vmem:[#allocation10 + $0x3d0] ss:$24 sps:$4 sm:$0xff]  }
 0x473   :  { %8481 = vmatpush1.bf16.msra.mxu0 %v17131_v41  ;;  %v17185_v41 = vld [vmem:[#allocation10 + $0x1f0] ss:$24 sps:$4 sm:$0xff]  }
 0x474   :  { %8522 = vmatpush1.bf16.msra.mxu1 %v17134_v28  ;;  %8482 = vmatprep.subr.bf16.mxu0 %v17139_v42  ;;  %v17188_v28 = vld [vmem:[#allocation10 + $0x4f0] ss:$24 sps:$4 sm:$0xff]   ;;  %v17193_v42 = vld [vmem:[#allocation10 + $0x224] ss:$24 sps:$4 sm:$0xff]  }
 0x475   :  { %8523 = vmatprep.subr.bf16.mxu1 %v17142_v43  ;;  %v17196_v43 = vld [vmem:[#allocation10 + $0x524] ss:$24 sps:$4 sm:$0xff]  }
 0x477   :  { %8483 = vmatpush1.bf16.msra.mxu0 %v17137_v3  ;;  %v17191_v3 = vld [vmem:[#allocation10 + $0x220] ss:$24 sps:$4 sm:$0xff]  }
 0x478   :  { %8524 = vmatpush1.bf16.msra.mxu1 %v17140_v47  ;;  %8484 = vmatprep.subr.bf16.mxu0 %v17145_v10  ;;  %v17194_v47 = vld [vmem:[#allocation10 + $0x520] ss:$24 sps:$4 sm:$0xff]   ;;  %v17199_v10 = vld [vmem:[#allocation10 + $0x254] ss:$24 sps:$4 sm:$0xff]  }
 0x479   :  { %8525 = vmatprep.subr.bf16.mxu1 %v17148_v48  ;;  %v17202_v48 = vld [vmem:[#allocation10 + $0x554] ss:$24 sps:$4 sm:$0xff]  }
 0x47b   :  { %8485 = vmatpush1.bf16.msra.mxu0 %v17143_v50  ;;  %v17197_v50 = vld [vmem:[#allocation10 + $0x250] ss:$24 sps:$4 sm:$0xff]  }
 0x47c   :  { %8526 = vmatpush1.bf16.msra.mxu1 %v17146_v51  ;;  %8486 = vmatprep.subr.bf16.mxu0 %v17151_v61  ;;  %v17200_v51 = vld [vmem:[#allocation10 + $0x550] ss:$24 sps:$4 sm:$0xff]   ;;  %v17205_v61 = vld [vmem:[#allocation10 + $0x284] ss:$24 sps:$4 sm:$0xff]  }
 0x47d   :  { %8527 = vmatprep.subr.bf16.mxu1 %v17154_v0  ;;  %v17208_v0 = vld [vmem:[#allocation10 + $0x584] ss:$24 sps:$4 sm:$0xff]  }
 0x47f   :  { %8487 = vmatpush1.bf16.msra.mxu0 %v17149_v56  ;;  %v17203_v56 = vld [vmem:[#allocation10 + $0x280] ss:$24 sps:$4 sm:$0xff]  }
 0x480   :  { %8528 = vmatpush1.bf16.msra.mxu1 %v17152_v58  ;;  %8488 = vmatprep.subr.bf16.mxu0 %v17157_v2  ;;  %v17206_v58 = vld [vmem:[#allocation10 + $0x580] ss:$24 sps:$4 sm:$0xff]   ;;  %v17211_v2 = vld [vmem:[#allocation10 + $0x2b4] ss:$24 sps:$4 sm:$0xff]  }
 0x481   :  { %8529 = vmatprep.subr.bf16.mxu1 %v17160_v7  ;;  %v8184_v57 = vpop.f32.mrb[44].mxu0  ;;  %v17214_v7 = vld [vmem:[#allocation10 + $0x5b4] ss:$24 sps:$4 sm:$0xff]  }
 0x482   :  { %v8225_v14 = vpop.f32.mrb[44].mxu1  ;;  %v8185_v39 = vadd.f32 %v8184_v57, %v19004_v52  ;;  %v8186_v17 = vpop.f32.mrb[45].mxu0  ;;  %v17167_v52 = vld [vmem:[#allocation10 + $0x160] ss:$24 sps:$4 sm:$0xff]  }
 0x483   :  { %v8227_v15 = vpop.f32.mrb[45].mxu1  ;;  %v8187_v18 = vadd.f32 %v8186_v17, %v19006_v46  ;;  %v8188_v21 = vpop.f32.mrb[46].mxu0  ;;  %8489 = vmatpush1.bf16.msra.mxu0 %v17155_v4  ;;  %v17175_v46 = vld [vmem:[#allocation10 + $0x194] ss:$24 sps:$4 sm:$0xff]   ;;  %v17209_v4 = vld [vmem:[#allocation10 + $0x2b0] ss:$24 sps:$4 sm:$0xff]  }
 0x484   :  { %v8229_v22 = vpop.f32.mrb[46].mxu1  ;;  %8530 = vmatpush1.bf16.msra.mxu1 %v17158_v34  ;;  %v19014_v23 = vadd.f32 %v8225_v14, %v8185_v39  ;;  %v8189_v24 = vpop.f32.mrb[47].mxu0  ;;  %8490 = vmatprep.subr.bf16.mxu0 %v17163_v8  ;;  %v17212_v34 = vld [vmem:[#allocation10 + $0x5b0] ss:$24 sps:$4 sm:$0xff]   ;;  %v17217_v8 = vld [vmem:[#allocation10 + $0x2e4] ss:$24 sps:$4 sm:$0xff]  }
 0x485   :  { %v8230_v25 = vpop.f32.mrb[47].mxu1  ;;  %8531 = vmatprep.subr.bf16.mxu1 %v17166_v9  ;;  %v19016_v33 = vadd.f32 %v8227_v15, %v8187_v18  ;;  %v17220_v9 = vld [vmem:[#allocation10 + $0x5e4] ss:$24 sps:$4 sm:$0xff]   ;;  %v17215_v57 = vld [vmem:[#allocation10 + $0x2e0] ss:$24 sps:$4 sm:$0xff]  }
 0x486   :  { %v17218_v14 = vld [vmem:[#allocation10 + $0x5e0] ss:$24 sps:$4 sm:$0xff]   ;;  %v17221_v39 = vld [vmem:[#allocation10 + $0x610] ss:$24 sps:$4 sm:$0xff]   ;;  %v17229_v15 = vld [vmem:[#allocation10 + $0x644] ss:$24 sps:$4 sm:$0xff]  }
 0x487   :  { %8491 = vmatpush1.bf16.msra.mxu0 %v17161_v5  ;;  %v17223_v5 = vld [vmem:[#allocation10 + $0x614] ss:$24 sps:$4 sm:$0xff]   ;;  %v17224_v17 = vld [vmem:[#allocation10 + $0x910] ss:$24 sps:$4 sm:$0xff]   ;;  %v17232_v18 = vld [vmem:[#allocation10 + $0x944] ss:$24 sps:$4 sm:$0xff]  }
 0x488   :  { %8532 = vmatpush1.bf16.msra.mxu1 %v17164_v13  ;;  %8492 = vmatprep.subr.bf16.mxu0 %v17169_v31  ;;  %v17226_v13 = vld [vmem:[#allocation10 + $0x914] ss:$24 sps:$4 sm:$0xff]   ;;  %v17227_v21 = vld [vmem:[#allocation10 + $0x640] ss:$24 sps:$4 sm:$0xff]   ;;  %v17233_v31 = vld [vmem:[#allocation10 + $0x670] ss:$24 sps:$4 sm:$0xff]  }
 0x489   :  { %8533 = vmatprep.subr.bf16.mxu1 %v17172_v11  ;;  %v17230_v22 = vld [vmem:[#allocation10 + $0x940] ss:$24 sps:$4 sm:$0xff]   ;;  %v17235_v24 = vld [vmem:[#allocation10 + $0x674] ss:$24 sps:$4 sm:$0xff]   ;;  %v17236_v11 = vld [vmem:[#allocation10 + $0x970] ss:$24 sps:$4 sm:$0xff]  }
 0x48a   :  { %v17238_v25 = vld [vmem:[#allocation10 + $0x974] ss:$24 sps:$4 sm:$0xff]  }
 0x48b   :  { %8493 = vmatpush1.bf16.msra.mxu0 %v17167_v52  ;;  %v17239_v52 = vld [vmem:[#allocation10 + $0x6a0] ss:$24 sps:$4 sm:$0xff]  }
 0x48c   :  { %8534 = vmatpush1.bf16.msra.mxu1 %v17170_v63  ;;  %8494 = vmatprep.subr.bf16.mxu0 %v17175_v46  ;;  %v17242_v63 = vld [vmem:[#allocation10 + $0x9a0] ss:$24 sps:$4 sm:$0xff]   ;;  %v17247_v46 = vld [vmem:[#allocation10 + $0x6d4] ss:$24 sps:$4 sm:$0xff]  }
 0x48d   :  { %8535 = vmatprep.subr.bf16.mxu1 %v17178_v49  ;;  %v17250_v49 = vld [vmem:[#allocation10 + $0x9d4] ss:$24 sps:$4 sm:$0xff]  }
 0x48f   :  { %8495 = vmatpush1.bf16.msra.mxu0 %v17173_v44  ;;  %v17253_v44 = vld [vmem:[#allocation10 + $0x704] ss:$24 sps:$4 sm:$0xff]  }
 0x490   :  { %8536 = vmatpush1.bf16.msra.mxu1 %v17176_v45  ;;  %8496 = vmatprep.subr.bf16.mxu0 %v17181_v54  ;;  %v17256_v45 = vld [vmem:[#allocation10 + $0xa04] ss:$24 sps:$4 sm:$0xff]   ;;  %v17251_v54 = vld [vmem:[#allocation10 + $0x700] ss:$24 sps:$4 sm:$0xff]  }
 0x491   :  { %8537 = vmatprep.subr.bf16.mxu1 %v17184_v55  ;;  %v17254_v55 = vld [vmem:[#allocation10 + $0xa00] ss:$24 sps:$4 sm:$0xff]  }
 0x493   :  { %8497 = vmatpush1.bf16.msra.mxu0 %v17179_v37  ;;  %v17259_v37 = vld [vmem:[#allocation10 + $0x734] ss:$24 sps:$4 sm:$0xff]  }
 0x494   :  { %8538 = vmatpush1.bf16.msra.mxu1 %v17182_v38  ;;  %8498 = vmatprep.subr.bf16.mxu0 %v17187_v40  ;;  %v17262_v38 = vld [vmem:[#allocation10 + $0xa34] ss:$24 sps:$4 sm:$0xff]  }
 0x495   :  { %8539 = vmatprep.subr.bf16.mxu1 %v17190_v62 }
 0x497   :  { %8499 = vmatpush1.bf16.msra.mxu0 %v17185_v41 }
 0x498   :  { %8540 = vmatpush1.bf16.msra.mxu1 %v17188_v28  ;;  %8500 = vmatprep.subr.bf16.mxu0 %v17193_v42 }
 0x499   :  { %8541 = vmatprep.subr.bf16.mxu1 %v17196_v43 }
 0x49b   :  { %8501 = vmatpush1.bf16.msra.mxu0 %v17191_v3 }
 0x49c   :  { %8542 = vmatpush1.bf16.msra.mxu1 %v17194_v47  ;;  %8502 = vmatprep.subr.bf16.mxu0 %v17199_v10  ;;  %v17257_v10 = vld [vmem:[#allocation10 + $0x730] ss:$24 sps:$4 sm:$0xff]  }
 0x49d   :  { %8543 = vmatprep.subr.bf16.mxu1 %v17202_v48  ;;  %v17260_v48 = vld [vmem:[#allocation10 + $0xa30] ss:$24 sps:$4 sm:$0xff]  }
 0x49f   :  { %8503 = vmatpush1.bf16.msra.mxu0 %v17197_v50 }
 0x4a0   :  { %8544 = vmatpush1.bf16.msra.mxu1 %v17200_v51  ;;  %8504 = vmatprep.subr.bf16.mxu0 %v17205_v61 }
 0x4a1   :  { %8545 = vmatprep.subr.bf16.mxu1 %v17208_v0  ;;  %v17265_v0 = vld [vmem:[#allocation10 + $0x764] ss:$24 sps:$4 sm:$0xff]  }
 0x4a3   :  { %8505 = vmatpush1.bf16.msra.mxu0 %v17203_v56  ;;  %v17268_v56 = vld [vmem:[#allocation10 + $0xa64] ss:$24 sps:$4 sm:$0xff]  }
 0x4a4   :  { %8546 = vmatpush1.bf16.msra.mxu1 %v17206_v58  ;;  %8506 = vmatprep.subr.bf16.mxu0 %v17211_v2  ;;  %v17271_v2 = vld [vmem:[#allocation10 + $0x794] ss:$24 sps:$4 sm:$0xff]  }
 0x4a5   :  { %8547 = vmatprep.subr.bf16.mxu1 %v17214_v7  ;;  %v17274_v7 = vld [vmem:[#allocation10 + $0xa94] ss:$24 sps:$4 sm:$0xff]  }
 0x4a7   :  { %8507 = vmatpush1.bf16.msra.mxu0 %v17209_v4  ;;  %v17269_v4 = vld [vmem:[#allocation10 + $0x790] ss:$24 sps:$4 sm:$0xff]  }
 0x4a8   :  { %8548 = vmatpush1.bf16.msra.mxu1 %v17212_v34  ;;  %8508 = vmatprep.subr.bf16.mxu0 %v17217_v8  ;;  %v17272_v34 = vld [vmem:[#allocation10 + $0xa90] ss:$24 sps:$4 sm:$0xff]   ;;  %v17277_v8 = vld [vmem:[#allocation10 + $0x7c4] ss:$24 sps:$4 sm:$0xff]  }
 0x4a9   :  { %8549 = vmatprep.subr.bf16.mxu1 %v17220_v9  ;;  %v17280_v9 = vld [vmem:[#allocation10 + $0xac4] ss:$24 sps:$4 sm:$0xff]  }
 0x4ab   :  { %8509 = vmatpush1.bf16.msra.mxu0 %v17215_v57  ;;  %v17275_v57 = vld [vmem:[#allocation10 + $0x7c0] ss:$24 sps:$4 sm:$0xff]  }
 0x4ac   :  { %8550 = vmatpush1.bf16.msra.mxu1 %v17218_v14  ;;  %8560 = vmatprep.subr.bf16.mxu0 %v17223_v5  ;;  %v17278_v14 = vld [vmem:[#allocation10 + $0xac0] ss:$24 sps:$4 sm:$0xff]   ;;  %v17283_v5 = vld [vmem:[#allocation10 + $0x7f4] ss:$24 sps:$4 sm:$0xff]  }
 0x4ad   :  { %8601 = vmatprep.subr.bf16.mxu1 %v17226_v13  ;;  %v17286_v13 = vld [vmem:[#allocation10 + $0xaf4] ss:$24 sps:$4 sm:$0xff]  }
 0x4ae   :  { %8511 = vmatmul.mubr.bf16.vlgmr.msra.gmra.mrb[60].mxu0 %v18940_v16  ;;  %v17241_v16 = vld [vmem:[#allocation10 + $0x6a4] ss:$24 sps:$4 sm:$0xff]  }
 0x4af   :  { %8552 = vmatmul.mubr.bf16.vlgmr.msra.gmra.mrb[60].mxu1 %v18942_v20  ;;  %8561 = vmatpush1.bf16.msra.mxu0 %v17221_v39  ;;  %v17244_v20 = vld [vmem:[#allocation10 + $0x9a4] ss:$24 sps:$4 sm:$0xff]   ;;  %v17281_v39 = vld [vmem:[#allocation10 + $0x7f0] ss:$24 sps:$4 sm:$0xff]  }
 0x4b0   :  { %8602 = vmatpush1.bf16.msra.mxu1 %v17224_v17  ;;  %8562 = vmatprep.subr.bf16.mxu0 %v17229_v15  ;;  %v17284_v17 = vld [vmem:[#allocation10 + $0xaf0] ss:$24 sps:$4 sm:$0xff]   ;;  %v17289_v15 = vld [vmem:[#allocation10 + $0x824] ss:$24 sps:$4 sm:$0xff]  }
 0x4b1   :  { %8603 = vmatprep.subr.bf16.mxu1 %v17232_v18  ;;  %8592 = vmatprep.mubr.bf16.mxu0 %v18944_v26  ;;  %v17245_v26 = vld [vmem:[#allocation10 + $0x6d0] ss:$24 sps:$4 sm:$0xff]   ;;  %v17292_v18 = vld [vmem:[#allocation10 + $0xb24] ss:$24 sps:$4 sm:$0xff]  }
 0x4b2   :  { %8633 = vmatprep.mubr.bf16.mxu1 %v18946_v30  ;;  %v17248_v30 = vld [vmem:[#allocation10 + $0x9d0] ss:$24 sps:$4 sm:$0xff]  }
 0x4b3   :  { %8563 = vmatpush1.bf16.msra.mxu0 %v17227_v21  ;;  %v17287_v21 = vld [vmem:[#allocation10 + $0x820] ss:$24 sps:$4 sm:$0xff]  }
 0x4b4   :  { %8604 = vmatpush1.bf16.msra.mxu1 %v17230_v22  ;;  %8564 = vmatprep.subr.bf16.mxu0 %v17235_v24  ;;  %v17290_v22 = vld [vmem:[#allocation10 + $0xb20] ss:$24 sps:$4 sm:$0xff]   ;;  %v17295_v24 = vld [vmem:[#allocation10 + $0x854] ss:$24 sps:$4 sm:$0xff]  }
 0x4b5   :  { %8605 = vmatprep.subr.bf16.mxu1 %v17238_v25  ;;  %v17298_v25 = vld [vmem:[#allocation10 + $0xb54] ss:$24 sps:$4 sm:$0xff]  }
 0x4b7   :  { %8565 = vmatpush1.bf16.msra.mxu0 %v17233_v31  ;;  %v17293_v31 = vld [vmem:[#allocation10 + $0x850] ss:$24 sps:$4 sm:$0xff]  }
 0x4b8   :  { %8606 = vmatpush1.bf16.msra.mxu1 %v17236_v11  ;;  %8566 = vmatprep.subr.bf16.mxu0 %v17241_v16  ;;  %v17296_v11 = vld [vmem:[#allocation10 + $0xb50] ss:$24 sps:$4 sm:$0xff]   ;;  %v17301_v16 = vld [vmem:[#allocation10 + $0x884] ss:$24 sps:$4 sm:$0xff]  }
 0x4b9   :  { %8607 = vmatprep.subr.bf16.mxu1 %v17244_v20  ;;  %v17304_v20 = vld [vmem:[#allocation10 + $0xb84] ss:$24 sps:$4 sm:$0xff]  }
 0x4bb   :  { %8567 = vmatpush1.bf16.msra.mxu0 %v17239_v52  ;;  %v17299_v52 = vld [vmem:[#allocation10 + $0x880] ss:$24 sps:$4 sm:$0xff]  }
 0x4bc   :  { %8608 = vmatpush1.bf16.msra.mxu1 %v17242_v63  ;;  %8568 = vmatprep.subr.bf16.mxu0 %v17247_v46  ;;  %v17302_v63 = vld [vmem:[#allocation10 + $0xb80] ss:$24 sps:$4 sm:$0xff]   ;;  %v17307_v46 = vld [vmem:[#allocation10 + $0x8b4] ss:$24 sps:$4 sm:$0xff]  }
 0x4bd   :  { %8609 = vmatprep.subr.bf16.mxu1 %v17250_v49  ;;  %v17310_v49 = vld [vmem:[#allocation10 + $0xbb4] ss:$24 sps:$4 sm:$0xff]  }
 0x4bf   :  { %8569 = vmatpush1.bf16.msra.mxu0 %v17245_v26  ;;  %v17305_v26 = vld [vmem:[#allocation10 + $0x8b0] ss:$24 sps:$4 sm:$0xff]  }
 0x4c0   :  { %8610 = vmatpush1.bf16.msra.mxu1 %v17248_v30  ;;  %8570 = vmatprep.subr.bf16.mxu0 %v17253_v44  ;;  %v17308_v30 = vld [vmem:[#allocation10 + $0xbb0] ss:$24 sps:$4 sm:$0xff]   ;;  %v17313_v44 = vld [vmem:[#allocation10 + $0x8e4] ss:$24 sps:$4 sm:$0xff]  }
 0x4c1   :  { %8611 = vmatprep.subr.bf16.mxu1 %v17256_v45  ;;  %v8266_v40 = vpop.f32.mrb[48].mxu0  ;;  %v17316_v45 = vld [vmem:[#allocation10 + $0xbe4] ss:$24 sps:$4 sm:$0xff]  }
 0x4c2   :  { %v8307_v62 = vpop.f32.mrb[48].mxu1  ;;  %v8267_v41 = vadd.f32 %v8266_v40, %v18936_v35  ;;  %v8268_v28 = vpop.f32.mrb[49].mxu0  ;;  %v17263_v35 = vld [vmem:[#allocation10 + $0x760] ss:$24 sps:$4 sm:$0xff]   ;;  %v17317_v40 = vld [vmem:[#allocation10 + $0xc10] ss:$24 sps:$4 sm:$0xff]  }
 0x4c3   :  { %v8309_v42 = vpop.f32.mrb[49].mxu1  ;;  %v8269_v43 = vadd.f32 %v8268_v28, %v18938_v60  ;;  %v8270_v3 = vpop.f32.mrb[50].mxu0  ;;  %8571 = vmatpush1.bf16.msra.mxu0 %v17251_v54  ;;  %v17266_v60 = vld [vmem:[#allocation10 + $0xa60] ss:$24 sps:$4 sm:$0xff]   ;;  %v17328_v28 = vld [vmem:[#allocation10 + $0xf44] ss:$24 sps:$4 sm:$0xff]  }
 0x4c4   :  { %v8311_v47 = vpop.f32.mrb[50].mxu1  ;;  %8612 = vmatpush1.bf16.msra.mxu1 %v17254_v55  ;;  %v19024_v50 = vadd.f32 %v8307_v62, %v8267_v41  ;;  %v8271_v51 = vpop.f32.mrb[51].mxu0  ;;  %8572 = vmatprep.subr.bf16.mxu0 %v17259_v37  ;;  %v17311_v54 = vld [vmem:[#allocation10 + $0x8e0] ss:$24 sps:$4 sm:$0xff]   ;;  %v17319_v37 = vld [vmem:[#allocation10 + $0xc14] ss:$24 sps:$4 sm:$0xff]  }
 0x4c5   :  { %v8312_v61 = vpop.f32.mrb[51].mxu1  ;;  %8613 = vmatprep.subr.bf16.mxu1 %v17262_v38  ;;  %v19026_v58 = vadd.f32 %v8309_v42, %v8269_v43  ;;  %v17314_v55 = vld [vmem:[#allocation10 + $0xbe0] ss:$24 sps:$4 sm:$0xff]   ;;  %v17322_v38 = vld [vmem:[#allocation10 + $0xf14] ss:$24 sps:$4 sm:$0xff]  }
 0x4c6   :  { %v17320_v62 = vld [vmem:[#allocation10 + $0xf10] ss:$24 sps:$4 sm:$0xff]   ;;  %v17325_v41 = vld [vmem:[#allocation10 + $0xc44] ss:$24 sps:$4 sm:$0xff]   ;;  %v17323_v42 = vld [vmem:[#allocation10 + $0xc40] ss:$24 sps:$4 sm:$0xff]  }
 0x4c7   :  { %8573 = vmatpush1.bf16.msra.mxu0 %v17257_v10  ;;  %v17326_v43 = vld [vmem:[#allocation10 + $0xf40] ss:$24 sps:$4 sm:$0xff]   ;;  %v17331_v3 = vld [vmem:[#allocation10 + $0xc74] ss:$24 sps:$4 sm:$0xff]   ;;  %v17329_v10 = vld [vmem:[#allocation10 + $0xc70] ss:$24 sps:$4 sm:$0xff]  }
 0x4c8   :  { %8614 = vmatpush1.bf16.msra.mxu1 %v17260_v48  ;;  %8574 = vmatprep.subr.bf16.mxu0 %v17265_v0  ;;  %v17334_v47 = vld [vmem:[#allocation10 + $0xf74] ss:$24 sps:$4 sm:$0xff]   ;;  %v17332_v48 = vld [vmem:[#allocation10 + $0xf70] ss:$24 sps:$4 sm:$0xff]   ;;  %v17335_v51 = vld [vmem:[#allocation10 + $0xca0] ss:$24 sps:$4 sm:$0xff]  }
 0x4c9   :  { %8615 = vmatprep.subr.bf16.mxu1 %v17268_v56  ;;  %v17338_v61 = vld [vmem:[#allocation10 + $0xfa0] ss:$24 sps:$4 sm:$0xff]   ;;  %v17343_v0 = vld [vmem:[#allocation10 + $0xcd4] ss:$24 sps:$4 sm:$0xff]  }
 0x4ca   :  { %v17346_v56 = vld [vmem:[#allocation10 + $0xfd4] ss:$24 sps:$4 sm:$0xff]  }
 0x4cb   :  { %8575 = vmatpush1.bf16.msra.mxu0 %v17263_v35  ;;  %v17349_v35 = vld [vmem:[#allocation10 + $0xd04] ss:$24 sps:$4 sm:$0xff]  }
 0x4cc   :  { %8616 = vmatpush1.bf16.msra.mxu1 %v17266_v60  ;;  %8576 = vmatprep.subr.bf16.mxu0 %v17271_v2  ;;  %v17352_v60 = vld [vmem:[#allocation10 + $0x1004] ss:$24 sps:$4 sm:$0xff]   ;;  %v17347_v2 = vld [vmem:[#allocation10 + $0xd00] ss:$24 sps:$4 sm:$0xff]  }
 0x4cd   :  { %8617 = vmatprep.subr.bf16.mxu1 %v17274_v7  ;;  %v17350_v7 = vld [vmem:[#allocation10 + $0x1000] ss:$24 sps:$4 sm:$0xff]  }
 0x4cf   :  { %8577 = vmatpush1.bf16.msra.mxu0 %v17269_v4  ;;  %v17355_v4 = vld [vmem:[#allocation10 + $0xd34] ss:$24 sps:$4 sm:$0xff]  }
 0x4d0   :  { %8618 = vmatpush1.bf16.msra.mxu1 %v17272_v34  ;;  %8578 = vmatprep.subr.bf16.mxu0 %v17277_v8  ;;  %v17358_v34 = vld [vmem:[#allocation10 + $0x1034] ss:$24 sps:$4 sm:$0xff]  }
 0x4d1   :  { %8619 = vmatprep.subr.bf16.mxu1 %v17280_v9 }
 0x4d3   :  { %8579 = vmatpush1.bf16.msra.mxu0 %v17275_v57 }
 0x4d4   :  { %8620 = vmatpush1.bf16.msra.mxu1 %v17278_v14  ;;  %8580 = vmatprep.subr.bf16.mxu0 %v17283_v5 }
 0x4d5   :  { %8621 = vmatprep.subr.bf16.mxu1 %v17286_v13 }
 0x4d7   :  { %8581 = vmatpush1.bf16.msra.mxu0 %v17281_v39 }
 0x4d8   :  { %8622 = vmatpush1.bf16.msra.mxu1 %v17284_v17  ;;  %8582 = vmatprep.subr.bf16.mxu0 %v17289_v15  ;;  %v17353_v15 = vld [vmem:[#allocation10 + $0xd30] ss:$24 sps:$4 sm:$0xff]  }
 0x4d9   :  { %8623 = vmatprep.subr.bf16.mxu1 %v17292_v18  ;;  %v17356_v18 = vld [vmem:[#allocation10 + $0x1030] ss:$24 sps:$4 sm:$0xff]  }
 0x4db   :  { %8583 = vmatpush1.bf16.msra.mxu0 %v17287_v21 }
 0x4dc   :  { %8624 = vmatpush1.bf16.msra.mxu1 %v17290_v22  ;;  %8584 = vmatprep.subr.bf16.mxu0 %v17295_v24 }
 0x4dd   :  { %8625 = vmatprep.subr.bf16.mxu1 %v17298_v25  ;;  %v17361_v25 = vld [vmem:[#allocation10 + $0xd64] ss:$24 sps:$4 sm:$0xff]  }
 0x4df   :  { %8585 = vmatpush1.bf16.msra.mxu0 %v17293_v31  ;;  %v17364_v31 = vld [vmem:[#allocation10 + $0x1064] ss:$24 sps:$4 sm:$0xff]  }
 0x4e0   :  { %8626 = vmatpush1.bf16.msra.mxu1 %v17296_v11  ;;  %8586 = vmatprep.subr.bf16.mxu0 %v17301_v16  ;;  %v17367_v16 = vld [vmem:[#allocation10 + $0xd94] ss:$24 sps:$4 sm:$0xff]  }
 0x4e1   :  { %8627 = vmatprep.subr.bf16.mxu1 %v17304_v20  ;;  %v17370_v20 = vld [vmem:[#allocation10 + $0x1094] ss:$24 sps:$4 sm:$0xff]  }
 0x4e3   :  { %8587 = vmatpush1.bf16.msra.mxu0 %v17299_v52  ;;  %v17365_v52 = vld [vmem:[#allocation10 + $0xd90] ss:$24 sps:$4 sm:$0xff]  }
 0x4e4   :  { %8628 = vmatpush1.bf16.msra.mxu1 %v17302_v63  ;;  %8588 = vmatprep.subr.bf16.mxu0 %v17307_v46  ;;  %v17368_v63 = vld [vmem:[#allocation10 + $0x1090] ss:$24 sps:$4 sm:$0xff]   ;;  %v17373_v46 = vld [vmem:[#allocation10 + $0xdc4] ss:$24 sps:$4 sm:$0xff]  }
 0x4e5   :  { %8629 = vmatprep.subr.bf16.mxu1 %v17310_v49  ;;  %v17376_v49 = vld [vmem:[#allocation10 + $0x10c4] ss:$24 sps:$4 sm:$0xff]  }
 0x4e7   :  { %8589 = vmatpush1.bf16.msra.mxu0 %v17305_v26  ;;  %v17371_v26 = vld [vmem:[#allocation10 + $0xdc0] ss:$24 sps:$4 sm:$0xff]  }
 0x4e8   :  { %8630 = vmatpush1.bf16.msra.mxu1 %v17308_v30  ;;  %8590 = vmatprep.subr.bf16.mxu0 %v17313_v44  ;;  %v17374_v30 = vld [vmem:[#allocation10 + $0x10c0] ss:$24 sps:$4 sm:$0xff]   ;;  %v17379_v44 = vld [vmem:[#allocation10 + $0xdf4] ss:$24 sps:$4 sm:$0xff]  }
 0x4e9   :  { %8631 = vmatprep.subr.bf16.mxu1 %v17316_v45  ;;  %v17382_v45 = vld [vmem:[#allocation10 + $0x10f4] ss:$24 sps:$4 sm:$0xff]  }
 0x4eb   :  { %8591 = vmatpush1.bf16.msra.mxu0 %v17311_v54  ;;  %v17377_v54 = vld [vmem:[#allocation10 + $0xdf0] ss:$24 sps:$4 sm:$0xff]  }
 0x4ec   :  { %8632 = vmatpush1.bf16.msra.mxu1 %v17314_v55  ;;  %8642 = vmatprep.subr.bf16.mxu0 %v17319_v37  ;;  %v17380_v55 = vld [vmem:[#allocation10 + $0x10f0] ss:$24 sps:$4 sm:$0xff]   ;;  %v17385_v37 = vld [vmem:[#allocation10 + $0xe24] ss:$24 sps:$4 sm:$0xff]  }
 0x4ed   :  { %8683 = vmatprep.subr.bf16.mxu1 %v17322_v38  ;;  %v17388_v38 = vld [vmem:[#allocation10 + $0x1124] ss:$24 sps:$4 sm:$0xff]  }
 0x4ee   :  { %8593 = vmatmul.mubr.bf16.vlgmr.msra.gmra.mrb[64].mxu0 %v18956_v53  ;;  %v17337_v53 = vld [vmem:[#allocation10 + $0xca4] ss:$24 sps:$4 sm:$0xff]  }
 0x4ef   :  { %8634 = vmatmul.mubr.bf16.vlgmr.msra.gmra.mrb[64].mxu1 %v18958_v27  ;;  %8643 = vmatpush1.bf16.msra.mxu0 %v17317_v40  ;;  %v17340_v27 = vld [vmem:[#allocation10 + $0xfa4] ss:$24 sps:$4 sm:$0xff]   ;;  %v17383_v40 = vld [vmem:[#allocation10 + $0xe20] ss:$24 sps:$4 sm:$0xff]  }
 0x4f0   :  { %8684 = vmatpush1.bf16.msra.mxu1 %v17320_v62  ;;  %8644 = vmatprep.subr.bf16.mxu0 %v17325_v41  ;;  %v17386_v62 = vld [vmem:[#allocation10 + $0x1120] ss:$24 sps:$4 sm:$0xff]   ;;  %v17391_v41 = vld [vmem:[#allocation10 + $0xe54] ss:$24 sps:$4 sm:$0xff]  }
 0x4f1   :  { %8685 = vmatprep.subr.bf16.mxu1 %v17328_v28  ;;  %8674 = vmatprep.mubr.bf16.mxu0 %v18960_v59  ;;  %v17341_v59 = vld [vmem:[#allocation10 + $0xcd0] ss:$24 sps:$4 sm:$0xff]   ;;  %v17394_v28 = vld [vmem:[#allocation10 + $0x1154] ss:$24 sps:$4 sm:$0xff]  }
 0x4f2   :  { %8715 = vmatprep.mubr.bf16.mxu1 %v18962_v1  ;;  %v17344_v1 = vld [vmem:[#allocation10 + $0xfd0] ss:$24 sps:$4 sm:$0xff]  }
 0x4f3   :  { %8645 = vmatpush1.bf16.msra.mxu0 %v17323_v42  ;;  %v17389_v42 = vld [vmem:[#allocation10 + $0xe50] ss:$24 sps:$4 sm:$0xff]  }
 0x4f4   :  { %8686 = vmatpush1.bf16.msra.mxu1 %v17326_v43  ;;  %8646 = vmatprep.subr.bf16.mxu0 %v17331_v3  ;;  %v17392_v43 = vld [vmem:[#allocation10 + $0x1150] ss:$24 sps:$4 sm:$0xff]   ;;  %v17397_v3 = vld [vmem:[#allocation10 + $0xe84] ss:$24 sps:$4 sm:$0xff]  }
 0x4f5   :  { %8687 = vmatprep.subr.bf16.mxu1 %v17334_v47  ;;  %v17400_v47 = vld [vmem:[#allocation10 + $0x1184] ss:$24 sps:$4 sm:$0xff]  }
 0x4f7   :  { %8647 = vmatpush1.bf16.msra.mxu0 %v17329_v10  ;;  %v17395_v10 = vld [vmem:[#allocation10 + $0xe80] ss:$24 sps:$4 sm:$0xff]  }
 0x4f8   :  { %8688 = vmatpush1.bf16.msra.mxu1 %v17332_v48  ;;  %8648 = vmatprep.subr.bf16.mxu0 %v17337_v53  ;;  %v17398_v48 = vld [vmem:[#allocation10 + $0x1180] ss:$24 sps:$4 sm:$0xff]   ;;  %v17403_v53 = vld [vmem:[#allocation10 + $0xeb4] ss:$24 sps:$4 sm:$0xff]  }
 0x4f9   :  { %8689 = vmatprep.subr.bf16.mxu1 %v17340_v27  ;;  %v17406_v27 = vld [vmem:[#allocation10 + $0x11b4] ss:$24 sps:$4 sm:$0xff]  }
 0x4fb   :  { %8649 = vmatpush1.bf16.msra.mxu0 %v17335_v51  ;;  %v17401_v51 = vld [vmem:[#allocation10 + $0xeb0] ss:$24 sps:$4 sm:$0xff]  }
 0x4fc   :  { %8690 = vmatpush1.bf16.msra.mxu1 %v17338_v61  ;;  %8650 = vmatprep.subr.bf16.mxu0 %v17343_v0  ;;  %v17404_v61 = vld [vmem:[#allocation10 + $0x11b0] ss:$24 sps:$4 sm:$0xff]   ;;  %v17409_v0 = vld [vmem:[#allocation10 + $0xee4] ss:$24 sps:$4 sm:$0xff]  }
 0x4fd   :  { %8691 = vmatprep.subr.bf16.mxu1 %v17346_v56  ;;  %v17412_v56 = vld [vmem:[#allocation10 + $0x11e4] ss:$24 sps:$4 sm:$0xff]  }
 0x4ff   :  { %8651 = vmatpush1.bf16.msra.mxu0 %v17341_v59  ;;  %v17407_v59 = vld [vmem:[#allocation10 + $0xee0] ss:$24 sps:$4 sm:$0xff]  }
 0x500   :  { %8692 = vmatpush1.bf16.msra.mxu1 %v17344_v1  ;;  %8652 = vmatprep.subr.bf16.mxu0 %v17349_v35  ;;  %v17410_v1 = vld [vmem:[#allocation10 + $0x11e0] ss:$24 sps:$4 sm:$0xff]   ;;  %v17415_v35 = vld [vmem:[#allocation10 + $0x2404] ss:$24 sps:$4 sm:$0xff]  }
 0x501   :  { %8693 = vmatprep.subr.bf16.mxu1 %v17352_v60  ;;  %v8348_v8 = vpop.f32.mrb[52].mxu0  ;;  %v17418_v60 = vld [vmem:[#allocation10 + $0x2704] ss:$24 sps:$4 sm:$0xff]  }
 0x502   :  { %v8389_v9 = vpop.f32.mrb[52].mxu1  ;;  %v8349_v57 = vadd.f32 %v8348_v8, %v19024_v50  ;;  %v8350_v14 = vpop.f32.mrb[53].mxu0  ;;  %v17359_v50 = vld [vmem:[#allocation10 + $0xd60] ss:$24 sps:$4 sm:$0xff]   ;;  %v18343_v8 = vld [vmem:[#allocation9 + $0x8] sm:$0xff] }
 0x503   :  { %v8391_v5 = vpop.f32.mrb[53].mxu1  ;;  %v8351_v13 = vadd.f32 %v8350_v14, %v19026_v58  ;;  %v8352_v39 = vpop.f32.mrb[54].mxu0  ;;  %8653 = vmatpush1.bf16.msra.mxu0 %v17347_v2  ;;  %v17362_v58 = vld [vmem:[#allocation10 + $0x1060] ss:$24 sps:$4 sm:$0xff]  }
 0x504   :  { %v8393_v17 = vpop.f32.mrb[54].mxu1  ;;  %8694 = vmatpush1.bf16.msra.mxu1 %v17350_v7  ;;  %v19034_v21 = vadd.f32 %v8389_v9, %v8349_v57  ;;  %v8353_v22 = vpop.f32.mrb[55].mxu0  ;;  %8654 = vmatprep.subr.bf16.mxu0 %v17355_v4  ;;  %v17413_v2 = vld [vmem:[#allocation10 + $0x2400] ss:$24 sps:$4 sm:$0xff]   ;;  %v17421_v4 = vld [vmem:[#allocation10 + $0x2434] ss:$24 sps:$4 sm:$0xff]   ;;  %v19038_v9 = vpack.c.bf16 %v18343_v8, %v18343_v8 }
 0x505   :  { %v8394_v24 = vpop.f32.mrb[55].mxu1  ;;  %8695 = vmatprep.subr.bf16.mxu1 %v17358_v34  ;;  %v19036_v11 = vadd.f32 %v8391_v5, %v8351_v13  ;;  %v17416_v7 = vld [vmem:[#allocation10 + $0x2700] ss:$24 sps:$4 sm:$0xff]   ;;  %v17424_v34 = vld [vmem:[#allocation10 + $0x2734] ss:$24 sps:$4 sm:$0xff]  }
 0x506   :  { %v18344_v57 = vld [vmem:[#allocation9 + $0x18] sm:$0xff]  ;;  %v17419_v5 = vld [vmem:[#allocation10 + $0x2430] ss:$24 sps:$4 sm:$0xff]  }
 0x507   :  { %8655 = vmatpush1.bf16.msra.mxu0 %v17353_v15  ;;  %v19040_v14 = vpack.c.bf16 %v18344_v57, %v18344_v57  ;;  %v17422_v13 = vld [vmem:[#allocation10 + $0x2730] ss:$24 sps:$4 sm:$0xff]   ;;  %v17427_v39 = vld [vmem:[#allocation10 + $0x2464] ss:$24 sps:$4 sm:$0xff]   ;;  %v17425_v15 = vld [vmem:[#allocation10 + $0x2460] ss:$24 sps:$4 sm:$0xff]  }
 0x508   :  { %8696 = vmatpush1.bf16.msra.mxu1 %v17356_v18  ;;  %8656 = vmatprep.subr.bf16.mxu0 %v17361_v25  ;;  %v17430_v17 = vld [vmem:[#allocation10 + $0x2764] ss:$24 sps:$4 sm:$0xff]   ;;  %v17428_v18 = vld [vmem:[#allocation10 + $0x2760] ss:$24 sps:$4 sm:$0xff]   ;;  %v17431_v22 = vld [vmem:[#allocation10 + $0x2490] ss:$24 sps:$4 sm:$0xff]  }
 0x509   :  { %8697 = vmatprep.subr.bf16.mxu1 %v17364_v31  ;;  %v17434_v24 = vld [vmem:[#allocation10 + $0x2790] ss:$24 sps:$4 sm:$0xff]   ;;  %v17439_v25 = vld [vmem:[#allocation10 + $0x24c4] ss:$24 sps:$4 sm:$0xff]  }
 0x50a   :  { %v17442_v31 = vld [vmem:[#allocation10 + $0x27c4] ss:$24 sps:$4 sm:$0xff]  }
 0x50b   :  { %8657 = vmatpush1.bf16.msra.mxu0 %v17359_v50  ;;  %v17437_v50 = vld [vmem:[#allocation10 + $0x24c0] ss:$24 sps:$4 sm:$0xff]   ;;  %v17487_v8 = vld [vmem:[#allocation10 + $0x2644] ss:$24 sps:$4 sm:$0xff]  }
 0x50c   :  { %8698 = vmatpush1.bf16.msra.mxu1 %v17362_v58  ;;  %8658 = vmatprep.subr.bf16.mxu0 %v17367_v16  ;;  %v17440_v58 = vld [vmem:[#allocation10 + $0x27c0] ss:$24 sps:$4 sm:$0xff]   ;;  %v17445_v16 = vld [vmem:[#allocation10 + $0x24f4] ss:$24 sps:$4 sm:$0xff]   ;;  %v17490_v57 = vld [vmem:[#allocation10 + $0x2944] ss:$24 sps:$4 sm:$0xff]  }
 0x50d   :  { %8699 = vmatprep.subr.bf16.mxu1 %v17370_v20  ;;  %v17448_v20 = vld [vmem:[#allocation10 + $0x27f4] ss:$24 sps:$4 sm:$0xff]  }
 0x50f   :  { %8659 = vmatpush1.bf16.msra.mxu0 %v17365_v52  ;;  %v17443_v52 = vld [vmem:[#allocation10 + $0x24f0] ss:$24 sps:$4 sm:$0xff]  }
 0x510   :  { %8700 = vmatpush1.bf16.msra.mxu1 %v17368_v63  ;;  %8660 = vmatprep.subr.bf16.mxu0 %v17373_v46  ;;  %v17446_v63 = vld [vmem:[#allocation10 + $0x27f0] ss:$24 sps:$4 sm:$0xff]   ;;  %v17451_v46 = vld [vmem:[#allocation10 + $0x2524] ss:$24 sps:$4 sm:$0xff]  }
 0x511   :  { %8701 = vmatprep.subr.bf16.mxu1 %v17376_v49  ;;  %v17454_v49 = vld [vmem:[#allocation10 + $0x2824] ss:$24 sps:$4 sm:$0xff]  }
 0x513   :  { %8661 = vmatpush1.bf16.msra.mxu0 %v17371_v26 }
 0x514   :  { %8702 = vmatpush1.bf16.msra.mxu1 %v17374_v30  ;;  %8662 = vmatprep.subr.bf16.mxu0 %v17379_v44 }
 0x515   :  { %8703 = vmatprep.subr.bf16.mxu1 %v17382_v45 }
 0x517   :  { %8663 = vmatpush1.bf16.msra.mxu0 %v17377_v54 }
 0x518   :  { %8704 = vmatpush1.bf16.msra.mxu1 %v17380_v55  ;;  %8664 = vmatprep.subr.bf16.mxu0 %v17385_v37 }
 0x519   :  { %8705 = vmatprep.subr.bf16.mxu1 %v17388_v38 }
 0x51b   :  { %8665 = vmatpush1.bf16.msra.mxu0 %v17383_v40  ;;  %v17449_v40 = vld [vmem:[#allocation10 + $0x2520] ss:$24 sps:$4 sm:$0xff]  }
 0x51c   :  { %8706 = vmatpush1.bf16.msra.mxu1 %v17386_v62  ;;  %8666 = vmatprep.subr.bf16.mxu0 %v17391_v41  ;;  %v17452_v62 = vld [vmem:[#allocation10 + $0x2820] ss:$24 sps:$4 sm:$0xff]  }
 0x51d   :  { %8707 = vmatprep.subr.bf16.mxu1 %v17394_v28 }
 0x51f   :  { %8667 = vmatpush1.bf16.msra.mxu0 %v17389_v42 }
 0x520   :  { %8708 = vmatpush1.bf16.msra.mxu1 %v17392_v43  ;;  %8668 = vmatprep.subr.bf16.mxu0 %v17397_v3  ;;  %v17457_v43 = vld [vmem:[#allocation10 + $0x2554] ss:$24 sps:$4 sm:$0xff]  }
 0x521   :  { %8709 = vmatprep.subr.bf16.mxu1 %v17400_v47  ;;  %v17460_v3 = vld [vmem:[#allocation10 + $0x2854] ss:$24 sps:$4 sm:$0xff]  }
 0x523   :  { %8669 = vmatpush1.bf16.msra.mxu0 %v17395_v10  ;;  %v17463_v10 = vld [vmem:[#allocation10 + $0x2584] ss:$24 sps:$4 sm:$0xff]  }
 0x524   :  { %8710 = vmatpush1.bf16.msra.mxu1 %v17398_v48  ;;  %8670 = vmatprep.subr.bf16.mxu0 %v17403_v53  ;;  %v17466_v48 = vld [vmem:[#allocation10 + $0x2884] ss:$24 sps:$4 sm:$0xff]   ;;  %v17461_v53 = vld [vmem:[#allocation10 + $0x2580] ss:$24 sps:$4 sm:$0xff]  }
 0x525   :  { %8711 = vmatprep.subr.bf16.mxu1 %v17406_v27  ;;  %v17464_v27 = vld [vmem:[#allocation10 + $0x2880] ss:$24 sps:$4 sm:$0xff]  }
 0x527   :  { %8671 = vmatpush1.bf16.msra.mxu0 %v17401_v51  ;;  %v17469_v51 = vld [vmem:[#allocation10 + $0x25b4] ss:$24 sps:$4 sm:$0xff]  }
 0x528   :  { %8712 = vmatpush1.bf16.msra.mxu1 %v17404_v61  ;;  %8672 = vmatprep.subr.bf16.mxu0 %v17409_v0  ;;  %v17472_v61 = vld [vmem:[#allocation10 + $0x28b4] ss:$24 sps:$4 sm:$0xff]   ;;  %v17467_v0 = vld [vmem:[#allocation10 + $0x25b0] ss:$24 sps:$4 sm:$0xff]  }
 0x529   :  { %8713 = vmatprep.subr.bf16.mxu1 %v17412_v56  ;;  %v17470_v56 = vld [vmem:[#allocation10 + $0x28b0] ss:$24 sps:$4 sm:$0xff]  }
 0x52b   :  { %8673 = vmatpush1.bf16.msra.mxu0 %v17407_v59  ;;  %v17475_v59 = vld [vmem:[#allocation10 + $0x25e4] ss:$24 sps:$4 sm:$0xff]  }
 0x52c   :  { %8714 = vmatpush1.bf16.msra.mxu1 %v17410_v1  ;;  %12192 = vmatprep.subr.bf16.mxu0 %v17415_v35  ;;  %v17478_v1 = vld [vmem:[#allocation10 + $0x28e4] ss:$24 sps:$4 sm:$0xff]   ;;  %v17473_v35 = vld [vmem:[#allocation10 + $0x25e0] ss:$24 sps:$4 sm:$0xff]  }
 0x52d   :  { %12233 = vmatprep.subr.bf16.mxu1 %v17418_v60  ;;  %v17476_v60 = vld [vmem:[#allocation10 + $0x28e0] ss:$24 sps:$4 sm:$0xff]  }
 0x52e   :  { %8675 = vmatmul.mubr.bf16.vlgmr.msra.gmra.mrb[68].mxu0 %v18974_v29  ;;  %v17433_v29 = vld [vmem:[#allocation10 + $0x2494] ss:$24 sps:$4 sm:$0xff]  }
 0x52f   :  { %8716 = vmatmul.mubr.bf16.vlgmr.msra.gmra.mrb[68].mxu1 %v18976_v36  ;;  %12193 = vmatpush1.bf16.msra.mxu0 %v17413_v2  ;;  %v17436_v36 = vld [vmem:[#allocation10 + $0x2794] ss:$24 sps:$4 sm:$0xff]  }
 0x530   :  { %12234 = vmatpush1.bf16.msra.mxu1 %v17416_v7  ;;  %12194 = vmatprep.subr.bf16.mxu0 %v17421_v4  ;;  %v17481_v2 = vld [vmem:[#allocation10 + $0x2614] ss:$24 sps:$4 sm:$0xff]   ;;  %v17479_v4 = vld [vmem:[#allocation10 + $0x2610] ss:$24 sps:$4 sm:$0xff]  }
 0x531   :  { %12235 = vmatprep.subr.bf16.mxu1 %v17424_v34  ;;  %12224 = vmatprep.mubr.bf16.mxu0 %v19038_v9  ;;  %v17484_v7 = vld [vmem:[#allocation10 + $0x2914] ss:$24 sps:$4 sm:$0xff]   ;;  %v17482_v34 = vld [vmem:[#allocation10 + $0x2910] ss:$24 sps:$4 sm:$0xff]  }
 0x532   :  { %12265 = vmatprep.mubr.bf16.mxu1 %v19040_v14 }
 0x533   :  { %12195 = vmatpush1.bf16.msra.mxu0 %v17419_v5  ;;  %v17485_v5 = vld [vmem:[#allocation10 + $0x2640] ss:$24 sps:$4 sm:$0xff]  }
 0x534   :  { %12236 = vmatpush1.bf16.msra.mxu1 %v17422_v13  ;;  %12196 = vmatprep.subr.bf16.mxu0 %v17427_v39  ;;  %v17488_v13 = vld [vmem:[#allocation10 + $0x2940] ss:$24 sps:$4 sm:$0xff]   ;;  %v17493_v39 = vld [vmem:[#allocation10 + $0x2674] ss:$24 sps:$4 sm:$0xff]  }
 0x535   :  { %12237 = vmatprep.subr.bf16.mxu1 %v17430_v17  ;;  %v17496_v17 = vld [vmem:[#allocation10 + $0x2974] ss:$24 sps:$4 sm:$0xff]  }
 0x537   :  { %12197 = vmatpush1.bf16.msra.mxu0 %v17425_v15  ;;  %v17491_v15 = vld [vmem:[#allocation10 + $0x2670] ss:$24 sps:$4 sm:$0xff]  }
 0x538   :  { %12238 = vmatpush1.bf16.msra.mxu1 %v17428_v18  ;;  %12198 = vmatprep.subr.bf16.mxu0 %v17433_v29  ;;  %v17494_v18 = vld [vmem:[#allocation10 + $0x2970] ss:$24 sps:$4 sm:$0xff]   ;;  %v17499_v29 = vld [vmem:[#allocation10 + $0x26a4] ss:$24 sps:$4 sm:$0xff]  }
 0x539   :  { %12239 = vmatprep.subr.bf16.mxu1 %v17436_v36  ;;  %v17502_v36 = vld [vmem:[#allocation10 + $0x29a4] ss:$24 sps:$4 sm:$0xff]  }
 0x53b   :  { %12199 = vmatpush1.bf16.msra.mxu0 %v17431_v22  ;;  %v17497_v22 = vld [vmem:[#allocation10 + $0x26a0] ss:$24 sps:$4 sm:$0xff]  }
 0x53c   :  { %12240 = vmatpush1.bf16.msra.mxu1 %v17434_v24  ;;  %12200 = vmatprep.subr.bf16.mxu0 %v17439_v25  ;;  %v17500_v24 = vld [vmem:[#allocation10 + $0x29a0] ss:$24 sps:$4 sm:$0xff]   ;;  %v17505_v25 = vld [vmem:[#allocation10 + $0x26d4] ss:$24 sps:$4 sm:$0xff]  }
 0x53d   :  { %12241 = vmatprep.subr.bf16.mxu1 %v17442_v31  ;;  %v17508_v31 = vld [vmem:[#allocation10 + $0x29d4] ss:$24 sps:$4 sm:$0xff]  }
 0x53f   :  { %12201 = vmatpush1.bf16.msra.mxu0 %v17437_v50  ;;  %v17503_v50 = vld [vmem:[#allocation10 + $0x26d0] ss:$24 sps:$4 sm:$0xff]  }
 0x540   :  { %12242 = vmatpush1.bf16.msra.mxu1 %v17440_v58  ;;  %12202 = vmatprep.subr.bf16.mxu0 %v17445_v16  ;;  %v17506_v58 = vld [vmem:[#allocation10 + $0x29d0] ss:$24 sps:$4 sm:$0xff]   ;;  %v17511_v16 = vld [vmem:[#allocation10 + $0x2a04] ss:$24 sps:$4 sm:$0xff]  }
 0x541   :  { %12243 = vmatprep.subr.bf16.mxu1 %v17448_v20  ;;  %v8430_v26 = vpop.f32.mrb[56].mxu0  ;;  %v17514_v20 = vld [vmem:[#allocation10 + $0x2d04] ss:$24 sps:$4 sm:$0xff]  }
 0x542   :  { %v8471_v30 = vpop.f32.mrb[56].mxu1  ;;  %v8431_v44 = vadd.f32 %v8430_v26, %v19034_v21  ;;  %v8432_v45 = vpop.f32.mrb[57].mxu0  ;;  %v17455_v21 = vld [vmem:[#allocation10 + $0x2550] ss:$24 sps:$4 sm:$0xff]  }
 0x543   :  { %v8473_v54 = vpop.f32.mrb[57].mxu1  ;;  %v8433_v55 = vadd.f32 %v8432_v45, %v19036_v11  ;;  %v8434_v37 = vpop.f32.mrb[58].mxu0  ;;  %12203 = vmatpush1.bf16.msra.mxu0 %v17443_v52  ;;  %v17458_v11 = vld [vmem:[#allocation10 + $0x2850] ss:$24 sps:$4 sm:$0xff]   ;;  %v17512_v45 = vld [vmem:[#allocation10 + $0x2d00] ss:$24 sps:$4 sm:$0xff]  }
 0x544   :  { %v8475_v38 = vpop.f32.mrb[58].mxu1  ;;  %12244 = vmatpush1.bf16.msra.mxu1 %v17446_v63  ;;  %v19048_v41 = vadd.f32 %v8471_v30, %v8431_v44  ;;  %v8435_v28 = vpop.f32.mrb[59].mxu0  ;;  %12204 = vmatprep.subr.bf16.mxu0 %v17451_v46  ;;  %v152_v52 = vld [vmem:[#allocation9 + $0x28] sm:$0xff]  ;;  %v154_v63 = vld [vmem:[#allocation9 + $0x38] sm:$0xff]  ;;  %v18345_v46 = vld [vmem:[#allocation9] sm:$0xff] }
 0x545   :  { %v8476_v42 = vpop.f32.mrb[59].mxu1  ;;  %12245 = vmatprep.subr.bf16.mxu1 %v17454_v49  ;;  %v19050_v47 = vadd.f32 %v8473_v54, %v8433_v55  ;;  %v19052_v49 = vpack.c.bf16 %v18345_v46, %v18345_v46  ;;  %v18346_v26 = vld [vmem:[#allocation9 + $0x10] sm:$0xff]  ;;  %v17509_v44 = vld [vmem:[#allocation10 + $0x2a00] ss:$24 sps:$4 sm:$0xff]   ;;  %v19056_v37 = vpack.c.bf16 %v152_v52, %v152_v52  ;;  %v19058_v38 = vpack.c.bf16 %v154_v63, %v154_v63  ;;  %v17523_v28 = vld [vmem:[#allocation10 + $0x2a64] ss:$24 sps:$4 sm:$0xff]  }
 0x546   :  { %v19054_v30 = vpack.c.bf16 %v18346_v26, %v18346_v26  ;;  %v17517_v54 = vld [vmem:[#allocation10 + $0x2a34] ss:$24 sps:$4 sm:$0xff]   ;;  %v17526_v42 = vld [vmem:[#allocation10 + $0x2d64] ss:$24 sps:$4 sm:$0xff]   ;;  %v17563_v52 = vld [vmem:[#allocation10 + $0x2bb0] ss:$24 sps:$4 sm:$0xff]  }
 0x547   :  { %12205 = vmatpush1.bf16.msra.mxu0 %v17449_v40  ;;  %v17520_v55 = vld [vmem:[#allocation10 + $0x2d34] ss:$24 sps:$4 sm:$0xff]   ;;  %v17515_v40 = vld [vmem:[#allocation10 + $0x2a30] ss:$24 sps:$4 sm:$0xff]   ;;  %v17571_v46 = vld [vmem:[#allocation10 + $0x2be4] ss:$24 sps:$4 sm:$0xff]  }
 0x548   :  { %12246 = vmatpush1.bf16.msra.mxu1 %v17452_v62  ;;  %12206 = vmatprep.subr.bf16.mxu0 %v17457_v43  ;;  %v17518_v62 = vld [vmem:[#allocation10 + $0x2d30] ss:$24 sps:$4 sm:$0xff]   ;;  %v17521_v43 = vld [vmem:[#allocation10 + $0x2a60] ss:$24 sps:$4 sm:$0xff]   ;;  %v17574_v26 = vld [vmem:[#allocation10 + $0x2ee4] ss:$24 sps:$4 sm:$0xff]  }
 0x549   :  { %12247 = vmatprep.subr.bf16.mxu1 %v17460_v3  ;;  %v17524_v3 = vld [vmem:[#allocation10 + $0x2d60] ss:$24 sps:$4 sm:$0xff]   ;;  %v17566_v63 = vld [vmem:[#allocation10 + $0x2eb0] ss:$24 sps:$4 sm:$0xff]  }
 0x54b   :  { %12207 = vmatpush1.bf16.msra.mxu0 %v17455_v21  ;;  %v17529_v21 = vld [vmem:[#allocation10 + $0x2a94] ss:$24 sps:$4 sm:$0xff]  }
 0x54c   :  { %12248 = vmatpush1.bf16.msra.mxu1 %v17458_v11  ;;  %12208 = vmatprep.subr.bf16.mxu0 %v17463_v10  ;;  %v17532_v11 = vld [vmem:[#allocation10 + $0x2d94] ss:$24 sps:$4 sm:$0xff]   ;;  %v17527_v10 = vld [vmem:[#allocation10 + $0x2a90] ss:$24 sps:$4 sm:$0xff]  }
 0x54d   :  { %12249 = vmatprep.subr.bf16.mxu1 %v17466_v48  ;;  %v17530_v48 = vld [vmem:[#allocation10 + $0x2d90] ss:$24 sps:$4 sm:$0xff]  }
 0x54f   :  { %12209 = vmatpush1.bf16.msra.mxu0 %v17461_v53  ;;  %v17535_v53 = vld [vmem:[#allocation10 + $0x2ac4] ss:$24 sps:$4 sm:$0xff]  }
 0x550   :  { %12250 = vmatpush1.bf16.msra.mxu1 %v17464_v27  ;;  %12210 = vmatprep.subr.bf16.mxu0 %v17469_v51  ;;  %v17538_v27 = vld [vmem:[#allocation10 + $0x2dc4] ss:$24 sps:$4 sm:$0xff]   ;;  %v17533_v51 = vld [vmem:[#allocation10 + $0x2ac0] ss:$24 sps:$4 sm:$0xff]  }
 0x551   :  { %12251 = vmatprep.subr.bf16.mxu1 %v17472_v61  ;;  %v17536_v61 = vld [vmem:[#allocation10 + $0x2dc0] ss:$24 sps:$4 sm:$0xff]  }
 0x553   :  { %12211 = vmatpush1.bf16.msra.mxu0 %v17467_v0  ;;  %v17541_v0 = vld [vmem:[#allocation10 + $0x2af4] ss:$24 sps:$4 sm:$0xff]  }
 0x554   :  { %12252 = vmatpush1.bf16.msra.mxu1 %v17470_v56  ;;  %12212 = vmatprep.subr.bf16.mxu0 %v17475_v59  ;;  %v17544_v56 = vld [vmem:[#allocation10 + $0x2df4] ss:$24 sps:$4 sm:$0xff]   ;;  %v17539_v59 = vld [vmem:[#allocation10 + $0x2af0] ss:$24 sps:$4 sm:$0xff]  }
 0x555   :  { %12253 = vmatprep.subr.bf16.mxu1 %v17478_v1  ;;  %v17542_v1 = vld [vmem:[#allocation10 + $0x2df0] ss:$24 sps:$4 sm:$0xff]  }
 0x557   :  { %12213 = vmatpush1.bf16.msra.mxu0 %v17473_v35  ;;  %v17547_v35 = vld [vmem:[#allocation10 + $0x2b24] ss:$24 sps:$4 sm:$0xff]  }
 0x558   :  { %12254 = vmatpush1.bf16.msra.mxu1 %v17476_v60  ;;  %12214 = vmatprep.subr.bf16.mxu0 %v17481_v2  ;;  %v17550_v60 = vld [vmem:[#allocation10 + $0x2e24] ss:$24 sps:$4 sm:$0xff]  }
 0x559   :  { %12255 = vmatprep.subr.bf16.mxu1 %v17484_v7 }
 0x55b   :  { %12215 = vmatpush1.bf16.msra.mxu0 %v17479_v4 }
 0x55c   :  { %12256 = vmatpush1.bf16.msra.mxu1 %v17482_v34  ;;  %12216 = vmatprep.subr.bf16.mxu0 %v17487_v8 }
 0x55d   :  { %12257 = vmatprep.subr.bf16.mxu1 %v17490_v57 }
 0x55f   :  { %12217 = vmatpush1.bf16.msra.mxu0 %v17485_v5 }
 0x560   :  { %12258 = vmatpush1.bf16.msra.mxu1 %v17488_v13  ;;  %12218 = vmatprep.subr.bf16.mxu0 %v17493_v39  ;;  %v17545_v39 = vld [vmem:[#allocation10 + $0x2b20] ss:$24 sps:$4 sm:$0xff]  }
 0x561   :  { %12259 = vmatprep.subr.bf16.mxu1 %v17496_v17  ;;  %v17548_v17 = vld [vmem:[#allocation10 + $0x2e20] ss:$24 sps:$4 sm:$0xff]  }
 0x563   :  { %12219 = vmatpush1.bf16.msra.mxu0 %v17491_v15 }
 0x564   :  { %12260 = vmatpush1.bf16.msra.mxu1 %v17494_v18  ;;  %12220 = vmatprep.subr.bf16.mxu0 %v17499_v29 }
 0x565   :  { %12261 = vmatprep.subr.bf16.mxu1 %v17502_v36  ;;  %v17553_v36 = vld [vmem:[#allocation10 + $0x2b54] ss:$24 sps:$4 sm:$0xff]  }
 0x567   :  { %12221 = vmatpush1.bf16.msra.mxu0 %v17497_v22  ;;  %v17556_v22 = vld [vmem:[#allocation10 + $0x2e54] ss:$24 sps:$4 sm:$0xff]  }
 0x568   :  { %12262 = vmatpush1.bf16.msra.mxu1 %v17500_v24  ;;  %12222 = vmatprep.subr.bf16.mxu0 %v17505_v25  ;;  %v17559_v25 = vld [vmem:[#allocation10 + $0x2b84] ss:$24 sps:$4 sm:$0xff]  }
 0x569   :  { %12263 = vmatprep.subr.bf16.mxu1 %v17508_v31  ;;  %v17562_v31 = vld [vmem:[#allocation10 + $0x2e84] ss:$24 sps:$4 sm:$0xff]  }
 0x56b   :  { %12223 = vmatpush1.bf16.msra.mxu0 %v17503_v50  ;;  %v17557_v50 = vld [vmem:[#allocation10 + $0x2b80] ss:$24 sps:$4 sm:$0xff]  }
 0x56c   :  { %12264 = vmatpush1.bf16.msra.mxu1 %v17506_v58  ;;  %12274 = vmatprep.subr.bf16.mxu0 %v17511_v16  ;;  %v17560_v58 = vld [vmem:[#allocation10 + $0x2e80] ss:$24 sps:$4 sm:$0xff]   ;;  %v17565_v16 = vld [vmem:[#allocation10 + $0x2bb4] ss:$24 sps:$4 sm:$0xff]  }
 0x56d   :  { %12315 = vmatprep.subr.bf16.mxu1 %v17514_v20  ;;  %v17568_v20 = vld [vmem:[#allocation10 + $0x2eb4] ss:$24 sps:$4 sm:$0xff]  }
 0x56e   :  { %12225 = vmatmul.mubr.bf16.vlgmr.msra.gmra.mrb[72].mxu0 %v19052_v49 }
 0x56f   :  { %12266 = vmatmul.mubr.bf16.vlgmr.msra.gmra.mrb[72].mxu1 %v19054_v30  ;;  %12275 = vmatpush1.bf16.msra.mxu0 %v17509_v44  ;;  %v17569_v44 = vld [vmem:[#allocation10 + $0x2be0] ss:$24 sps:$4 sm:$0xff]  }
 0x570   :  { %12316 = vmatpush1.bf16.msra.mxu1 %v17512_v45  ;;  %12276 = vmatprep.subr.bf16.mxu0 %v17517_v54  ;;  %v17572_v45 = vld [vmem:[#allocation10 + $0x2ee0] ss:$24 sps:$4 sm:$0xff]   ;;  %v17577_v54 = vld [vmem:[#allocation10 + $0x2c14] ss:$24 sps:$4 sm:$0xff]  }
 0x571   :  { %12317 = vmatprep.subr.bf16.mxu1 %v17520_v55  ;;  %12306 = vmatprep.mubr.bf16.mxu0 %v19056_v37  ;;  %v17580_v55 = vld [vmem:[#allocation10 + $0x2f14] ss:$24 sps:$4 sm:$0xff]  }
 0x572   :  { %12347 = vmatprep.mubr.bf16.mxu1 %v19058_v38 }
 0x573   :  { %12277 = vmatpush1.bf16.msra.mxu0 %v17515_v40  ;;  %v17575_v40 = vld [vmem:[#allocation10 + $0x2c10] ss:$24 sps:$4 sm:$0xff]  }
 0x574   :  { %12318 = vmatpush1.bf16.msra.mxu1 %v17518_v62  ;;  %12278 = vmatprep.subr.bf16.mxu0 %v17523_v28  ;;  %v17578_v62 = vld [vmem:[#allocation10 + $0x2f10] ss:$24 sps:$4 sm:$0xff]   ;;  %v17583_v28 = vld [vmem:[#allocation10 + $0x2c44] ss:$24 sps:$4 sm:$0xff]  }
 0x575   :  { %12319 = vmatprep.subr.bf16.mxu1 %v17526_v42  ;;  %v17586_v42 = vld [vmem:[#allocation10 + $0x2f44] ss:$24 sps:$4 sm:$0xff]  }
 0x577   :  { %12279 = vmatpush1.bf16.msra.mxu0 %v17521_v43  ;;  %v17581_v43 = vld [vmem:[#allocation10 + $0x2c40] ss:$24 sps:$4 sm:$0xff]  }
 0x578   :  { %12320 = vmatpush1.bf16.msra.mxu1 %v17524_v3  ;;  %12280 = vmatprep.subr.bf16.mxu0 %v17529_v21  ;;  %v17584_v3 = vld [vmem:[#allocation10 + $0x2f40] ss:$24 sps:$4 sm:$0xff]   ;;  %v17589_v21 = vld [vmem:[#allocation10 + $0x2c74] ss:$24 sps:$4 sm:$0xff]  }
 0x579   :  { %12321 = vmatprep.subr.bf16.mxu1 %v17532_v11  ;;  %v17592_v11 = vld [vmem:[#allocation10 + $0x2f74] ss:$24 sps:$4 sm:$0xff]  }
 0x57b   :  { %12281 = vmatpush1.bf16.msra.mxu0 %v17527_v10  ;;  %v17587_v10 = vld [vmem:[#allocation10 + $0x2c70] ss:$24 sps:$4 sm:$0xff]  }
 0x57c   :  { %12322 = vmatpush1.bf16.msra.mxu1 %v17530_v48  ;;  %12282 = vmatprep.subr.bf16.mxu0 %v17535_v53  ;;  %v17590_v48 = vld [vmem:[#allocation10 + $0x2f70] ss:$24 sps:$4 sm:$0xff]   ;;  %v17595_v53 = vld [vmem:[#allocation10 + $0x2ca4] ss:$24 sps:$4 sm:$0xff]  }
 0x57d   :  { %12323 = vmatprep.subr.bf16.mxu1 %v17538_v27  ;;  %v17598_v27 = vld [vmem:[#allocation10 + $0x2fa4] ss:$24 sps:$4 sm:$0xff]  }
 0x57f   :  { %12283 = vmatpush1.bf16.msra.mxu0 %v17533_v51  ;;  %v17593_v51 = vld [vmem:[#allocation10 + $0x2ca0] ss:$24 sps:$4 sm:$0xff]  }
 0x580   :  { %12324 = vmatpush1.bf16.msra.mxu1 %v17536_v61  ;;  %12284 = vmatprep.subr.bf16.mxu0 %v17541_v0  ;;  %v17596_v61 = vld [vmem:[#allocation10 + $0x2fa0] ss:$24 sps:$4 sm:$0xff]   ;;  %v17601_v0 = vld [vmem:[#allocation10 + $0x2cd4] ss:$24 sps:$4 sm:$0xff]  }
 0x581   :  { %12325 = vmatprep.subr.bf16.mxu1 %v17544_v56  ;;  %v8512_v2 = vpop.f32.mrb[60].mxu0  ;;  %v17604_v56 = vld [vmem:[#allocation10 + $0x2fd4] ss:$24 sps:$4 sm:$0xff]  }
 0x582   :  { %v8553_v7 = vpop.f32.mrb[60].mxu1  ;;  %v8513_v4 = vadd.f32 %v8512_v2, %v18984_v19  ;;  %v8514_v34 = vpop.f32.mrb[61].mxu0  ;;  %v17551_v19 = vld [vmem:[#allocation10 + $0x2b50] ss:$24 sps:$4 sm:$0xff]   ;;  %v17610_v2 = vld [vmem:[#allocation10 + $0x3304] ss:$24 sps:$4 sm:$0xff]  }
 0x583   :  { %v8555_v8 = vpop.f32.mrb[61].mxu1  ;;  %v8515_v57 = vadd.f32 %v8514_v34, %v18986_v32  ;;  %v8516_v5 = vpop.f32.mrb[62].mxu0  ;;  %12285 = vmatpush1.bf16.msra.mxu0 %v17539_v59  ;;  %v17554_v32 = vld [vmem:[#allocation10 + $0x2e50] ss:$24 sps:$4 sm:$0xff]  }
 0x584   :  { %v8557_v13 = vpop.f32.mrb[62].mxu1  ;;  %12326 = vmatpush1.bf16.msra.mxu1 %v17542_v1  ;;  %v19066_v15 = vadd.f32 %v8553_v7, %v8513_v4  ;;  %v8517_v18 = vpop.f32.mrb[63].mxu0  ;;  %12286 = vmatprep.subr.bf16.mxu0 %v17547_v35  ;;  %v153_v59 = vld [vmem:[#allocation9 + $0x30] sm:$0xff]  ;;  %v156_v7 = vld [vmem:[#allocation9 + $0x48] sm:$0xff]  ;;  %v18347_v4 = vld [vmem:[#allocation9 + $0x20] sm:$0xff] }
 0x585   :  { %v8558_v29 = vpop.f32.mrb[63].mxu1  ;;  %12327 = vmatprep.subr.bf16.mxu1 %v17550_v60  ;;  %v19068_v24 = vadd.f32 %v8555_v8, %v8515_v57  ;;  %v17599_v1 = vld [vmem:[#allocation10 + $0x2cd0] ss:$24 sps:$4 sm:$0xff]   ;;  %v17607_v60 = vld [vmem:[#allocation10 + $0x3004] ss:$24 sps:$4 sm:$0xff]   ;;  %v19070_v34 = vpack.c.bf16 %v18347_v4, %v18347_v4  ;;  %v19072_v8 = vpack.c.bf16 %v153_v59, %v153_v59  ;;  %v19074_v18 = vpack.c.bf16 %v156_v7, %v156_v7 }
 0x586   :  { %v17602_v35 = vld [vmem:[#allocation10 + $0x2fd0] ss:$24 sps:$4 sm:$0xff]   ;;  %v158_v57 = vld [vmem:[#allocation9 + $0x58] sm:$0xff]  ;;  %v17652_v59 = vld [vmem:[#allocation10 + $0x3454] ss:$24 sps:$4 sm:$0xff]  }
 0x587   :  { %12287 = vmatpush1.bf16.msra.mxu0 %v17545_v39  ;;  %v17605_v5 = vld [vmem:[#allocation10 + $0x3000] ss:$24 sps:$4 sm:$0xff]   ;;  %v17613_v39 = vld [vmem:[#allocation10 + $0x3034] ss:$24 sps:$4 sm:$0xff]   ;;  %v19076_v29 = vpack.c.bf16 %v158_v57, %v158_v57 }
 0x588   :  { %12328 = vmatpush1.bf16.msra.mxu1 %v17548_v17  ;;  %12288 = vmatprep.subr.bf16.mxu0 %v17553_v36  ;;  %v17608_v13 = vld [vmem:[#allocation10 + $0x3300] ss:$24 sps:$4 sm:$0xff]   ;;  %v17616_v17 = vld [vmem:[#allocation10 + $0x3334] ss:$24 sps:$4 sm:$0xff]   ;;  %v17611_v36 = vld [vmem:[#allocation10 + $0x3030] ss:$24 sps:$4 sm:$0xff]  }
 0x589   :  { %12329 = vmatprep.subr.bf16.mxu1 %v17556_v22  ;;  %v17614_v22 = vld [vmem:[#allocation10 + $0x3330] ss:$24 sps:$4 sm:$0xff]   ;;  %v17656_v7 = vld [vmem:[#allocation10 + $0x3480] ss:$24 sps:$4 sm:$0xff]   ;;  %v17661_v4 = vld [vmem:[#allocation10 + $0x31b4] ss:$24 sps:$4 sm:$0xff]  }
 0x58a   :  { %v17664_v57 = vld [vmem:[#allocation10 + $0x34b4] ss:$24 sps:$4 sm:$0xff]  }
 0x58b   :  { %12289 = vmatpush1.bf16.msra.mxu0 %v17551_v19  ;;  %v17619_v19 = vld [vmem:[#allocation10 + $0x3064] ss:$24 sps:$4 sm:$0xff]  }
 0x58c   :  { %12330 = vmatpush1.bf16.msra.mxu1 %v17554_v32  ;;  %12290 = vmatprep.subr.bf16.mxu0 %v17559_v25  ;;  %v17622_v32 = vld [vmem:[#allocation10 + $0x3364] ss:$24 sps:$4 sm:$0xff]   ;;  %v17617_v25 = vld [vmem:[#allocation10 + $0x3060] ss:$24 sps:$4 sm:$0xff]  }
 0x58d   :  { %12331 = vmatprep.subr.bf16.mxu1 %v17562_v31  ;;  %v17620_v31 = vld [vmem:[#allocation10 + $0x3360] ss:$24 sps:$4 sm:$0xff]  }
 0x58f   :  { %12291 = vmatpush1.bf16.msra.mxu0 %v17557_v50  ;;  %v17625_v50 = vld [vmem:[#allocation10 + $0x3094] ss:$24 sps:$4 sm:$0xff]  }
 0x590   :  { %12332 = vmatpush1.bf16.msra.mxu1 %v17560_v58  ;;  %12292 = vmatprep.subr.bf16.mxu0 %v17565_v16  ;;  %v17628_v58 = vld [vmem:[#allocation10 + $0x3394] ss:$24 sps:$4 sm:$0xff]   ;;  %v17623_v16 = vld [vmem:[#allocation10 + $0x3090] ss:$24 sps:$4 sm:$0xff]  }
 0x591   :  { %12333 = vmatprep.subr.bf16.mxu1 %v17568_v20  ;;  %v17626_v20 = vld [vmem:[#allocation10 + $0x3390] ss:$24 sps:$4 sm:$0xff]  }
 0x593   :  { %12293 = vmatpush1.bf16.msra.mxu0 %v17563_v52  ;;  %v17631_v52 = vld [vmem:[#allocation10 + $0x30c4] ss:$24 sps:$4 sm:$0xff]  }
 0x594   :  { %12334 = vmatpush1.bf16.msra.mxu1 %v17566_v63  ;;  %12294 = vmatprep.subr.bf16.mxu0 %v17571_v46  ;;  %v17634_v63 = vld [vmem:[#allocation10 + $0x33c4] ss:$24 sps:$4 sm:$0xff]   ;;  %v17629_v46 = vld [vmem:[#allocation10 + $0x30c0] ss:$24 sps:$4 sm:$0xff]  }
 0x595   :  { %12335 = vmatprep.subr.bf16.mxu1 %v17574_v26  ;;  %v17632_v26 = vld [vmem:[#allocation10 + $0x33c0] ss:$24 sps:$4 sm:$0xff]  }
 0x597   :  { %12295 = vmatpush1.bf16.msra.mxu0 %v17569_v44  ;;  %v17637_v44 = vld [vmem:[#allocation10 + $0x30f4] ss:$24 sps:$4 sm:$0xff]  }
 0x598   :  { %12336 = vmatpush1.bf16.msra.mxu1 %v17572_v45  ;;  %12296 = vmatprep.subr.bf16.mxu0 %v17577_v54  ;;  %v17640_v45 = vld [vmem:[#allocation10 + $0x33f4] ss:$24 sps:$4 sm:$0xff]   ;;  %v17635_v54 = vld [vmem:[#allocation10 + $0x30f0] ss:$24 sps:$4 sm:$0xff]  }
 0x599   :  { %12337 = vmatprep.subr.bf16.mxu1 %v17580_v55  ;;  %v17638_v55 = vld [vmem:[#allocation10 + $0x33f0] ss:$24 sps:$4 sm:$0xff]  }
 0x59b   :  { %12297 = vmatpush1.bf16.msra.mxu0 %v17575_v40  ;;  %v17643_v40 = vld [vmem:[#allocation10 + $0x3124] ss:$24 sps:$4 sm:$0xff]  }
 0x59c   :  { %12338 = vmatpush1.bf16.msra.mxu1 %v17578_v62  ;;  %12298 = vmatprep.subr.bf16.mxu0 %v17583_v28  ;;  %v17646_v62 = vld [vmem:[#allocation10 + $0x3424] ss:$24 sps:$4 sm:$0xff]  }
 0x59d   :  { %12339 = vmatprep.subr.bf16.mxu1 %v17586_v42 }
 0x59f   :  { %12299 = vmatpush1.bf16.msra.mxu0 %v17581_v43 }
 0x5a0   :  { %12340 = vmatpush1.bf16.msra.mxu1 %v17584_v3  ;;  %12300 = vmatprep.subr.bf16.mxu0 %v17589_v21 }
 0x5a1   :  { %12341 = vmatprep.subr.bf16.mxu1 %v17592_v11 }
 0x5a3   :  { %12301 = vmatpush1.bf16.msra.mxu0 %v17587_v10 }
 0x5a4   :  { %12342 = vmatpush1.bf16.msra.mxu1 %v17590_v48  ;;  %12302 = vmatprep.subr.bf16.mxu0 %v17595_v53  ;;  %v17641_v53 = vld [vmem:[#allocation10 + $0x3120] ss:$24 sps:$4 sm:$0xff]  }
 0x5a5   :  { %12343 = vmatprep.subr.bf16.mxu1 %v17598_v27  ;;  %v17644_v27 = vld [vmem:[#allocation10 + $0x3420] ss:$24 sps:$4 sm:$0xff]  }
 0x5a7   :  { %12303 = vmatpush1.bf16.msra.mxu0 %v17593_v51 }
 0x5a8   :  { %12344 = vmatpush1.bf16.msra.mxu1 %v17596_v61  ;;  %12304 = vmatprep.subr.bf16.mxu0 %v17601_v0 }
 0x5a9   :  { %12345 = vmatprep.subr.bf16.mxu1 %v17604_v56  ;;  %v17649_v56 = vld [vmem:[#allocation10 + $0x3154] ss:$24 sps:$4 sm:$0xff]  }
 0x5ab   :  { %12305 = vmatpush1.bf16.msra.mxu0 %v17599_v1 }
 0x5ac   :  { %12346 = vmatpush1.bf16.msra.mxu1 %v17602_v35  ;;  %12356 = vmatprep.subr.bf16.mxu0 %v17607_v60  ;;  %v17655_v35 = vld [vmem:[#allocation10 + $0x3184] ss:$24 sps:$4 sm:$0xff]  }
 0x5ad   :  { %12397 = vmatprep.subr.bf16.mxu1 %v17610_v2  ;;  %v17658_v60 = vld [vmem:[#allocation10 + $0x3484] ss:$24 sps:$4 sm:$0xff]   ;;  %v17653_v2 = vld [vmem:[#allocation10 + $0x3180] ss:$24 sps:$4 sm:$0xff]  }
 0x5ae   :  { %12307 = vmatmul.mubr.bf16.vlgmr.msra.gmra.mrb[76].mxu0 %v19070_v34 }
 0x5af   :  { %12348 = vmatmul.mubr.bf16.vlgmr.msra.gmra.mrb[76].mxu1 %v19072_v8  ;;  %12357 = vmatpush1.bf16.msra.mxu0 %v17605_v5  ;;  %v17659_v5 = vld [vmem:[#allocation10 + $0x31b0] ss:$24 sps:$4 sm:$0xff]  }
 0x5b0   :  { %12398 = vmatpush1.bf16.msra.mxu1 %v17608_v13  ;;  %12358 = vmatprep.subr.bf16.mxu0 %v17613_v39  ;;  %v17662_v13 = vld [vmem:[#allocation10 + $0x34b0] ss:$24 sps:$4 sm:$0xff]   ;;  %v17667_v39 = vld [vmem:[#allocation10 + $0x31e4] ss:$24 sps:$4 sm:$0xff]  }
 0x5b1   :  { %12399 = vmatprep.subr.bf16.mxu1 %v17616_v17  ;;  %12388 = vmatprep.mubr.bf16.mxu0 %v19074_v18  ;;  %v17670_v17 = vld [vmem:[#allocation10 + $0x34e4] ss:$24 sps:$4 sm:$0xff]  }
 0x5b2   :  { %12429 = vmatprep.mubr.bf16.mxu1 %v19076_v29 }
 0x5b3   :  { %12359 = vmatpush1.bf16.msra.mxu0 %v17611_v36  ;;  %v17665_v36 = vld [vmem:[#allocation10 + $0x31e0] ss:$24 sps:$4 sm:$0xff]  }
 0x5b4   :  { %12400 = vmatpush1.bf16.msra.mxu1 %v17614_v22  ;;  %12360 = vmatprep.subr.bf16.mxu0 %v17619_v19  ;;  %v17668_v22 = vld [vmem:[#allocation10 + $0x34e0] ss:$24 sps:$4 sm:$0xff]   ;;  %v17673_v19 = vld [vmem:[#allocation10 + $0x3214] ss:$24 sps:$4 sm:$0xff]  }
 0x5b5   :  { %12401 = vmatprep.subr.bf16.mxu1 %v17622_v32  ;;  %v17676_v32 = vld [vmem:[#allocation10 + $0x3514] ss:$24 sps:$4 sm:$0xff]  }
 0x5b7   :  { %12361 = vmatpush1.bf16.msra.mxu0 %v17617_v25  ;;  %v17671_v25 = vld [vmem:[#allocation10 + $0x3210] ss:$24 sps:$4 sm:$0xff]  }
 0x5b8   :  { %12402 = vmatpush1.bf16.msra.mxu1 %v17620_v31  ;;  %12362 = vmatprep.subr.bf16.mxu0 %v17625_v50  ;;  %v17674_v31 = vld [vmem:[#allocation10 + $0x3510] ss:$24 sps:$4 sm:$0xff]   ;;  %v17679_v50 = vld [vmem:[#allocation10 + $0x3244] ss:$24 sps:$4 sm:$0xff]  }
 0x5b9   :  { %12403 = vmatprep.subr.bf16.mxu1 %v17628_v58  ;;  %v17682_v58 = vld [vmem:[#allocation10 + $0x3544] ss:$24 sps:$4 sm:$0xff]  }
 0x5bb   :  { %12363 = vmatpush1.bf16.msra.mxu0 %v17623_v16  ;;  %v17677_v16 = vld [vmem:[#allocation10 + $0x3240] ss:$24 sps:$4 sm:$0xff]  }
 0x5bc   :  { %12404 = vmatpush1.bf16.msra.mxu1 %v17626_v20  ;;  %12364 = vmatprep.subr.bf16.mxu0 %v17631_v52  ;;  %v17680_v20 = vld [vmem:[#allocation10 + $0x3540] ss:$24 sps:$4 sm:$0xff]   ;;  %v17685_v52 = vld [vmem:[#allocation10 + $0x3274] ss:$24 sps:$4 sm:$0xff]  }
 0x5bd   :  { %12405 = vmatprep.subr.bf16.mxu1 %v17634_v63  ;;  %v17688_v63 = vld [vmem:[#allocation10 + $0x3574] ss:$24 sps:$4 sm:$0xff]  }
 0x5bf   :  { %12365 = vmatpush1.bf16.msra.mxu0 %v17629_v46  ;;  %v17683_v46 = vld [vmem:[#allocation10 + $0x3270] ss:$24 sps:$4 sm:$0xff]  }
 0x5c0   :  { %12406 = vmatpush1.bf16.msra.mxu1 %v17632_v26  ;;  %12366 = vmatprep.subr.bf16.mxu0 %v17637_v44  ;;  %v17686_v26 = vld [vmem:[#allocation10 + $0x3570] ss:$24 sps:$4 sm:$0xff]   ;;  %v17691_v44 = vld [vmem:[#allocation10 + $0x32a4] ss:$24 sps:$4 sm:$0xff]  }
 0x5c1   :  { %12407 = vmatprep.subr.bf16.mxu1 %v17640_v45  ;;  %v8594_v28 = vpop.f32.mrb[64].mxu0  ;;  %v17694_v45 = vld [vmem:[#allocation10 + $0x35a4] ss:$24 sps:$4 sm:$0xff]  }
 0x5c2   :  { %v8635_v42 = vpop.f32.mrb[64].mxu1  ;;  %v8595_v43 = vadd.f32 %v8594_v28, %v19066_v15  ;;  %v8596_v3 = vpop.f32.mrb[65].mxu0  ;;  %v17647_v15 = vld [vmem:[#allocation10 + $0x3150] ss:$24 sps:$4 sm:$0xff]   ;;  %v155_v28 = vld [vmem:[#allocation9 + $0x40] sm:$0xff] }
 0x5c3   :  { %v8637_v21 = vpop.f32.mrb[65].mxu1  ;;  %v8597_v11 = vadd.f32 %v8596_v3, %v19068_v24  ;;  %v8598_v10 = vpop.f32.mrb[66].mxu0  ;;  %12367 = vmatpush1.bf16.msra.mxu0 %v17635_v54  ;;  %v17650_v24 = vld [vmem:[#allocation10 + $0x3450] ss:$24 sps:$4 sm:$0xff]   ;;  %v17689_v54 = vld [vmem:[#allocation10 + $0x32a0] ss:$24 sps:$4 sm:$0xff]  }
 0x5c4   :  { %v8639_v48 = vpop.f32.mrb[66].mxu1  ;;  %12408 = vmatpush1.bf16.msra.mxu1 %v17638_v55  ;;  %v19084_v51 = vadd.f32 %v8635_v42, %v8595_v43  ;;  %v8599_v61 = vpop.f32.mrb[67].mxu0  ;;  %12368 = vmatprep.subr.bf16.mxu0 %v17643_v40  ;;  %v17692_v55 = vld [vmem:[#allocation10 + $0x35a0] ss:$24 sps:$4 sm:$0xff]   ;;  %v17697_v40 = vld [vmem:[#allocation10 + $0x32d4] ss:$24 sps:$4 sm:$0xff]   ;;  %v19088_v10 = vpack.c.bf16 %v155_v28, %v155_v28 }
 0x5c5   :  { %v8640_v0 = vpop.f32.mrb[67].mxu1  ;;  %12409 = vmatprep.subr.bf16.mxu1 %v17646_v62  ;;  %v19086_v1 = vadd.f32 %v8637_v21, %v8597_v11  ;;  %v17700_v62 = vld [vmem:[#allocation10 + $0x35d4] ss:$24 sps:$4 sm:$0xff]   ;;  %v17695_v42 = vld [vmem:[#allocation10 + $0x32d0] ss:$24 sps:$4 sm:$0xff]  }
 0x5c6   :  { %v17698_v43 = vld [vmem:[#allocation10 + $0x35d0] ss:$24 sps:$4 sm:$0xff]   ;;  %v17703_v21 = vld [vmem:[#allocation10 + $0x240c] ss:$24 sps:$4 sm:$0xff]   ;;  %v17709_v61 = vld [vmem:[#allocation10 + $0x243c] ss:$24 sps:$4 sm:$0xff]  }
 0x5c7   :  { %12369 = vmatpush1.bf16.msra.mxu0 %v17641_v53  ;;  %v157_v3 = vld [vmem:[#allocation9 + $0x50] sm:$0xff]  ;;  %v17706_v11 = vld [vmem:[#allocation10 + $0x270c] ss:$24 sps:$4 sm:$0xff]   ;;  %v17701_v53 = vld [vmem:[#allocation10 + $0x2408] ss:$24 sps:$4 sm:$0xff]  }
 0x5c8   :  { %12410 = vmatpush1.bf16.msra.mxu1 %v17644_v27  ;;  %12370 = vmatprep.subr.bf16.mxu0 %v17649_v56  ;;  %v19090_v48 = vpack.c.bf16 %v157_v3, %v157_v3  ;;  %v17704_v27 = vld [vmem:[#allocation10 + $0x2708] ss:$24 sps:$4 sm:$0xff]   ;;  %v17712_v0 = vld [vmem:[#allocation10 + $0x273c] ss:$24 sps:$4 sm:$0xff]   ;;  %v17707_v56 = vld [vmem:[#allocation10 + $0x2438] ss:$24 sps:$4 sm:$0xff]  }
 0x5c9   :  { %12411 = vmatprep.subr.bf16.mxu1 %v17652_v59  ;;  %v17710_v59 = vld [vmem:[#allocation10 + $0x2738] ss:$24 sps:$4 sm:$0xff]   ;;  %v17748_v28 = vld [vmem:[#allocation10 + $0x285c] ss:$24 sps:$4 sm:$0xff]   ;;  %v17754_v3 = vld [vmem:[#allocation10 + $0x288c] ss:$24 sps:$4 sm:$0xff]  }
 0x5cb   :  { %12371 = vmatpush1.bf16.msra.mxu0 %v17647_v15  ;;  %v17715_v15 = vld [vmem:[#allocation10 + $0x246c] ss:$24 sps:$4 sm:$0xff]  }
 0x5cc   :  { %12412 = vmatpush1.bf16.msra.mxu1 %v17650_v24  ;;  %12372 = vmatprep.subr.bf16.mxu0 %v17655_v35  ;;  %v17718_v24 = vld [vmem:[#allocation10 + $0x276c] ss:$24 sps:$4 sm:$0xff]   ;;  %v17713_v35 = vld [vmem:[#allocation10 + $0x2468] ss:$24 sps:$4 sm:$0xff]  }
 0x5cd   :  { %12413 = vmatprep.subr.bf16.mxu1 %v17658_v60  ;;  %v17716_v60 = vld [vmem:[#allocation10 + $0x2768] ss:$24 sps:$4 sm:$0xff]  }
 0x5cf   :  { %12373 = vmatpush1.bf16.msra.mxu0 %v17653_v2  ;;  %v17721_v2 = vld [vmem:[#allocation10 + $0x249c] ss:$24 sps:$4 sm:$0xff]  }
 0x5d0   :  { %12414 = vmatpush1.bf16.msra.mxu1 %v17656_v7  ;;  %12374 = vmatprep.subr.bf16.mxu0 %v17661_v4  ;;  %v17724_v7 = vld [vmem:[#allocation10 + $0x279c] ss:$24 sps:$4 sm:$0xff]   ;;  %v17719_v4 = vld [vmem:[#allocation10 + $0x2498] ss:$24 sps:$4 sm:$0xff]  }
 0x5d1   :  { %12415 = vmatprep.subr.bf16.mxu1 %v17664_v57  ;;  %v17722_v57 = vld [vmem:[#allocation10 + $0x2798] ss:$24 sps:$4 sm:$0xff]  }
 0x5d3   :  { %12375 = vmatpush1.bf16.msra.mxu0 %v17659_v5  ;;  %v17727_v5 = vld [vmem:[#allocation10 + $0x24cc] ss:$24 sps:$4 sm:$0xff]  }
 0x5d4   :  { %12416 = vmatpush1.bf16.msra.mxu1 %v17662_v13  ;;  %12376 = vmatprep.subr.bf16.mxu0 %v17667_v39  ;;  %v17730_v13 = vld [vmem:[#allocation10 + $0x27cc] ss:$24 sps:$4 sm:$0xff]   ;;  %v17725_v39 = vld [vmem:[#allocation10 + $0x24c8] ss:$24 sps:$4 sm:$0xff]  }
 0x5d5   :  { %12417 = vmatprep.subr.bf16.mxu1 %v17670_v17  ;;  %v17728_v17 = vld [vmem:[#allocation10 + $0x27c8] ss:$24 sps:$4 sm:$0xff]  }
 0x5d7   :  { %12377 = vmatpush1.bf16.msra.mxu0 %v17665_v36  ;;  %v17733_v36 = vld [vmem:[#allocation10 + $0x24fc] ss:$24 sps:$4 sm:$0xff]  }
 0x5d8   :  { %12418 = vmatpush1.bf16.msra.mxu1 %v17668_v22  ;;  %12378 = vmatprep.subr.bf16.mxu0 %v17673_v19  ;;  %v17736_v22 = vld [vmem:[#allocation10 + $0x27fc] ss:$24 sps:$4 sm:$0xff]   ;;  %v17731_v19 = vld [vmem:[#allocation10 + $0x24f8] ss:$24 sps:$4 sm:$0xff]  }
 0x5d9   :  { %12419 = vmatprep.subr.bf16.mxu1 %v17676_v32  ;;  %v17734_v32 = vld [vmem:[#allocation10 + $0x27f8] ss:$24 sps:$4 sm:$0xff]  }
 0x5db   :  { %12379 = vmatpush1.bf16.msra.mxu0 %v17671_v25  ;;  %v17739_v25 = vld [vmem:[#allocation10 + $0x252c] ss:$24 sps:$4 sm:$0xff]  }
 0x5dc   :  { %12420 = vmatpush1.bf16.msra.mxu1 %v17674_v31  ;;  %12380 = vmatprep.subr.bf16.mxu0 %v17679_v50  ;;  %v17742_v31 = vld [vmem:[#allocation10 + $0x282c] ss:$24 sps:$4 sm:$0xff]  }
 0x5dd   :  { %12421 = vmatprep.subr.bf16.mxu1 %v17682_v58 }
 0x5df   :  { %12381 = vmatpush1.bf16.msra.mxu0 %v17677_v16 }
 0x5e0   :  { %12422 = vmatpush1.bf16.msra.mxu1 %v17680_v20  ;;  %12382 = vmatprep.subr.bf16.mxu0 %v17685_v52 }
 0x5e1   :  { %12423 = vmatprep.subr.bf16.mxu1 %v17688_v63 }
 0x5e3   :  { %12383 = vmatpush1.bf16.msra.mxu0 %v17683_v46 }
 0x5e4   :  { %12424 = vmatpush1.bf16.msra.mxu1 %v17686_v26  ;;  %12384 = vmatprep.subr.bf16.mxu0 %v17691_v44  ;;  %v17737_v44 = vld [vmem:[#allocation10 + $0x2528] ss:$24 sps:$4 sm:$0xff]  }
 0x5e5   :  { %12425 = vmatprep.subr.bf16.mxu1 %v17694_v45  ;;  %v17740_v45 = vld [vmem:[#allocation10 + $0x2828] ss:$24 sps:$4 sm:$0xff]  }
 0x5e7   :  { %12385 = vmatpush1.bf16.msra.mxu0 %v17689_v54 }
 0x5e8   :  { %12426 = vmatpush1.bf16.msra.mxu1 %v17692_v55  ;;  %12386 = vmatprep.subr.bf16.mxu0 %v17697_v40 }
 0x5e9   :  { %12427 = vmatprep.subr.bf16.mxu1 %v17700_v62  ;;  %v17745_v62 = vld [vmem:[#allocation10 + $0x255c] ss:$24 sps:$4 sm:$0xff]  }
 0x5eb   :  { %12387 = vmatpush1.bf16.msra.mxu0 %v17695_v42 }
 0x5ec   :  { %12428 = vmatpush1.bf16.msra.mxu1 %v17698_v43  ;;  %12438 = vmatprep.subr.bf16.mxu0 %v17703_v21  ;;  %v17751_v43 = vld [vmem:[#allocation10 + $0x258c] ss:$24 sps:$4 sm:$0xff]   ;;  %v17749_v21 = vld [vmem:[#allocation10 + $0x2588] ss:$24 sps:$4 sm:$0xff]  }
 0x5ed   :  { %12479 = vmatprep.subr.bf16.mxu1 %v17706_v11  ;;  %v17752_v11 = vld [vmem:[#allocation10 + $0x2888] ss:$24 sps:$4 sm:$0xff]  }
 0x5ee   :  { %12389 = vmatmul.mubr.bf16.vlgmr.msra.gmra.mrb[80].mxu0 %v19088_v10 }
 0x5ef   :  { %12430 = vmatmul.mubr.bf16.vlgmr.msra.gmra.mrb[80].mxu1 %v19090_v48  ;;  %12439 = vmatpush1.bf16.msra.mxu0 %v17701_v53  ;;  %v17757_v53 = vld [vmem:[#allocation10 + $0x25bc] ss:$24 sps:$4 sm:$0xff]  }
 0x5f0   :  { %12480 = vmatpush1.bf16.msra.mxu1 %v17704_v27  ;;  %12440 = vmatprep.subr.bf16.mxu0 %v17709_v61  ;;  %v17760_v27 = vld [vmem:[#allocation10 + $0x28bc] ss:$24 sps:$4 sm:$0xff]   ;;  %v17755_v61 = vld [vmem:[#allocation10 + $0x25b8] ss:$24 sps:$4 sm:$0xff]  }
 0x5f1   :  { %12481 = vmatprep.subr.bf16.mxu1 %v17712_v0  ;;  %12470 = vmatprep.mubr.bf16.mxu0 %v19038_v9  ;;  %v17758_v0 = vld [vmem:[#allocation10 + $0x28b8] ss:$24 sps:$4 sm:$0xff]  }
 0x5f2   :  { %12511 = vmatprep.mubr.bf16.mxu1 %v19040_v14 }
 0x5f3   :  { %12441 = vmatpush1.bf16.msra.mxu0 %v17707_v56  ;;  %v17763_v56 = vld [vmem:[#allocation10 + $0x25ec] ss:$24 sps:$4 sm:$0xff]  }
 0x5f4   :  { %12482 = vmatpush1.bf16.msra.mxu1 %v17710_v59  ;;  %12442 = vmatprep.subr.bf16.mxu0 %v17715_v15  ;;  %v17766_v59 = vld [vmem:[#allocation10 + $0x28ec] ss:$24 sps:$4 sm:$0xff]   ;;  %v17761_v15 = vld [vmem:[#allocation10 + $0x25e8] ss:$24 sps:$4 sm:$0xff]  }
 0x5f5   :  { %12483 = vmatprep.subr.bf16.mxu1 %v17718_v24  ;;  %v17764_v24 = vld [vmem:[#allocation10 + $0x28e8] ss:$24 sps:$4 sm:$0xff]  }
 0x5f7   :  { %12443 = vmatpush1.bf16.msra.mxu0 %v17713_v35  ;;  %v17769_v35 = vld [vmem:[#allocation10 + $0x261c] ss:$24 sps:$4 sm:$0xff]  }
 0x5f8   :  { %12484 = vmatpush1.bf16.msra.mxu1 %v17716_v60  ;;  %12444 = vmatprep.subr.bf16.mxu0 %v17721_v2  ;;  %v17772_v60 = vld [vmem:[#allocation10 + $0x291c] ss:$24 sps:$4 sm:$0xff]   ;;  %v17767_v2 = vld [vmem:[#allocation10 + $0x2618] ss:$24 sps:$4 sm:$0xff]  }
 0x5f9   :  { %12485 = vmatprep.subr.bf16.mxu1 %v17724_v7  ;;  %v17770_v7 = vld [vmem:[#allocation10 + $0x2918] ss:$24 sps:$4 sm:$0xff]  }
 0x5fb   :  { %12445 = vmatpush1.bf16.msra.mxu0 %v17719_v4  ;;  %v17775_v4 = vld [vmem:[#allocation10 + $0x264c] ss:$24 sps:$4 sm:$0xff]  }
 0x5fc   :  { %12486 = vmatpush1.bf16.msra.mxu1 %v17722_v57  ;;  %12446 = vmatprep.subr.bf16.mxu0 %v17727_v5  ;;  %v17778_v57 = vld [vmem:[#allocation10 + $0x294c] ss:$24 sps:$4 sm:$0xff]   ;;  %v17773_v5 = vld [vmem:[#allocation10 + $0x2648] ss:$24 sps:$4 sm:$0xff]  }
 0x5fd   :  { %12487 = vmatprep.subr.bf16.mxu1 %v17730_v13  ;;  %v17776_v13 = vld [vmem:[#allocation10 + $0x2948] ss:$24 sps:$4 sm:$0xff]  }
 0x5ff   :  { %12447 = vmatpush1.bf16.msra.mxu0 %v17725_v39  ;;  %v17781_v39 = vld [vmem:[#allocation10 + $0x267c] ss:$24 sps:$4 sm:$0xff]  }
 0x600   :  { %12488 = vmatpush1.bf16.msra.mxu1 %v17728_v17  ;;  %12448 = vmatprep.subr.bf16.mxu0 %v17733_v36  ;;  %v17784_v17 = vld [vmem:[#allocation10 + $0x297c] ss:$24 sps:$4 sm:$0xff]   ;;  %v17779_v36 = vld [vmem:[#allocation10 + $0x2678] ss:$24 sps:$4 sm:$0xff]  }
 0x601   :  { %12489 = vmatprep.subr.bf16.mxu1 %v17736_v22  ;;  %v8676_v50 = vpop.f32.mrb[68].mxu0  ;;  %v17782_v22 = vld [vmem:[#allocation10 + $0x2978] ss:$24 sps:$4 sm:$0xff]  }
 0x602   :  { %v8717_v58 = vpop.f32.mrb[68].mxu1  ;;  %v8677_v16 = vadd.f32 %v8676_v50, %v19084_v51  ;;  %v8678_v20 = vpop.f32.mrb[69].mxu0  ;;  %v17743_v51 = vld [vmem:[#allocation10 + $0x2558] ss:$24 sps:$4 sm:$0xff]   ;;  %v17793_v50 = vld [vmem:[#allocation10 + $0x26dc] ss:$24 sps:$4 sm:$0xff]  }
 0x603   :  { %v8719_v52 = vpop.f32.mrb[69].mxu1  ;;  %v8679_v63 = vadd.f32 %v8678_v20, %v19086_v1  ;;  %v8680_v46 = vpop.f32.mrb[70].mxu0  ;;  %12449 = vmatpush1.bf16.msra.mxu0 %v17731_v19  ;;  %v17746_v1 = vld [vmem:[#allocation10 + $0x2858] ss:$24 sps:$4 sm:$0xff]   ;;  %v17787_v19 = vld [vmem:[#allocation10 + $0x26ac] ss:$24 sps:$4 sm:$0xff]  }
 0x604   :  { %v8721_v26 = vpop.f32.mrb[70].mxu1  ;;  %12490 = vmatpush1.bf16.msra.mxu1 %v17734_v32  ;;  %v19098_v54 = vadd.f32 %v8717_v58, %v8677_v16  ;;  %v8681_v55 = vpop.f32.mrb[71].mxu0  ;;  %12450 = vmatprep.subr.bf16.mxu0 %v17739_v25  ;;  %v17790_v32 = vld [vmem:[#allocation10 + $0x29ac] ss:$24 sps:$4 sm:$0xff]   ;;  %v17785_v25 = vld [vmem:[#allocation10 + $0x26a8] ss:$24 sps:$4 sm:$0xff]  }
 0x605   :  { %v8722_v40 = vpop.f32.mrb[71].mxu1  ;;  %12491 = vmatprep.subr.bf16.mxu1 %v17742_v31  ;;  %v19100_v42 = vadd.f32 %v8719_v52, %v8679_v63  ;;  %v17788_v31 = vld [vmem:[#allocation10 + $0x29a8] ss:$24 sps:$4 sm:$0xff]   ;;  %v17796_v58 = vld [vmem:[#allocation10 + $0x29dc] ss:$24 sps:$4 sm:$0xff]  }
 0x606   :  { %v17791_v16 = vld [vmem:[#allocation10 + $0x26d8] ss:$24 sps:$4 sm:$0xff]   ;;  %v17799_v52 = vld [vmem:[#allocation10 + $0x2a0c] ss:$24 sps:$4 sm:$0xff]   ;;  %v17797_v46 = vld [vmem:[#allocation10 + $0x2a08] ss:$24 sps:$4 sm:$0xff]  }
 0x607   :  { %12451 = vmatpush1.bf16.msra.mxu0 %v17737_v44  ;;  %v17794_v20 = vld [vmem:[#allocation10 + $0x29d8] ss:$24 sps:$4 sm:$0xff]   ;;  %v17802_v63 = vld [vmem:[#allocation10 + $0x2d0c] ss:$24 sps:$4 sm:$0xff]   ;;  %v17800_v26 = vld [vmem:[#allocation10 + $0x2d08] ss:$24 sps:$4 sm:$0xff]  }
 0x608   :  { %12492 = vmatpush1.bf16.msra.mxu1 %v17740_v45  ;;  %12452 = vmatprep.subr.bf16.mxu0 %v17745_v62  ;;  %v17805_v44 = vld [vmem:[#allocation10 + $0x2a3c] ss:$24 sps:$4 sm:$0xff]   ;;  %v17803_v55 = vld [vmem:[#allocation10 + $0x2a38] ss:$24 sps:$4 sm:$0xff]   ;;  %v17811_v62 = vld [vmem:[#allocation10 + $0x2a6c] ss:$24 sps:$4 sm:$0xff]  }
 0x609   :  { %12493 = vmatprep.subr.bf16.mxu1 %v17748_v28  ;;  %v17808_v45 = vld [vmem:[#allocation10 + $0x2d3c] ss:$24 sps:$4 sm:$0xff]   ;;  %v17806_v40 = vld [vmem:[#allocation10 + $0x2d38] ss:$24 sps:$4 sm:$0xff]   ;;  %v17814_v28 = vld [vmem:[#allocation10 + $0x2d6c] ss:$24 sps:$4 sm:$0xff]  }
 0x60b   :  { %12453 = vmatpush1.bf16.msra.mxu0 %v17743_v51  ;;  %v17809_v51 = vld [vmem:[#allocation10 + $0x2a68] ss:$24 sps:$4 sm:$0xff]  }
 0x60c   :  { %12494 = vmatpush1.bf16.msra.mxu1 %v17746_v1  ;;  %12454 = vmatprep.subr.bf16.mxu0 %v17751_v43  ;;  %v17812_v1 = vld [vmem:[#allocation10 + $0x2d68] ss:$24 sps:$4 sm:$0xff]   ;;  %v17817_v43 = vld [vmem:[#allocation10 + $0x2a9c] ss:$24 sps:$4 sm:$0xff]  }
 0x60d   :  { %12495 = vmatprep.subr.bf16.mxu1 %v17754_v3  ;;  %v17820_v3 = vld [vmem:[#allocation10 + $0x2d9c] ss:$24 sps:$4 sm:$0xff]  }
 0x60f   :  { %12455 = vmatpush1.bf16.msra.mxu0 %v17749_v21  ;;  %v17815_v21 = vld [vmem:[#allocation10 + $0x2a98] ss:$24 sps:$4 sm:$0xff]  }
 0x610   :  { %12496 = vmatpush1.bf16.msra.mxu1 %v17752_v11  ;;  %12456 = vmatprep.subr.bf16.mxu0 %v17757_v53  ;;  %v17818_v11 = vld [vmem:[#allocation10 + $0x2d98] ss:$24 sps:$4 sm:$0xff]   ;;  %v17823_v53 = vld [vmem:[#allocation10 + $0x2acc] ss:$24 sps:$4 sm:$0xff]  }
 0x611   :  { %12497 = vmatprep.subr.bf16.mxu1 %v17760_v27  ;;  %v17826_v27 = vld [vmem:[#allocation10 + $0x2dcc] ss:$24 sps:$4 sm:$0xff]  }
 0x613   :  { %12457 = vmatpush1.bf16.msra.mxu0 %v17755_v61  ;;  %v17821_v61 = vld [vmem:[#allocation10 + $0x2ac8] ss:$24 sps:$4 sm:$0xff]  }
 0x614   :  { %12498 = vmatpush1.bf16.msra.mxu1 %v17758_v0  ;;  %12458 = vmatprep.subr.bf16.mxu0 %v17763_v56  ;;  %v17824_v0 = vld [vmem:[#allocation10 + $0x2dc8] ss:$24 sps:$4 sm:$0xff]   ;;  %v17829_v56 = vld [vmem:[#allocation10 + $0x2afc] ss:$24 sps:$4 sm:$0xff]  }
 0x615   :  { %12499 = vmatprep.subr.bf16.mxu1 %v17766_v59  ;;  %v17832_v59 = vld [vmem:[#allocation10 + $0x2dfc] ss:$24 sps:$4 sm:$0xff]  }
 0x617   :  { %12459 = vmatpush1.bf16.msra.mxu0 %v17761_v15  ;;  %v17827_v15 = vld [vmem:[#allocation10 + $0x2af8] ss:$24 sps:$4 sm:$0xff]  }
 0x618   :  { %12500 = vmatpush1.bf16.msra.mxu1 %v17764_v24  ;;  %12460 = vmatprep.subr.bf16.mxu0 %v17769_v35  ;;  %v17830_v24 = vld [vmem:[#allocation10 + $0x2df8] ss:$24 sps:$4 sm:$0xff]   ;;  %v17835_v35 = vld [vmem:[#allocation10 + $0x2b2c] ss:$24 sps:$4 sm:$0xff]  }
 0x619   :  { %12501 = vmatprep.subr.bf16.mxu1 %v17772_v60  ;;  %v17838_v60 = vld [vmem:[#allocation10 + $0x2e2c] ss:$24 sps:$4 sm:$0xff]  }
 0x61b   :  { %12461 = vmatpush1.bf16.msra.mxu0 %v17767_v2 }
 0x61c   :  { %12502 = vmatpush1.bf16.msra.mxu1 %v17770_v7  ;;  %12462 = vmatprep.subr.bf16.mxu0 %v17775_v4 }
 0x61d   :  { %12503 = vmatprep.subr.bf16.mxu1 %v17778_v57 }
 0x61f   :  { %12463 = vmatpush1.bf16.msra.mxu0 %v17773_v5 }
 0x620   :  { %12504 = vmatpush1.bf16.msra.mxu1 %v17776_v13  ;;  %12464 = vmatprep.subr.bf16.mxu0 %v17781_v39 }
 0x621   :  { %12505 = vmatprep.subr.bf16.mxu1 %v17784_v17 }
 0x623   :  { %12465 = vmatpush1.bf16.msra.mxu0 %v17779_v36  ;;  %v17833_v36 = vld [vmem:[#allocation10 + $0x2b28] ss:$24 sps:$4 sm:$0xff]  }
 0x624   :  { %12506 = vmatpush1.bf16.msra.mxu1 %v17782_v22  ;;  %12466 = vmatprep.subr.bf16.mxu0 %v17787_v19  ;;  %v17836_v22 = vld [vmem:[#allocation10 + $0x2e28] ss:$24 sps:$4 sm:$0xff]  }
 0x625   :  { %12507 = vmatprep.subr.bf16.mxu1 %v17790_v32 }
 0x627   :  { %12467 = vmatpush1.bf16.msra.mxu0 %v17785_v25  ;;  %v17841_v25 = vld [vmem:[#allocation10 + $0x2b5c] ss:$24 sps:$4 sm:$0xff]  }
 0x628   :  { %12508 = vmatpush1.bf16.msra.mxu1 %v17788_v31  ;;  %12468 = vmatprep.subr.bf16.mxu0 %v17793_v50  ;;  %v17844_v31 = vld [vmem:[#allocation10 + $0x2e5c] ss:$24 sps:$4 sm:$0xff]   ;;  %v17839_v50 = vld [vmem:[#allocation10 + $0x2b58] ss:$24 sps:$4 sm:$0xff]  }
 0x629   :  { %12509 = vmatprep.subr.bf16.mxu1 %v17796_v58  ;;  %v17842_v58 = vld [vmem:[#allocation10 + $0x2e58] ss:$24 sps:$4 sm:$0xff]  }
 0x62b   :  { %12469 = vmatpush1.bf16.msra.mxu0 %v17791_v16  ;;  %v17847_v16 = vld [vmem:[#allocation10 + $0x2b8c] ss:$24 sps:$4 sm:$0xff]  }
 0x62c   :  { %12510 = vmatpush1.bf16.msra.mxu1 %v17794_v20  ;;  %12520 = vmatprep.subr.bf16.mxu0 %v17799_v52  ;;  %v17850_v20 = vld [vmem:[#allocation10 + $0x2e8c] ss:$24 sps:$4 sm:$0xff]   ;;  %v17845_v52 = vld [vmem:[#allocation10 + $0x2b88] ss:$24 sps:$4 sm:$0xff]  }
 0x62d   :  { %12561 = vmatprep.subr.bf16.mxu1 %v17802_v63  ;;  %v17848_v63 = vld [vmem:[#allocation10 + $0x2e88] ss:$24 sps:$4 sm:$0xff]  }
 0x62e   :  { %12471 = vmatmul.mubr.bf16.vlgmr.msra.gmra.mrb[84].mxu0 %v19052_v49 }
 0x62f   :  { %12512 = vmatmul.mubr.bf16.vlgmr.msra.gmra.mrb[84].mxu1 %v19054_v30  ;;  %12521 = vmatpush1.bf16.msra.mxu0 %v17797_v46  ;;  %v17853_v46 = vld [vmem:[#allocation10 + $0x2bbc] ss:$24 sps:$4 sm:$0xff]  }
 0x630   :  { %12562 = vmatpush1.bf16.msra.mxu1 %v17800_v26  ;;  %12522 = vmatprep.subr.bf16.mxu0 %v17805_v44  ;;  %v17856_v26 = vld [vmem:[#allocation10 + $0x2ebc] ss:$24 sps:$4 sm:$0xff]   ;;  %v17851_v44 = vld [vmem:[#allocation10 + $0x2bb8] ss:$24 sps:$4 sm:$0xff]  }
 0x631   :  { %12563 = vmatprep.subr.bf16.mxu1 %v17808_v45  ;;  %12552 = vmatprep.mubr.bf16.mxu0 %v19056_v37  ;;  %v17854_v45 = vld [vmem:[#allocation10 + $0x2eb8] ss:$24 sps:$4 sm:$0xff]  }
 0x632   :  { %12593 = vmatprep.mubr.bf16.mxu1 %v19058_v38 }
 0x633   :  { %12523 = vmatpush1.bf16.msra.mxu0 %v17803_v55  ;;  %v17859_v55 = vld [vmem:[#allocation10 + $0x2bec] ss:$24 sps:$4 sm:$0xff]  }
 0x634   :  { %12564 = vmatpush1.bf16.msra.mxu1 %v17806_v40  ;;  %12524 = vmatprep.subr.bf16.mxu0 %v17811_v62  ;;  %v17862_v40 = vld [vmem:[#allocation10 + $0x2eec] ss:$24 sps:$4 sm:$0xff]   ;;  %v17857_v62 = vld [vmem:[#allocation10 + $0x2be8] ss:$24 sps:$4 sm:$0xff]  }
 0x635   :  { %12565 = vmatprep.subr.bf16.mxu1 %v17814_v28  ;;  %v17860_v28 = vld [vmem:[#allocation10 + $0x2ee8] ss:$24 sps:$4 sm:$0xff]  }
 0x637   :  { %12525 = vmatpush1.bf16.msra.mxu0 %v17809_v51  ;;  %v17865_v51 = vld [vmem:[#allocation10 + $0x2c1c] ss:$24 sps:$4 sm:$0xff]  }
 0x638   :  { %12566 = vmatpush1.bf16.msra.mxu1 %v17812_v1  ;;  %12526 = vmatprep.subr.bf16.mxu0 %v17817_v43  ;;  %v17868_v1 = vld [vmem:[#allocation10 + $0x2f1c] ss:$24 sps:$4 sm:$0xff]   ;;  %v17863_v43 = vld [vmem:[#allocation10 + $0x2c18] ss:$24 sps:$4 sm:$0xff]  }
 0x639   :  { %12567 = vmatprep.subr.bf16.mxu1 %v17820_v3  ;;  %v17866_v3 = vld [vmem:[#allocation10 + $0x2f18] ss:$24 sps:$4 sm:$0xff]  }
 0x63b   :  { %12527 = vmatpush1.bf16.msra.mxu0 %v17815_v21  ;;  %v17871_v21 = vld [vmem:[#allocation10 + $0x2c4c] ss:$24 sps:$4 sm:$0xff]  }
 0x63c   :  { %12568 = vmatpush1.bf16.msra.mxu1 %v17818_v11  ;;  %12528 = vmatprep.subr.bf16.mxu0 %v17823_v53  ;;  %v17874_v11 = vld [vmem:[#allocation10 + $0x2f4c] ss:$24 sps:$4 sm:$0xff]   ;;  %v17869_v53 = vld [vmem:[#allocation10 + $0x2c48] ss:$24 sps:$4 sm:$0xff]  }
 0x63d   :  { %12569 = vmatprep.subr.bf16.mxu1 %v17826_v27  ;;  %v17872_v27 = vld [vmem:[#allocation10 + $0x2f48] ss:$24 sps:$4 sm:$0xff]  }
 0x63f   :  { %12529 = vmatpush1.bf16.msra.mxu0 %v17821_v61  ;;  %v17877_v61 = vld [vmem:[#allocation10 + $0x2c7c] ss:$24 sps:$4 sm:$0xff]  }
 0x640   :  { %12570 = vmatpush1.bf16.msra.mxu1 %v17824_v0  ;;  %12530 = vmatprep.subr.bf16.mxu0 %v17829_v56  ;;  %v17880_v0 = vld [vmem:[#allocation10 + $0x2f7c] ss:$24 sps:$4 sm:$0xff]   ;;  %v17875_v56 = vld [vmem:[#allocation10 + $0x2c78] ss:$24 sps:$4 sm:$0xff]  }
 0x641   :  { %12571 = vmatprep.subr.bf16.mxu1 %v17832_v59  ;;  %v12226_v2 = vpop.f32.mrb[72].mxu0  ;;  %v17878_v59 = vld [vmem:[#allocation10 + $0x2f78] ss:$24 sps:$4 sm:$0xff]  }
 0x642   :  { %v12267_v7 = vpop.f32.mrb[72].mxu1  ;;  %v12228_v57 = vpop.f32.mrb[73].mxu0 }
 0x643   :  { %v19106_v4 = vadd.f32 %v12267_v7, %v12226_v2  ;;  %v12269_v5 = vpop.f32.mrb[73].mxu1  ;;  %v12230_v39 = vpop.f32.mrb[74].mxu0  ;;  %12531 = vmatpush1.bf16.msra.mxu0 %v17827_v15  ;;  %v17883_v15 = vld [vmem:[#allocation10 + $0x2cac] ss:$24 sps:$4 sm:$0xff]   ;;  %v17889_v2 = vld [vmem:[#allocation10 + $0x2cdc] ss:$24 sps:$4 sm:$0xff]  }
 0x644   :  { %v19108_v13 = vadd.f32 %v12269_v5, %v12228_v57  ;;  %v12271_v17 = vpop.f32.mrb[74].mxu1  ;;  %12572 = vmatpush1.bf16.msra.mxu1 %v17830_v24  ;;  %v12231_v19 = vpop.f32.mrb[75].mxu0  ;;  %12532 = vmatprep.subr.bf16.mxu0 %v17835_v35  ;;  %v17886_v24 = vld [vmem:[#allocation10 + $0x2fac] ss:$24 sps:$4 sm:$0xff]   ;;  %v17881_v35 = vld [vmem:[#allocation10 + $0x2ca8] ss:$24 sps:$4 sm:$0xff]  }
 0x645   :  { %v12272_v32 = vpop.f32.mrb[75].mxu1  ;;  %12573 = vmatprep.subr.bf16.mxu1 %v17838_v60  ;;  %v17884_v60 = vld [vmem:[#allocation10 + $0x2fa8] ss:$24 sps:$4 sm:$0xff]   ;;  %v17892_v7 = vld [vmem:[#allocation10 + $0x2fdc] ss:$24 sps:$4 sm:$0xff]  }
 0x646   :  { %v17887_v57 = vld [vmem:[#allocation10 + $0x2cd8] ss:$24 sps:$4 sm:$0xff]   ;;  %v17895_v39 = vld [vmem:[#allocation10 + $0x300c] ss:$24 sps:$4 sm:$0xff]   ;;  %v17901_v19 = vld [vmem:[#allocation10 + $0x303c] ss:$24 sps:$4 sm:$0xff]  }
 0x647   :  { %12533 = vmatpush1.bf16.msra.mxu0 %v17833_v36  ;;  %v17890_v5 = vld [vmem:[#allocation10 + $0x2fd8] ss:$24 sps:$4 sm:$0xff]   ;;  %v17898_v17 = vld [vmem:[#allocation10 + $0x330c] ss:$24 sps:$4 sm:$0xff]   ;;  %v17893_v36 = vld [vmem:[#allocation10 + $0x3008] ss:$24 sps:$4 sm:$0xff]  }
 0x648   :  { %12574 = vmatpush1.bf16.msra.mxu1 %v17836_v22  ;;  %12534 = vmatprep.subr.bf16.mxu0 %v17841_v25  ;;  %v17896_v22 = vld [vmem:[#allocation10 + $0x3308] ss:$24 sps:$4 sm:$0xff]   ;;  %v17904_v32 = vld [vmem:[#allocation10 + $0x333c] ss:$24 sps:$4 sm:$0xff]   ;;  %v17899_v25 = vld [vmem:[#allocation10 + $0x3038] ss:$24 sps:$4 sm:$0xff]  }
 0x649   :  { %12575 = vmatprep.subr.bf16.mxu1 %v17844_v31  ;;  %v17902_v31 = vld [vmem:[#allocation10 + $0x3338] ss:$24 sps:$4 sm:$0xff]  }
 0x64b   :  { %12535 = vmatpush1.bf16.msra.mxu0 %v17839_v50  ;;  %v17907_v50 = vld [vmem:[#allocation10 + $0x306c] ss:$24 sps:$4 sm:$0xff]  }
 0x64c   :  { %12576 = vmatpush1.bf16.msra.mxu1 %v17842_v58  ;;  %12536 = vmatprep.subr.bf16.mxu0 %v17847_v16  ;;  %v17910_v58 = vld [vmem:[#allocation10 + $0x336c] ss:$24 sps:$4 sm:$0xff]   ;;  %v17905_v16 = vld [vmem:[#allocation10 + $0x3068] ss:$24 sps:$4 sm:$0xff]  }
 0x64d   :  { %12577 = vmatprep.subr.bf16.mxu1 %v17850_v20  ;;  %v17908_v20 = vld [vmem:[#allocation10 + $0x3368] ss:$24 sps:$4 sm:$0xff]  }
 0x64f   :  { %12537 = vmatpush1.bf16.msra.mxu0 %v17845_v52  ;;  %v17913_v52 = vld [vmem:[#allocation10 + $0x309c] ss:$24 sps:$4 sm:$0xff]  }
 0x650   :  { %12578 = vmatpush1.bf16.msra.mxu1 %v17848_v63  ;;  %12538 = vmatprep.subr.bf16.mxu0 %v17853_v46  ;;  %v17916_v63 = vld [vmem:[#allocation10 + $0x339c] ss:$24 sps:$4 sm:$0xff]   ;;  %v17911_v46 = vld [vmem:[#allocation10 + $0x3098] ss:$24 sps:$4 sm:$0xff]  }
 0x651   :  { %12579 = vmatprep.subr.bf16.mxu1 %v17856_v26  ;;  %v17914_v26 = vld [vmem:[#allocation10 + $0x3398] ss:$24 sps:$4 sm:$0xff]  }
 0x653   :  { %12539 = vmatpush1.bf16.msra.mxu0 %v17851_v44  ;;  %v17919_v44 = vld [vmem:[#allocation10 + $0x30cc] ss:$24 sps:$4 sm:$0xff]  }
 0x654   :  { %12580 = vmatpush1.bf16.msra.mxu1 %v17854_v45  ;;  %12540 = vmatprep.subr.bf16.mxu0 %v17859_v55  ;;  %v17922_v45 = vld [vmem:[#allocation10 + $0x33cc] ss:$24 sps:$4 sm:$0xff]   ;;  %v17917_v55 = vld [vmem:[#allocation10 + $0x30c8] ss:$24 sps:$4 sm:$0xff]  }
 0x655   :  { %12581 = vmatprep.subr.bf16.mxu1 %v17862_v40  ;;  %v17920_v40 = vld [vmem:[#allocation10 + $0x33c8] ss:$24 sps:$4 sm:$0xff]  }
 0x657   :  { %12541 = vmatpush1.bf16.msra.mxu0 %v17857_v62  ;;  %v17925_v62 = vld [vmem:[#allocation10 + $0x30fc] ss:$24 sps:$4 sm:$0xff]  }
 0x658   :  { %12582 = vmatpush1.bf16.msra.mxu1 %v17860_v28  ;;  %12542 = vmatprep.subr.bf16.mxu0 %v17865_v51  ;;  %v17928_v28 = vld [vmem:[#allocation10 + $0x33fc] ss:$24 sps:$4 sm:$0xff]   ;;  %v17923_v51 = vld [vmem:[#allocation10 + $0x30f8] ss:$24 sps:$4 sm:$0xff]  }
 0x659   :  { %12583 = vmatprep.subr.bf16.mxu1 %v17868_v1  ;;  %v17926_v1 = vld [vmem:[#allocation10 + $0x33f8] ss:$24 sps:$4 sm:$0xff]  }
 0x65b   :  { %12543 = vmatpush1.bf16.msra.mxu0 %v17863_v43  ;;  %v17931_v43 = vld [vmem:[#allocation10 + $0x312c] ss:$24 sps:$4 sm:$0xff]  }
 0x65c   :  { %12584 = vmatpush1.bf16.msra.mxu1 %v17866_v3  ;;  %12544 = vmatprep.subr.bf16.mxu0 %v17871_v21  ;;  %v17934_v3 = vld [vmem:[#allocation10 + $0x342c] ss:$24 sps:$4 sm:$0xff]  }
 0x65d   :  { %12585 = vmatprep.subr.bf16.mxu1 %v17874_v11 }
 0x65f   :  { %12545 = vmatpush1.bf16.msra.mxu0 %v17869_v53 }
 0x660   :  { %12586 = vmatpush1.bf16.msra.mxu1 %v17872_v27  ;;  %12546 = vmatprep.subr.bf16.mxu0 %v17877_v61 }
 0x661   :  { %12587 = vmatprep.subr.bf16.mxu1 %v17880_v0 }
 0x663   :  { %12547 = vmatpush1.bf16.msra.mxu0 %v17875_v56 }
 0x664   :  { %12588 = vmatpush1.bf16.msra.mxu1 %v17878_v59  ;;  %12548 = vmatprep.subr.bf16.mxu0 %v17883_v15  ;;  %v17929_v15 = vld [vmem:[#allocation10 + $0x3128] ss:$24 sps:$4 sm:$0xff]  }
 0x665   :  { %12589 = vmatprep.subr.bf16.mxu1 %v17886_v24  ;;  %v17932_v24 = vld [vmem:[#allocation10 + $0x3428] ss:$24 sps:$4 sm:$0xff]  }
 0x667   :  { %12549 = vmatpush1.bf16.msra.mxu0 %v17881_v35 }
 0x668   :  { %12590 = vmatpush1.bf16.msra.mxu1 %v17884_v60  ;;  %12550 = vmatprep.subr.bf16.mxu0 %v17889_v2 }
 0x669   :  { %12591 = vmatprep.subr.bf16.mxu1 %v17892_v7  ;;  %v17937_v7 = vld [vmem:[#allocation10 + $0x315c] ss:$24 sps:$4 sm:$0xff]  }
 0x66b   :  { %12551 = vmatpush1.bf16.msra.mxu0 %v17887_v57  ;;  %v17940_v57 = vld [vmem:[#allocation10 + $0x345c] ss:$24 sps:$4 sm:$0xff]  }
 0x66c   :  { %12592 = vmatpush1.bf16.msra.mxu1 %v17890_v5  ;;  %12602 = vmatprep.subr.bf16.mxu0 %v17895_v39  ;;  %v17943_v39 = vld [vmem:[#allocation10 + $0x318c] ss:$24 sps:$4 sm:$0xff]  }
 0x66d   :  { %12643 = vmatprep.subr.bf16.mxu1 %v17898_v17  ;;  %v17946_v17 = vld [vmem:[#allocation10 + $0x348c] ss:$24 sps:$4 sm:$0xff]  }
 0x66e   :  { %12553 = vmatmul.mubr.bf16.vlgmr.msra.gmra.mrb[88].mxu0 %v19070_v34 }
 0x66f   :  { %12594 = vmatmul.mubr.bf16.vlgmr.msra.gmra.mrb[88].mxu1 %v19072_v8  ;;  %12603 = vmatpush1.bf16.msra.mxu0 %v17893_v36  ;;  %v17941_v36 = vld [vmem:[#allocation10 + $0x3188] ss:$24 sps:$4 sm:$0xff]  }
 0x670   :  { %12644 = vmatpush1.bf16.msra.mxu1 %v17896_v22  ;;  %12604 = vmatprep.subr.bf16.mxu0 %v17901_v19  ;;  %v17944_v22 = vld [vmem:[#allocation10 + $0x3488] ss:$24 sps:$4 sm:$0xff]   ;;  %v17949_v19 = vld [vmem:[#allocation10 + $0x31bc] ss:$24 sps:$4 sm:$0xff]  }
 0x671   :  { %12645 = vmatprep.subr.bf16.mxu1 %v17904_v32  ;;  %12634 = vmatprep.mubr.bf16.mxu0 %v19074_v18  ;;  %v17952_v32 = vld [vmem:[#allocation10 + $0x34bc] ss:$24 sps:$4 sm:$0xff]  }
 0x672   :  { %12675 = vmatprep.mubr.bf16.mxu1 %v19076_v29 }
 0x673   :  { %12605 = vmatpush1.bf16.msra.mxu0 %v17899_v25  ;;  %v17947_v25 = vld [vmem:[#allocation10 + $0x31b8] ss:$24 sps:$4 sm:$0xff]  }
 0x674   :  { %12646 = vmatpush1.bf16.msra.mxu1 %v17902_v31  ;;  %12606 = vmatprep.subr.bf16.mxu0 %v17907_v50  ;;  %v17950_v31 = vld [vmem:[#allocation10 + $0x34b8] ss:$24 sps:$4 sm:$0xff]   ;;  %v17955_v50 = vld [vmem:[#allocation10 + $0x31ec] ss:$24 sps:$4 sm:$0xff]  }
 0x675   :  { %12647 = vmatprep.subr.bf16.mxu1 %v17910_v58  ;;  %v17958_v58 = vld [vmem:[#allocation10 + $0x34ec] ss:$24 sps:$4 sm:$0xff]  }
 0x677   :  { %12607 = vmatpush1.bf16.msra.mxu0 %v17905_v16  ;;  %v17953_v16 = vld [vmem:[#allocation10 + $0x31e8] ss:$24 sps:$4 sm:$0xff]  }
 0x678   :  { %12648 = vmatpush1.bf16.msra.mxu1 %v17908_v20  ;;  %12608 = vmatprep.subr.bf16.mxu0 %v17913_v52  ;;  %v17956_v20 = vld [vmem:[#allocation10 + $0x34e8] ss:$24 sps:$4 sm:$0xff]   ;;  %v17961_v52 = vld [vmem:[#allocation10 + $0x321c] ss:$24 sps:$4 sm:$0xff]  }
 0x679   :  { %12649 = vmatprep.subr.bf16.mxu1 %v17916_v63  ;;  %v17964_v63 = vld [vmem:[#allocation10 + $0x351c] ss:$24 sps:$4 sm:$0xff]  }
 0x67b   :  { %12609 = vmatpush1.bf16.msra.mxu0 %v17911_v46  ;;  %v17959_v46 = vld [vmem:[#allocation10 + $0x3218] ss:$24 sps:$4 sm:$0xff]  }
 0x67c   :  { %12650 = vmatpush1.bf16.msra.mxu1 %v17914_v26  ;;  %12610 = vmatprep.subr.bf16.mxu0 %v17919_v44  ;;  %v17962_v26 = vld [vmem:[#allocation10 + $0x3518] ss:$24 sps:$4 sm:$0xff]   ;;  %v17967_v44 = vld [vmem:[#allocation10 + $0x324c] ss:$24 sps:$4 sm:$0xff]  }
 0x67d   :  { %12651 = vmatprep.subr.bf16.mxu1 %v17922_v45  ;;  %v17970_v45 = vld [vmem:[#allocation10 + $0x354c] ss:$24 sps:$4 sm:$0xff]  }
 0x67f   :  { %12611 = vmatpush1.bf16.msra.mxu0 %v17917_v55  ;;  %v17965_v55 = vld [vmem:[#allocation10 + $0x3248] ss:$24 sps:$4 sm:$0xff]  }
 0x680   :  { %12652 = vmatpush1.bf16.msra.mxu1 %v17920_v40  ;;  %12612 = vmatprep.subr.bf16.mxu0 %v17925_v62  ;;  %v17968_v40 = vld [vmem:[#allocation10 + $0x3548] ss:$24 sps:$4 sm:$0xff]   ;;  %v17973_v62 = vld [vmem:[#allocation10 + $0x327c] ss:$24 sps:$4 sm:$0xff]  }
 0x681   :  { %12653 = vmatprep.subr.bf16.mxu1 %v17928_v28  ;;  %v12308_v21 = vpop.f32.mrb[76].mxu0  ;;  %v17976_v28 = vld [vmem:[#allocation10 + $0x357c] ss:$24 sps:$4 sm:$0xff]  }
 0x682   :  { %v12349_v11 = vpop.f32.mrb[76].mxu1  ;;  %v12309_v53 = vadd.f32 %v12308_v21, %v19106_v4  ;;  %v12310_v27 = vpop.f32.mrb[77].mxu0  ;;  %v17935_v4 = vld [vmem:[#allocation10 + $0x3158] ss:$24 sps:$4 sm:$0xff]   ;;  %v17977_v21 = vld [vmem:[#allocation10 + $0x32a8] ss:$24 sps:$4 sm:$0xff]  }
 0x683   :  { %v12351_v61 = vpop.f32.mrb[77].mxu1  ;;  %v12311_v0 = vadd.f32 %v12310_v27, %v19108_v13  ;;  %v12312_v56 = vpop.f32.mrb[78].mxu0  ;;  %12613 = vmatpush1.bf16.msra.mxu0 %v17923_v51  ;;  %v17938_v13 = vld [vmem:[#allocation10 + $0x3458] ss:$24 sps:$4 sm:$0xff]   ;;  %v17988_v27 = vld [vmem:[#allocation10 + $0x35dc] ss:$24 sps:$4 sm:$0xff]  }
 0x684   :  { %v12353_v59 = vpop.f32.mrb[78].mxu1  ;;  %12654 = vmatpush1.bf16.msra.mxu1 %v17926_v1  ;;  %v19116_v35 = vadd.f32 %v12349_v11, %v12309_v53  ;;  %v12313_v60 = vpop.f32.mrb[79].mxu0  ;;  %12614 = vmatprep.subr.bf16.mxu0 %v17931_v43  ;;  %v17971_v51 = vld [vmem:[#allocation10 + $0x3278] ss:$24 sps:$4 sm:$0xff]   ;;  %v17979_v43 = vld [vmem:[#allocation10 + $0x32ac] ss:$24 sps:$4 sm:$0xff]  }
 0x685   :  { %v12354_v2 = vpop.f32.mrb[79].mxu1  ;;  %12655 = vmatprep.subr.bf16.mxu1 %v17934_v3  ;;  %v19118_v5 = vadd.f32 %v12351_v61, %v12311_v0  ;;  %v17974_v1 = vld [vmem:[#allocation10 + $0x3578] ss:$24 sps:$4 sm:$0xff]   ;;  %v17982_v3 = vld [vmem:[#allocation10 + $0x35ac] ss:$24 sps:$4 sm:$0xff]  }
 0x686   :  { %v17980_v11 = vld [vmem:[#allocation10 + $0x35a8] ss:$24 sps:$4 sm:$0xff]   ;;  %v17985_v53 = vld [vmem:[#allocation10 + $0x32dc] ss:$24 sps:$4 sm:$0xff]   ;;  %v17983_v61 = vld [vmem:[#allocation10 + $0x32d8] ss:$24 sps:$4 sm:$0xff]  }
 0x687   :  { %12615 = vmatpush1.bf16.msra.mxu0 %v17929_v15  ;;  %v17986_v0 = vld [vmem:[#allocation10 + $0x35d8] ss:$24 sps:$4 sm:$0xff]   ;;  %v17991_v56 = vld [vmem:[#allocation10 + $0x2414] ss:$24 sps:$4 sm:$0xff]   ;;  %v17997_v60 = vld [vmem:[#allocation10 + $0x2444] ss:$24 sps:$4 sm:$0xff]  }
 0x688   :  { %12656 = vmatpush1.bf16.msra.mxu1 %v17932_v24  ;;  %12616 = vmatprep.subr.bf16.mxu0 %v17937_v7  ;;  %v17994_v59 = vld [vmem:[#allocation10 + $0x2714] ss:$24 sps:$4 sm:$0xff]   ;;  %v17989_v15 = vld [vmem:[#allocation10 + $0x2410] ss:$24 sps:$4 sm:$0xff]   ;;  %v18000_v2 = vld [vmem:[#allocation10 + $0x2744] ss:$24 sps:$4 sm:$0xff]  }
 0x689   :  { %12657 = vmatprep.subr.bf16.mxu1 %v17940_v57  ;;  %v17992_v24 = vld [vmem:[#allocation10 + $0x2710] ss:$24 sps:$4 sm:$0xff]   ;;  %v17995_v7 = vld [vmem:[#allocation10 + $0x2440] ss:$24 sps:$4 sm:$0xff]  }
 0x68a   :  { %v17998_v57 = vld [vmem:[#allocation10 + $0x2740] ss:$24 sps:$4 sm:$0xff]  }
 0x68b   :  { %12617 = vmatpush1.bf16.msra.mxu0 %v17935_v4  ;;  %v18003_v4 = vld [vmem:[#allocation10 + $0x2474] ss:$24 sps:$4 sm:$0xff]  }
 0x68c   :  { %12658 = vmatpush1.bf16.msra.mxu1 %v17938_v13  ;;  %12618 = vmatprep.subr.bf16.mxu0 %v17943_v39  ;;  %v18006_v13 = vld [vmem:[#allocation10 + $0x2774] ss:$24 sps:$4 sm:$0xff]   ;;  %v18001_v39 = vld [vmem:[#allocation10 + $0x2470] ss:$24 sps:$4 sm:$0xff]  }
 0x68d   :  { %12659 = vmatprep.subr.bf16.mxu1 %v17946_v17  ;;  %v18004_v17 = vld [vmem:[#allocation10 + $0x2770] ss:$24 sps:$4 sm:$0xff]  }
 0x68f   :  { %12619 = vmatpush1.bf16.msra.mxu0 %v17941_v36  ;;  %v18009_v36 = vld [vmem:[#allocation10 + $0x24a4] ss:$24 sps:$4 sm:$0xff]  }
 0x690   :  { %12660 = vmatpush1.bf16.msra.mxu1 %v17944_v22  ;;  %12620 = vmatprep.subr.bf16.mxu0 %v17949_v19  ;;  %v18012_v22 = vld [vmem:[#allocation10 + $0x27a4] ss:$24 sps:$4 sm:$0xff]   ;;  %v18007_v19 = vld [vmem:[#allocation10 + $0x24a0] ss:$24 sps:$4 sm:$0xff]  }
 0x691   :  { %12661 = vmatprep.subr.bf16.mxu1 %v17952_v32  ;;  %v18010_v32 = vld [vmem:[#allocation10 + $0x27a0] ss:$24 sps:$4 sm:$0xff]  }
 0x693   :  { %12621 = vmatpush1.bf16.msra.mxu0 %v17947_v25  ;;  %v18015_v25 = vld [vmem:[#allocation10 + $0x24d4] ss:$24 sps:$4 sm:$0xff]  }
 0x694   :  { %12662 = vmatpush1.bf16.msra.mxu1 %v17950_v31  ;;  %12622 = vmatprep.subr.bf16.mxu0 %v17955_v50  ;;  %v18018_v31 = vld [vmem:[#allocation10 + $0x27d4] ss:$24 sps:$4 sm:$0xff]   ;;  %v18021_v50 = vld [vmem:[#allocation10 + $0x2504] ss:$24 sps:$4 sm:$0xff]  }
 0x695   :  { %12663 = vmatprep.subr.bf16.mxu1 %v17958_v58  ;;  %v18024_v58 = vld [vmem:[#allocation10 + $0x2804] ss:$24 sps:$4 sm:$0xff]  }
 0x697   :  { %12623 = vmatpush1.bf16.msra.mxu0 %v17953_v16  ;;  %v18019_v16 = vld [vmem:[#allocation10 + $0x2500] ss:$24 sps:$4 sm:$0xff]  }
 0x698   :  { %12664 = vmatpush1.bf16.msra.mxu1 %v17956_v20  ;;  %12624 = vmatprep.subr.bf16.mxu0 %v17961_v52  ;;  %v18022_v20 = vld [vmem:[#allocation10 + $0x2800] ss:$24 sps:$4 sm:$0xff]   ;;  %v18027_v52 = vld [vmem:[#allocation10 + $0x2534] ss:$24 sps:$4 sm:$0xff]  }
 0x699   :  { %12665 = vmatprep.subr.bf16.mxu1 %v17964_v63  ;;  %v18030_v63 = vld [vmem:[#allocation10 + $0x2834] ss:$24 sps:$4 sm:$0xff]  }
 0x69b   :  { %12625 = vmatpush1.bf16.msra.mxu0 %v17959_v46 }
 0x69c   :  { %12666 = vmatpush1.bf16.msra.mxu1 %v17962_v26  ;;  %12626 = vmatprep.subr.bf16.mxu0 %v17967_v44 }
 0x69d   :  { %12667 = vmatprep.subr.bf16.mxu1 %v17970_v45 }
 0x69f   :  { %12627 = vmatpush1.bf16.msra.mxu0 %v17965_v55 }
 0x6a0   :  { %12668 = vmatpush1.bf16.msra.mxu1 %v17968_v40  ;;  %12628 = vmatprep.subr.bf16.mxu0 %v17973_v62 }
 0x6a1   :  { %12669 = vmatprep.subr.bf16.mxu1 %v17976_v28 }
 0x6a3   :  { %12629 = vmatpush1.bf16.msra.mxu0 %v17971_v51  ;;  %v18025_v51 = vld [vmem:[#allocation10 + $0x2530] ss:$24 sps:$4 sm:$0xff]  }
 0x6a4   :  { %12670 = vmatpush1.bf16.msra.mxu1 %v17974_v1  ;;  %12630 = vmatprep.subr.bf16.mxu0 %v17979_v43  ;;  %v18028_v1 = vld [vmem:[#allocation10 + $0x2830] ss:$24 sps:$4 sm:$0xff]  }
 0x6a5   :  { %12671 = vmatprep.subr.bf16.mxu1 %v17982_v3 }
 0x6a7   :  { %12631 = vmatpush1.bf16.msra.mxu0 %v17977_v21 }
 0x6a8   :  { %12672 = vmatpush1.bf16.msra.mxu1 %v17980_v11  ;;  %12632 = vmatprep.subr.bf16.mxu0 %v17985_v53  ;;  %v18033_v11 = vld [vmem:[#allocation10 + $0x2564] ss:$24 sps:$4 sm:$0xff]  }
 0x6a9   :  { %12673 = vmatprep.subr.bf16.mxu1 %v17988_v27  ;;  %v18036_v53 = vld [vmem:[#allocation10 + $0x2864] ss:$24 sps:$4 sm:$0xff]  }
 0x6ab   :  { %12633 = vmatpush1.bf16.msra.mxu0 %v17983_v61 }
 0x6ac   :  { %12674 = vmatpush1.bf16.msra.mxu1 %v17986_v0  ;;  %12684 = vmatprep.subr.bf16.mxu0 %v17991_v56  ;;  %v18034_v0 = vld [vmem:[#allocation10 + $0x2860] ss:$24 sps:$4 sm:$0xff]   ;;  %v18039_v56 = vld [vmem:[#allocation10 + $0x2594] ss:$24 sps:$4 sm:$0xff]  }
 0x6ad   :  { %12725 = vmatprep.subr.bf16.mxu1 %v17994_v59  ;;  %v18042_v59 = vld [vmem:[#allocation10 + $0x2894] ss:$24 sps:$4 sm:$0xff]  }
 0x6ae   :  { %12635 = vmatmul.mubr.bf16.vlgmr.msra.gmra.mrb[92].mxu0 %v19088_v10 }
 0x6af   :  { %12676 = vmatmul.mubr.bf16.vlgmr.msra.gmra.mrb[92].mxu1 %v19090_v48  ;;  %12685 = vmatpush1.bf16.msra.mxu0 %v17989_v15  ;;  %v18037_v15 = vld [vmem:[#allocation10 + $0x2590] ss:$24 sps:$4 sm:$0xff]  }
 0x6b0   :  { %12726 = vmatpush1.bf16.msra.mxu1 %v17992_v24  ;;  %12686 = vmatprep.subr.bf16.mxu0 %v17997_v60  ;;  %v18040_v24 = vld [vmem:[#allocation10 + $0x2890] ss:$24 sps:$4 sm:$0xff]   ;;  %v18045_v60 = vld [vmem:[#allocation10 + $0x25c4] ss:$24 sps:$4 sm:$0xff]  }
 0x6b1   :  { %12727 = vmatprep.subr.bf16.mxu1 %v18000_v2  ;;  %12716 = vmatprep.mubr.bf16.mxu0 %v19038_v9  ;;  %v18013_v9 = vld [vmem:[#allocation10 + $0x24d0] ss:$24 sps:$4 sm:$0xff]   ;;  %v18046_v2 = vld [vmem:[#allocation10 + $0x28c0] ss:$24 sps:$4 sm:$0xff]  }
 0x6b2   :  { %12757 = vmatprep.mubr.bf16.mxu1 %v19040_v14  ;;  %v18016_v14 = vld [vmem:[#allocation10 + $0x27d0] ss:$24 sps:$4 sm:$0xff]  }
 0x6b3   :  { %12687 = vmatpush1.bf16.msra.mxu0 %v17995_v7  ;;  %v18051_v7 = vld [vmem:[#allocation10 + $0x25f4] ss:$24 sps:$4 sm:$0xff]  }
 0x6b4   :  { %12728 = vmatpush1.bf16.msra.mxu1 %v17998_v57  ;;  %12688 = vmatprep.subr.bf16.mxu0 %v18003_v4  ;;  %v18054_v57 = vld [vmem:[#allocation10 + $0x28f4] ss:$24 sps:$4 sm:$0xff]   ;;  %v18049_v4 = vld [vmem:[#allocation10 + $0x25f0] ss:$24 sps:$4 sm:$0xff]  }
 0x6b5   :  { %12729 = vmatprep.subr.bf16.mxu1 %v18006_v13  ;;  %v18052_v13 = vld [vmem:[#allocation10 + $0x28f0] ss:$24 sps:$4 sm:$0xff]  }
 0x6b7   :  { %12689 = vmatpush1.bf16.msra.mxu0 %v18001_v39  ;;  %v18057_v39 = vld [vmem:[#allocation10 + $0x2624] ss:$24 sps:$4 sm:$0xff]  }
 0x6b8   :  { %12730 = vmatpush1.bf16.msra.mxu1 %v18004_v17  ;;  %12690 = vmatprep.subr.bf16.mxu0 %v18009_v36  ;;  %v18060_v17 = vld [vmem:[#allocation10 + $0x2924] ss:$24 sps:$4 sm:$0xff]   ;;  %v18055_v36 = vld [vmem:[#allocation10 + $0x2620] ss:$24 sps:$4 sm:$0xff]  }
 0x6b9   :  { %12731 = vmatprep.subr.bf16.mxu1 %v18012_v22  ;;  %v18058_v22 = vld [vmem:[#allocation10 + $0x2920] ss:$24 sps:$4 sm:$0xff]  }
 0x6bb   :  { %12691 = vmatpush1.bf16.msra.mxu0 %v18007_v19  ;;  %v18063_v19 = vld [vmem:[#allocation10 + $0x2654] ss:$24 sps:$4 sm:$0xff]  }
 0x6bc   :  { %12732 = vmatpush1.bf16.msra.mxu1 %v18010_v32  ;;  %12692 = vmatprep.subr.bf16.mxu0 %v18015_v25  ;;  %v18066_v32 = vld [vmem:[#allocation10 + $0x2954] ss:$24 sps:$4 sm:$0xff]   ;;  %v18061_v25 = vld [vmem:[#allocation10 + $0x2650] ss:$24 sps:$4 sm:$0xff]  }
 0x6bd   :  { %12733 = vmatprep.subr.bf16.mxu1 %v18018_v31  ;;  %v18064_v31 = vld [vmem:[#allocation10 + $0x2950] ss:$24 sps:$4 sm:$0xff]  }
 0x6bf   :  { %12693 = vmatpush1.bf16.msra.mxu0 %v18013_v9  ;;  %v18069_v9 = vld [vmem:[#allocation10 + $0x2684] ss:$24 sps:$4 sm:$0xff]  }
 0x6c0   :  { %12734 = vmatpush1.bf16.msra.mxu1 %v18016_v14  ;;  %12694 = vmatprep.subr.bf16.mxu0 %v18021_v50  ;;  %v18072_v14 = vld [vmem:[#allocation10 + $0x2984] ss:$24 sps:$4 sm:$0xff]   ;;  %v18067_v50 = vld [vmem:[#allocation10 + $0x2680] ss:$24 sps:$4 sm:$0xff]  }
 0x6c1   :  { %12735 = vmatprep.subr.bf16.mxu1 %v18024_v58  ;;  %v12390_v46 = vpop.f32.mrb[80].mxu0  ;;  %v18070_v58 = vld [vmem:[#allocation10 + $0x2980] ss:$24 sps:$4 sm:$0xff]  }
 0x6c2   :  { %v12431_v26 = vpop.f32.mrb[80].mxu1  ;;  %v12391_v44 = vadd.f32 %v12390_v46, %v19116_v35  ;;  %v12392_v45 = vpop.f32.mrb[81].mxu0  ;;  %v18081_v46 = vld [vmem:[#allocation10 + $0x26e4] ss:$24 sps:$4 sm:$0xff]  }
 0x6c3   :  { %v12433_v55 = vpop.f32.mrb[81].mxu1  ;;  %v12393_v40 = vadd.f32 %v12392_v45, %v19118_v5  ;;  %v12394_v62 = vpop.f32.mrb[82].mxu0  ;;  %12695 = vmatpush1.bf16.msra.mxu0 %v18019_v16  ;;  %v18031_v5 = vld [vmem:[#allocation10 + $0x2560] ss:$24 sps:$4 sm:$0xff]   ;;  %v18075_v16 = vld [vmem:[#allocation10 + $0x26b4] ss:$24 sps:$4 sm:$0xff]  }
 0x6c4   :  { %v12435_v28 = vpop.f32.mrb[82].mxu1  ;;  %12736 = vmatpush1.bf16.msra.mxu1 %v18022_v20  ;;  %v12432_v43 = vadd.f32 %v12431_v26, %v12391_v44  ;;  %v12395_v3 = vpop.f32.mrb[83].mxu0  ;;  %12696 = vmatprep.subr.bf16.mxu0 %v18027_v52  ;;  %v18078_v20 = vld [vmem:[#allocation10 + $0x29b4] ss:$24 sps:$4 sm:$0xff]   ;;  %v18073_v52 = vld [vmem:[#allocation10 + $0x26b0] ss:$24 sps:$4 sm:$0xff]  }
 0x6c5   :  { %v12436_v21 = vpop.f32.mrb[83].mxu1  ;;  %12737 = vmatprep.subr.bf16.mxu1 %v18030_v63  ;;  %v12434_v27 = vadd.f32 %v12433_v55, %v12393_v40  ;;  %v18076_v63 = vld [vmem:[#allocation10 + $0x29b0] ss:$24 sps:$4 sm:$0xff]   ;;  %v18084_v26 = vld [vmem:[#allocation10 + $0x29e4] ss:$24 sps:$4 sm:$0xff]  }
 0x6c6   :  { %v19127_v35 = vadd.f32 %v12432_v43, %v19014_v23  ;;  %v18048_v23 = vld [vmem:[#allocation10 + $0x28c4] ss:$24 sps:$4 sm:$0xff]   ;;  %v18079_v44 = vld [vmem:[#allocation10 + $0x26e0] ss:$24 sps:$4 sm:$0xff]   ;;  %v18087_v55 = vld [vmem:[#allocation10 + $0x2a14] ss:$24 sps:$4 sm:$0xff]  }
 0x6c7   :  { %v19130_v61 = vadd.f32 %v12434_v27, %v19016_v33  ;;  %12697 = vmatpush1.bf16.msra.mxu0 %v18025_v51  ;;  %v18043_v33 = vld [vmem:[#allocation10 + $0x25c0] ss:$24 sps:$4 sm:$0xff]   ;;  %v18090_v40 = vld [vmem:[#allocation10 + $0x2d14] ss:$24 sps:$4 sm:$0xff]   ;;  %v18085_v62 = vld [vmem:[#allocation10 + $0x2a10] ss:$24 sps:$4 sm:$0xff]  }
 0x6c8   :  { %12738 = vmatpush1.bf16.msra.mxu1 %v18028_v1  ;;  %12698 = vmatprep.subr.bf16.mxu0 %v18033_v11  ;;  %v18082_v45 = vld [vmem:[#allocation10 + $0x29e0] ss:$24 sps:$4 sm:$0xff]   ;;  %v18088_v28 = vld [vmem:[#allocation10 + $0x2d10] ss:$24 sps:$4 sm:$0xff]   ;;  %v18093_v51 = vld [vmem:[#allocation10 + $0x2a44] ss:$24 sps:$4 sm:$0xff]  }
 0x6c9   :  { %12739 = vmatprep.subr.bf16.mxu1 %v18036_v53  ;;  %v18096_v1 = vld [vmem:[#allocation10 + $0x2d44] ss:$24 sps:$4 sm:$0xff]   ;;  %v18091_v43 = vld [vmem:[#allocation10 + $0x2a40] ss:$24 sps:$4 sm:$0xff]   ;;  %v18099_v21 = vld [vmem:[#allocation10 + $0x2a74] ss:$24 sps:$4 sm:$0xff]  }
 0x6ca   :  { %v18094_v3 = vld [vmem:[#allocation10 + $0x2d40] ss:$24 sps:$4 sm:$0xff]   ;;  %v18102_v11 = vld [vmem:[#allocation10 + $0x2d74] ss:$24 sps:$4 sm:$0xff]   ;;  %v18097_v53 = vld [vmem:[#allocation10 + $0x2a70] ss:$24 sps:$4 sm:$0xff]  }
 0x6cb   :  { %12699 = vmatpush1.bf16.msra.mxu0 %v18031_v5  ;;  %v18100_v27 = vld [vmem:[#allocation10 + $0x2d70] ss:$24 sps:$4 sm:$0xff]   ;;  %v18103_v5 = vld [vmem:[#allocation10 + $0x2aa0] ss:$24 sps:$4 sm:$0xff]  }
 0x6cc   :  { %12740 = vmatpush1.bf16.msra.mxu1 %v18034_v0  ;;  %12700 = vmatprep.subr.bf16.mxu0 %v18039_v56  ;;  %v18106_v0 = vld [vmem:[#allocation10 + $0x2da0] ss:$24 sps:$4 sm:$0xff]   ;;  %v18111_v56 = vld [vmem:[#allocation10 + $0x2ad4] ss:$24 sps:$4 sm:$0xff]  }
 0x6cd   :  { %12741 = vmatprep.subr.bf16.mxu1 %v18042_v59  ;;  %v18114_v59 = vld [vmem:[#allocation10 + $0x2dd4] ss:$24 sps:$4 sm:$0xff]  }
 0x6cf   :  { %12701 = vmatpush1.bf16.msra.mxu0 %v18037_v15  ;;  %v18117_v15 = vld [vmem:[#allocation10 + $0x2b04] ss:$24 sps:$4 sm:$0xff]  }
 0x6d0   :  { %12742 = vmatpush1.bf16.msra.mxu1 %v18040_v24  ;;  %12702 = vmatprep.subr.bf16.mxu0 %v18045_v60  ;;  %v18120_v24 = vld [vmem:[#allocation10 + $0x2e04] ss:$24 sps:$4 sm:$0xff]   ;;  %v18115_v60 = vld [vmem:[#allocation10 + $0x2b00] ss:$24 sps:$4 sm:$0xff]  }
 0x6d1   :  { %12743 = vmatprep.subr.bf16.mxu1 %v18048_v23  ;;  %v18118_v23 = vld [vmem:[#allocation10 + $0x2e00] ss:$24 sps:$4 sm:$0xff]  }
 0x6d3   :  { %12703 = vmatpush1.bf16.msra.mxu0 %v18043_v33  ;;  %v18123_v33 = vld [vmem:[#allocation10 + $0x2b34] ss:$24 sps:$4 sm:$0xff]  }
 0x6d4   :  { %12744 = vmatpush1.bf16.msra.mxu1 %v18046_v2  ;;  %12704 = vmatprep.subr.bf16.mxu0 %v18051_v7  ;;  %v18126_v2 = vld [vmem:[#allocation10 + $0x2e34] ss:$24 sps:$4 sm:$0xff]  }
 0x6d5   :  { %12745 = vmatprep.subr.bf16.mxu1 %v18054_v57 }
 0x6d7   :  { %12705 = vmatpush1.bf16.msra.mxu0 %v18049_v4 }
 0x6d8   :  { %12746 = vmatpush1.bf16.msra.mxu1 %v18052_v13  ;;  %12706 = vmatprep.subr.bf16.mxu0 %v18057_v39 }
 0x6d9   :  { %12747 = vmatprep.subr.bf16.mxu1 %v18060_v17 }
 0x6db   :  { %12707 = vmatpush1.bf16.msra.mxu0 %v18055_v36 }
 0x6dc   :  { %12748 = vmatpush1.bf16.msra.mxu1 %v18058_v22  ;;  %12708 = vmatprep.subr.bf16.mxu0 %v18063_v19  ;;  %v18121_v19 = vld [vmem:[#allocation10 + $0x2b30] ss:$24 sps:$4 sm:$0xff]  }
 0x6dd   :  { %12749 = vmatprep.subr.bf16.mxu1 %v18066_v32  ;;  %v18124_v32 = vld [vmem:[#allocation10 + $0x2e30] ss:$24 sps:$4 sm:$0xff]  }
 0x6df   :  { %12709 = vmatpush1.bf16.msra.mxu0 %v18061_v25 }
 0x6e0   :  { %12750 = vmatpush1.bf16.msra.mxu1 %v18064_v31  ;;  %12710 = vmatprep.subr.bf16.mxu0 %v18069_v9  ;;  %v18129_v9 = vld [vmem:[#allocation10 + $0x2b64] ss:$24 sps:$4 sm:$0xff]  }
 0x6e1   :  { %12751 = vmatprep.subr.bf16.mxu1 %v18072_v14  ;;  %v18132_v14 = vld [vmem:[#allocation10 + $0x2e64] ss:$24 sps:$4 sm:$0xff]  }
 0x6e3   :  { %12711 = vmatpush1.bf16.msra.mxu0 %v18067_v50  ;;  %v18127_v50 = vld [vmem:[#allocation10 + $0x2b60] ss:$24 sps:$4 sm:$0xff]  }
 0x6e4   :  { %12752 = vmatpush1.bf16.msra.mxu1 %v18070_v58  ;;  %12712 = vmatprep.subr.bf16.mxu0 %v18075_v16  ;;  %v18130_v58 = vld [vmem:[#allocation10 + $0x2e60] ss:$24 sps:$4 sm:$0xff]   ;;  %v18135_v16 = vld [vmem:[#allocation10 + $0x2b94] ss:$24 sps:$4 sm:$0xff]  }
 0x6e5   :  { %12753 = vmatprep.subr.bf16.mxu1 %v18078_v20  ;;  %v18138_v20 = vld [vmem:[#allocation10 + $0x2e94] ss:$24 sps:$4 sm:$0xff]  }
 0x6e7   :  { %12713 = vmatpush1.bf16.msra.mxu0 %v18073_v52  ;;  %v18133_v52 = vld [vmem:[#allocation10 + $0x2b90] ss:$24 sps:$4 sm:$0xff]  }
 0x6e8   :  { %12754 = vmatpush1.bf16.msra.mxu1 %v18076_v63  ;;  %12714 = vmatprep.subr.bf16.mxu0 %v18081_v46  ;;  %v18136_v63 = vld [vmem:[#allocation10 + $0x2e90] ss:$24 sps:$4 sm:$0xff]   ;;  %v18141_v46 = vld [vmem:[#allocation10 + $0x2bc4] ss:$24 sps:$4 sm:$0xff]  }
 0x6e9   :  { %12755 = vmatprep.subr.bf16.mxu1 %v18084_v26  ;;  %v18144_v26 = vld [vmem:[#allocation10 + $0x2ec4] ss:$24 sps:$4 sm:$0xff]  }
 0x6eb   :  { %12715 = vmatpush1.bf16.msra.mxu0 %v18079_v44  ;;  %v18139_v44 = vld [vmem:[#allocation10 + $0x2bc0] ss:$24 sps:$4 sm:$0xff]  }
 0x6ec   :  { %12756 = vmatpush1.bf16.msra.mxu1 %v18082_v45  ;;  %12766 = vmatprep.subr.bf16.mxu0 %v18087_v55  ;;  %v18142_v45 = vld [vmem:[#allocation10 + $0x2ec0] ss:$24 sps:$4 sm:$0xff]   ;;  %v18147_v55 = vld [vmem:[#allocation10 + $0x2bf4] ss:$24 sps:$4 sm:$0xff]  }
 0x6ed   :  { %12807 = vmatprep.subr.bf16.mxu1 %v18090_v40  ;;  %v18150_v40 = vld [vmem:[#allocation10 + $0x2ef4] ss:$24 sps:$4 sm:$0xff]  }
 0x6ee   :  { %12717 = vmatmul.mubr.bf16.vlgmr.msra.gmra.mrb[96].mxu0 %v19052_v49  ;;  %v18105_v49 = vld [vmem:[#allocation10 + $0x2aa4] ss:$24 sps:$4 sm:$0xff]  }
 0x6ef   :  { %12758 = vmatmul.mubr.bf16.vlgmr.msra.gmra.mrb[96].mxu1 %v19054_v30  ;;  %12767 = vmatpush1.bf16.msra.mxu0 %v18085_v62  ;;  %v18108_v30 = vld [vmem:[#allocation10 + $0x2da4] ss:$24 sps:$4 sm:$0xff]   ;;  %v18145_v62 = vld [vmem:[#allocation10 + $0x2bf0] ss:$24 sps:$4 sm:$0xff]  }
 0x6f0   :  { %12808 = vmatpush1.bf16.msra.mxu1 %v18088_v28  ;;  %12768 = vmatprep.subr.bf16.mxu0 %v18093_v51  ;;  %v18148_v28 = vld [vmem:[#allocation10 + $0x2ef0] ss:$24 sps:$4 sm:$0xff]   ;;  %v18153_v51 = vld [vmem:[#allocation10 + $0x2c24] ss:$24 sps:$4 sm:$0xff]  }
 0x6f1   :  { %12809 = vmatprep.subr.bf16.mxu1 %v18096_v1  ;;  %12798 = vmatprep.mubr.bf16.mxu0 %v19056_v37  ;;  %v18109_v37 = vld [vmem:[#allocation10 + $0x2ad0] ss:$24 sps:$4 sm:$0xff]   ;;  %v18156_v1 = vld [vmem:[#allocation10 + $0x2f24] ss:$24 sps:$4 sm:$0xff]  }
 0x6f2   :  { %12839 = vmatprep.mubr.bf16.mxu1 %v19058_v38  ;;  %v18112_v38 = vld [vmem:[#allocation10 + $0x2dd0] ss:$24 sps:$4 sm:$0xff]  }
 0x6f3   :  { %12769 = vmatpush1.bf16.msra.mxu0 %v18091_v43  ;;  %v18151_v43 = vld [vmem:[#allocation10 + $0x2c20] ss:$24 sps:$4 sm:$0xff]  }
 0x6f4   :  { %12810 = vmatpush1.bf16.msra.mxu1 %v18094_v3  ;;  %12770 = vmatprep.subr.bf16.mxu0 %v18099_v21  ;;  %v18154_v3 = vld [vmem:[#allocation10 + $0x2f20] ss:$24 sps:$4 sm:$0xff]   ;;  %v18159_v21 = vld [vmem:[#allocation10 + $0x2c54] ss:$24 sps:$4 sm:$0xff]  }
 0x6f5   :  { %12811 = vmatprep.subr.bf16.mxu1 %v18102_v11  ;;  %v18162_v11 = vld [vmem:[#allocation10 + $0x2f54] ss:$24 sps:$4 sm:$0xff]  }
 0x6f7   :  { %12771 = vmatpush1.bf16.msra.mxu0 %v18097_v53  ;;  %v18157_v53 = vld [vmem:[#allocation10 + $0x2c50] ss:$24 sps:$4 sm:$0xff]  }
 0x6f8   :  { %12812 = vmatpush1.bf16.msra.mxu1 %v18100_v27  ;;  %12772 = vmatprep.subr.bf16.mxu0 %v18105_v49  ;;  %v18160_v27 = vld [vmem:[#allocation10 + $0x2f50] ss:$24 sps:$4 sm:$0xff]   ;;  %v18165_v49 = vld [vmem:[#allocation10 + $0x2c84] ss:$24 sps:$4 sm:$0xff]  }
 0x6f9   :  { %12813 = vmatprep.subr.bf16.mxu1 %v18108_v30  ;;  %v18168_v30 = vld [vmem:[#allocation10 + $0x2f84] ss:$24 sps:$4 sm:$0xff]  }
 0x6fb   :  { %12773 = vmatpush1.bf16.msra.mxu0 %v18103_v5  ;;  %v18163_v5 = vld [vmem:[#allocation10 + $0x2c80] ss:$24 sps:$4 sm:$0xff]  }
 0x6fc   :  { %12814 = vmatpush1.bf16.msra.mxu1 %v18106_v0  ;;  %12774 = vmatprep.subr.bf16.mxu0 %v18111_v56  ;;  %v18166_v0 = vld [vmem:[#allocation10 + $0x2f80] ss:$24 sps:$4 sm:$0xff]   ;;  %v18171_v56 = vld [vmem:[#allocation10 + $0x2cb4] ss:$24 sps:$4 sm:$0xff]  }
 0x6fd   :  { %12815 = vmatprep.subr.bf16.mxu1 %v18114_v59  ;;  %v18174_v59 = vld [vmem:[#allocation10 + $0x2fb4] ss:$24 sps:$4 sm:$0xff]  }
 0x6ff   :  { %12775 = vmatpush1.bf16.msra.mxu0 %v18109_v37  ;;  %v18169_v37 = vld [vmem:[#allocation10 + $0x2cb0] ss:$24 sps:$4 sm:$0xff]  }
 0x700   :  { %12816 = vmatpush1.bf16.msra.mxu1 %v18112_v38  ;;  %12776 = vmatprep.subr.bf16.mxu0 %v18117_v15  ;;  %v18172_v38 = vld [vmem:[#allocation10 + $0x2fb0] ss:$24 sps:$4 sm:$0xff]   ;;  %v18177_v15 = vld [vmem:[#allocation10 + $0x2ce4] ss:$24 sps:$4 sm:$0xff]  }
 0x701   :  { %12817 = vmatprep.subr.bf16.mxu1 %v18120_v24  ;;  %v12472_v7 = vpop.f32.mrb[84].mxu0  ;;  %v18180_v24 = vld [vmem:[#allocation10 + $0x2fe4] ss:$24 sps:$4 sm:$0xff]  }
 0x702   :  { %v12513_v57 = vpop.f32.mrb[84].mxu1  ;;  %v12474_v13 = vpop.f32.mrb[85].mxu0 }
 0x703   :  { %v19136_v4 = vadd.f32 %v12513_v57, %v12472_v7  ;;  %v12515_v39 = vpop.f32.mrb[85].mxu1  ;;  %v12476_v36 = vpop.f32.mrb[86].mxu0  ;;  %12777 = vmatpush1.bf16.msra.mxu0 %v18115_v60  ;;  %v18175_v60 = vld [vmem:[#allocation10 + $0x2ce0] ss:$24 sps:$4 sm:$0xff]   ;;  %v18181_v7 = vld [vmem:[#allocation10 + $0x3010] ss:$24 sps:$4 sm:$0xff]  }
 0x704   :  { %v19138_v17 = vadd.f32 %v12515_v39, %v12474_v13  ;;  %v12517_v22 = vpop.f32.mrb[86].mxu1  ;;  %12818 = vmatpush1.bf16.msra.mxu1 %v18118_v23  ;;  %v12477_v25 = vpop.f32.mrb[87].mxu0  ;;  %12778 = vmatprep.subr.bf16.mxu0 %v18123_v33  ;;  %v18178_v23 = vld [vmem:[#allocation10 + $0x2fe0] ss:$24 sps:$4 sm:$0xff]   ;;  %v18183_v33 = vld [vmem:[#allocation10 + $0x3014] ss:$24 sps:$4 sm:$0xff]  }
 0x705   :  { %v12518_v31 = vpop.f32.mrb[87].mxu1  ;;  %12819 = vmatprep.subr.bf16.mxu1 %v18126_v2  ;;  %v18186_v2 = vld [vmem:[#allocation10 + $0x3314] ss:$24 sps:$4 sm:$0xff]   ;;  %v18184_v57 = vld [vmem:[#allocation10 + $0x3310] ss:$24 sps:$4 sm:$0xff]  }
 0x706   :  { %v18189_v13 = vld [vmem:[#allocation10 + $0x3044] ss:$24 sps:$4 sm:$0xff]   ;;  %v18187_v36 = vld [vmem:[#allocation10 + $0x3040] ss:$24 sps:$4 sm:$0xff]   ;;  %v18193_v25 = vld [vmem:[#allocation10 + $0x3070] ss:$24 sps:$4 sm:$0xff]  }
 0x707   :  { %12779 = vmatpush1.bf16.msra.mxu0 %v18121_v19  ;;  %v18192_v39 = vld [vmem:[#allocation10 + $0x3344] ss:$24 sps:$4 sm:$0xff]   ;;  %v18190_v22 = vld [vmem:[#allocation10 + $0x3340] ss:$24 sps:$4 sm:$0xff]   ;;  %v18195_v19 = vld [vmem:[#allocation10 + $0x3074] ss:$24 sps:$4 sm:$0xff]  }
 0x708   :  { %12820 = vmatpush1.bf16.msra.mxu1 %v18124_v32  ;;  %12780 = vmatprep.subr.bf16.mxu0 %v18129_v9  ;;  %v18198_v32 = vld [vmem:[#allocation10 + $0x3374] ss:$24 sps:$4 sm:$0xff]   ;;  %v18196_v31 = vld [vmem:[#allocation10 + $0x3370] ss:$24 sps:$4 sm:$0xff]   ;;  %v18199_v9 = vld [vmem:[#allocation10 + $0x30a0] ss:$24 sps:$4 sm:$0xff]  }
 0x709   :  { %12821 = vmatprep.subr.bf16.mxu1 %v18132_v14  ;;  %v18202_v14 = vld [vmem:[#allocation10 + $0x33a0] ss:$24 sps:$4 sm:$0xff]  }
 0x70b   :  { %12781 = vmatpush1.bf16.msra.mxu0 %v18127_v50  ;;  %v18207_v50 = vld [vmem:[#allocation10 + $0x30d4] ss:$24 sps:$4 sm:$0xff]  }
 0x70c   :  { %12822 = vmatpush1.bf16.msra.mxu1 %v18130_v58  ;;  %12782 = vmatprep.subr.bf16.mxu0 %v18135_v16  ;;  %v18210_v58 = vld [vmem:[#allocation10 + $0x33d4] ss:$24 sps:$4 sm:$0xff]   ;;  %v18213_v16 = vld [vmem:[#allocation10 + $0x3104] ss:$24 sps:$4 sm:$0xff]  }
 0x70d   :  { %12823 = vmatprep.subr.bf16.mxu1 %v18138_v20  ;;  %v18216_v20 = vld [vmem:[#allocation10 + $0x3404] ss:$24 sps:$4 sm:$0xff]  }
 0x70f   :  { %12783 = vmatpush1.bf16.msra.mxu0 %v18133_v52  ;;  %v18211_v52 = vld [vmem:[#allocation10 + $0x3100] ss:$24 sps:$4 sm:$0xff]  }
 0x710   :  { %12824 = vmatpush1.bf16.msra.mxu1 %v18136_v63  ;;  %12784 = vmatprep.subr.bf16.mxu0 %v18141_v46  ;;  %v18214_v63 = vld [vmem:[#allocation10 + $0x3400] ss:$24 sps:$4 sm:$0xff]   ;;  %v18219_v46 = vld [vmem:[#allocation10 + $0x3134] ss:$24 sps:$4 sm:$0xff]  }
 0x711   :  { %12825 = vmatprep.subr.bf16.mxu1 %v18144_v26  ;;  %v18222_v26 = vld [vmem:[#allocation10 + $0x3434] ss:$24 sps:$4 sm:$0xff]  }
 0x713   :  { %12785 = vmatpush1.bf16.msra.mxu0 %v18139_v44 }
 0x714   :  { %12826 = vmatpush1.bf16.msra.mxu1 %v18142_v45  ;;  %12786 = vmatprep.subr.bf16.mxu0 %v18147_v55 }
 0x715   :  { %12827 = vmatprep.subr.bf16.mxu1 %v18150_v40 }
 0x717   :  { %12787 = vmatpush1.bf16.msra.mxu0 %v18145_v62 }
 0x718   :  { %12828 = vmatpush1.bf16.msra.mxu1 %v18148_v28  ;;  %12788 = vmatprep.subr.bf16.mxu0 %v18153_v51 }
 0x719   :  { %12829 = vmatprep.subr.bf16.mxu1 %v18156_v1 }
 0x71b   :  { %12789 = vmatpush1.bf16.msra.mxu0 %v18151_v43  ;;  %v18217_v43 = vld [vmem:[#allocation10 + $0x3130] ss:$24 sps:$4 sm:$0xff]  }
 0x71c   :  { %12830 = vmatpush1.bf16.msra.mxu1 %v18154_v3  ;;  %12790 = vmatprep.subr.bf16.mxu0 %v18159_v21  ;;  %v18220_v3 = vld [vmem:[#allocation10 + $0x3430] ss:$24 sps:$4 sm:$0xff]  }
 0x71d   :  { %12831 = vmatprep.subr.bf16.mxu1 %v18162_v11 }
 0x71f   :  { %12791 = vmatpush1.bf16.msra.mxu0 %v18157_v53 }
 0x720   :  { %12832 = vmatpush1.bf16.msra.mxu1 %v18160_v27  ;;  %12792 = vmatprep.subr.bf16.mxu0 %v18165_v49  ;;  %v18225_v27 = vld [vmem:[#allocation10 + $0x3164] ss:$24 sps:$4 sm:$0xff]  }
 0x721   :  { %12833 = vmatprep.subr.bf16.mxu1 %v18168_v30  ;;  %v18228_v49 = vld [vmem:[#allocation10 + $0x3464] ss:$24 sps:$4 sm:$0xff]  }
 0x723   :  { %12793 = vmatpush1.bf16.msra.mxu0 %v18163_v5  ;;  %v18231_v5 = vld [vmem:[#allocation10 + $0x3194] ss:$24 sps:$4 sm:$0xff]  }
 0x724   :  { %12834 = vmatpush1.bf16.msra.mxu1 %v18166_v0  ;;  %12794 = vmatprep.subr.bf16.mxu0 %v18171_v56  ;;  %v18234_v0 = vld [vmem:[#allocation10 + $0x3494] ss:$24 sps:$4 sm:$0xff]   ;;  %v18229_v56 = vld [vmem:[#allocation10 + $0x3190] ss:$24 sps:$4 sm:$0xff]  }
 0x725   :  { %12835 = vmatprep.subr.bf16.mxu1 %v18174_v59  ;;  %v18232_v59 = vld [vmem:[#allocation10 + $0x3490] ss:$24 sps:$4 sm:$0xff]  }
 0x727   :  { %12795 = vmatpush1.bf16.msra.mxu0 %v18169_v37  ;;  %v18237_v37 = vld [vmem:[#allocation10 + $0x31c4] ss:$24 sps:$4 sm:$0xff]  }
 0x728   :  { %12836 = vmatpush1.bf16.msra.mxu1 %v18172_v38  ;;  %12796 = vmatprep.subr.bf16.mxu0 %v18177_v15  ;;  %v18240_v38 = vld [vmem:[#allocation10 + $0x34c4] ss:$24 sps:$4 sm:$0xff]   ;;  %v18235_v15 = vld [vmem:[#allocation10 + $0x31c0] ss:$24 sps:$4 sm:$0xff]  }
 0x729   :  { %12837 = vmatprep.subr.bf16.mxu1 %v18180_v24  ;;  %v18238_v24 = vld [vmem:[#allocation10 + $0x34c0] ss:$24 sps:$4 sm:$0xff]  }
 0x72b   :  { %12797 = vmatpush1.bf16.msra.mxu0 %v18175_v60  ;;  %v18243_v60 = vld [vmem:[#allocation10 + $0x31f4] ss:$24 sps:$4 sm:$0xff]  }
 0x72c   :  { %12838 = vmatpush1.bf16.msra.mxu1 %v18178_v23  ;;  %12848 = vmatprep.subr.bf16.mxu0 %v18183_v33  ;;  %v18246_v23 = vld [vmem:[#allocation10 + $0x34f4] ss:$24 sps:$4 sm:$0xff]   ;;  %v18241_v33 = vld [vmem:[#allocation10 + $0x31f0] ss:$24 sps:$4 sm:$0xff]  }
 0x72d   :  { %12889 = vmatprep.subr.bf16.mxu1 %v18186_v2  ;;  %v18244_v2 = vld [vmem:[#allocation10 + $0x34f0] ss:$24 sps:$4 sm:$0xff]  }
 0x72e   :  { %12799 = vmatmul.mubr.bf16.vlgmr.msra.gmra.mrb[100].mxu0 %v19070_v34  ;;  %v18201_v34 = vld [vmem:[#allocation10 + $0x30a4] ss:$24 sps:$4 sm:$0xff]  }
 0x72f   :  { %12840 = vmatmul.mubr.bf16.vlgmr.msra.gmra.mrb[100].mxu1 %v19072_v8  ;;  %12849 = vmatpush1.bf16.msra.mxu0 %v18181_v7  ;;  %v18204_v8 = vld [vmem:[#allocation10 + $0x33a4] ss:$24 sps:$4 sm:$0xff]  }
 0x730   :  { %12890 = vmatpush1.bf16.msra.mxu1 %v18184_v57  ;;  %12850 = vmatprep.subr.bf16.mxu0 %v18189_v13  ;;  %v18249_v7 = vld [vmem:[#allocation10 + $0x3224] ss:$24 sps:$4 sm:$0xff]   ;;  %v18247_v13 = vld [vmem:[#allocation10 + $0x3220] ss:$24 sps:$4 sm:$0xff]  }
 0x731   :  { %12891 = vmatprep.subr.bf16.mxu1 %v18192_v39  ;;  %12880 = vmatprep.mubr.bf16.mxu0 %v19074_v18  ;;  %v18205_v18 = vld [vmem:[#allocation10 + $0x30d0] ss:$24 sps:$4 sm:$0xff]   ;;  %v18252_v57 = vld [vmem:[#allocation10 + $0x3524] ss:$24 sps:$4 sm:$0xff]   ;;  %v18250_v39 = vld [vmem:[#allocation10 + $0x3520] ss:$24 sps:$4 sm:$0xff]  }
 0x732   :  { %12921 = vmatprep.mubr.bf16.mxu1 %v19076_v29  ;;  %v18208_v29 = vld [vmem:[#allocation10 + $0x33d0] ss:$24 sps:$4 sm:$0xff]  }
 0x733   :  { %12851 = vmatpush1.bf16.msra.mxu0 %v18187_v36  ;;  %v18255_v36 = vld [vmem:[#allocation10 + $0x3254] ss:$24 sps:$4 sm:$0xff]  }
 0x734   :  { %12892 = vmatpush1.bf16.msra.mxu1 %v18190_v22  ;;  %12852 = vmatprep.subr.bf16.mxu0 %v18195_v19  ;;  %v18258_v22 = vld [vmem:[#allocation10 + $0x3554] ss:$24 sps:$4 sm:$0xff]   ;;  %v18253_v19 = vld [vmem:[#allocation10 + $0x3250] ss:$24 sps:$4 sm:$0xff]  }
 0x735   :  { %12893 = vmatprep.subr.bf16.mxu1 %v18198_v32  ;;  %v18256_v32 = vld [vmem:[#allocation10 + $0x3550] ss:$24 sps:$4 sm:$0xff]  }
 0x737   :  { %12853 = vmatpush1.bf16.msra.mxu0 %v18193_v25  ;;  %v18261_v25 = vld [vmem:[#allocation10 + $0x3284] ss:$24 sps:$4 sm:$0xff]  }
 0x738   :  { %12894 = vmatpush1.bf16.msra.mxu1 %v18196_v31  ;;  %12854 = vmatprep.subr.bf16.mxu0 %v18201_v34  ;;  %v18264_v31 = vld [vmem:[#allocation10 + $0x3584] ss:$24 sps:$4 sm:$0xff]   ;;  %v18259_v34 = vld [vmem:[#allocation10 + $0x3280] ss:$24 sps:$4 sm:$0xff]  }
 0x739   :  { %12895 = vmatprep.subr.bf16.mxu1 %v18204_v8  ;;  %v18262_v8 = vld [vmem:[#allocation10 + $0x3580] ss:$24 sps:$4 sm:$0xff]  }
 0x73b   :  { %12855 = vmatpush1.bf16.msra.mxu0 %v18199_v9  ;;  %v18267_v9 = vld [vmem:[#allocation10 + $0x32b4] ss:$24 sps:$4 sm:$0xff]  }
 0x73c   :  { %12896 = vmatpush1.bf16.msra.mxu1 %v18202_v14  ;;  %12856 = vmatprep.subr.bf16.mxu0 %v18207_v50  ;;  %v18270_v14 = vld [vmem:[#allocation10 + $0x35b4] ss:$24 sps:$4 sm:$0xff]   ;;  %v18265_v50 = vld [vmem:[#allocation10 + $0x32b0] ss:$24 sps:$4 sm:$0xff]  }
 0x73d   :  { %12897 = vmatprep.subr.bf16.mxu1 %v18210_v58  ;;  %v18268_v58 = vld [vmem:[#allocation10 + $0x35b0] ss:$24 sps:$4 sm:$0xff]  }
 0x73f   :  { %12857 = vmatpush1.bf16.msra.mxu0 %v18205_v18  ;;  %v18273_v18 = vld [vmem:[#allocation10 + $0x32e4] ss:$24 sps:$4 sm:$0xff]  }
 0x740   :  { %12898 = vmatpush1.bf16.msra.mxu1 %v18208_v29  ;;  %12858 = vmatprep.subr.bf16.mxu0 %v18213_v16  ;;  %v18276_v29 = vld [vmem:[#allocation10 + $0x35e4] ss:$24 sps:$4 sm:$0xff]   ;;  %v18271_v16 = vld [vmem:[#allocation10 + $0x32e0] ss:$24 sps:$4 sm:$0xff]  }
 0x741   :  { %12899 = vmatprep.subr.bf16.mxu1 %v18216_v20  ;;  %v12554_v44 = vpop.f32.mrb[88].mxu0  ;;  %v18274_v20 = vld [vmem:[#allocation10 + $0x35e0] ss:$24 sps:$4 sm:$0xff]  }
 0x742   :  { %v12595_v45 = vpop.f32.mrb[88].mxu1  ;;  %v12555_v55 = vadd.f32 %v12554_v44, %v19136_v4  ;;  %v12556_v40 = vpop.f32.mrb[89].mxu0  ;;  %v18223_v4 = vld [vmem:[#allocation10 + $0x3160] ss:$24 sps:$4 sm:$0xff]  }
 0x743   :  { %v12597_v62 = vpop.f32.mrb[89].mxu1  ;;  %v12557_v28 = vadd.f32 %v12556_v40, %v19138_v17  ;;  %v12558_v51 = vpop.f32.mrb[90].mxu0  ;;  %12859 = vmatpush1.bf16.msra.mxu0 %v18211_v52  ;;  %v18226_v17 = vld [vmem:[#allocation10 + $0x3460] ss:$24 sps:$4 sm:$0xff]  }
 0x744   :  { %v12599_v1 = vpop.f32.mrb[90].mxu1  ;;  %12900 = vmatpush1.bf16.msra.mxu1 %v18214_v63  ;;  %v19146_v21 = vadd.f32 %v12595_v45, %v12555_v55  ;;  %v12559_v11 = vpop.f32.mrb[91].mxu0  ;;  %12860 = vmatprep.subr.bf16.mxu0 %v18219_v46 }
 0x745   :  { %v12600_v53 = vpop.f32.mrb[91].mxu1  ;;  %12901 = vmatprep.subr.bf16.mxu1 %v18222_v26  ;;  %v19148_v30 = vadd.f32 %v12597_v62, %v12557_v28 }
 0x747   :  { %12861 = vmatpush1.bf16.msra.mxu0 %v18217_v43 }
 0x748   :  { %12902 = vmatpush1.bf16.msra.mxu1 %v18220_v3  ;;  %12862 = vmatprep.subr.bf16.mxu0 %v18225_v27 }
 0x749   :  { %12903 = vmatprep.subr.bf16.mxu1 %v18228_v49 }
 0x74b   :  { %12863 = vmatpush1.bf16.msra.mxu0 %v18223_v4 }
 0x74c   :  { %12904 = vmatpush1.bf16.msra.mxu1 %v18226_v17  ;;  %12864 = vmatprep.subr.bf16.mxu0 %v18231_v5 }
 0x74d   :  { %12905 = vmatprep.subr.bf16.mxu1 %v18234_v0 }
 0x74f   :  { %12865 = vmatpush1.bf16.msra.mxu0 %v18229_v56 }
 0x750   :  { %12906 = vmatpush1.bf16.msra.mxu1 %v18232_v59  ;;  %12866 = vmatprep.subr.bf16.mxu0 %v18237_v37 }
 0x751   :  { %12907 = vmatprep.subr.bf16.mxu1 %v18240_v38 }
 0x753   :  { %12867 = vmatpush1.bf16.msra.mxu0 %v18235_v15 }
 0x754   :  { %12908 = vmatpush1.bf16.msra.mxu1 %v18238_v24  ;;  %12868 = vmatprep.subr.bf16.mxu0 %v18243_v60 }
 0x755   :  { %12909 = vmatprep.subr.bf16.mxu1 %v18246_v23 }
 0x757   :  { %12869 = vmatpush1.bf16.msra.mxu0 %v18241_v33  ;;  %v12938_v33 = vlaneseq }
 0x758   :  { %12910 = vmatpush1.bf16.msra.mxu1 %v18244_v2  ;;  %12870 = vmatprep.subr.bf16.mxu0 %v18249_v7 }
 0x759   :  { %12911 = vmatprep.subr.bf16.mxu1 %v18252_v57  ;;  %v12939_v2 = vshrl.u32 %v12938_v33, 7 }
 0x75b   :  { %12871 = vmatpush1.bf16.msra.mxu0 %v18247_v13  ;;  %v19157_v7 = vsub.s32 0, %v12939_v2  ;;  %v19159_v57 = vsub.s32 1, %v12939_v2  ;;  %v12936_v13 = vld [vmem:[#allocation12] sm:$0x3f] }
 0x75c   :  { %12912 = vmatpush1.bf16.msra.mxu1 %v18250_v39  ;;  %12872 = vmatprep.subr.bf16.mxu0 %v18255_v36  ;;  %v19161_v39 = vsub.s32 2, %v12939_v2 }
 0x75d   :  { %12913 = vmatprep.subr.bf16.mxu1 %v18258_v22  ;;  %v12941_v36 = vrot.slane %v12936_v13, %v19157_v7  ;;  %v12945_v22 = vrot.slane %v12936_v13, %v19159_v57 }
 0x75f   :  { %12873 = vmatpush1.bf16.msra.mxu0 %v18253_v19  ;;  %v12949_v19 = vrot.slane %v12936_v13, %v19161_v39 }
 0x760   :  { %12914 = vmatpush1.bf16.msra.mxu1 %v18256_v32  ;;  %12874 = vmatprep.subr.bf16.mxu0 %v18261_v25  ;;  %v19166_v32 = vsub.s32 3, %v12939_v2  ;;  %v12968_v25 = vadd.f32 %v12941_v36, %v19127_v35 }
 0x761   :  { %12915 = vmatprep.subr.bf16.mxu1 %v18264_v31  ;;  %v12969_v31 = vadd.f32 %v12945_v22, %v19130_v61 }
 0x763   :  { %12875 = vmatpush1.bf16.msra.mxu0 %v18259_v34 }
 0x764   :  { %12916 = vmatpush1.bf16.msra.mxu1 %v18262_v8  ;;  %12876 = vmatprep.subr.bf16.mxu0 %v18267_v9  ;;  %v12953_v8 = vrot.slane %v12936_v13, %v19166_v32  ;;  %v12974_v9 = vmax.f32 %v12968_v25, 0.0 }
 0x765   :  { %12917 = vmatprep.subr.bf16.mxu1 %v18270_v14  ;;  %v12975_v14 = vmax.f32 %v12969_v31, 0.0 }
 0x767   :  { %12877 = vmatpush1.bf16.msra.mxu0 %v18265_v50  ;;  %v19171_v50 = vsub.s32 4, %v12939_v2  ;;  %v12980_v61 = vadd.f32 %v12975_v14, %v12974_v9 }
 0x768   :  { %12918 = vmatpush1.bf16.msra.mxu1 %v18268_v58  ;;  %12878 = vmatprep.subr.bf16.mxu0 %v18273_v18 }
 0x769   :  { %12919 = vmatprep.subr.bf16.mxu1 %v18276_v29  ;;  %v19173_v29 = vsub.s32 5, %v12939_v2 }
 0x76b   :  { %12879 = vmatpush1.bf16.msra.mxu0 %v18271_v16 }
 0x76c   :  { %12920 = vmatpush1.bf16.msra.mxu1 %v18274_v20 }
 0x76e   :  { %12881 = vmatmul.mubr.bf16.vlgmr.msra.gmra.mrb[104].mxu0 %v19088_v10 }
 0x76f   :  { %12922 = vmatmul.mubr.bf16.vlgmr.msra.gmra.mrb[104].mxu1 %v19090_v48 }
 0x781   :  { %v12636_v52 = vpop.f32.mrb[92].mxu0 }
 0x782   :  { %v12677_v63 = vpop.f32.mrb[92].mxu1  ;;  %v12637_v46 = vadd.f32 %v12636_v52, %v19146_v21  ;;  %v12638_v26 = vpop.f32.mrb[93].mxu0 }
 0x783   :  { %v12679_v44 = vpop.f32.mrb[93].mxu1  ;;  %v12639_v45 = vadd.f32 %v12638_v26, %v19148_v30  ;;  %v12640_v55 = vpop.f32.mrb[94].mxu0 }
 0x784   :  { %v12681_v40 = vpop.f32.mrb[94].mxu1  ;;  %v12678_v62 = vadd.f32 %v12677_v63, %v12637_v46  ;;  %v12641_v28 = vpop.f32.mrb[95].mxu0 }
 0x785   :  { %v12682_v51 = vpop.f32.mrb[95].mxu1  ;;  %v12680_v1 = vadd.f32 %v12679_v44, %v12639_v45 }
 0x786   :  { %v12932_v43 = vadd.f32 %v12678_v62, %v19048_v41  ;;  %v12957_v62 = vrot.slane %v12936_v13, %v19171_v50  ;;  %v12961_v51 = vrot.slane %v12936_v13, %v19173_v29 }
 0x787   :  { %v12933_v10 = vadd.f32 %v12680_v1, %v19050_v47 }
 0x788   :  { %v12970_v34 = vadd.f32 %v12949_v19, %v12932_v43 }
 0x789   :  { %v12971_v20 = vadd.f32 %v12953_v8, %v12933_v10 }
 0x78a   :  { %v12976_v16 = vmax.f32 %v12970_v34, 0.0 }
 0x78b   :  { %v12977_v1 = vmax.f32 %v12971_v20, 0.0  ;;  %v18288_v20 = vld [vmem:[#allocation16 + $0x90] sm:$0xff]  }
 0x7c1   :  { %v12718_v3 = vpop.f32.mrb[96].mxu0 }
 0x7c2   :  { %v12759_v48 = vpop.f32.mrb[96].mxu1  ;;  %v12720_v53 = vpop.f32.mrb[97].mxu0 }
 0x7c3   :  { %v12760_v11 = vadd.f32 %v12759_v48, %v12718_v3  ;;  %v12761_v27 = vpop.f32.mrb[97].mxu1  ;;  %v12722_v49 = vpop.f32.mrb[98].mxu0  ;;  %v12981_v3 = vadd.f32 %v12980_v61, %v12976_v16  ;;  %v18295_v61 = vld [vmem:[#allocation16 + $0xe0] sm:$0xff]  }
 0x7c4   :  { %v12762_v21 = vadd.f32 %v12761_v27, %v12720_v53  ;;  %v12763_v4 = vpop.f32.mrb[98].mxu1  ;;  %v12723_v17 = vpop.f32.mrb[99].mxu0 }
 0x7c5   :  { %v12764_v30 = vpop.f32.mrb[99].mxu1  ;;  %v12982_v27 = vadd.f32 %v12981_v3, %v12977_v1  ;;  %v18277_v17 = vld [vmem:[#allocation16 + $0x40] sm:$0xff]   ;;  %v18304_v3 = vld [vmem:[#allocation16 + $0xb0] sm:$0xff]  }
 0x7c6   :  { %v18278_v30 = vld [vmem:[#allocation16] sm:$0xff]   ;;  %15584 = vmatprep.subr.bf16.mxu0 %v18277_v17  ;;  %v19203_v17 = vld [vmem:[#allocation13] sm:$0x3f] }
 0x7c7   :  { %15585 = vmatpush3.bf16.msra.mxu0 %v18278_v30  ;;  %v19205_v30 = vld [vmem:[#allocation15] sm:$0x3f] }
 0x801   :  { %v12800_v5 = vpop.f32.mrb[100].mxu0 }
 0x802   :  { %v12841_v0 = vpop.f32.mrb[100].mxu1  ;;  %v12801_v56 = vadd.f32 %v12800_v5, %v12760_v11  ;;  %v12802_v59 = vpop.f32.mrb[101].mxu0  ;;  %v18279_v5 = vld [vmem:[#allocation16 + $0xc0] sm:$0xff]  }
 0x803   :  { %v12843_v37 = vpop.f32.mrb[101].mxu1  ;;  %v12803_v38 = vadd.f32 %v12802_v59, %v12762_v21  ;;  %v12804_v15 = vpop.f32.mrb[102].mxu0  ;;  %15606 = vmatprep.subr.bf16.mxu1 %v18279_v5  ;;  %v18283_v59 = vld [vmem:[#allocation16 + $0xc8] sm:$0xff]   ;;  %v13026_v5 = vrot.slane %v19203_v17, %v19159_v57 }
 0x804   :  { %v12845_v41 = vpop.f32.mrb[102].mxu1  ;;  %v12842_v24 = vadd.f32 %v12841_v0, %v12801_v56  ;;  %v12805_v47 = vpop.f32.mrb[103].mxu0  ;;  %v18280_v0 = vld [vmem:[#allocation16 + $0x80] sm:$0xff]   ;;  %v18281_v56 = vld [vmem:[#allocation16 + $0x48] sm:$0xff]  }
 0x805   :  { %v12846_v60 = vpop.f32.mrb[103].mxu1  ;;  %v12844_v23 = vadd.f32 %v12843_v37, %v12803_v38  ;;  %15607 = vmatpush3.bf16.msra.mxu1 %v18280_v0  ;;  %15586 = vmatprep.subr.bf16.mxu0 %v18281_v56  ;;  %v18285_v37 = vld [vmem:[#allocation16 + $0x50] sm:$0xff]   ;;  %v13034_v0 = vrot.slane %v19203_v17, %v19166_v32  ;;  %v13022_v56 = vrot.slane %v19203_v17, %v19157_v7 }
 0x806   :  { %15608 = vmatprep.subr.bf16.mxu1 %v18283_v59  ;;  %v13030_v59 = vrot.slane %v19203_v17, %v19161_v39 }
 0x841   :  { %v12882_v58 = vpop.f32.mrb[104].mxu0 }
 0x842   :  { %v12923_v18 = vpop.f32.mrb[104].mxu1  ;;  %v12883_v52 = vadd.f32 %v12882_v58, %v12842_v24  ;;  %v12884_v63 = vpop.f32.mrb[105].mxu0 }
 0x843   :  { %v12925_v46 = vpop.f32.mrb[105].mxu1  ;;  %v12885_v26 = vadd.f32 %v12884_v63, %v12844_v23  ;;  %v12886_v35 = vpop.f32.mrb[106].mxu0  ;;  %v18290_v63 = vld [vmem:[#allocation16 + $0x18] sm:$0xff]  }
 0x844   :  { %v12927_v44 = vpop.f32.mrb[106].mxu1  ;;  %v12924_v45 = vadd.f32 %v12923_v18, %v12883_v52  ;;  %v12887_v55 = vpop.f32.mrb[107].mxu0  ;;  %v18286_v18 = vld [vmem:[#allocation16 + $0x10] sm:$0xff]   ;;  %v18289_v52 = vld [vmem:[#allocation16 + $0x58] sm:$0xff]   ;;  %v18293_v35 = vld [vmem:[#allocation16 + $0x60] sm:$0xff]  }
 0x845   :  { %v12928_v40 = vpop.f32.mrb[107].mxu1  ;;  %v12926_v28 = vadd.f32 %v12925_v46, %v12885_v26  ;;  %v18291_v46 = vld [vmem:[#allocation16 + $0xd8] sm:$0xff]   ;;  %v18294_v44 = vld [vmem:[#allocation16 + $0x20] sm:$0xff]   ;;  %v18297_v55 = vld [vmem:[#allocation16 + $0x68] sm:$0xff]  }
 0x846   :  { %v12934_v43 = vadd.f32 %v12924_v45, %v19098_v54  ;;  %v18282_v54 = vld [vmem:[#allocation16 + $0x8] sm:$0xff]   ;;  %v18292_v26 = vld [vmem:[#allocation16 + $0x98] sm:$0xff]   ;;  %v18296_v45 = vld [vmem:[#allocation16 + $0xa0] sm:$0xff]  }
 0x847   :  { %v12935_v10 = vadd.f32 %v12926_v28, %v19100_v42  ;;  %v18284_v42 = vld [vmem:[#allocation16 + $0x88] sm:$0xff]   ;;  %15587 = vmatpush3.bf16.msra.mxu0 %v18282_v54  ;;  %v13042_v54 = vrot.slane %v19203_v17, %v19173_v29 }
 0x848   :  { %v12972_v48 = vadd.f32 %v12957_v62, %v12934_v43  ;;  %15609 = vmatpush3.bf16.msra.mxu1 %v18284_v42  ;;  %15588 = vmatprep.subr.bf16.mxu0 %v18285_v37  ;;  %v18299_v40 = vld [vmem:[#allocation16 + $0xe8] sm:$0xff]   ;;  %v18302_v43 = vld [vmem:[#allocation16 + $0x30] sm:$0xff]   ;;  %v13064_v37 = vrot.slane %v19205_v30, %v19159_v57  ;;  %v13080_v57 = vrot.slane %v19205_v30, %v19173_v29 }
 0x849   :  { %v12973_v11 = vadd.f32 %v12961_v51, %v12935_v10  ;;  %v18298_v62 = vld [vmem:[#allocation16 + $0x28] sm:$0xff]   ;;  %v18301_v51 = vld [vmem:[#allocation16 + $0x70] sm:$0xff]   ;;  %v18305_v10 = vld [vmem:[#allocation16 + $0x78] sm:$0xff]  }
 0x84a   :  { %v12978_v53 = vmax.f32 %v12972_v48, 0.0  ;;  %v18300_v28 = vld [vmem:[#allocation16 + $0xa8] sm:$0xff]   ;;  %v18307_v48 = vld [vmem:[#allocation16 + $0xf8] sm:$0xff]  }
 0x84b   :  { %v12979_v21 = vmax.f32 %v12973_v11, 0.0  ;;  %15589 = vmatpush3.bf16.msra.mxu0 %v18286_v18  ;;  %v18306_v11 = vld [vmem:[#allocation16 + $0x38] sm:$0xff]   ;;  %v18312_v29 = vld [vmem:[#allocation16 + $0x108] sm:$0xff]  }
 0x84c   :  { %v12983_v49 = vadd.f32 %v12982_v27, %v12978_v53  ;;  %15590 = vmatprep.subr.bf16.mxu0 %v18289_v52  ;;  %v18309_v27 = vld [vmem:[#allocation16 + $0x140] sm:$0xff]   ;;  %v18311_v52 = vld [vmem:[#allocation16 + $0x148] sm:$0xff]  }
 0x84e   :  { %v12984_v4 = vadd.f32 %v12983_v49, %v12979_v21 }
 0x84f   :  { %15591 = vmatpush3.bf16.msra.mxu0 %v18290_v63  ;;  %v18313_v63 = vld [vmem:[#allocation16 + $0x150] sm:$0xff]  }
 0x850   :  { %12985 = vadd.xlane.f32.xlu0 %v12984_v4  ;;  %15592 = vmatprep.subr.bf16.mxu0 %v18293_v35  ;;  %v18316_v35 = vld [vmem:[#allocation16 + $0x118] sm:$0xff]  }
 0x853   :  { %15593 = vmatpush3.bf16.msra.mxu0 %v18294_v44  ;;  %v18317_v44 = vld [vmem:[#allocation16 + $0x160] sm:$0xff]  }
 0x854   :  { %15594 = vmatprep.subr.bf16.mxu0 %v18297_v55  ;;  %v18320_v55 = vld [vmem:[#allocation16 + $0x128] sm:$0xff]  }
 0x857   :  { %15595 = vmatpush3.bf16.msra.mxu0 %v18298_v62 }
 0x858   :  { %15596 = vmatprep.subr.bf16.mxu0 %v18301_v51  ;;  %v18322_v51 = vld [vmem:[#allocation16 + $0x130] sm:$0xff]  }
 0x85b   :  { %15597 = vmatpush3.bf16.msra.mxu0 %v18302_v43 }
 0x85c   :  { %15598 = vmatprep.subr.bf16.mxu0 %v18305_v10  ;;  %v18324_v10 = vld [vmem:[#allocation16 + $0x138] sm:$0xff]  }
 0x85f   :  { %15599 = vmatpush3.bf16.msra.mxu0 %v18306_v11 }
 0x860   :  { %15628 = vmatprep.subr.bf16.mxu0 %v18309_v27 }
 0x8dd   :  { %v12986_v38 = vpop.xlane.xlu0 %12985 }
 0x8de   :  { %v12988_v15 = vmul.f32 0.0013020834, %v12986_v38  ;;  %v13072_v38 = vrot.slane %v19205_v30, %v19166_v32 }
 0x8e0   :  { %v19179_v41 = vsub.f32 %v12974_v9, %v12988_v15  ;;  %v19181_v24 = vsub.f32 %v12975_v14, %v12988_v15  ;;  %v19183_v47 = vsub.f32 %v12976_v16, %v12988_v15  ;;  %v19185_v60 = vsub.f32 %v12977_v1, %v12988_v15  ;;  %v18287_v16 = vld [vmem:[#allocation16 + $0xd0] sm:$0xff]  }
 0x8e1   :  { %v19191_v13 = vsub.f32 %v12978_v53, %v12988_v15  ;;  %v19195_v19 = vsub.f32 %v12979_v21, %v12988_v15  ;;  %15610 = vmatprep.subr.bf16.mxu1 %v18287_v16  ;;  %v18303_v1 = vld [vmem:[#allocation16 + $0xf0] sm:$0xff]   ;;  %v18308_v53 = vld [vmem:[#allocation16 + $0xb8] sm:$0xff]   ;;  %v13060_v15 = vrot.slane %v19205_v30, %v19157_v7 }
 0x8e2   :  { %v12995_v23 = vmul.f32 %v19179_v41, %v19179_v41  ;;  %v12996_v2 = vmul.f32 %v19181_v24, %v19181_v24  ;;  %v12997_v36 = vmul.f32 %v19183_v47, %v19183_v47  ;;  %v12998_v25 = vmul.f32 %v19185_v60, %v19185_v60  ;;  %15611 = vmatpush3.bf16.msra.mxu1 %v18288_v20 }
 0x8e3   :  { %v12999_v34 = vmul.f32 %v19191_v13, %v19191_v13  ;;  %v13000_v9 = vmul.f32 %v19195_v19, %v19195_v19  ;;  %15612 = vmatprep.subr.bf16.mxu1 %v18291_v46  ;;  %v18314_v46 = vld [vmem:[#allocation16 + $0x110] sm:$0xff]  }
 0x8e4   :  { %v13001_v22 = vadd.f32 %v12996_v2, %v12995_v23  ;;  %v13068_v23 = vrot.slane %v19205_v30, %v19161_v39 }
 0x8e6   :  { %v13002_v31 = vadd.f32 %v13001_v22, %v12997_v36  ;;  %15613 = vmatpush3.bf16.msra.mxu1 %v18292_v26  ;;  %v18315_v26 = vld [vmem:[#allocation16 + $0x158] sm:$0xff]  }
 0x8e7   :  { %15614 = vmatprep.subr.bf16.mxu1 %v18295_v61  ;;  %v18318_v61 = vld [vmem:[#allocation16 + $0x120] sm:$0xff]  }
 0x8e8   :  { %v13003_v8 = vadd.f32 %v13002_v31, %v12998_v25 }
 0x8ea   :  { %v13004_v14 = vadd.f32 %v13003_v8, %v12999_v34  ;;  %15615 = vmatpush3.bf16.msra.mxu1 %v18296_v45  ;;  %v18319_v45 = vld [vmem:[#allocation16 + $0x168] sm:$0xff]  }
 0x8eb   :  { %15616 = vmatprep.subr.bf16.mxu1 %v18299_v40  ;;  %v18321_v40 = vld [vmem:[#allocation16 + $0x170] sm:$0xff]  }
 0x8ec   :  { %v13005_v58 = vadd.f32 %v13004_v14, %v13000_v9 }
 0x8ee   :  { %13006 = vadd.xlane.f32.xlu0 %v13005_v58  ;;  %15617 = vmatpush3.bf16.msra.mxu1 %v18300_v28  ;;  %v13038_v28 = vrot.slane %v19203_v17, %v19171_v50  ;;  %v18352_v17 = vld [vmem:[#allocation9 + $0x30] sm:$0xff] }
 0x8ef   :  { %15618 = vmatprep.subr.bf16.mxu1 %v18303_v1  ;;  %v18323_v1 = vld [vmem:[#allocation16 + $0x178] sm:$0xff]  }
 0x8f2   :  { %15619 = vmatpush3.bf16.msra.mxu1 %v18304_v3  ;;  %v13076_v3 = vrot.slane %v19205_v30, %v19171_v50  ;;  %v18355_v50 = vld [vmem:[#allocation9 + $0x38] sm:$0xff] }
 0x8f3   :  { %15620 = vmatprep.subr.bf16.mxu1 %v18307_v48 }
 0x8f6   :  { %15621 = vmatpush3.bf16.msra.mxu1 %v18308_v53  ;;  %v18348_v53 = vld [vmem:[#allocation7 + $0x28] sm:$0xff] }
 0x97b   :  { %v13007_v21 = vpop.xlane.xlu0 %13006 }
 0x97c   :  { %v13008_v49 = vmul.f32 0.0013020834, %v13007_v21  ;;  %v18350_v21 = vld [vmem:[#allocation4 + $0x28] sm:$0xff] }
 0x97e   :  { %v13009_v4 = vadd.f32 1e-05, %v13008_v49 }
 0x980   :  { %18325 = vrsqrt.f32 %v13009_v4  ;;  %v18351_v4 = vld [vmem:[#allocation7 + $0x30] sm:$0xff] }
 0x98a   :  { %v18326_v42 = vpop.eup %18325 }
 0x98b   :  { %v13012_v2 = vmul.f32 %v18326_v42, %v19181_v24  ;;  %v13014_v36 = vmul.f32 %v18326_v42, %v19185_v60  ;;  %v13011_v22 = vmul.f32 %v18326_v42, %v19179_v41  ;;  %v13013_v25 = vmul.f32 %v18326_v42, %v19183_v47  ;;  %v18310_v47 = vld [vmem:[#allocation16 + $0x100] sm:$0xff]  }
 0x98c   :  { %v13016_v31 = vmul.f32 %v18326_v42, %v19195_v19  ;;  %v13015_v62 = vmul.f32 %v18326_v42, %v19191_v13  ;;  %v18349_v13 = vld [vmem:[#allocation9 + $0x28] sm:$0xff] }
 0x98d   :  { %v13050_v32 = vmul.f32 %v13026_v5, %v13012_v2  ;;  %v13052_v34 = vmul.f32 %v13034_v0, %v13014_v36  ;;  %v13049_v8 = vmul.f32 %v13022_v56, %v13011_v22  ;;  %v13051_v7 = vmul.f32 %v13030_v59, %v13013_v25  ;;  %v18353_v0 = vld [vmem:[#allocation4 + $0x30] sm:$0xff]  ;;  %v18357_v22 = vld [vmem:[#allocation7 + $0x48] sm:$0xff] }
 0x98e   :  { %v13054_v9 = vmul.f32 %v13042_v54, %v13016_v31  ;;  %v13053_v43 = vmul.f32 %v13038_v28, %v13015_v62  ;;  %v244_v27 = vsub.f32 %v18349_v13, %v18348_v53  ;;  %v176_v49 = vsub.f32 %v18349_v13, %v18350_v21  ;;  %v18354_v54 = vld [vmem:[#allocation7 + $0x38] sm:$0xff]  ;;  %v18358_v25 = vld [vmem:[#allocation9 + $0x48] sm:$0xff] }
 0x98f   :  { %v13088_v14 = vadd.f32 %v13064_v37, %v13050_v32  ;;  %v13090_v39 = vadd.f32 %v13072_v38, %v13052_v34  ;;  %v13087_v58 = vadd.f32 %v13060_v15, %v13049_v8  ;;  %v13089_v24 = vadd.f32 %v13068_v23, %v13051_v7  ;;  %v18356_v37 = vld [vmem:[#allocation4 + $0x38] sm:$0xff]  ;;  %v18359_v34 = vld [vmem:[#allocation4 + $0x48] sm:$0xff] }
 0x990   :  { %v13092_v18 = vadd.f32 %v13080_v57, %v13054_v9  ;;  %v13091_v48 = vadd.f32 %v13076_v3, %v13053_v43  ;;  %v245_v5 = vsub.f32 %v18352_v17, %v18351_v4  ;;  %v177_v56 = vsub.f32 %v18352_v17, %v18353_v0  ;;  %v18360_v9 = vld [vmem:[#allocation7 + $0x40] sm:$0xff]  ;;  %v15528_v17 = vld [vmem:[#allocation18] ss:$0 sm:$0xff] }
 0x991   :  { %v13094_v60 = vpack.c.bf16 %v13088_v14, %v13088_v14  ;;  %v13096_v16 = vpack.c.bf16 %v13090_v39, %v13090_v39  ;;  %v13093_v41 = vpack.c.bf16 %v13087_v58, %v13087_v58  ;;  %v13095_v20 = vpack.c.bf16 %v13089_v24, %v13089_v24  ;;  %v18361_v14 = vld [vmem:[#allocation9 + $0x40] sm:$0xff] }
 0x992   :  { %v13098_v19 = vpack.c.bf16 %v13092_v18, %v13092_v18  ;;  %v13097_v11 = vpack.c.bf16 %v13091_v48, %v13091_v48  ;;  %v256_v59 = vadd.f32 1e-06, %v244_v27  ;;  %v246_v30 = vsub.f32 %v18355_v50, %v18354_v54  ;;  %v18362_v24 = vld [vmem:[#allocation4 + $0x40] sm:$0xff] }
 0x993   :  { %13522 = vmatprep.mubr.bf16.mxu0 %v13094_v60  ;;  %13562 = vmatprep.mubr.bf16.mxu1 %v13096_v16  ;;  %v188_v42 = vadd.f32 1e-06, %v176_v49  ;;  %v178_v38 = vsub.f32 %v18355_v50, %v18356_v37  ;;  %v257_v15 = vadd.f32 1e-06, %v245_v5  ;;  %v189_v23 = vadd.f32 1e-06, %v177_v56 }
 0x994   :  { %13523 = vmatmul.mubr.bf16.vlgmr.msra.gmra.mrb[108].mxu0 %v13093_v41  ;;  %13563 = vmatmul.mubr.bf16.vlgmr.msra.gmra.mrb[108].mxu1 %v13095_v20  ;;  %v268_v2 = vmul.f32 %v256_v59, %v256_v59  ;;  %v258_v36 = vadd.f32 1e-06, %v246_v30  ;;  %v248_v31 = vsub.f32 %v18358_v25, %v18357_v22  ;;  %v180_v8 = vsub.f32 %v18358_v25, %v18359_v34 }
 0x995   :  { %15629 = vmatpush3.bf16.msra.mxu0 %v18310_v47  ;;  %13602 = vmatprep.mubr.bf16.mxu0 %v13098_v19  ;;  %v200_v57 = vmul.f32 %v188_v42, %v188_v42  ;;  %v190_v32 = vadd.f32 1e-06, %v178_v38  ;;  %v269_v7 = vmul.f32 %v257_v15, %v257_v15  ;;  %v247_v39 = vsub.f32 %v18361_v14, %v18360_v9  ;;  %v18367_v15 = vld [vmem:[#allocation4 + $0x50] sm:$0xff] }
 0x996   :  { %15630 = vmatprep.subr.bf16.mxu0 %v18311_v52  ;;  %v201_v58 = vmul.f32 %v189_v23, %v189_v23  ;;  %v179_v18 = vsub.f32 %v18361_v14, %v18362_v24  ;;  %v270_v60 = vmul.f32 %v258_v36, %v258_v36  ;;  %v260_v16 = vadd.f32 1e-06, %v248_v31 }
 0x997   :  { %v279_v41 = vadd.f32 %v18841_v12, %v268_v2  ;;  %v211_v20 = vadd.f32 %v18932_v6, %v200_v57  ;;  %v202_v47 = vmul.f32 %v190_v32, %v190_v32  ;;  %v192_v52 = vadd.f32 1e-06, %v180_v8  ;;  %v18368_v2 = vld [vmem:[#allocation4 + $0x58] sm:$0xff] }
 0x998   :  { %v259_v19 = vadd.f32 1e-06, %v247_v39  ;;  %v19240_v32 = vand.u32 127, %v12938_v33  ;;  %v13649_v9 = vstv %s15577_s9  ;;  %v13721_v24 = vstv %s15581_s4  ;;  %s18581_s4 = scalar_lea.vmem %s13788_s16, 32 }
 0x999   :  { %15631 = vmatpush3.bf16.msra.mxu0 %v18312_v29  ;;  %v280_v29 = vadd.f32 %v279_v41, %v269_v7 }
 0x99a   :  { %15632 = vmatprep.subr.bf16.mxu0 %v18313_v63  ;;  %v191_v63 = vadd.f32 1e-06, %v179_v18  ;;  %v13757_v18 = vstv %s15583_s26  ;;  %vm13650_vm0 = vcmp.eq.s32.totalorder %v19240_v32, %v13649_v9  ;;  %vm13722_vm2 = vcmp.eq.s32.totalorder %v19240_v32, %v13721_v24 }
 0x99b   :  { %vm13758_vm3 = vcmp.eq.s32.totalorder %v19240_v32, %v13757_v18 }
 0x99c   :  { %v203_v62 = vmul.f32 %v191_v63, %v191_v63 }
 0x99d   :  { %15633 = vmatpush3.bf16.msra.mxu0 %v18314_v46  ;;  %v212_v46 = vadd.f32 %v211_v20, %v201_v58  ;;  %v13685_v58 = vstv %s15579_s17  ;;  %s18577_s17 = scalar_lea.vmem %s13788_s16, 16 }
 0x99e   :  { %15634 = vmatprep.subr.bf16.mxu0 %v18315_v26  ;;  %v272_v26 = vmul.f32 %v260_v16, %v260_v16  ;;  %vm13686_vm1 = vcmp.eq.s32.totalorder %v19240_v32, %v13685_v58  ;;  %p18578_p5 = scmp.ne.s32.totalorder %s13788_s16, %s18577_s17  ;;  %p18583_p7 = scmp.lt.s32.totalorder %s18581_s4, %s18577_s17 }
 0x99f   :  { %v213_v28 = vadd.f32 %v212_v46, %v202_v47 }
 0x9a0   :  { %p18584_p8 = por %p18583_p7, %p18582_p6 }
 0x9a1   :  { %15635 = vmatpush3.bf16.msra.mxu0 %v18316_v35  ;;  %v18363_v35 = vld [vmem:[#allocation7 + $0x50] sm:$0xff]  ;;  %v214_v3 = vadd.f32 %v213_v28, %v203_v62 }
 0x9a2   :  { %15636 = vmatprep.subr.bf16.mxu0 %v18317_v44  ;;  %v18364_v44 = vld [vmem:[#allocation9 + $0x50] sm:$0xff]  ;;  %p18585_p9 = pnand %p18584_p8, %p18578_p5 }
 0x9a3   :  { %v181_v23 = vsub.f32 %v18364_v44, %v18367_v15 }
 0x9a5   :  { %15637 = vmatpush3.bf16.msra.mxu0 %v18318_v61  ;;  %v249_v61 = vsub.f32 %v18364_v44, %v18363_v35  ;;  %v193_v22 = vadd.f32 1e-06, %v181_v23 }
 0x9a6   :  { %15638 = vmatprep.subr.bf16.mxu0 %v18319_v45  ;;  %v271_v45 = vmul.f32 %v259_v19, %v259_v19 }
 0x9a7   :  { %v261_v43 = vadd.f32 1e-06, %v249_v61  ;;  %v205_v31 = vmul.f32 %v193_v22, %v193_v22 }
 0x9a9   :  { %15639 = vmatpush3.bf16.msra.mxu0 %v18320_v55  ;;  %v281_v55 = vadd.f32 %v280_v29, %v270_v60  ;;  %v273_v48 = vmul.f32 %v261_v43, %v261_v43 }
 0x9aa   :  { %15640 = vmatprep.subr.bf16.mxu0 %v18321_v40  ;;  %v204_v40 = vmul.f32 %v192_v52, %v192_v52 }
 0x9ab   :  { %v282_v6 = vadd.f32 %v281_v55, %v271_v45 }
 0x9ac   :  { %v215_v53 = vadd.f32 %v214_v3, %v204_v40 }
 0x9ad   :  { %15641 = vmatpush3.bf16.msra.mxu0 %v18322_v51  ;;  %v18365_v51 = vld [vmem:[#allocation7 + $0x58] sm:$0xff] }
 0x9ae   :  { %15642 = vmatprep.subr.bf16.mxu0 %v18323_v1  ;;  %v18366_v1 = vld [vmem:[#allocation9 + $0x58] sm:$0xff]  ;;  %v216_v7 = vadd.f32 %v215_v53, %v205_v31 }
 0x9af   :  { %v250_v12 = vsub.f32 %v18366_v1, %v18365_v51  ;;  %v182_v36 = vsub.f32 %v18366_v1, %v18368_v2 }
 0x9b1   :  { %15643 = vmatpush3.bf16.msra.mxu0 %v18324_v10  ;;  %v262_v10 = vadd.f32 1e-06, %v250_v12  ;;  %v194_v25 = vadd.f32 1e-06, %v182_v36 }
 0x9b3   :  { %v274_v13 = vmul.f32 %v262_v10, %v262_v10  ;;  %v206_v8 = vmul.f32 %v194_v25, %v194_v25 }
 0x9b4   :  { %13603 = vmatmul.mubr.bf16.vlgmr.msra.gmra.mrb[112].mxu0 %v13097_v11  ;;  %v283_v11 = vadd.f32 %v282_v6, %v272_v26 }
 0x9b5   :  { %v217_v33 = vadd.f32 %v216_v7, %v206_v8 }
 0x9b6   :  { %v284_v27 = vadd.f32 %v283_v11, %v273_v48 }
 0x9b8   :  { %v285_v21 = vadd.f32 %v284_v27, %v274_v13 }
 0x9ba   :  { %286 = vadd.xlane.f32.xlu0 %v285_v21  ;;  %v13633_v21 = vstv %s13632_s3 }
 0x9bb   :  { %vm13634_vm10 = vcmp.eq.s32.totalorder %v19240_v32, %v13633_v21 }
 0xa47   :  { %v287_v45 = vpop.xlane.xlu0 %286 }
 0xa48   :  { %18327 = vrsqrt.f32 %v287_v45  ;;  %vm290_vm5 = vcmp.eq.f32.partialorder %v287_v45, inf  ;;  %v293_v12 = vand.u32 2147483648, %v287_v45  ;;  %vm292_vm6 = vcmp.eq.f32.partialorder %v287_v45, 0.0 }
 0xa52   :  { %v18328_v51 = vpop.eup %18327 }
 0xa53   :  { %v289_v1 = vmul.f32 %v18328_v51, %v287_v45 }
 0xa55   :  { %v291_v6 = vsel %vm290_vm5, %v287_v45, %v289_v1 }
 0xa56   :  { %v294_v11 = vsel %vm292_vm6, %v293_v12, %v291_v6 }
 0xa67   :  { %v15600_v49 = vpop.f32.mrb[108].mxu0  ;;  %v15622_v4 = vpop.f32.mrb[108].mxu1 }
 0xa68   :  { %v15601_v5 = vpop.f32.mrb[109].mxu0  ;;  %v15623_v0 = vpop.f32.mrb[109].mxu1 }
 0xa69   :  { %v15602_v56 = vadd.f32 %v15601_v5, %v15600_v49  ;;  %v15624_v59 = vadd.f32 %v15623_v0, %v15622_v4  ;;  %v15603_v54 = vpop.f32.mrb[110].mxu0  ;;  %v15625_v50 = vpop.f32.mrb[110].mxu1  ;;  %v13667_v49 = vstv %s15578_s13  ;;  %v13703_v5 = vstv %s15580_s18 }
 0xa6a   :  { %v15604_v30 = vpop.f32.mrb[111].mxu0  ;;  %v15626_v42 = vpop.f32.mrb[111].mxu1  ;;  %vm13668_vm11 = vcmp.eq.s32.totalorder %v19240_v32, %v13667_v49  ;;  %vm13704_vm12 = vcmp.eq.s32.totalorder %v19240_v32, %v13703_v5  ;;  %v13739_v54 = vstv %s15582_s8 }
 0xa6b   :  { %v13525_v37 = vadd.f32 %v15602_v56, %v15528_v17  ;;  %vm13740_vm13 = vcmp.eq.s32.totalorder %v19240_v32, %v13739_v54 }
 0xa6d   :  { %v13565_v38 = vadd.f32 %v15624_v59, %v13525_v37 }
 0xa87   :  { %v15644_v57 = vpop.f32.mrb[112].mxu0 }
 0xa88   :  { %v15645_v34 = vpop.f32.mrb[113].mxu0 }
 0xa89   :  { %v15646_v14 = vadd.f32 %v15645_v34, %v15644_v57  ;;  %v15647_v39 = vpop.f32.mrb[114].mxu0 }
 0xa8a   :  { %v15648_v60 = vpop.f32.mrb[115].mxu0 }
 0xa8b   :  { %v19242_v16 = vadd.f32 %v15646_v14, %v13565_v38 }
 0xa8d   :  { %13610 = vmax.xlane.f32.xlu1 %v19242_v16  ;;  %v13651_v41 = vsel %vm13650_vm0, %v19242_v16, 0.0  ;;  %v13687_v20 = vsel %vm13686_vm1, %v19242_v16, 0.0  ;;  %v13723_v47 = vsel %vm13722_vm2, %v19242_v16, 0.0  ;;  %v13759_v52 = vsel %vm13758_vm3, %v19242_v16, 0.0 }
 0xa8e   :  { %v13653_v19 = vrot.slane %v13651_v41, 1  ;;  %v13689_v29 = vrot.slane %v13687_v20, 3  ;;  %v13725_v63 = vrot.slane %v13723_v47, 5  ;;  %v13761_v46 = vrot.slane %v13759_v52, 7 }
 0xa8f   :  { %v13635_v56 = vsel %vm13634_vm10, %v19242_v16, 0.0  ;;  %v13669_v59 = vsel %vm13668_vm11, %v19242_v16, 0.0  ;;  %v13705_v42 = vsel %vm13704_vm12, %v19242_v16, 0.0  ;;  %v13741_v15 = vsel %vm13740_vm13, %v19242_v16, 0.0 }
 0xa90   :  { %v19254_v26 = vsel %vm13636_vm4, %v13653_v19, 0.0  ;;  %v19257_v35 = vsel %vm13636_vm4, %v13689_v29, 0.0  ;;  %v19260_v44 = vsel %vm13636_vm4, %v13725_v63, 0.0  ;;  %v19263_v61 = vsel %vm13636_vm4, %v13761_v46, 0.0 }
 0xa91   :  { %218 = vadd.xlane.f32.xlu1 %v217_v33  ;;  %v13637_v50 = vsel %vm13636_vm4, %v13635_v56, 0.0  ;;  %v13671_v30 = vrot.slane %v13669_v59, 2  ;;  %v13707_v38 = vrot.slane %v13705_v42, 4  ;;  %v13743_v2 = vrot.slane %v13741_v15, 6 }
 0xa93   :  { %v13673_v37 = vsel %vm13636_vm4, %v13671_v30, 0.0  ;;  %v13709_v23 = vsel %vm13636_vm4, %v13707_v38, 0.0  ;;  %v13745_v36 = vsel %vm13636_vm4, %v13743_v2, 0.0 }
 0xb1a   :  { %v13611_v55 = vpop.xlane.xlu1 %13610 }
 0xb1b   :  { %v13612_v40 = vsub.f32 %v19242_v16, %v13611_v55 }
 0xb1d   :  { %v13613_v62 = vmul.f32 1.442695, %v13612_v40 }
 0xb1e   :  { %v219_v28 = vpop.xlane.xlu1 %218 }
 0xb1f   :  { %18329 = vpow2.f32 %v13613_v62  ;;  %vm222_vm7 = vcmp.eq.f32.partialorder %v219_v28, inf  ;;  %v225_v10 = vand.u32 2147483648, %v219_v28  ;;  %vm224_vm8 = vcmp.eq.f32.partialorder %v219_v28, 0.0 }
 0xb20   :  { %18331 = vrsqrt.f32 %v219_v28 }
 0xb29   :  { %v18330_v43 = vpop.eup %18329 }
 0xb2a   :  { %v18332_v3 = vpop.eup %18331  ;;  %13615 = vadd.xlane.f32.xlu1 %v18330_v43 }
 0xb2b   :  { %v221_v48 = vmul.f32 %v18332_v3, %v219_v28 }
 0xb2d   :  { %v223_v53 = vsel %vm222_vm7, %v219_v28, %v221_v48 }
 0xb2e   :  { %v226_v13 = vsel %vm224_vm8, %v225_v10, %v223_v53 }
 0xb2f   :  { %v295_v27 = vsub.f32 %v226_v13, %v294_v11 }
 0xb31   :  { %v296_v4 = vadd.f32 1.0, %v295_v27 }
 0xb33   :  { %v297_v17 = vmax.f32 %v296_v4, 0.0 }
 0xb35   :  { %v299_v0 = vsel %vm298_vm9, %v297_v17, 0.0 }
 0xb36   :  { %300 = vadd.xlane.f32.xlu0 %v299_v0 }
 0xb3a   :  { %13638 = vadd.xlane.f32.xlu0 %v13637_v50 }
 0xb3e   :  { %13674 = vadd.xlane.f32.xlu0 %v13673_v37 }
 0xb42   :  { %13710 = vadd.xlane.f32.xlu0 %v13709_v23 }
 0xb46   :  { %13746 = vadd.xlane.f32.xlu0 %v13745_v36 }
 0xbb7   :  { %v13616_v22 = vpop.xlane.xlu1 %13615 }
 0xbb8   :  { %18333 = vlog2.f32 %v13616_v22 }
 0xbc2   :  { %v18334_v25 = vpop.eup %18333 }
 0xbc3   :  { %v13618_v31 = vmul.f32 0.6931472, %v18334_v25  ;;  %v301_v57 = vpop.xlane.xlu0 %300 }
 0xbc4   :  { %v302_v34 = vrot.slane %v301_v57, 4 }
 0xbc5   :  { %v13619_v32 = vadd.f32 %v13618_v31, %v13611_v55 }
 0xbc6   :  { %v303_v8 = vadd.f32 %v302_v34, %v301_v57 }
 0xbc7   :  { %v13622_v7 = vsel %vm298_vm9, %v13619_v32, 0.0  ;;  %v13639_v24 = vpop.xlane.xlu0 %13638 }
 0xbc8   :  { %v304_v9 = vrot.slane %v303_v8, 2  ;;  %13623 = vadd.xlane.f32.xlu1 %v13622_v7  ;;  %v13640_v60 = vrot.slane %v13639_v24, 4 }
 0xbca   :  { %v305_v14 = vadd.f32 %v304_v9, %v303_v8  ;;  %v13641_v33 = vadd.f32 %v13640_v60, %v13639_v24 }
 0xbcb   :  { %v13675_v18 = vpop.xlane.xlu0 %13674 }
 0xbcc   :  { %13656 = vadd.xlane.f32.xlu1 %v19254_v26  ;;  %v306_v39 = vrot.slane %v305_v14, 1  ;;  %v13676_v41 = vrot.slane %v13675_v18, 4  ;;  %v13642_v20 = vrot.slane %v13641_v33, 2 }
 0xbce   :  { %v307_v58 = vadd.f32 %v306_v39, %v305_v14  ;;  %v13677_v47 = vadd.f32 %v13676_v41, %v13675_v18 }
 0xbcf   :  { %v13711_v16 = vpop.xlane.xlu0 %13710 }
 0xbd0   :  { %13692 = vadd.xlane.f32.xlu1 %v19257_v35  ;;  %15650 = vpush %v307_v58  ;;  %v13712_v52 = vrot.slane %v13711_v16, 4  ;;  %v13678_v26 = vrot.slane %v13677_v47, 2 }
 0xbd2   :  { %v13713_v35 = vadd.f32 %v13712_v52, %v13711_v16  ;;  %v13679_v6 = vadd.f32 %v13678_v26, %v13677_v47 }
 0xbd3   :  { %v13747_v29 = vpop.xlane.xlu0 %13746 }
 0xbd4   :  { %13728 = vadd.xlane.f32.xlu1 %v19260_v44  ;;  %v13748_v45 = vrot.slane %v13747_v29, 4  ;;  %v13643_v44 = vadd.f32 %v13642_v20, %v13641_v33  ;;  %v13714_v51 = vrot.slane %v13713_v35, 2  ;;  %v13680_v4 = vrot.slane %v13679_v6, 1 }
 0xbd6   :  { %v13749_v1 = vadd.f32 %v13748_v45, %v13747_v29  ;;  %v13644_v43 = vrot.slane %v13643_v44, 1  ;;  %v13715_v17 = vadd.f32 %v13714_v51, %v13713_v35  ;;  %v13681_v37 = vadd.f32 %v13680_v4, %v13679_v6 }
 0xbd8   :  { %13764 = vadd.xlane.f32.xlu1 %v19263_v61  ;;  %v13750_v27 = vrot.slane %v13749_v1, 2  ;;  %v13645_v49 = vadd.f32 %v13644_v43, %v13643_v44  ;;  %v13716_v38 = vrot.slane %v13715_v17, 1 }
 0xbda   :  { %v13751_v30 = vadd.f32 %v13750_v27, %v13749_v1  ;;  %v13717_v31 = vadd.f32 %v13716_v38, %v13715_v17 }
 0xbdc   :  { %v13752_v57 = vrot.slane %v13751_v30, 1 }
 0xbde   :  { %v13753_v9 = vadd.f32 %v13752_v57, %v13751_v30 }
 0xc01   :  { %s15651_s30 = spop %15650 }
 0xc02   :  { %s311_s15 = smul.f32 0.125, %s15651_s30 }
 0xc55   :  { %v13624_v19 = vpop.xlane.xlu1 %13623 }
 0xc56   :  { %v13625_v63 = vrot.slane %v13624_v19, 4 }
 0xc58   :  { %v13626_v46 = vadd.f32 %v13625_v63, %v13624_v19 }
 0xc59   :  { %v13657_v55 = vpop.xlane.xlu1 %13656 }
 0xc5a   :  { %v13627_v40 = vrot.slane %v13626_v46, 2  ;;  %v13658_v61 = vrot.slane %v13657_v55, 4 }
 0xc5c   :  { %v13659_v62 = vadd.f32 %v13658_v61, %v13657_v55  ;;  %v13628_v28 = vadd.f32 %v13627_v40, %v13626_v46 }
 0xc5d   :  { %v13693_v12 = vpop.xlane.xlu1 %13692 }
 0xc5e   :  { %v13660_v3 = vrot.slane %v13659_v62, 2  ;;  %v13694_v10 = vrot.slane %v13693_v12, 4  ;;  %v13629_v48 = vrot.slane %v13628_v28, 1 }
 0xc60   :  { %v13695_v11 = vadd.f32 %v13694_v10, %v13693_v12  ;;  %v13630_v53 = vadd.f32 %v13629_v48, %v13628_v28  ;;  %v13661_v13 = vadd.f32 %v13660_v3, %v13659_v62 }
 0xc61   :  { %v13729_v21 = vpop.xlane.xlu1 %13728 }
 0xc62   :  { %v13696_v5 = vrot.slane %v13695_v11, 2  ;;  %v13730_v0 = vrot.slane %v13729_v21, 4  ;;  %15652 = vpush %v13630_v53  ;;  %v13662_v56 = vrot.slane %v13661_v13, 1 }
 0xc63   :  { %15654 = vpush %v13645_v49 }
 0xc64   :  { %v13731_v59 = vadd.f32 %v13730_v0, %v13729_v21  ;;  %v13663_v54 = vadd.f32 %v13662_v56, %v13661_v13  ;;  %v13697_v50 = vadd.f32 %v13696_v5, %v13695_v11 }
 0xc65   :  { %v13765_v42 = vpop.xlane.xlu1 %13764 }
 0xc66   :  { %v13732_v15 = vrot.slane %v13731_v59, 2  ;;  %v13766_v23 = vrot.slane %v13765_v42, 4  ;;  %15656 = vpush %v13663_v54  ;;  %v13698_v2 = vrot.slane %v13697_v50, 1 }
 0xc67   :  { %15658 = vpush %v13681_v37 }
 0xc68   :  { %v13767_v36 = vadd.f32 %v13766_v23, %v13765_v42  ;;  %v13699_v22 = vadd.f32 %v13698_v2, %v13697_v50  ;;  %v13733_v25 = vadd.f32 %v13732_v15, %v13731_v59 }
 0xc6a   :  { %v13768_v34 = vrot.slane %v13767_v36, 2  ;;  %15660 = vpush %v13699_v22  ;;  %v13734_v32 = vrot.slane %v13733_v25, 1 }
 0xc6b   :  { %15662 = vpush %v13717_v31 }
 0xc6c   :  { %v13769_v8 = vadd.f32 %v13768_v34, %v13767_v36  ;;  %v13735_v7 = vadd.f32 %v13734_v32, %v13733_v25 }
 0xc6e   :  { %15664 = vpush %v13735_v7  ;;  %v13770_v14 = vrot.slane %v13769_v8, 1 }
 0xc6f   :  { %15666 = vpush %v13753_v9 }
 0xc70   :  { %v13771_v39 = vadd.f32 %v13770_v14, %v13769_v8 }
 0xc72   :  { %15668 = vpush %v13771_v39 }
 0xc93   :  { %s15653_s19 = spop %15652 }
 0xc94   :  { %s15655_s20 = spop %15654 }
 0xc95   :  { %s13647_s21 = ssub.f32 %s15653_s19, %s15655_s20 }
 0xc97   :  { %s15657_s22 = spop %15656 }
 0xc98   :  { %s13665_s23 = ssub.f32 %s13647_s21, %s15657_s22  ;;  %s15659_s2 = spop %15658 }
 0xc9a   :  { %s13683_s5 = ssub.f32 %s13665_s23, %s15659_s2 }
 0xc9b   :  { %s15661_s24 = spop %15660 }
 0xc9c   :  { %s13701_s25 = ssub.f32 %s13683_s5, %s15661_s24  ;;  %s15663_s6 = spop %15662 }
 0xc9e   :  { %s13719_s1 = ssub.f32 %s13701_s25, %s15663_s6 }
 0xc9f   :  { %s15665_s27 = spop %15664 }
 0xca0   :  { %s13737_s28 = ssub.f32 %s13719_s1, %s15665_s27  ;;  %s15667_s0 = spop %15666 }
 0xca2   :  { %s13755_s29 = ssub.f32 %s13737_s28, %s15667_s0 }
 0xca3   :  { %s15669_s12 = spop %15668 }
 0xca4   :  { %s13773_s14 = ssub.f32 %s13755_s29, %s15669_s12 }
 0xca6   :  { %s13776_s7 = smul.f32 0.125, %s13773_s14 }
 0xca8   :  { %s13777_s9 = sadd.f32 %s13776_s7, %s311_s15 }
 0xcaa   :  { %v13778_v58 = vstv %s13777_s9 }
 0xcab   :  { %13780 = vst.msk [vmem:[#allocation19] sm:$0x1] %vm13779_vm14, %v13778_v58 }
 0xcac   :  { %18588 = shalt.err (!%p18585_p9)
}
 0xcad   :  { %s18589_s13 = scalar_lea.hbm %s19306_s10, 16 }
 0xcae   :  { %p18590_p10 = scmp.ne.s32.totalorder %s19306_s10, %s18589_s13  ;;  %p18593_p11 = scmp.lt.u32.totalorder %s18589_s13, %s19306_s10 }
 0xcb0   :  { %p18595_p12 = pnand %p18593_p11, %p18590_p10 }
 0xcb2   :  { %18598 = shalt.err (!%p18595_p12)
}
 0xcb3   :  { %13790 = dma.vmem_to_hbm [thread:$0]  %s13788_s16, 16, %s19306_s10, [#allocation6]  }
 0xcb4   :  { %18611 = dma.done.wait [#allocation6], 16  }
 0xcb5   :  { %18612 = vsyncadd [#allocation6], 4294967280 }
 0xcb6   :  { %13794 = vsyncpa [#allocation5], 1 }
 0xcb7   :  { %13795 = vsyncpa [#allocation8], 1 }
 0xcb8   :  { %13796 = vsyncpa [#allocation11], 1 }
 0xcb9   :  { %13797 = vsyncpa [#allocation14], 1 }
 0xcba   :  { %13798 = vsyncpa [#allocation17], 1 }
 0xcbb   :  { %13799 = vsyncpa [#allocation6], 1 }

</bundles_post_ra>
